<compile_context>
chip_gen: v7x
topology: tpu7x:2x2x1
jax: 0.10.0
libtpu: 0.0.40
codegen_flags: <defaults>
</compile_context>

<pallas_src>
import functools

import jax
import jax.numpy as jnp
from jax import lax
from jax.experimental import pallas as pl
from jax.experimental.pallas import tpu as pltpu

BN_EPS = 1e-5
LANE = 128


def _fold_bn(gamma, beta, mean, var):
    s = gamma / jnp.sqrt(var + BN_EPS)
    return s, beta - mean * s


def _resblock_kernel(*refs, h, wp, cin, cmidp, coutp, has_proj):
    # Ref layout (per grid step = one image):
    #   x_ref:    ((h+5)*wp, cin)  f32   flattened zero-bordered input
    #                                     (2 zero rows/cols of border, row stride wp)
    #   mask_ref: ((h+2)*wp, 1)    f32   1.0 on the valid hidden interior, else 0.0
    #   w1_ref:   (9, cin, cmidp)  bf16  conv1 taps, BN1 scale folded, lane-padded
    #   b1_ref:   (1, cmidp)       f32   BN1 bias (lane-padded)
    #   w2_ref:   (9, cmidp, coutp) bf16 conv2 taps, BN2 scale folded, K & N padded
    #   ws_ref:   (cin, coutp)     bf16  1x1 shortcut (projection case only)
    #   bout_ref: (1, coutp)       f32   BN2 bias (+ shortcut-BN bias)
    #   out_ref:  (h*wp, coutp)    f32   lane-dense output (wrapper slices w/cout)
    #   hid_ref:  ((h+2)*wp+8, cmidp) f32 VMEM scratch for the padded hidden act.
    if has_proj:
        (x_ref, mask_ref, w1_ref, b1_ref, w2_ref, ws_ref, bout_ref,
         out_ref, hid_ref) = refs
    else:
        (x_ref, mask_ref, w1_ref, b1_ref, w2_ref, bout_ref,
         out_ref, hid_ref) = refs
        ws_ref = None

    mh = (h + 2) * wp          # rows of the zero-bordered hidden grid (flat)
    mo = h * wp                # rows of the output grid (flat)

    # ---- conv1 (+ folded BN1): 9 shifted-tap bf16 matmuls over the flattened
    #      zero-bordered input; bias add; ReLU; mask off border / wrap columns.
    acc1 = jnp.zeros((mh, cmidp), jnp.float32)
    for di in range(3):
        for dj in range(3):
            tap = x_ref[pl.ds(di * wp + dj, mh), :].astype(jnp.bfloat16)
            acc1 = acc1 + jnp.dot(tap, w1_ref[3 * di + dj],
                                  preferred_element_type=jnp.float32)
    hid = jnp.maximum(acc1 + b1_ref[...], 0.0) * mask_ref[...]

    # Stage the padded hidden activation in the explicit VMEM scratch (plus a
    # small zeroed tail so the wrap-around garbage columns never read OOB).
    hid_ref[pl.ds(0, mh), :] = hid
    hid_ref[pl.ds(mh, 8), :] = jnp.zeros((8, cmidp), jnp.float32)

    # ---- shortcut (1x1 projection + folded BN, or identity) + combined bias.
    x_in = x_ref[pl.ds(2 * wp + 2, mo), :]          # the unpadded image pixels
    if has_proj:
        acc = jnp.dot(x_in.astype(jnp.bfloat16), ws_ref[...],
                      preferred_element_type=jnp.float32)
    elif coutp == cin:
        acc = x_in.astype(jnp.float32)
    else:
        acc = jnp.concatenate(
            [x_in.astype(jnp.float32),
             jnp.zeros((mo, coutp - cin), jnp.float32)], axis=-1)
    acc = acc + bout_ref[...]

    # ---- conv2 (+ folded BN2): 9 shifted-tap bf16 matmuls over the scratch.
    for di in range(3):
        for dj in range(3):
            tap = hid_ref[pl.ds(di * wp + dj, mo), :].astype(jnp.bfloat16)
            acc = acc + jnp.dot(tap, w2_ref[3 * di + dj],
                                preferred_element_type=jnp.float32)

    out_ref[...] = jnp.maximum(acc, 0.0).astype(out_ref.dtype)


def residual_block(x, params, stride=1):
    """Fused residual block (eval-mode BN).  x: NCHW f32 -> NCHW f32."""
    # TODO(synk): stride > 1 downsampling is not implemented in this kernel.
    assert stride == 1, "stride > 1 is not supported by this Pallas kernel"
    n, cin, h, w = x.shape
    cout = params["w1"].shape[0]
    has_proj = params.get("ws") is not None
    if not has_proj:
        assert cin == cout, "identity shortcut requires cin == cout"

    cmidp = ((cout + LANE - 1) // LANE) * LANE       # lane-padded hidden channels
    coutp = cmidp                                    # lane-padded output channels
    wp = ((w + 4 + 7) // 8) * 8                      # row stride (>= w+4, 8-aligned)
    hxp = h + 5                                      # 2 zero rows above, 3 below
    mh = (h + 2) * wp
    mo = h * wp

    # Zero-bordered input, flattened row-major per image (pure layout plumbing;
    # no data amplification).  TODO(synk): when stacking blocks, keep this
    # NHWC lane-dense layout between blocks instead of round-tripping NCHW.
    x_nhwc = jnp.transpose(x, (0, 2, 3, 1)).astype(jnp.float32)
    xpad = jnp.pad(x_nhwc, ((0, 0), (2, 3), (2, wp - w - 2), (0, 0)))
    x_flat = xpad.reshape(n, hxp * wp, cin)

    # Valid-region mask of the zero-bordered hidden grid: kills the relu(b1)
    # border and the row-wrap garbage columns of the flat-window trick.
    idx = jnp.arange(mh)
    r_i, c_i = idx // wp, idx % wp
    mask = ((r_i >= 1) & (r_i <= h) & (c_i >= 1) & (c_i <= w))
    mask = mask.astype(jnp.float32).reshape(mh, 1)

    s1, b1 = _fold_bn(params["bn1_g"], params["bn1_b"], params["bn1_m"], params["bn1_v"])
    s2, b2 = _fold_bn(params["bn2_g"], params["bn2_b"], params["bn2_m"], params["bn2_v"])

    # conv1 weights: HWIO, BN1 scale folded, output lanes padded, per-tap layout.
    w1_hwio = jnp.transpose(params["w1"], (2, 3, 1, 0)) * s1          # (3,3,cin,cout)
    w1_pad = jnp.pad(w1_hwio, ((0, 0), (0, 0), (0, 0), (0, cmidp - cout)))
    w1_pad = w1_pad.reshape(9, cin, cmidp).astype(jnp.bfloat16)
    b1_pad = jnp.pad(b1, (0, cmidp - cout)).reshape(1, cmidp)

    # conv2 weights: HWIO, BN2 scale folded, K rows and output lanes padded.
    w2_hwio = jnp.transpose(params["w2"], (2, 3, 1, 0)) * s2          # (3,3,cout,cout)
    w2_pad = jnp.pad(w2_hwio, ((0, 0), (0, 0), (0, cmidp - cout), (0, coutp - cout)))
    w2_pad = w2_pad.reshape(9, cmidp, coutp).astype(jnp.bfloat16)

    if has_proj:
        ss, bs = _fold_bn(params["bns_g"], params["bns_b"],
                          params["bns_m"], params["bns_v"])
        ws_io = jnp.transpose(params["ws"][:, :, 0, 0], (1, 0)) * ss  # (cin, cout)
        ws_pad = jnp.pad(ws_io, ((0, 0), (0, coutp - cout))).astype(jnp.bfloat16)
    else:
        bs = jnp.zeros((cout,), jnp.float32)
    bout = jnp.pad(b2 + bs, (0, coutp - cout)).reshape(1, coutp)

    kernel = functools.partial(_resblock_kernel, h=h, wp=wp, cin=cin,
                               cmidp=cmidp, coutp=coutp, has_proj=has_proj)

    in_specs = [
        pl.BlockSpec((None, hxp * wp, cin), lambda b: (b, 0, 0)),
        pl.BlockSpec((mh, 1), lambda b: (0, 0)),
        pl.BlockSpec((9, cin, cmidp), lambda b: (0, 0, 0)),
        pl.BlockSpec((1, cmidp), lambda b: (0, 0)),
        pl.BlockSpec((9, cmidp, coutp), lambda b: (0, 0, 0)),
    ]
    args = [x_flat, mask, w1_pad, b1_pad, w2_pad]
    if has_proj:
        in_specs.append(pl.BlockSpec((cin, coutp), lambda b: (0, 0)))
        args.append(ws_pad)
    in_specs.append(pl.BlockSpec((1, coutp), lambda b: (0, 0)))
    args.append(bout)

    flops = n * 2 * (9 * mh * cin * cmidp + 9 * mo * cmidp * coutp
                     + (mo * cin * coutp if has_proj else 0))
    bytes_accessed = (x_flat.size * 4 + mask.size * 4 + w1_pad.size * 2
                      + b1_pad.size * 4 + w2_pad.size * 2 + bout.size * 4
                      + (ws_pad.size * 2 if has_proj else 0)
                      + n * mo * coutp * 4)

    out = pl.pallas_call(
        kernel,
        out_shape=jax.ShapeDtypeStruct((n, mo, coutp), jnp.float32),
        grid=(n,),
        in_specs=in_specs,
        out_specs=pl.BlockSpec((None, mo, coutp), lambda b: (b, 0, 0)),
        scratch_shapes=[pltpu.VMEM((mh + 8, cmidp), jnp.float32)],
        compiler_params=pltpu.CompilerParams(
            dimension_semantics=("parallel",),
            vmem_limit_bytes=32 * 1024 * 1024),
        cost_estimate=pl.CostEstimate(flops=int(flops), transcendentals=0,
                                      bytes_accessed=int(bytes_accessed)),
    )(*args)

    out = out.reshape(n, h, wp, coutp)[:, :, :w, :cout]
    return jnp.transpose(out, (0, 3, 1, 2))


def residual_block_ref(x, params):
    """Pure-JAX NCHW reference mirroring the PyTorch forward in eval mode."""
    def conv(z, w_oihw, pad):
        return lax.conv_general_dilated(
            z, w_oihw, (1, 1), [(pad, pad), (pad, pad)],
            dimension_numbers=("NCHW", "OIHW", "NCHW"))

    def bn(y, g, b, mu, v):
        r = lambda t: t.reshape(1, -1, 1, 1)
        return (y - r(mu)) * (r(g) / jnp.sqrt(r(v) + BN_EPS)) + r(b)

    hid = jax.nn.relu(bn(conv(x, params["w1"], 1), params["bn1_g"], params["bn1_b"],
                         params["bn1_m"], params["bn1_v"]))
    y = bn(conv(hid, params["w2"], 1), params["bn2_g"], params["bn2_b"],
           params["bn2_m"], params["bn2_v"])
    if params.get("ws") is not None:
        sc = bn(conv(x, params["ws"], 0), params["bns_g"], params["bns_b"],
                params["bns_m"], params["bns_v"])
    else:
        sc = x
    return jax.nn.relu(y + sc)


def make_params(key, cin, cout, stride=1):
    ks = jax.random.split(key, 16)
    f32 = jnp.float32
    p = dict(
        w1=0.1 * jax.random.normal(ks[0], (cout, cin, 3, 3), f32),
        bn1_g=jax.random.uniform(ks[1], (cout,), f32, 0.5, 1.5),
        bn1_b=0.1 * jax.random.normal(ks[2], (cout,), f32),
        bn1_m=0.1 * jax.random.normal(ks[3], (cout,), f32),
        bn1_v=jax.random.uniform(ks[4], (cout,), f32, 0.5, 1.5),
        w2=0.1 * jax.random.normal(ks[5], (cout, cout, 3, 3), f32),
        bn2_g=jax.random.uniform(ks[6], (cout,), f32, 0.5, 1.5),
        bn2_b=0.1 * jax.random.normal(ks[7], (cout,), f32),
        bn2_m=0.1 * jax.random.normal(ks[8], (cout,), f32),
        bn2_v=jax.random.uniform(ks[9], (cout,), f32, 0.5, 1.5),
    )
    if stride != 1 or cin != cout:
        p.update(
            ws=0.1 * jax.random.normal(ks[10], (cout, cin, 1, 1), f32),
            bns_g=jax.random.uniform(ks[11], (cout,), f32, 0.5, 1.5),
            bns_b=0.1 * jax.random.normal(ks[12], (cout,), f32),
            bns_m=0.1 * jax.random.normal(ks[13], (cout,), f32),
            bns_v=jax.random.uniform(ks[14], (cout,), f32, 0.5, 1.5),
        )
    else:
        p["ws"] = None
    return p


if __name__ == "__main__":
    key = jax.random.PRNGKey(0)
    kx, kp = jax.random.split(key)

    # PyTorch-equivalent shapes: batch=2, in_channels=4, out_channels=8,
    # spatial 16x16, stride=1 (projection shortcut active since cin != cout).
    N, CIN, COUT, H, W = 2, 4, 8, 16, 16
    x = jax.random.normal(kx, (N, CIN, H, W), jnp.float32)
    params = make_params(kp, CIN, COUT, stride=1)

    out = jax.block_until_ready(residual_block(x, params))
    ref = residual_block_ref(x, params)

    assert out.shape == (N, COUT, H, W)
    max_err = float(jnp.max(jnp.abs(out - ref)))
    rel_err = float(jnp.linalg.norm(out - ref) / (jnp.linalg.norm(ref) + 1e-12))
    # bf16 MXU operands (f32 accumulation) => expect ~1e-2 accuracy vs f32 ref.
    if not (rel_err < 2e-2 and max_err < 5e-2):
        raise AssertionError(
            f"Pallas kernel mismatch vs reference: max_abs={max_err}, rel_fro={rel_err}")
    print("KERNEL_OK")
</pallas_src>

<mosaic_0001>
module attributes {stable_mosaic.version = 11 : i64} {
  func.func @_resblock_kernel(%arg0: i32, %arg1: memref<1x504x4xf32, #tpu.memory_space<vmem>>, %arg2: memref<432x1xf32, #tpu.memory_space<vmem>>, %arg3: memref<9x4x128xbf16, #tpu.memory_space<vmem>>, %arg4: memref<1x128xf32, #tpu.memory_space<vmem>>, %arg5: memref<9x128x128xbf16, #tpu.memory_space<vmem>>, %arg6: memref<4x128xbf16, #tpu.memory_space<vmem>>, %arg7: memref<1x128xf32, #tpu.memory_space<vmem>>, %arg8: memref<1x384x128xf32, #tpu.memory_space<vmem>>, %arg9: memref<440x128xf32, #tpu.memory_space<vmem>>) attributes {dimension_semantics = [#tpu.dimension_semantics<parallel>], iteration_bounds = array<i64: 2>, scalar_prefetch = 0 : i64, scratch_operands = 1 : i64, tpu.core_type = #tpu.core_type<tc>, window_params = [{transform_indices = @transform_0, window_bounds = array<i64: 1, 504, 4>}, {pipeline_mode = #tpu.pipeline_mode<synchronous>, transform_indices = @transform_1, window_bounds = array<i64: 432, 1>}, {pipeline_mode = #tpu.pipeline_mode<synchronous>, transform_indices = @transform_2, window_bounds = array<i64: 9, 4, 128>}, {pipeline_mode = #tpu.pipeline_mode<synchronous>, transform_indices = @transform_3, window_bounds = array<i64: 1, 128>}, {pipeline_mode = #tpu.pipeline_mode<synchronous>, transform_indices = @transform_4, window_bounds = array<i64: 9, 128, 128>}, {pipeline_mode = #tpu.pipeline_mode<synchronous>, transform_indices = @transform_5, window_bounds = array<i64: 4, 128>}, {pipeline_mode = #tpu.pipeline_mode<synchronous>, transform_indices = @transform_6, window_bounds = array<i64: 1, 128>}, {transform_indices = @transform_7, window_bounds = array<i64: 1, 384, 128>}]} {
    %cst = arith.constant 0.000000e+00 : f32
    %0 = vector.broadcast %cst : f32 to vector<432x128xf32>
    %c0 = arith.constant 0 : index
    %c0_0 = arith.constant 0 : index
    %c0_1 = arith.constant 0 : index
    %1 = vector.load %arg1[%c0, %c0_0, %c0_1] : memref<1x504x4xf32, #tpu.memory_space<vmem>>, vector<1x432x4xf32>
    %2 = vector.shape_cast %1 : vector<1x432x4xf32> to vector<432x4xf32>
    %3 = arith.truncf %2 : vector<432x4xf32> to vector<432x4xbf16>
    %c0_2 = arith.constant 0 : index
    %c0_3 = arith.constant 0 : index
    %c0_4 = arith.constant 0 : index
    %4 = vector.load %arg3[%c0_2, %c0_3, %c0_4] : memref<9x4x128xbf16, #tpu.memory_space<vmem>>, vector<1x4x128xbf16>
    %5 = vector.shape_cast %4 : vector<1x4x128xbf16> to vector<4x128xbf16>
    %cst_5 = arith.constant dense<0.000000e+00> : vector<432x128xf32>
    %6 = tpu.matmul %3, %5, %cst_5 {dimension_numbers = #tpu.dot_dimension_numbers<[1], [0], [0], [1], [0, 0, 1, 1], [], []>} : vector<432x4xbf16>, vector<4x128xbf16>, vector<432x128xf32> -> vector<432x128xf32>
    %7 = arith.addf %0, %6 : vector<432x128xf32>
    %c0_6 = arith.constant 0 : index
    %c1 = arith.constant 1 : index
    %c0_7 = arith.constant 0 : index
    %8 = vector.load %arg1[%c0_6, %c1, %c0_7] : memref<1x504x4xf32, #tpu.memory_space<vmem>>, vector<1x432x4xf32>
    %9 = vector.shape_cast %8 : vector<1x432x4xf32> to vector<432x4xf32>
    %10 = arith.truncf %9 : vector<432x4xf32> to vector<432x4xbf16>
    %c1_8 = arith.constant 1 : index
    %c0_9 = arith.constant 0 : index
    %c0_10 = arith.constant 0 : index
    %11 = vector.load %arg3[%c1_8, %c0_9, %c0_10] : memref<9x4x128xbf16, #tpu.memory_space<vmem>>, vector<1x4x128xbf16>
    %12 = vector.shape_cast %11 : vector<1x4x128xbf16> to vector<4x128xbf16>
    %cst_11 = arith.constant dense<0.000000e+00> : vector<432x128xf32>
    %13 = tpu.matmul %10, %12, %cst_11 {dimension_numbers = #tpu.dot_dimension_numbers<[1], [0], [0], [1], [0, 0, 1, 1], [], []>} : vector<432x4xbf16>, vector<4x128xbf16>, vector<432x128xf32> -> vector<432x128xf32>
    %14 = arith.addf %7, %13 : vector<432x128xf32>
    %c0_12 = arith.constant 0 : index
    %c2 = arith.constant 2 : index
    %c0_13 = arith.constant 0 : index
    %15 = vector.load %arg1[%c0_12, %c2, %c0_13] : memref<1x504x4xf32, #tpu.memory_space<vmem>>, vector<1x432x4xf32>
    %16 = vector.shape_cast %15 : vector<1x432x4xf32> to vector<432x4xf32>
    %17 = arith.truncf %16 : vector<432x4xf32> to vector<432x4xbf16>
    %c2_14 = arith.constant 2 : index
    %c0_15 = arith.constant 0 : index
    %c0_16 = arith.constant 0 : index
    %18 = vector.load %arg3[%c2_14, %c0_15, %c0_16] : memref<9x4x128xbf16, #tpu.memory_space<vmem>>, vector<1x4x128xbf16>
    %19 = vector.shape_cast %18 : vector<1x4x128xbf16> to vector<4x128xbf16>
    %cst_17 = arith.constant dense<0.000000e+00> : vector<432x128xf32>
    %20 = tpu.matmul %17, %19, %cst_17 {dimension_numbers = #tpu.dot_dimension_numbers<[1], [0], [0], [1], [0, 0, 1, 1], [], []>} : vector<432x4xbf16>, vector<4x128xbf16>, vector<432x128xf32> -> vector<432x128xf32>
    %21 = arith.addf %14, %20 : vector<432x128xf32>
    %c0_18 = arith.constant 0 : index
    %c24 = arith.constant 24 : index
    %c0_19 = arith.constant 0 : index
    %22 = vector.load %arg1[%c0_18, %c24, %c0_19] : memref<1x504x4xf32, #tpu.memory_space<vmem>>, vector<1x432x4xf32>
    %23 = vector.shape_cast %22 : vector<1x432x4xf32> to vector<432x4xf32>
    %24 = arith.truncf %23 : vector<432x4xf32> to vector<432x4xbf16>
    %c3 = arith.constant 3 : index
    %c0_20 = arith.constant 0 : index
    %c0_21 = arith.constant 0 : index
    %25 = vector.load %arg3[%c3, %c0_20, %c0_21] : memref<9x4x128xbf16, #tpu.memory_space<vmem>>, vector<1x4x128xbf16>
    %26 = vector.shape_cast %25 : vector<1x4x128xbf16> to vector<4x128xbf16>
    %cst_22 = arith.constant dense<0.000000e+00> : vector<432x128xf32>
    %27 = tpu.matmul %24, %26, %cst_22 {dimension_numbers = #tpu.dot_dimension_numbers<[1], [0], [0], [1], [0, 0, 1, 1], [], []>} : vector<432x4xbf16>, vector<4x128xbf16>, vector<432x128xf32> -> vector<432x128xf32>
    %28 = arith.addf %21, %27 : vector<432x128xf32>
    %c0_23 = arith.constant 0 : index
    %c25 = arith.constant 25 : index
    %c0_24 = arith.constant 0 : index
    %29 = vector.load %arg1[%c0_23, %c25, %c0_24] : memref<1x504x4xf32, #tpu.memory_space<vmem>>, vector<1x432x4xf32>
    %30 = vector.shape_cast %29 : vector<1x432x4xf32> to vector<432x4xf32>
    %31 = arith.truncf %30 : vector<432x4xf32> to vector<432x4xbf16>
    %c4 = arith.constant 4 : index
    %c0_25 = arith.constant 0 : index
    %c0_26 = arith.constant 0 : index
    %32 = vector.load %arg3[%c4, %c0_25, %c0_26] : memref<9x4x128xbf16, #tpu.memory_space<vmem>>, vector<1x4x128xbf16>
    %33 = vector.shape_cast %32 : vector<1x4x128xbf16> to vector<4x128xbf16>
    %cst_27 = arith.constant dense<0.000000e+00> : vector<432x128xf32>
    %34 = tpu.matmul %31, %33, %cst_27 {dimension_numbers = #tpu.dot_dimension_numbers<[1], [0], [0], [1], [0, 0, 1, 1], [], []>} : vector<432x4xbf16>, vector<4x128xbf16>, vector<432x128xf32> -> vector<432x128xf32>
    %35 = arith.addf %28, %34 : vector<432x128xf32>
    %c0_28 = arith.constant 0 : index
    %c26 = arith.constant 26 : index
    %c0_29 = arith.constant 0 : index
    %36 = vector.load %arg1[%c0_28, %c26, %c0_29] : memref<1x504x4xf32, #tpu.memory_space<vmem>>, vector<1x432x4xf32>
    %37 = vector.shape_cast %36 : vector<1x432x4xf32> to vector<432x4xf32>
    %38 = arith.truncf %37 : vector<432x4xf32> to vector<432x4xbf16>
    %c5 = arith.constant 5 : index
    %c0_30 = arith.constant 0 : index
    %c0_31 = arith.constant 0 : index
    %39 = vector.load %arg3[%c5, %c0_30, %c0_31] : memref<9x4x128xbf16, #tpu.memory_space<vmem>>, vector<1x4x128xbf16>
    %40 = vector.shape_cast %39 : vector<1x4x128xbf16> to vector<4x128xbf16>
    %cst_32 = arith.constant dense<0.000000e+00> : vector<432x128xf32>
    %41 = tpu.matmul %38, %40, %cst_32 {dimension_numbers = #tpu.dot_dimension_numbers<[1], [0], [0], [1], [0, 0, 1, 1], [], []>} : vector<432x4xbf16>, vector<4x128xbf16>, vector<432x128xf32> -> vector<432x128xf32>
    %42 = arith.addf %35, %41 : vector<432x128xf32>
    %c0_33 = arith.constant 0 : index
    %c48 = arith.constant 48 : index
    %c0_34 = arith.constant 0 : index
    %43 = vector.load %arg1[%c0_33, %c48, %c0_34] : memref<1x504x4xf32, #tpu.memory_space<vmem>>, vector<1x432x4xf32>
    %44 = vector.shape_cast %43 : vector<1x432x4xf32> to vector<432x4xf32>
    %45 = arith.truncf %44 : vector<432x4xf32> to vector<432x4xbf16>
    %c6 = arith.constant 6 : index
    %c0_35 = arith.constant 0 : index
    %c0_36 = arith.constant 0 : index
    %46 = vector.load %arg3[%c6, %c0_35, %c0_36] : memref<9x4x128xbf16, #tpu.memory_space<vmem>>, vector<1x4x128xbf16>
    %47 = vector.shape_cast %46 : vector<1x4x128xbf16> to vector<4x128xbf16>
    %cst_37 = arith.constant dense<0.000000e+00> : vector<432x128xf32>
    %48 = tpu.matmul %45, %47, %cst_37 {dimension_numbers = #tpu.dot_dimension_numbers<[1], [0], [0], [1], [0, 0, 1, 1], [], []>} : vector<432x4xbf16>, vector<4x128xbf16>, vector<432x128xf32> -> vector<432x128xf32>
    %49 = arith.addf %42, %48 : vector<432x128xf32>
    %c0_38 = arith.constant 0 : index
    %c49 = arith.constant 49 : index
    %c0_39 = arith.constant 0 : index
    %50 = vector.load %arg1[%c0_38, %c49, %c0_39] : memref<1x504x4xf32, #tpu.memory_space<vmem>>, vector<1x432x4xf32>
    %51 = vector.shape_cast %50 : vector<1x432x4xf32> to vector<432x4xf32>
    %52 = arith.truncf %51 : vector<432x4xf32> to vector<432x4xbf16>
    %c7 = arith.constant 7 : index
    %c0_40 = arith.constant 0 : index
    %c0_41 = arith.constant 0 : index
    %53 = vector.load %arg3[%c7, %c0_40, %c0_41] : memref<9x4x128xbf16, #tpu.memory_space<vmem>>, vector<1x4x128xbf16>
    %54 = vector.shape_cast %53 : vector<1x4x128xbf16> to vector<4x128xbf16>
    %cst_42 = arith.constant dense<0.000000e+00> : vector<432x128xf32>
    %55 = tpu.matmul %52, %54, %cst_42 {dimension_numbers = #tpu.dot_dimension_numbers<[1], [0], [0], [1], [0, 0, 1, 1], [], []>} : vector<432x4xbf16>, vector<4x128xbf16>, vector<432x128xf32> -> vector<432x128xf32>
    %56 = arith.addf %49, %55 : vector<432x128xf32>
    %c0_43 = arith.constant 0 : index
    %c50 = arith.constant 50 : index
    %c0_44 = arith.constant 0 : index
    %57 = vector.load %arg1[%c0_43, %c50, %c0_44] : memref<1x504x4xf32, #tpu.memory_space<vmem>>, vector<1x432x4xf32>
    %58 = vector.shape_cast %57 : vector<1x432x4xf32> to vector<432x4xf32>
    %59 = arith.truncf %58 : vector<432x4xf32> to vector<432x4xbf16>
    %c8 = arith.constant 8 : index
    %c0_45 = arith.constant 0 : index
    %c0_46 = arith.constant 0 : index
    %60 = vector.load %arg3[%c8, %c0_45, %c0_46] : memref<9x4x128xbf16, #tpu.memory_space<vmem>>, vector<1x4x128xbf16>
    %61 = vector.shape_cast %60 : vector<1x4x128xbf16> to vector<4x128xbf16>
    %cst_47 = arith.constant dense<0.000000e+00> : vector<432x128xf32>
    %62 = tpu.matmul %59, %61, %cst_47 {dimension_numbers = #tpu.dot_dimension_numbers<[1], [0], [0], [1], [0, 0, 1, 1], [], []>} : vector<432x4xbf16>, vector<4x128xbf16>, vector<432x128xf32> -> vector<432x128xf32>
    %63 = arith.addf %56, %62 : vector<432x128xf32>
    %c0_48 = arith.constant 0 : index
    %c0_49 = arith.constant 0 : index
    %64 = vector.load %arg4[%c0_48, %c0_49] : memref<1x128xf32, #tpu.memory_space<vmem>>, vector<1x128xf32>
    %65 = vector.broadcast %64 : vector<1x128xf32> to vector<432x128xf32>
    %66 = arith.addf %63, %65 : vector<432x128xf32>
    %cst_50 = arith.constant 0.000000e+00 : f32
    %67 = vector.broadcast %cst_50 : f32 to vector<432x128xf32>
    %68 = arith.maximumf %66, %67 : vector<432x128xf32>
    %c0_51 = arith.constant 0 : index
    %c0_52 = arith.constant 0 : index
    %69 = vector.load %arg2[%c0_51, %c0_52] : memref<432x1xf32, #tpu.memory_space<vmem>>, vector<432x1xf32>
    %70 = vector.broadcast %69 : vector<432x1xf32> to vector<432x128xf32>
    %71 = arith.mulf %68, %70 : vector<432x128xf32>
    %c0_53 = arith.constant 0 : index
    %c0_54 = arith.constant 0 : index
    %72 = vector.load %arg9[%c0_53, %c0_54] : memref<440x128xf32, #tpu.memory_space<vmem>>, vector<432x128xf32>
    tpu.vector_store %arg9[%c0_53, %c0_54], %71 {strides = array<i32>} : memref<440x128xf32, #tpu.memory_space<vmem>>, vector<432x128xf32>,
    %cst_55 = arith.constant 0.000000e+00 : f32
    %73 = vector.broadcast %cst_55 : f32 to vector<8x128xf32>
    %c432 = arith.constant 432 : index
    %c0_56 = arith.constant 0 : index
    %74 = vector.load %arg9[%c432, %c0_56] : memref<440x128xf32, #tpu.memory_space<vmem>>, vector<8x128xf32>
    tpu.vector_store %arg9[%c432, %c0_56], %73 {strides = array<i32>} : memref<440x128xf32, #tpu.memory_space<vmem>>, vector<8x128xf32>,
    %c0_57 = arith.constant 0 : index
    %c50_58 = arith.constant 50 : index
    %c0_59 = arith.constant 0 : index
    %75 = vector.load %arg1[%c0_57, %c50_58, %c0_59] : memref<1x504x4xf32, #tpu.memory_space<vmem>>, vector<1x384x4xf32>
    %76 = vector.shape_cast %75 : vector<1x384x4xf32> to vector<384x4xf32>
    %77 = arith.truncf %76 : vector<384x4xf32> to vector<384x4xbf16>
    %c0_60 = arith.constant 0 : index
    %c0_61 = arith.constant 0 : index
    %78 = vector.load %arg6[%c0_60, %c0_61] : memref<4x128xbf16, #tpu.memory_space<vmem>>, vector<4x128xbf16>
    %cst_62 = arith.constant dense<0.000000e+00> : vector<384x128xf32>
    %79 = tpu.matmul %77, %78, %cst_62 {dimension_numbers = #tpu.dot_dimension_numbers<[1], [0], [0], [1], [0, 0, 1, 1], [], []>} : vector<384x4xbf16>, vector<4x128xbf16>, vector<384x128xf32> -> vector<384x128xf32>
    %c0_63 = arith.constant 0 : index
    %c0_64 = arith.constant 0 : index
    %80 = vector.load %arg7[%c0_63, %c0_64] : memref<1x128xf32, #tpu.memory_space<vmem>>, vector<1x128xf32>
    %81 = vector.broadcast %80 : vector<1x128xf32> to vector<384x128xf32>
    %82 = arith.addf %79, %81 : vector<384x128xf32>
    %c0_65 = arith.constant 0 : index
    %c0_66 = arith.constant 0 : index
    %83 = vector.load %arg9[%c0_65, %c0_66] : memref<440x128xf32, #tpu.memory_space<vmem>>, vector<384x128xf32>
    %84 = arith.truncf %83 : vector<384x128xf32> to vector<384x128xbf16>
    %c0_67 = arith.constant 0 : index
    %c0_68 = arith.constant 0 : index
    %c0_69 = arith.constant 0 : index
    %85 = vector.load %arg5[%c0_67, %c0_68, %c0_69] : memref<9x128x128xbf16, #tpu.memory_space<vmem>>, vector<1x128x128xbf16>
    %86 = vector.shape_cast %85 : vector<1x128x128xbf16> to vector<128x128xbf16>
    %cst_70 = arith.constant dense<0.000000e+00> : vector<384x128xf32>
    %87 = tpu.matmul %84, %86, %cst_70 {dimension_numbers = #tpu.dot_dimension_numbers<[1], [0], [0], [1], [0, 0, 1, 1], [], []>} : vector<384x128xbf16>, vector<128x128xbf16>, vector<384x128xf32> -> vector<384x128xf32>
    %88 = arith.addf %82, %87 : vector<384x128xf32>
    %c1_71 = arith.constant 1 : index
    %c0_72 = arith.constant 0 : index
    %89 = vector.load %arg9[%c1_71, %c0_72] : memref<440x128xf32, #tpu.memory_space<vmem>>, vector<384x128xf32>
    %90 = arith.truncf %89 : vector<384x128xf32> to vector<384x128xbf16>
    %c1_73 = arith.constant 1 : index
    %c0_74 = arith.constant 0 : index
    %c0_75 = arith.constant 0 : index
    %91 = vector.load %arg5[%c1_73, %c0_74, %c0_75] : memref<9x128x128xbf16, #tpu.memory_space<vmem>>, vector<1x128x128xbf16>
    %92 = vector.shape_cast %91 : vector<1x128x128xbf16> to vector<128x128xbf16>
    %cst_76 = arith.constant dense<0.000000e+00> : vector<384x128xf32>
    %93 = tpu.matmul %90, %92, %cst_76 {dimension_numbers = #tpu.dot_dimension_numbers<[1], [0], [0], [1], [0, 0, 1, 1], [], []>} : vector<384x128xbf16>, vector<128x128xbf16>, vector<384x128xf32> -> vector<384x128xf32>
    %94 = arith.addf %88, %93 : vector<384x128xf32>
    %c2_77 = arith.constant 2 : index
    %c0_78 = arith.constant 0 : index
    %95 = vector.load %arg9[%c2_77, %c0_78] : memref<440x128xf32, #tpu.memory_space<vmem>>, vector<384x128xf32>
    %96 = arith.truncf %95 : vector<384x128xf32> to vector<384x128xbf16>
    %c2_79 = arith.constant 2 : index
    %c0_80 = arith.constant 0 : index
    %c0_81 = arith.constant 0 : index
    %97 = vector.load %arg5[%c2_79, %c0_80, %c0_81] : memref<9x128x128xbf16, #tpu.memory_space<vmem>>, vector<1x128x128xbf16>
    %98 = vector.shape_cast %97 : vector<1x128x128xbf16> to vector<128x128xbf16>
    %cst_82 = arith.constant dense<0.000000e+00> : vector<384x128xf32>
    %99 = tpu.matmul %96, %98, %cst_82 {dimension_numbers = #tpu.dot_dimension_numbers<[1], [0], [0], [1], [0, 0, 1, 1], [], []>} : vector<384x128xbf16>, vector<128x128xbf16>, vector<384x128xf32> -> vector<384x128xf32>
    %100 = arith.addf %94, %99 : vector<384x128xf32>
    %c24_83 = arith.constant 24 : index
    %c0_84 = arith.constant 0 : index
    %101 = vector.load %arg9[%c24_83, %c0_84] : memref<440x128xf32, #tpu.memory_space<vmem>>, vector<384x128xf32>
    %102 = arith.truncf %101 : vector<384x128xf32> to vector<384x128xbf16>
    %c3_85 = arith.constant 3 : index
    %c0_86 = arith.constant 0 : index
    %c0_87 = arith.constant 0 : index
    %103 = vector.load %arg5[%c3_85, %c0_86, %c0_87] : memref<9x128x128xbf16, #tpu.memory_space<vmem>>, vector<1x128x128xbf16>
    %104 = vector.shape_cast %103 : vector<1x128x128xbf16> to vector<128x128xbf16>
    %cst_88 = arith.constant dense<0.000000e+00> : vector<384x128xf32>
    %105 = tpu.matmul %102, %104, %cst_88 {dimension_numbers = #tpu.dot_dimension_numbers<[1], [0], [0], [1], [0, 0, 1, 1], [], []>} : vector<384x128xbf16>, vector<128x128xbf16>, vector<384x128xf32> -> vector<384x128xf32>
    %106 = arith.addf %100, %105 : vector<384x128xf32>
    %c25_89 = arith.constant 25 : index
    %c0_90 = arith.constant 0 : index
    %107 = vector.load %arg9[%c25_89, %c0_90] : memref<440x128xf32, #tpu.memory_space<vmem>>, vector<384x128xf32>
    %108 = arith.truncf %107 : vector<384x128xf32> to vector<384x128xbf16>
    %c4_91 = arith.constant 4 : index
    %c0_92 = arith.constant 0 : index
    %c0_93 = arith.constant 0 : index
    %109 = vector.load %arg5[%c4_91, %c0_92, %c0_93] : memref<9x128x128xbf16, #tpu.memory_space<vmem>>, vector<1x128x128xbf16>
    %110 = vector.shape_cast %109 : vector<1x128x128xbf16> to vector<128x128xbf16>
    %cst_94 = arith.constant dense<0.000000e+00> : vector<384x128xf32>
    %111 = tpu.matmul %108, %110, %cst_94 {dimension_numbers = #tpu.dot_dimension_numbers<[1], [0], [0], [1], [0, 0, 1, 1], [], []>} : vector<384x128xbf16>, vector<128x128xbf16>, vector<384x128xf32> -> vector<384x128xf32>
    %112 = arith.addf %106, %111 : vector<384x128xf32>
    %c26_95 = arith.constant 26 : index
    %c0_96 = arith.constant 0 : index
    %113 = vector.load %arg9[%c26_95, %c0_96] : memref<440x128xf32, #tpu.memory_space<vmem>>, vector<384x128xf32>
    %114 = arith.truncf %113 : vector<384x128xf32> to vector<384x128xbf16>
    %c5_97 = arith.constant 5 : index
    %c0_98 = arith.constant 0 : index
    %c0_99 = arith.constant 0 : index
    %115 = vector.load %arg5[%c5_97, %c0_98, %c0_99] : memref<9x128x128xbf16, #tpu.memory_space<vmem>>, vector<1x128x128xbf16>
    %116 = vector.shape_cast %115 : vector<1x128x128xbf16> to vector<128x128xbf16>
    %cst_100 = arith.constant dense<0.000000e+00> : vector<384x128xf32>
    %117 = tpu.matmul %114, %116, %cst_100 {dimension_numbers = #tpu.dot_dimension_numbers<[1], [0], [0], [1], [0, 0, 1, 1], [], []>} : vector<384x128xbf16>, vector<128x128xbf16>, vector<384x128xf32> -> vector<384x128xf32>
    %118 = arith.addf %112, %117 : vector<384x128xf32>
    %c48_101 = arith.constant 48 : index
    %c0_102 = arith.constant 0 : index
    %119 = vector.load %arg9[%c48_101, %c0_102] : memref<440x128xf32, #tpu.memory_space<vmem>>, vector<384x128xf32>
    %120 = arith.truncf %119 : vector<384x128xf32> to vector<384x128xbf16>
    %c6_103 = arith.constant 6 : index
    %c0_104 = arith.constant 0 : index
    %c0_105 = arith.constant 0 : index
    %121 = vector.load %arg5[%c6_103, %c0_104, %c0_105] : memref<9x128x128xbf16, #tpu.memory_space<vmem>>, vector<1x128x128xbf16>
    %122 = vector.shape_cast %121 : vector<1x128x128xbf16> to vector<128x128xbf16>
    %cst_106 = arith.constant dense<0.000000e+00> : vector<384x128xf32>
    %123 = tpu.matmul %120, %122, %cst_106 {dimension_numbers = #tpu.dot_dimension_numbers<[1], [0], [0], [1], [0, 0, 1, 1], [], []>} : vector<384x128xbf16>, vector<128x128xbf16>, vector<384x128xf32> -> vector<384x128xf32>
    %124 = arith.addf %118, %123 : vector<384x128xf32>
    %c49_107 = arith.constant 49 : index
    %c0_108 = arith.constant 0 : index
    %125 = vector.load %arg9[%c49_107, %c0_108] : memref<440x128xf32, #tpu.memory_space<vmem>>, vector<384x128xf32>
    %126 = arith.truncf %125 : vector<384x128xf32> to vector<384x128xbf16>
    %c7_109 = arith.constant 7 : index
    %c0_110 = arith.constant 0 : index
    %c0_111 = arith.constant 0 : index
    %127 = vector.load %arg5[%c7_109, %c0_110, %c0_111] : memref<9x128x128xbf16, #tpu.memory_space<vmem>>, vector<1x128x128xbf16>
    %128 = vector.shape_cast %127 : vector<1x128x128xbf16> to vector<128x128xbf16>
    %cst_112 = arith.constant dense<0.000000e+00> : vector<384x128xf32>
    %129 = tpu.matmul %126, %128, %cst_112 {dimension_numbers = #tpu.dot_dimension_numbers<[1], [0], [0], [1], [0, 0, 1, 1], [], []>} : vector<384x128xbf16>, vector<128x128xbf16>, vector<384x128xf32> -> vector<384x128xf32>
    %130 = arith.addf %124, %129 : vector<384x128xf32>
    %c50_113 = arith.constant 50 : index
    %c0_114 = arith.constant 0 : index
    %131 = vector.load %arg9[%c50_113, %c0_114] : memref<440x128xf32, #tpu.memory_space<vmem>>, vector<384x128xf32>
    %132 = arith.truncf %131 : vector<384x128xf32> to vector<384x128xbf16>
    %c8_115 = arith.constant 8 : index
    %c0_116 = arith.constant 0 : index
    %c0_117 = arith.constant 0 : index
    %133 = vector.load %arg5[%c8_115, %c0_116, %c0_117] : memref<9x128x128xbf16, #tpu.memory_space<vmem>>, vector<1x128x128xbf16>
    %134 = vector.shape_cast %133 : vector<1x128x128xbf16> to vector<128x128xbf16>
    %cst_118 = arith.constant dense<0.000000e+00> : vector<384x128xf32>
    %135 = tpu.matmul %132, %134, %cst_118 {dimension_numbers = #tpu.dot_dimension_numbers<[1], [0], [0], [1], [0, 0, 1, 1], [], []>} : vector<384x128xbf16>, vector<128x128xbf16>, vector<384x128xf32> -> vector<384x128xf32>
    %136 = arith.addf %130, %135 : vector<384x128xf32>
    %cst_119 = arith.constant 0.000000e+00 : f32
    %137 = vector.broadcast %cst_119 : f32 to vector<384x128xf32>
    %138 = arith.maximumf %136, %137 : vector<384x128xf32>
    %c0_120 = arith.constant 0 : index
    %c0_121 = arith.constant 0 : index
    %c0_122 = arith.constant 0 : index
    %139 = vector.load %arg8[%c0_120, %c0_121, %c0_122] : memref<1x384x128xf32, #tpu.memory_space<vmem>>, vector<1x384x128xf32>
    %140 = vector.shape_cast %139 : vector<1x384x128xf32> to vector<384x128xf32>
    %141 = vector.shape_cast %138 : vector<384x128xf32> to vector<1x384x128xf32>
    tpu.vector_store %arg8[%c0_120, %c0_121, %c0_122], %141 {strides = array<i32>} : memref<1x384x128xf32, #tpu.memory_space<vmem>>, vector<1x384x128xf32>,
    return
  }
  func.func @transform_0(%arg0: i32) -> (i32, i32, i32) {
    %c0_i32 = arith.constant 0 : i32
    %c0_i32_0 = arith.constant 0 : i32
    %c0_i32_1 = arith.constant 0 : i32
    return %arg0, %c0_i32, %c0_i32_0 : i32, i32, i32
  }
  func.func @transform_1(%arg0: i32) -> (i32, i32) {
    %c0_i32 = arith.constant 0 : i32
    %c0_i32_0 = arith.constant 0 : i32
    %c0_i32_1 = arith.constant 0 : i32
    return %c0_i32, %c0_i32_0 : i32, i32
  }
  func.func @transform_2(%arg0: i32) -> (i32, i32, i32) {
    %c0_i32 = arith.constant 0 : i32
    %c0_i32_0 = arith.constant 0 : i32
    %c0_i32_1 = arith.constant 0 : i32
    %c0_i32_2 = arith.constant 0 : i32
    return %c0_i32, %c0_i32_0, %c0_i32_1 : i32, i32, i32
  }
  func.func @transform_3(%arg0: i32) -> (i32, i32) {
    %c0_i32 = arith.constant 0 : i32
    %c0_i32_0 = arith.constant 0 : i32
    %c0_i32_1 = arith.constant 0 : i32
    return %c0_i32, %c0_i32_0 : i32, i32
  }
  func.func @transform_4(%arg0: i32) -> (i32, i32, i32) {
    %c0_i32 = arith.constant 0 : i32
    %c0_i32_0 = arith.constant 0 : i32
    %c0_i32_1 = arith.constant 0 : i32
    %c0_i32_2 = arith.constant 0 : i32
    return %c0_i32, %c0_i32_0, %c0_i32_1 : i32, i32, i32
  }
  func.func @transform_5(%arg0: i32) -> (i32, i32) {
    %c0_i32 = arith.constant 0 : i32
    %c0_i32_0 = arith.constant 0 : i32
    %c0_i32_1 = arith.constant 0 : i32
    return %c0_i32, %c0_i32_0 : i32, i32
  }
  func.func @transform_6(%arg0: i32) -> (i32, i32) {
    %c0_i32 = arith.constant 0 : i32
    %c0_i32_0 = arith.constant 0 : i32
    %c0_i32_1 = arith.constant 0 : i32
    return %c0_i32, %c0_i32_0 : i32, i32
  }
  func.func @transform_7(%arg0: i32) -> (i32, i32, i32) {
    %c0_i32 = arith.constant 0 : i32
    %c0_i32_0 = arith.constant 0 : i32
    %c0_i32_1 = arith.constant 0 : i32
    return %arg0, %c0_i32, %c0_i32_0 : i32, i32, i32
  }
}

</mosaic_0001>

<bundles_post_ra>
// kernel: tpu_custom_call.1
= control target key start
LH: loop header
LB: loop body
LE: loop exit
PB: predicated region body
PF: predicated region fallthrough
CT: control target
= control target key end

     0   :  { %12 = vsyncpa [#allocation4], 0  ;;  %s16843_s0 = inlined_call_operand.vmem [shape: f32[2,504,4], index: 0, kind: input, shape index: {}]   ;;  %s16844_s1 = inlined_call_operand.vmem [shape: f32[432,1], index: 1, kind: input, shape index: {}]   ;;  %s16845_s2 = inlined_call_operand.vmem [shape: bf16[9,4,128], index: 2, kind: input, shape index: {}]   ;;  %s16846_s3 = inlined_call_operand.vmem [shape: f32[1,128], index: 3, kind: input, shape index: {}]   ;;  %s16847_s4 = inlined_call_operand.vmem [shape: bf16[9,128,128], index: 4, kind: input, shape index: {}]   ;;  %s16848_s5 = inlined_call_operand.vmem [shape: bf16[4,128], index: 5, kind: input, shape index: {}]   ;;  %s16849_s6 = inlined_call_operand.vmem [shape: f32[1,128], index: 6, kind: input, shape index: {}]   ;;  %s16850_s7 = inlined_call_operand.hbm [shape: f32[2,384,128], index: 7, kind: output, shape index: {}]  }
   0x1   :  { %14 = vsyncpa [#allocation4 + $0x1], 0  ;;  %s12622_s24 = smov 0   ;;  %s12624_s25 = smov 0  }
   0x2   :  { %s12626_s26 = smov 0   ;;  %s12628_s27 = smov 0  }
   0x3 LB: > { %s12643_s28 = sadd.s32 4294967295, %s12574_s27   ;;  %s9190_s29 = sadd.s32 4294967294, %s12574_s27   ;;  %s12574_s27 = sphi %s12628_s27, %s17579_s27   ;;  %s12570_s26 = sphi %s12626_s26, %s17578_s26   ;;  %s12566_s25 = sphi %s12624_s25, %s17577_s25   ;;  %s12562_s24 = sphi %s12622_s24, %s17576_s24  }
   0x4   : > { %s12647_s30 = sadd.s32 1, %s12574_s27   ;;  %s179_s8 = sadd.s32 1, %s12570_s26 }
   0x5   : > { %s176_s9 = ssub.s32 %s12574_s27, %s12647_s30  ;;  %p189_p0 = scmp.ne.s32.totalorder %s12570_s26, %s12566_s25 }
   0x6   : > { %p177_p1 = scmp.eq.s32.totalorder %s176_s9, 0  ;;  %p190_p2 = scmp.eq.s32.totalorder %s12643_s28, 1 }
   0x7   : > { %p195_p3 = scmp.ne.s32.totalorder %s12566_s25, %s12562_s24  ;;  %p196_p4 = scmp.eq.s32.totalorder %s9190_s29, 1 }
   0x8   : > { %s12658_s10 = scalar_select %p177_p1, %s12570_s26, %s179_s8  }
   0x9   : > { %p12660_p5 = por %p190_p2, %p189_p0  ;;  %p12664_p6 = por %p196_p4, %p195_p3 }
   0xa   : > { %p9193_p7 = scmp.ge.s32.totalorder %s12574_s27, 1  ;;  %p240_p8 = scmp.lt.s32.totalorder %s12574_s27, 3 }
   0xc   : > { %p241_p9 = pnand %p9193_p7, %p240_p8 }
   0xe   : > { %244 = sbr.rel (%p241_p9) target bundleno = 2673 (0xa71), region = 48 }
  0x15   : > { %v9195_v0 = vld [vmem:[%s16845_s2 + $0x2] sm:$0x3]  ;;  %vm525_vm0 = vcmask 1041408   ;;  %p272_p10 = scmp.lt.s32.totalorder %s12643_s28, 1  ;;  %v12576_v1 = vmov 0.0   ;;  %vm12577_vm1 = vmmov 0  }
  0x16   : > { %10240 = vmatprep.subr.bf16.mxu0 %v12576_v1  ;;  %4948 = vst [vmem:[#allocation2 + $0x1b0] sm:$0xff] %v12576_v1  ;;  %v527_v2 = vsel %vm525_vm0, %v9195_v0, 0  ;;  %10242 = vmatprep.mubr.msk.bf16.mxu0 %vm12577_vm1, %v12576_v1  ;;  %v359_v3 = vld [vmem:[%s16845_s2] sm:$0x3]  ;;  %vm443_vm2 = vcmask 31744   ;;  %s269_s29 = sand.u32 1, %s12566_s25  }
  0x17   : > { %10241 = vmatpush3.bf16.msra.mxu0 %v527_v2  ;;  %s273_s15 = scalar_select %p272_p10, %s12643_s28, 1  ;;  %11856 = vmatprep.subr.bf16.mxu1 %v12576_v1  ;;  %v860_v7 = vsel %vm525_vm0, %v359_v3, 0 }
  0x18   : > { %10350 = vmatprep.subr.bf16.mxu0 %v12576_v1  ;;  %10648 = vmatprep.mubr.msk.bf16.mxu1 %vm12577_vm1, %v12576_v1  ;;  %s12339_s8 = smul.u32 384, %s269_s29  ;;  %s16802_s19 = scalar_lea.sflag [#allocation4], %s269_s29 }
  0x19   : > { %s12340_s18 = smul.u32 504, %s273_s15  ;;  %s12579_s20 = smov [#allocation3]  }
  0x1a   : > { %s16697_s14 = scalar_lea.vmem [#allocation3], %s12339_s8  ;;  %s12341_s15 = smul.u32 6144, %s12643_s28 }
  0x1b   : > { %s12690_s21 = scalar_lea.vmem %s16843_s0, %s12340_s18  ;;  %s9128_s16 = sshll.u32 %s16697_s14, 4  ;;  %s16796_s16 = int_to_ptr.vmem [resolvable:$true] %s9128_s16 }
  0x1c   : > { %v360_v4 = vld [vmem:[%s12690_s21 + $0x1] sm:$0xff]  ;;  %v361_v5 = vld [vmem:[%s12690_s21 + $0x9] sm:$0xff]  ;;  %v362_v8 = vld [vmem:[%s12690_s21 + $0x11] sm:$0xff]  ;;  %s16793_s28 = scalar_lea.hbm %s16850_s7, %s12341_s15  ;;  %s12516_s22 = sshll.u32 %s12579_s20, 4  ;;  %s12517_s22 = int_to_ptr.vmem [resolvable:$false] %s12516_s22 }
  0x1d   : > { %v414_v6 = vpack.c.bf16 %v361_v5, %v360_v4  ;;  %v363_v9 = vld [vmem:[%s12690_s21 + $0x19] sm:$0xff]  ;;  %v364_v11 = vld [vmem:[%s12690_s21 + $0x21] sm:$0xff]  ;;  %v365_v12 = vld [vmem:[%s12690_s21 + $0x29] sm:$0xff]  ;;  %s12518_s23 = scalar_lea.vmem %s12517_s22, 12288  ;;  %p12519_p0 = scmp.lt.s32.totalorder %s16796_s16, %s12517_s22 }
  0x1e   : > { %v415_v10 = vpack.c.bf16 %v363_v9, %v362_v8  ;;  %v416_v13 = vpack.c.bf16 %v365_v12, %v364_v11  ;;  %v366_v14 = vld [vmem:[%s12690_s21 + $0x31] sm:$0xff]  ;;  %v367_v15 = vld [vmem:[%s12690_s21 + $0x39] sm:$0xff]  ;;  %v368_v17 = vld [vmem:[%s12690_s21 + $0x41] sm:$0xff] }
  0x1f   : > { %10243 = vmatmul.mubr.msk.bf16.vlgmr.msra.gmra.mrb[0].mxu0 %vm443_vm2, %v414_v6  ;;  %v417_v16 = vpack.c.bf16 %v367_v15, %v366_v14  ;;  %v369_v18 = vld [vmem:[%s12690_s21 + $0x49] sm:$0xff]  ;;  %v370_v20 = vld [vmem:[%s12690_s21 + $0x51] sm:$0xff]  ;;  %v371_v21 = vld [vmem:[%s12690_s21 + $0x59] sm:$0xff] }
  0x20   : > { %10351 = vmatpush3.bf16.msra.mxu0 %v860_v7  ;;  %10246 = vmatprep.mubr.msk.bf16.mxu0 %vm12577_vm1, %v12576_v1  ;;  %v418_v19 = vpack.c.bf16 %v369_v18, %v368_v17  ;;  %v419_v22 = vpack.c.bf16 %v371_v21, %v370_v20  ;;  %v372_v23 = vld [vmem:[%s12690_s21 + $0x61] sm:$0xff]  ;;  %v373_v24 = vld [vmem:[%s12690_s21 + $0x69] sm:$0xff]  ;;  %v374_v26 = vld [vmem:[%s12690_s21 + $0x71] sm:$0xff] }
  0x21   : > { %10460 = vmatprep.subr.bf16.mxu0 %v12576_v1  ;;  %v420_v25 = vpack.c.bf16 %v373_v24, %v372_v23  ;;  %v375_v27 = vld [vmem:[%s12690_s21 + $0x79] sm:$0xff]  ;;  %v376_v29 = vld [vmem:[%s12690_s21 + $0x81] sm:$0xff]  ;;  %v377_v30 = vld [vmem:[%s12690_s21 + $0x89] sm:$0xff] }
  0x22   : > { %v421_v28 = vpack.c.bf16 %v375_v27, %v374_v26  ;;  %v422_v31 = vpack.c.bf16 %v377_v30, %v376_v29  ;;  %v378_v32 = vld [vmem:[%s12690_s21 + $0x91] sm:$0xff]  ;;  %v379_v33 = vld [vmem:[%s12690_s21 + $0x99] sm:$0xff]  ;;  %v380_v35 = vld [vmem:[%s12690_s21 + $0xa1] sm:$0xff] }
  0x23   : > { %v423_v34 = vpack.c.bf16 %v379_v33, %v378_v32  ;;  %v381_v36 = vld [vmem:[%s12690_s21 + $0xa9] sm:$0xff]  ;;  %v382_v38 = vld [vmem:[%s12690_s21 + $0xb1] sm:$0xff]  ;;  %v383_v39 = vld [vmem:[%s12690_s21 + $0xb9] sm:$0xff] }
  0x24   : > { %v424_v37 = vpack.c.bf16 %v381_v36, %v380_v35  ;;  %v425_v40 = vpack.c.bf16 %v383_v39, %v382_v38  ;;  %v384_v41 = vld [vmem:[%s12690_s21 + $0xc1] sm:$0xff]  ;;  %v385_v42 = vld [vmem:[%s12690_s21 + $0xc9] sm:$0xff]  ;;  %v386_v44 = vld [vmem:[%s12690_s21 + $0xd1] sm:$0xff] }
  0x25   : > { %v426_v43 = vpack.c.bf16 %v385_v42, %v384_v41  ;;  %v387_v45 = vld [vmem:[%s12690_s21 + $0xd9] sm:$0xff]  ;;  %v388_v47 = vld [vmem:[%s12690_s21 + $0xe1] sm:$0xff]  ;;  %v389_v48 = vld [vmem:[%s12690_s21 + $0xe9] sm:$0xff] }
  0x26   : > { %v427_v46 = vpack.c.bf16 %v387_v45, %v386_v44  ;;  %v428_v49 = vpack.c.bf16 %v389_v48, %v388_v47  ;;  %v390_v50 = vld [vmem:[%s12690_s21 + $0xf1] sm:$0xff]  ;;  %v391_v51 = vld [vmem:[%s12690_s21 + $0xf9] sm:$0xff]  ;;  %v392_v53 = vld [vmem:[%s12690_s21 + $0x101] sm:$0xff] }
  0x27   : > { %10247 = vmatmul.mubr.msk.bf16.gmra.mrb[4].mxu0 %vm443_vm2, %v415_v10  ;;  %v429_v52 = vpack.c.bf16 %v391_v51, %v390_v50  ;;  %v393_v54 = vld [vmem:[%s12690_s21 + $0x109] sm:$0xff]  ;;  %v394_v56 = vld [vmem:[%s12690_s21 + $0x111] sm:$0xff]  ;;  %v395_v57 = vld [vmem:[%s12690_s21 + $0x119] sm:$0xff] }
  0x28   : > { %10250 = vmatprep.mubr.msk.bf16.mxu0 %vm12577_vm1, %v12576_v1  ;;  %v430_v55 = vpack.c.bf16 %v393_v54, %v392_v53  ;;  %v431_v58 = vpack.c.bf16 %v395_v57, %v394_v56  ;;  %v396_v59 = vld [vmem:[%s12690_s21 + $0x121] sm:$0xff]  ;;  %v397_v60 = vld [vmem:[%s12690_s21 + $0x129] sm:$0xff]  ;;  %v398_v62 = vld [vmem:[%s12690_s21 + $0x131] sm:$0xff] }
  0x29   : > { %v432_v61 = vpack.c.bf16 %v397_v60, %v396_v59  ;;  %v399_v63 = vld [vmem:[%s12690_s21 + $0x139] sm:$0xff]  ;;  %v400_v2 = vld [vmem:[%s12690_s21 + $0x141] sm:$0xff]  ;;  %v401_v3 = vld [vmem:[%s12690_s21 + $0x149] sm:$0xff] }
  0x2a   : > { %v433_v0 = vpack.c.bf16 %v399_v63, %v398_v62  ;;  %v434_v4 = vpack.c.bf16 %v401_v3, %v400_v2  ;;  %v402_v5 = vld [vmem:[%s12690_s21 + $0x151] sm:$0xff]  ;;  %v403_v6 = vld [vmem:[%s12690_s21 + $0x159] sm:$0xff]  ;;  %v404_v8 = vld [vmem:[%s12690_s21 + $0x161] sm:$0xff] }
  0x2b   : > { %v435_v7 = vpack.c.bf16 %v403_v6, %v402_v5  ;;  %v405_v9 = vld [vmem:[%s12690_s21 + $0x169] sm:$0xff]  ;;  %v406_v11 = vld [vmem:[%s12690_s21 + $0x171] sm:$0xff]  ;;  %v407_v12 = vld [vmem:[%s12690_s21 + $0x179] sm:$0xff] }
  0x2c   : > { %v436_v10 = vpack.c.bf16 %v405_v9, %v404_v8  ;;  %v408_v14 = vld [vmem:[%s12690_s21 + $0x181] sm:$0xff]  ;;  %v409_v15 = vld [vmem:[%s12690_s21 + $0x189] sm:$0xff]  ;;  %v410_v17 = vld [vmem:[%s12690_s21 + $0x191] sm:$0xff] }
  0x2d   : > { %v411_v18 = vld [vmem:[%s12690_s21 + $0x199] sm:$0xff]  ;;  %v412_v20 = vld [vmem:[%s12690_s21 + $0x1a1] sm:$0xff]  ;;  %v413_v21 = vld [vmem:[%s12690_s21 + $0x1a9] sm:$0xff] }
  0x2e   : > { %v278_v23 = vld [vmem:[%s12690_s21] sm:$0xff]  ;;  %v279_v24 = vld [vmem:[%s12690_s21 + $0x8] sm:$0xff]  ;;  %v280_v32 = vld [vmem:[%s12690_s21 + $0x10] sm:$0xff] }
  0x2f   : > { %10251 = vmatmul.mubr.msk.bf16.gmra.mrb[8].mxu0 %vm443_vm2, %v416_v13  ;;  %v437_v13 = vpack.c.bf16 %v407_v12, %v406_v11  ;;  %v9250_v26 = vld [vmem:[%s16845_s2 + $0x4] sm:$0x3]  ;;  %v281_v33 = vld [vmem:[%s12690_s21 + $0x18] sm:$0xff]  ;;  %v287_v54 = vld [vmem:[%s12690_s21 + $0x48] sm:$0xff] }
  0x30   : > { %10254 = vmatprep.mubr.msk.bf16.mxu0 %vm12577_vm1, %v12576_v1  ;;  %v333_v36 = vpack.c.bf16 %v281_v33, %v280_v32  ;;  %v282_v39 = vld [vmem:[%s12690_s21 + $0x20] sm:$0xff]  ;;  %v285_v47 = vld [vmem:[%s12690_s21 + $0x38] sm:$0xff]  ;;  %v288_v60 = vld [vmem:[%s12690_s21 + $0x50] sm:$0xff] }
  0x31   : > { %v286_v53 = vld [vmem:[%s12690_s21 + $0x40] sm:$0xff]  ;;  %v291_v5 = vld [vmem:[%s12690_s21 + $0x68] sm:$0xff]  ;;  %v292_v11 = vld [vmem:[%s12690_s21 + $0x70] sm:$0xff] }
  0x32   : > { %v336_v57 = vpack.c.bf16 %v287_v54, %v286_v53  ;;  %v293_v12 = vld [vmem:[%s12690_s21 + $0x78] sm:$0xff]  ;;  %v9278_v54 = vld [vmem:[%s16845_s2 + $0x6] sm:$0x3] }
  0x37   : > { %10255 = vmatmul.mubr.msk.bf16.gmra.mrb[12].mxu0 %vm443_vm2, %v417_v16  ;;  %v438_v16 = vpack.c.bf16 %v409_v15, %v408_v14  ;;  %v339_v15 = vpack.c.bf16 %v293_v12, %v292_v11 }
  0x38   : > { %10258 = vmatprep.mubr.msk.bf16.mxu0 %vm12577_vm1, %v12576_v1 }
  0x3f   : > { %10259 = vmatmul.mubr.msk.bf16.gmra.mrb[16].mxu0 %vm443_vm2, %v418_v19  ;;  %v439_v19 = vpack.c.bf16 %v411_v18, %v410_v17  ;;  %v294_v18 = vld [vmem:[%s12690_s21 + $0x80] sm:$0xff] }
  0x40   : > { %10262 = vmatprep.mubr.msk.bf16.mxu0 %vm12577_vm1, %v12576_v1 }
  0x47   : > { %10263 = vmatmul.mubr.msk.bf16.gmra.mrb[20].mxu0 %vm443_vm2, %v419_v22  ;;  %v440_v22 = vpack.c.bf16 %v413_v21, %v412_v20 }
  0x48   : > { %10266 = vmatprep.mubr.msk.bf16.mxu0 %vm12577_vm1, %v12576_v1 }
  0x4f   : > { %10267 = vmatmul.mubr.msk.bf16.gmra.mrb[24].mxu0 %vm443_vm2, %v420_v25 }
  0x50   : > { %10270 = vmatprep.mubr.msk.bf16.mxu0 %vm12577_vm1, %v12576_v1 }
  0x57   : > { %10271 = vmatmul.mubr.msk.bf16.gmra.mrb[28].mxu0 %vm443_vm2, %v421_v28  ;;  %v332_v28 = vpack.c.bf16 %v279_v24, %v278_v23 }
  0x58   : > { %10274 = vmatprep.mubr.msk.bf16.mxu0 %vm12577_vm1, %v12576_v1 }
  0x5f   : > { %10275 = vmatmul.mubr.msk.bf16.gmra.mrb[32].mxu0 %vm443_vm2, %v422_v31  ;;  %v1276_v31 = vsel %vm525_vm0, %v9250_v26, 0  ;;  %v296_v26 = vld [vmem:[%s12690_s21 + $0x90] sm:$0xff] }
  0x60   : > { %10278 = vmatprep.mubr.msk.bf16.mxu0 %vm12577_vm1, %v12576_v1 }
  0x67   : > { %10279 = vmatmul.mubr.msk.bf16.gmra.mrb[36].mxu0 %vm443_vm2, %v423_v34 }
  0x68   : > { %10282 = vmatprep.mubr.msk.bf16.mxu0 %vm12577_vm1, %v12576_v1 }
  0x6f   : > { %10283 = vmatmul.mubr.msk.bf16.gmra.mrb[40].mxu0 %vm443_vm2, %v424_v37 }
  0x70   : > { %10286 = vmatprep.mubr.msk.bf16.mxu0 %vm12577_vm1, %v12576_v1 }
  0x77   : > { %10287 = vmatmul.mubr.msk.bf16.gmra.mrb[44].mxu0 %vm443_vm2, %v425_v40  ;;  %v283_v40 = vld [vmem:[%s12690_s21 + $0x28] sm:$0xff] }
  0x78   : > { %10290 = vmatprep.mubr.msk.bf16.mxu0 %vm12577_vm1, %v12576_v1 }
  0x7f   : > { %10291 = vmatmul.mubr.msk.bf16.gmra.mrb[48].mxu0 %vm443_vm2, %v426_v43  ;;  %v334_v43 = vpack.c.bf16 %v283_v40, %v282_v39 }
  0x80   : > { %10294 = vmatprep.mubr.msk.bf16.mxu0 %vm12577_vm1, %v12576_v1 }
  0x87   : > { %10295 = vmatmul.mubr.msk.bf16.gmra.mrb[52].mxu0 %vm443_vm2, %v427_v46  ;;  %v284_v46 = vld [vmem:[%s12690_s21 + $0x30] sm:$0xff] }
  0x88   : > { %10298 = vmatprep.mubr.msk.bf16.mxu0 %vm12577_vm1, %v12576_v1  ;;  %v335_v50 = vpack.c.bf16 %v285_v47, %v284_v46  ;;  %v301_v46 = vld [vmem:[%s12690_s21 + $0xb8] sm:$0xff] }
  0x8f   : > { %10299 = vmatmul.mubr.msk.bf16.gmra.mrb[56].mxu0 %vm443_vm2, %v428_v49 }
  0x90   : > { %10302 = vmatprep.mubr.msk.bf16.mxu0 %vm12577_vm1, %v12576_v1 }
  0x97   : > { %10303 = vmatmul.mubr.msk.bf16.gmra.mrb[60].mxu0 %vm443_vm2, %v429_v52 }
  0x98   : > { %10306 = vmatprep.mubr.msk.bf16.mxu0 %vm12577_vm1, %v12576_v1 }
  0x9f   : > { %10307 = vmatmul.mubr.msk.bf16.gmra.mrb[64].mxu0 %vm443_vm2, %v430_v55 }
  0xa0   : > { %10310 = vmatprep.mubr.msk.bf16.mxu0 %vm12577_vm1, %v12576_v1 }
  0xa7   : > { %10311 = vmatmul.mubr.msk.bf16.gmra.mrb[68].mxu0 %vm443_vm2, %v431_v58 }
  0xa8   : > { %10314 = vmatprep.mubr.msk.bf16.mxu0 %vm12577_vm1, %v12576_v1 }
  0xaf   : > { %10315 = vmatmul.mubr.msk.bf16.gmra.mrb[72].mxu0 %vm443_vm2, %v432_v61  ;;  %v289_v61 = vld [vmem:[%s12690_s21 + $0x58] sm:$0xff] }
  0xb0   : > { %10318 = vmatprep.mubr.msk.bf16.mxu0 %vm12577_vm1, %v12576_v1 }
  0xb7   : > { %10319 = vmatmul.mubr.msk.bf16.gmra.mrb[76].mxu0 %vm443_vm2, %v433_v0  ;;  %v337_v0 = vpack.c.bf16 %v289_v61, %v288_v60 }
  0xb8   : > { %10322 = vmatprep.mubr.msk.bf16.mxu0 %vm12577_vm1, %v12576_v1 }
  0xbf   : > { %10323 = vmatmul.mubr.msk.bf16.gmra.mrb[80].mxu0 %vm443_vm2, %v434_v4  ;;  %v290_v4 = vld [vmem:[%s12690_s21 + $0x60] sm:$0xff] }
  0xc0   : > { %10326 = vmatprep.mubr.msk.bf16.mxu0 %vm12577_vm1, %v12576_v1  ;;  %v338_v8 = vpack.c.bf16 %v291_v5, %v290_v4  ;;  %v304_v4 = vld [vmem:[%s12690_s21 + $0xd0] sm:$0xff]  ;;  %v305_v5 = vld [vmem:[%s12690_s21 + $0xd8] sm:$0xff] }
  0xc7   : > { %10327 = vmatmul.mubr.msk.bf16.gmra.mrb[84].mxu0 %vm443_vm2, %v435_v7 }
  0xc8   : > { %10330 = vmatprep.mubr.msk.bf16.mxu0 %vm12577_vm1, %v12576_v1 }
  0xcf   : > { %10331 = vmatmul.mubr.msk.bf16.gmra.mrb[88].mxu0 %vm443_vm2, %v436_v10 }
  0xd0   : > { %10334 = vmatprep.mubr.msk.bf16.mxu0 %vm12577_vm1, %v12576_v1 }
  0xd7   : > { %10335 = vmatmul.mubr.msk.bf16.gmra.mrb[92].mxu0 %vm443_vm2, %v437_v13 }
  0xd8   : > { %10338 = vmatprep.mubr.msk.bf16.mxu0 %vm12577_vm1, %v12576_v1 }
  0xdf   : > { %10339 = vmatmul.mubr.msk.bf16.gmra.mrb[96].mxu0 %vm443_vm2, %v438_v16 }
  0xe0   : > { %10342 = vmatprep.mubr.msk.bf16.mxu0 %vm12577_vm1, %v12576_v1 }
  0xe7   : > { %10343 = vmatmul.mubr.msk.bf16.gmra.mrb[100].mxu0 %vm443_vm2, %v439_v19  ;;  %v295_v19 = vld [vmem:[%s12690_s21 + $0x88] sm:$0xff] }
  0xe8   : > { %10346 = vmatprep.mubr.msk.bf16.mxu0 %vm12577_vm1, %v12576_v1 }
  0xef   : > { %10347 = vmatmul.mubr.msk.bf16.gmra.mrb[104].mxu0 %vm443_vm2, %v440_v22  ;;  %v340_v22 = vpack.c.bf16 %v295_v19, %v294_v18 }
  0xf0   : > { %10352 = vmatprep.mubr.msk.bf16.mxu0 %vm12577_vm1, %v12576_v1 }
  0xf2   : > { %v12831_v25 = vpop.f32.mrb[0].mxu0 }
  0xf3   : > { %v10244_v27 = vpop.f32.mrb[1].mxu0 }
  0xf4   : > { %v12836_v29 = vpop.f32.mrb[2].mxu0  ;;  %v297_v27 = vld [vmem:[%s12690_s21 + $0x98] sm:$0xff] }
  0xf5   : > { %v10245_v30 = vpop.f32.mrb[3].mxu0 }
  0xf7   : > { %10353 = vmatmul.mubr.msk.bf16.vlgmr.msra.gmra.mrb[108].mxu0 %vm443_vm2, %v332_v28 }
  0xf8   : > { %10461 = vmatpush3.bf16.msra.mxu0 %v1276_v31  ;;  %10356 = vmatprep.mubr.msk.bf16.mxu0 %vm12577_vm1, %v12576_v1  ;;  %v341_v31 = vpack.c.bf16 %v297_v27, %v296_v26  ;;  %v309_v26 = vld [vmem:[%s12690_s21 + $0xf8] sm:$0xff] }
  0xf9   : > { %10570 = vmatprep.subr.bf16.mxu0 %v12576_v1 }
  0xfa   : > { %v12845_v34 = vpop.f32.mrb[4].mxu0 }
  0xfb   : > { %v10248_v35 = vpop.f32.mrb[5].mxu0 }
  0xfc   : > { %v12847_v37 = vpop.f32.mrb[6].mxu0  ;;  %v298_v35 = vld [vmem:[%s12690_s21 + $0xa0] sm:$0xff] }
  0xfd   : > { %v10249_v38 = vpop.f32.mrb[7].mxu0 }
  0xff   : > { %10357 = vmatmul.mubr.msk.bf16.gmra.mrb[112].mxu0 %vm443_vm2, %v333_v36  ;;  %v299_v36 = vld [vmem:[%s12690_s21 + $0xa8] sm:$0xff] }
 0x100   : > { %10360 = vmatprep.mubr.msk.bf16.mxu0 %vm12577_vm1, %v12576_v1  ;;  %v342_v40 = vpack.c.bf16 %v299_v36, %v298_v35  ;;  %v310_v36 = vld [vmem:[%s12690_s21 + $0x100] sm:$0xff] }
 0x102   : > { %v12854_v41 = vpop.f32.mrb[8].mxu0 }
 0x103   : > { %v10252_v42 = vpop.f32.mrb[9].mxu0 }
 0x104   : > { %v12856_v44 = vpop.f32.mrb[10].mxu0 }
 0x105   : > { %v10253_v45 = vpop.f32.mrb[11].mxu0 }
 0x106   : > { %v300_v45 = vld [vmem:[%s12690_s21 + $0xb0] sm:$0xff] }
 0x107   : > { %10361 = vmatmul.mubr.msk.bf16.gmra.mrb[116].mxu0 %vm443_vm2, %v334_v43 }
 0x108   : > { %10364 = vmatprep.mubr.msk.bf16.mxu0 %vm12577_vm1, %v12576_v1 }
 0x10a   : > { %v12863_v48 = vpop.f32.mrb[12].mxu0 }
 0x10b   : > { %v10256_v49 = vpop.f32.mrb[13].mxu0 }
 0x10c   : > { %v12865_v51 = vpop.f32.mrb[14].mxu0 }
 0x10d   : > { %v10257_v52 = vpop.f32.mrb[15].mxu0 }
 0x10f   : > { %10365 = vmatmul.mubr.msk.bf16.gmra.mrb[120].mxu0 %vm443_vm2, %v335_v50  ;;  %v343_v50 = vpack.c.bf16 %v301_v46, %v300_v45 }
 0x110   : > { %10368 = vmatprep.mubr.msk.bf16.mxu0 %vm12577_vm1, %v12576_v1 }
 0x112   : > { %v12872_v55 = vpop.f32.mrb[16].mxu0 }
 0x113   : > { %v10260_v56 = vpop.f32.mrb[17].mxu0 }
 0x114   : > { %v12874_v58 = vpop.f32.mrb[18].mxu0  ;;  %v302_v56 = vld [vmem:[%s12690_s21 + $0xc0] sm:$0xff] }
 0x115   : > { %v10261_v59 = vpop.f32.mrb[19].mxu0 }
 0x116   : > { %v12948_v59 = vsel %vm525_vm0, %v9278_v54, 0 }
 0x117   : > { %10369 = vmatmul.mubr.msk.bf16.gmra.mrb[124].mxu0 %vm443_vm2, %v336_v57  ;;  %v303_v57 = vld [vmem:[%s12690_s21 + $0xc8] sm:$0xff]  ;;  %11857 = vmatpush3.bf16.msra.mxu1 %v12948_v59 }
 0x118   : > { %10372 = vmatprep.mubr.msk.bf16.mxu0 %vm12577_vm1, %v12576_v1  ;;  %10790 = vmatprep.subr.bf16.mxu1 %v12576_v1 }
 0x11a   : > { %v12881_v62 = vpop.f32.mrb[20].mxu0 }
 0x11b   : > { %v10264_v63 = vpop.f32.mrb[21].mxu0 }
 0x11c   : > { %v12883_v2 = vpop.f32.mrb[22].mxu0  ;;  %v344_v63 = vpack.c.bf16 %v303_v57, %v302_v56 }
 0x11d   : > { %v10265_v3 = vpop.f32.mrb[23].mxu0 }
 0x11f   : > { %10373 = vmatmul.mubr.msk.bf16.gmra.mrb[128].mxu0 %vm443_vm2, %v337_v0 }
 0x120   : > { %10376 = vmatprep.mubr.msk.bf16.mxu0 %vm12577_vm1, %v12576_v1 }
 0x122   : > { %v12890_v6 = vpop.f32.mrb[24].mxu0 }
 0x123   : > { %v10268_v7 = vpop.f32.mrb[25].mxu0 }
 0x124   : > { %v12892_v9 = vpop.f32.mrb[26].mxu0 }
 0x125   : > { %v10269_v10 = vpop.f32.mrb[27].mxu0 }
 0x126   : > { %v345_v10 = vpack.c.bf16 %v305_v5, %v304_v4  ;;  %v315_v4 = vld [vmem:[%s12690_s21 + $0x128] sm:$0xff] }
 0x127   : > { %10377 = vmatmul.mubr.msk.bf16.gmra.mrb[132].mxu0 %vm443_vm2, %v338_v8 }
 0x128   : > { %10380 = vmatprep.mubr.msk.bf16.mxu0 %vm12577_vm1, %v12576_v1 }
 0x12a   : > { %v12899_v13 = vpop.f32.mrb[28].mxu0 }
 0x12b   : > { %v10272_v14 = vpop.f32.mrb[29].mxu0 }
 0x12c   : > { %v12901_v16 = vpop.f32.mrb[30].mxu0  ;;  %v306_v14 = vld [vmem:[%s12690_s21 + $0xe0] sm:$0xff] }
 0x12d   : > { %v10273_v17 = vpop.f32.mrb[31].mxu0 }
 0x12f   : > { %10381 = vmatmul.mubr.msk.bf16.gmra.mrb[136].mxu0 %vm443_vm2, %v339_v15  ;;  %v307_v15 = vld [vmem:[%s12690_s21 + $0xe8] sm:$0xff] }
 0x130   : > { %10384 = vmatprep.mubr.msk.bf16.mxu0 %vm12577_vm1, %v12576_v1  ;;  %v346_v19 = vpack.c.bf16 %v307_v15, %v306_v14  ;;  %v316_v15 = vld [vmem:[%s12690_s21 + $0x130] sm:$0xff] }
 0x132   : > { %v12908_v20 = vpop.f32.mrb[32].mxu0 }
 0x133   : > { %v10276_v21 = vpop.f32.mrb[33].mxu0 }
 0x134   : > { %v12910_v23 = vpop.f32.mrb[34].mxu0 }
 0x135   : > { %v10277_v24 = vpop.f32.mrb[35].mxu0 }
 0x136   : > { %v308_v24 = vld [vmem:[%s12690_s21 + $0xf0] sm:$0xff] }
 0x137   : > { %10385 = vmatmul.mubr.msk.bf16.gmra.mrb[140].mxu0 %vm443_vm2, %v340_v22 }
 0x138   : > { %10388 = vmatprep.mubr.msk.bf16.mxu0 %vm12577_vm1, %v12576_v1 }
 0x13a   : > { %v12917_v28 = vpop.f32.mrb[36].mxu0 }
 0x13b   : > { %v10280_v30 = vpop.f32.mrb[37].mxu0 }
 0x13c   : > { %v12919_v32 = vpop.f32.mrb[38].mxu0 }
 0x13d   : > { %v10281_v33 = vpop.f32.mrb[39].mxu0 }
 0x13f   : > { %10389 = vmatmul.mubr.msk.bf16.gmra.mrb[144].mxu0 %vm443_vm2, %v341_v31  ;;  %v347_v31 = vpack.c.bf16 %v309_v26, %v308_v24 }
 0x140   : > { %10392 = vmatprep.mubr.msk.bf16.mxu0 %vm12577_vm1, %v12576_v1 }
 0x142   : > { %v12926_v38 = vpop.f32.mrb[40].mxu0 }
 0x143   : > { %v10284_v39 = vpop.f32.mrb[41].mxu0 }
 0x144   : > { %v12928_v42 = vpop.f32.mrb[42].mxu0  ;;  %v311_v39 = vld [vmem:[%s12690_s21 + $0x108] sm:$0xff] }
 0x145   : > { %v10285_v43 = vpop.f32.mrb[43].mxu0  ;;  %v348_v45 = vpack.c.bf16 %v311_v39, %v310_v36 }
 0x147   : > { %10393 = vmatmul.mubr.msk.bf16.gmra.mrb[148].mxu0 %vm443_vm2, %v342_v40 }
 0x148   : > { %10396 = vmatprep.mubr.msk.bf16.mxu0 %vm12577_vm1, %v12576_v1 }
 0x14a   : > { %v12935_v47 = vpop.f32.mrb[44].mxu0 }
 0x14b   : > { %v10288_v49 = vpop.f32.mrb[45].mxu0 }
 0x14c   : > { %v12937_v52 = vpop.f32.mrb[46].mxu0 }
 0x14d   : > { %v10289_v53 = vpop.f32.mrb[47].mxu0 }
 0x14e   : > { %v313_v53 = vld [vmem:[%s12690_s21 + $0x118] sm:$0xff] }
 0x14f   : > { %10397 = vmatmul.mubr.msk.bf16.gmra.mrb[152].mxu0 %vm443_vm2, %v343_v50  ;;  %v312_v50 = vld [vmem:[%s12690_s21 + $0x110] sm:$0xff] }
 0x150   : > { %10400 = vmatprep.mubr.msk.bf16.mxu0 %vm12577_vm1, %v12576_v1  ;;  %v349_v57 = vpack.c.bf16 %v313_v53, %v312_v50  ;;  %v13035_v50 = vld [vmem:[%s12690_s21 + $0x150] sm:$0xff]  ;;  %v13038_v53 = vld [vmem:[%s12690_s21 + $0x158] sm:$0xff] }
 0x152   : > { %v12951_v60 = vpop.f32.mrb[48].mxu0 }
 0x153   : > { %v10292_v61 = vpop.f32.mrb[49].mxu0 }
 0x154   : > { %v12954_v0 = vpop.f32.mrb[50].mxu0 }
 0x155   : > { %v10293_v3 = vpop.f32.mrb[51].mxu0 }
 0x156   : > { %v314_v3 = vld [vmem:[%s12690_s21 + $0x120] sm:$0xff] }
 0x157   : > { %10401 = vmatmul.mubr.msk.bf16.gmra.mrb[156].mxu0 %vm443_vm2, %v344_v63 }
 0x158   : > { %10404 = vmatprep.mubr.msk.bf16.mxu0 %vm12577_vm1, %v12576_v1 }
 0x15a   : > { %v12961_v7 = vpop.f32.mrb[52].mxu0 }
 0x15b   : > { %v10296_v8 = vpop.f32.mrb[53].mxu0 }
 0x15c   : > { %v12963_v11 = vpop.f32.mrb[54].mxu0 }
 0x15d   : > { %v10297_v12 = vpop.f32.mrb[55].mxu0 }
 0x15f   : > { %10405 = vmatmul.mubr.msk.bf16.gmra.mrb[160].mxu0 %vm443_vm2, %v345_v10  ;;  %v350_v10 = vpack.c.bf16 %v315_v4, %v314_v3 }
 0x160   : > { %10408 = vmatprep.mubr.msk.bf16.mxu0 %vm12577_vm1, %v12576_v1 }
 0x162   : > { %v12970_v17 = vpop.f32.mrb[56].mxu0 }
 0x163   : > { %v10300_v18 = vpop.f32.mrb[57].mxu0 }
 0x164   : > { %v12972_v21 = vpop.f32.mrb[58].mxu0  ;;  %v317_v18 = vld [vmem:[%s12690_s21 + $0x138] sm:$0xff] }
 0x165   : > { %v10301_v22 = vpop.f32.mrb[59].mxu0  ;;  %v351_v24 = vpack.c.bf16 %v317_v18, %v316_v15 }
 0x167   : > { %10409 = vmatmul.mubr.msk.bf16.gmra.mrb[164].mxu0 %vm443_vm2, %v346_v19 }
 0x168   : > { %10412 = vmatprep.mubr.msk.bf16.mxu0 %vm12577_vm1, %v12576_v1 }
 0x16a   : > { %v12979_v27 = vpop.f32.mrb[60].mxu0 }
 0x16b   : > { %v10304_v30 = vpop.f32.mrb[61].mxu0 }
 0x16c   : > { %v12981_v33 = vpop.f32.mrb[62].mxu0 }
 0x16d   : > { %v10305_v35 = vpop.f32.mrb[63].mxu0 }
 0x16e   : > { %v13024_v35 = vld [vmem:[%s12690_s21 + $0x148] sm:$0xff] }
 0x16f   : > { %10413 = vmatmul.mubr.msk.bf16.gmra.mrb[168].mxu0 %vm443_vm2, %v347_v31  ;;  %v318_v31 = vld [vmem:[%s12690_s21 + $0x140] sm:$0xff] }
 0x170   : > { %10416 = vmatprep.mubr.msk.bf16.mxu0 %vm12577_vm1, %v12576_v1 }
 0x172   : > { %v12988_v40 = vpop.f32.mrb[64].mxu0 }
 0x173   : > { %v10308_v43 = vpop.f32.mrb[65].mxu0 }
 0x174   : > { %v12990_v46 = vpop.f32.mrb[66].mxu0  ;;  %v352_v43 = vpack.c.bf16 %v13024_v35, %v318_v31  ;;  %v13068_v31 = vld [vmem:[%s12690_s21 + $0x178] sm:$0xff] }
 0x175   : > { %v10309_v49 = vpop.f32.mrb[67].mxu0 }
 0x177   : > { %10417 = vmatmul.mubr.msk.bf16.gmra.mrb[172].mxu0 %vm443_vm2, %v348_v45 }
 0x178   : > { %10420 = vmatprep.mubr.msk.bf16.mxu0 %vm12577_vm1, %v12576_v1 }
 0x17a   : > { %v12997_v54 = vpop.f32.mrb[68].mxu0 }
 0x17b   : > { %v10312_v56 = vpop.f32.mrb[69].mxu0 }
 0x17c   : > { %v12999_v61 = vpop.f32.mrb[70].mxu0 }
 0x17d   : > { %v10313_v63 = vpop.f32.mrb[71].mxu0 }
 0x17e   : > { %v353_v63 = vpack.c.bf16 %v13038_v53, %v13035_v50 }
 0x17f   : > { %10421 = vmatmul.mubr.msk.bf16.gmra.mrb[176].mxu0 %vm443_vm2, %v349_v57 }
 0x180   : > { %10424 = vmatprep.mubr.msk.bf16.mxu0 %vm12577_vm1, %v12576_v1 }
 0x182   : > { %v13006_v5 = vpop.f32.mrb[72].mxu0 }
 0x183   : > { %v10316_v8 = vpop.f32.mrb[73].mxu0 }
 0x184   : > { %v13008_v12 = vpop.f32.mrb[74].mxu0  ;;  %v13050_v8 = vld [vmem:[%s12690_s21 + $0x160] sm:$0xff] }
 0x185   : > { %v10317_v14 = vpop.f32.mrb[75].mxu0 }
 0x187   : > { %10425 = vmatmul.mubr.msk.bf16.gmra.mrb[180].mxu0 %vm443_vm2, %v350_v10  ;;  %v13053_v10 = vld [vmem:[%s12690_s21 + $0x168] sm:$0xff] }
 0x188   : > { %10428 = vmatprep.mubr.msk.bf16.mxu0 %vm12577_vm1, %v12576_v1  ;;  %v354_v18 = vpack.c.bf16 %v13053_v10, %v13050_v8 }
 0x18a   : > { %v13015_v19 = vpop.f32.mrb[76].mxu0 }
 0x18b   : > { %16990 = vst [vmem:[#allocation6_spill] sm:$0xff] %v13015_v19  ;;  %v10320_v22 = vpop.f32.mrb[77].mxu0 }
 0x18c   : > { %v13017_v26 = vpop.f32.mrb[78].mxu0 }
 0x18d   : > { %16991 = vst [vmem:[#allocation7_spill] sm:$0xff] %v13017_v26  ;;  %v10321_v30 = vpop.f32.mrb[79].mxu0 }
 0x18e   : > { %v13065_v30 = vld [vmem:[%s12690_s21 + $0x170] sm:$0xff] }
 0x18f   : > { %10429 = vmatmul.mubr.msk.bf16.gmra.mrb[184].mxu0 %vm443_vm2, %v351_v24 }
 0x190   : > { %10432 = vmatprep.mubr.msk.bf16.mxu0 %vm12577_vm1, %v12576_v1 }
 0x192   : > { %v13026_v36 = vpop.f32.mrb[80].mxu0 }
 0x193   : > { %16992 = vst [vmem:[#allocation8_spill] sm:$0xff] %v13026_v36  ;;  %v10324_v39 = vpop.f32.mrb[81].mxu0 }
 0x194   : > { %v13029_v45 = vpop.f32.mrb[82].mxu0 }
 0x195   : > { %16993 = vst [vmem:[#allocation9_spill] sm:$0xff] %v13029_v45  ;;  %v10325_v49 = vpop.f32.mrb[83].mxu0 }
 0x196   : > { %v355_v49 = vpack.c.bf16 %v13068_v31, %v13065_v30 }
 0x197   : > { %10433 = vmatmul.mubr.msk.bf16.gmra.mrb[188].mxu0 %vm443_vm2, %v352_v43 }
 0x198   : > { %10436 = vmatprep.mubr.msk.bf16.mxu0 %vm12577_vm1, %v12576_v1 }
 0x19a   : > { %v13040_v56 = vpop.f32.mrb[84].mxu0 }
 0x19b   : > { %16994 = vst [vmem:[#allocation10_spill] sm:$0xff] %v13040_v56  ;;  %v10328_v57 = vpop.f32.mrb[85].mxu0 }
 0x19c   : > { %v13044_v3 = vpop.f32.mrb[86].mxu0 }
 0x19d   : > { %16995 = vst [vmem:[#allocation11_spill] sm:$0xff] %v13044_v3  ;;  %v10329_v4 = vpop.f32.mrb[87].mxu0 }
 0x19e   : > { %v13077_v4 = vld [vmem:[#allocation2 + $0x1b0] sm:$0xff] }
 0x19f   : > { %10437 = vmatmul.mubr.msk.bf16.gmra.mrb[192].mxu0 %vm443_vm2, %v353_v63 }
 0x1a0   : > { %10440 = vmatprep.mubr.msk.bf16.mxu0 %vm12577_vm1, %v12576_v1 }
 0x1a2   : > { %v13055_v14 = vpop.f32.mrb[88].mxu0 }
 0x1a3   : > { %16996 = vst [vmem:[#allocation12_spill] sm:$0xff] %v13055_v14  ;;  %v10332_v15 = vpop.f32.mrb[89].mxu0 }
 0x1a4   : > { %v13059_v22 = vpop.f32.mrb[90].mxu0  ;;  %v13085_v15 = vld [vmem:[%s12690_s21 + $0x188] sm:$0xff] }
 0x1a5   : > { %16997 = vst [vmem:[#allocation13_spill] sm:$0xff] %v13059_v22  ;;  %v10333_v24 = vpop.f32.mrb[91].mxu0 }
 0x1a7   : > { %10441 = vmatmul.mubr.msk.bf16.gmra.mrb[196].mxu0 %vm443_vm2, %v354_v18 }
 0x1a8   : > { %10444 = vmatprep.mubr.msk.bf16.mxu0 %vm12577_vm1, %v12576_v1  ;;  %v13082_v1 = vld [vmem:[%s12690_s21 + $0x180] sm:$0xff] }
 0x1aa   : > { %v13070_v39 = vpop.f32.mrb[92].mxu0 }
 0x1ab   : > { %16998 = vst [vmem:[#allocation14_spill] sm:$0xff] %v13070_v39  ;;  %v10336_v43 = vpop.f32.mrb[93].mxu0  ;;  %v13100_v39 = vld [vmem:[%s12690_s21 + $0x198] sm:$0xff] }
 0x1ac   : > { %v13074_v57 = vpop.f32.mrb[94].mxu0  ;;  %v356_v43 = vpack.c.bf16 %v13085_v15, %v13082_v1 }
 0x1ad   : > { %16999 = vst [vmem:[#allocation15_spill] sm:$0xff] %v13074_v57  ;;  %v10337_v63 = vpop.f32.mrb[95].mxu0  ;;  %v13097_v57 = vld [vmem:[%s12690_s21 + $0x190] sm:$0xff] }
 0x1af   : > { %10445 = vmatmul.mubr.msk.bf16.gmra.mrb[200].mxu0 %vm443_vm2, %v355_v49 }
 0x1b0   : > { %10448 = vmatprep.mubr.msk.bf16.mxu0 %vm12577_vm1, %v13077_v4 }
 0x1b2   : > { %v13087_v18 = vpop.f32.mrb[96].mxu0 }
 0x1b3   : > { %17000 = vst [vmem:[#allocation16_spill] sm:$0xff] %v13087_v18  ;;  %v10340_v24 = vpop.f32.mrb[97].mxu0  ;;  %v357_v18 = vpack.c.bf16 %v13100_v39, %v13097_v57 }
 0x1b4   : > { %v13091_v63 = vpop.f32.mrb[98].mxu0 }
 0x1b5   : > { %17001 = vst [vmem:[#allocation17_spill] sm:$0xff] %v13091_v63  ;;  %v10341_v49 = vpop.f32.mrb[99].mxu0  ;;  %v13115_v63 = vld [vmem:[%s12690_s21 + $0x1a8] sm:$0xff] }
 0x1b7   : > { %10449 = vmatmul.mubr.msk.bf16.gmra.mrb[204].mxu0 %vm443_vm2, %v356_v43  ;;  %v13112_v43 = vld [vmem:[%s12690_s21 + $0x1a0] sm:$0xff] }
 0x1b8   : > { %10452 = vmatprep.mubr.msk.bf16.mxu0 %vm12577_vm1, %v13077_v4 }
 0x1ba   : > { %v13102_v22 = vpop.f32.mrb[100].mxu0 }
 0x1bb   : > { %17002 = vst [vmem:[#allocation18_spill] sm:$0xff] %v13102_v22  ;;  %v10344_v24 = vpop.f32.mrb[101].mxu0 }
 0x1bc   : > { %v13106_v14 = vpop.f32.mrb[102].mxu0  ;;  %v358_v24 = vpack.c.bf16 %v13115_v63, %v13112_v43 }
 0x1bd   : > { %17003 = vst [vmem:[#allocation19_spill] sm:$0xff] %v13106_v14  ;;  %v10345_v49 = vpop.f32.mrb[103].mxu0 }
 0x1be   : > { %v1112_v49 = vld [vmem:[%s12690_s21 + $0xa] sm:$0xff] }
 0x1bf   : > { %10453 = vmatmul.mubr.msk.bf16.gmra.mrb[208].mxu0 %vm443_vm2, %v357_v18  ;;  %v1111_v18 = vld [vmem:[%s12690_s21 + $0x2] sm:$0xff] }
 0x1c0   : > { %10456 = vmatprep.mubr.msk.bf16.mxu0 %vm12577_vm1, %v13077_v4 }
 0x1c2   : > { %v13117_v3 = vpop.f32.mrb[104].mxu0 }
 0x1c3   : > { %17004 = vst [vmem:[#allocation20_spill] sm:$0xff] %v13117_v3  ;;  %v10348_v22 = vpop.f32.mrb[105].mxu0  ;;  %v1165_v3 = vpack.c.bf16 %v1112_v49, %v1111_v18  ;;  %v1115_v18 = vld [vmem:[%s12690_s21 + $0x22] sm:$0xff]  ;;  %v1116_v49 = vld [vmem:[%s12690_s21 + $0x2a] sm:$0xff] }
 0x1c4   : > { %v13121_v56 = vpop.f32.mrb[106].mxu0 }
 0x1c5   : > { %17005 = vst [vmem:[#allocation21_spill] sm:$0xff] %v13121_v56  ;;  %v10349_v14 = vpop.f32.mrb[107].mxu0 }
 0x1c6   : > { %v1113_v14 = vld [vmem:[%s12690_s21 + $0x12] sm:$0xff] }
 0x1c7   : > { %10457 = vmatmul.mubr.msk.bf16.gmra.mrb[212].mxu0 %vm443_vm2, %v358_v24  ;;  %v1114_v24 = vld [vmem:[%s12690_s21 + $0x1a] sm:$0xff] }
 0x1c8   : > { %10462 = vmatprep.mubr.msk.bf16.mxu0 %vm12577_vm1, %v13077_v4 }
 0x1ca   : > { %v896_v45 = vpop.f32.mrb[108].mxu0 }
 0x1cb   : > { %v13129_v36 = vadd.f32 %v896_v45, %v12831_v25  ;;  %v10354_v22 = vpop.f32.mrb[109].mxu0 }
 0x1cc   : > { %v899_v26 = vpop.f32.mrb[110].mxu0 }
 0x1cd   : > { %v13132_v19 = vadd.f32 %v899_v26, %v12836_v29  ;;  %v10355_v56 = vpop.f32.mrb[111].mxu0  ;;  %v1166_v26 = vpack.c.bf16 %v1114_v24, %v1113_v14  ;;  %v1167_v14 = vpack.c.bf16 %v1116_v49, %v1115_v18 }
 0x1cf   : > { %10463 = vmatmul.mubr.msk.bf16.vlgmr.msra.gmra.mrb[216].mxu0 %vm443_vm2, %v1165_v3 }
 0x1d0   : > { %10571 = vmatpush3.bf16.msra.mxu0 %v12948_v59  ;;  %10466 = vmatprep.mubr.msk.bf16.mxu0 %vm12577_vm1, %v13077_v4 }
 0x1d1   : > { %10680 = vmatprep.subr.bf16.mxu0 %v13077_v4 }
 0x1d2   : > { %v904_v25 = vpop.f32.mrb[112].mxu0 }
 0x1d3   : > { %v13142_v45 = vadd.f32 %v904_v25, %v12845_v34  ;;  %v10358_v29 = vpop.f32.mrb[113].mxu0 }
 0x1d4   : > { %v907_v56 = vpop.f32.mrb[114].mxu0 }
 0x1d5   : > { %v13145_v3 = vadd.f32 %v907_v56, %v12847_v37  ;;  %v10359_v59 = vpop.f32.mrb[115].mxu0  ;;  %v1118_v56 = vld [vmem:[%s12690_s21 + $0x3a] sm:$0xff] }
 0x1d7   : > { %10467 = vmatmul.mubr.msk.bf16.gmra.mrb[220].mxu0 %vm443_vm2, %v1166_v26  ;;  %v1117_v26 = vld [vmem:[%s12690_s21 + $0x32] sm:$0xff] }
 0x1d8   : > { %10470 = vmatprep.mubr.msk.bf16.mxu0 %vm12577_vm1, %v13077_v4  ;;  %v1168_v18 = vpack.c.bf16 %v1118_v56, %v1117_v26 }
 0x1da   : > { %v912_v22 = vpop.f32.mrb[116].mxu0 }
 0x1db   : > { %v13153_v34 = vadd.f32 %v912_v22, %v12854_v41  ;;  %v10362_v25 = vpop.f32.mrb[117].mxu0 }
 0x1dc   : > { %v915_v24 = vpop.f32.mrb[118].mxu0 }
 0x1dd   : > { %v13156_v29 = vadd.f32 %v915_v24, %v12856_v44  ;;  %v10363_v37 = vpop.f32.mrb[119].mxu0  ;;  %v1119_v24 = vld [vmem:[%s12690_s21 + $0x42] sm:$0xff] }
 0x1df   : > { %10471 = vmatmul.mubr.msk.bf16.gmra.mrb[224].mxu0 %vm443_vm2, %v1167_v14  ;;  %v1654_v14 = vpack.c.bf16 %v13035_v50, %v13024_v35 }
 0x1e0   : > { %10474 = vmatprep.mubr.msk.bf16.mxu0 %vm12577_vm1, %v13077_v4 }
 0x1e1   : > { %10649 = vmatmul.mubr.msk.bf16.vlgmr.msra.gmra.mrb[0].mxu1 %vm443_vm2, %v1654_v14 }
 0x1e2   : > { %v920_v59 = vpop.f32.mrb[120].mxu0  ;;  %10652 = vmatprep.mubr.msk.bf16.mxu1 %vm12577_vm1, %v13077_v4 }
 0x1e3   : > { %v13164_v41 = vadd.f32 %v920_v59, %v12863_v48  ;;  %v10366_v22 = vpop.f32.mrb[121].mxu0  ;;  %v1120_v48 = vld [vmem:[%s12690_s21 + $0x4a] sm:$0xff] }
 0x1e4   : > { %v923_v49 = vpop.f32.mrb[122].mxu0  ;;  %v1169_v56 = vpack.c.bf16 %v1120_v48, %v1119_v24  ;;  %v1655_v22 = vpack.c.bf16 %v13050_v8, %v13038_v53  ;;  %v1656_v48 = vpack.c.bf16 %v13065_v30, %v13053_v10 }
 0x1e5   : > { %v13167_v44 = vadd.f32 %v923_v49, %v12865_v51  ;;  %v10367_v25 = vpop.f32.mrb[123].mxu0 }
 0x1e7   : > { %10475 = vmatmul.mubr.msk.bf16.gmra.mrb[228].mxu0 %vm443_vm2, %v1168_v18  ;;  %v1121_v18 = vld [vmem:[%s12690_s21 + $0x52] sm:$0xff] }
 0x1e8   : > { %10478 = vmatprep.mubr.msk.bf16.mxu0 %vm12577_vm1, %v13077_v4 }
 0x1e9   : > { %10653 = vmatmul.mubr.msk.bf16.gmra.mrb[4].mxu1 %vm443_vm2, %v1655_v22  ;;  %v1657_v22 = vpack.c.bf16 %v13082_v1, %v13068_v31 }
 0x1ea   : > { %v928_v37 = vpop.f32.mrb[124].mxu0  ;;  %10656 = vmatprep.mubr.msk.bf16.mxu1 %vm12577_vm1, %v13077_v4 }
 0x1eb   : > { %v13180_v51 = vadd.f32 %v928_v37, %v12872_v55  ;;  %v10370_v26 = vpop.f32.mrb[125].mxu0  ;;  %v1122_v55 = vld [vmem:[%s12690_s21 + $0x5a] sm:$0xff]  ;;  %v1123_v37 = vld [vmem:[%s12690_s21 + $0x62] sm:$0xff] }
 0x1ec   : > { %v931_v59 = vpop.f32.mrb[126].mxu0  ;;  %v1170_v14 = vpack.c.bf16 %v1122_v55, %v1121_v18  ;;  %v1125_v18 = vld [vmem:[%s12690_s21 + $0x72] sm:$0xff] }
 0x1ed   : > { %v13183_v35 = vadd.f32 %v931_v59, %v12874_v58  ;;  %v10371_v50 = vpop.f32.mrb[127].mxu0 }
 0x1ef   : > { %10479 = vmatmul.mubr.msk.bf16.gmra.mrb[232].mxu0 %vm443_vm2, %v1169_v56 }
 0x1f0   : > { %10482 = vmatprep.mubr.msk.bf16.mxu0 %vm12577_vm1, %v13077_v4 }
 0x1f1   : > { %10657 = vmatmul.mubr.msk.bf16.gmra.mrb[8].mxu1 %vm443_vm2, %v1656_v48 }
 0x1f2   : > { %v936_v49 = vpop.f32.mrb[128].mxu0  ;;  %10660 = vmatprep.mubr.msk.bf16.mxu1 %vm12577_vm1, %v13077_v4 }
 0x1f3   : > { %v13196_v58 = vadd.f32 %v936_v49, %v12881_v62  ;;  %v10374_v25 = vpop.f32.mrb[129].mxu0  ;;  %v1124_v62 = vld [vmem:[%s12690_s21 + $0x6a] sm:$0xff] }
 0x1f4   : > { %v939_v24 = vpop.f32.mrb[130].mxu0  ;;  %v1171_v59 = vpack.c.bf16 %v1124_v62, %v1123_v37 }
 0x1f5   : > { %v13199_v53 = vadd.f32 %v939_v24, %v12883_v2  ;;  %v10375_v8 = vpop.f32.mrb[131].mxu0  ;;  %v1658_v24 = vpack.c.bf16 %v13097_v57, %v13085_v15 }
 0x1f6   : > { %v1127_v8 = vld [vmem:[%s12690_s21 + $0x82] sm:$0xff] }
 0x1f7   : > { %10483 = vmatmul.mubr.msk.bf16.gmra.mrb[236].mxu0 %vm443_vm2, %v1170_v14 }
 0x1f8   : > { %10486 = vmatprep.mubr.msk.bf16.mxu0 %vm12577_vm1, %v13077_v4 }
 0x1f9   : > { %10661 = vmatmul.mubr.msk.bf16.gmra.mrb[12].mxu1 %vm443_vm2, %v1657_v22 }
 0x1fa   : > { %v944_v26 = vpop.f32.mrb[132].mxu0  ;;  %10664 = vmatprep.mubr.msk.bf16.mxu1 %vm12577_vm1, %v13077_v4 }
 0x1fb   : > { %v13212_v2 = vadd.f32 %v944_v26, %v12890_v6  ;;  %v10378_v56 = vpop.f32.mrb[133].mxu0  ;;  %v1126_v6 = vld [vmem:[%s12690_s21 + $0x7a] sm:$0xff] }
 0x1fc   : > { %v947_v50 = vpop.f32.mrb[134].mxu0  ;;  %v1172_v25 = vpack.c.bf16 %v1126_v6, %v1125_v18  ;;  %v1659_v56 = vpack.c.bf16 %v13112_v43, %v13100_v39  ;;  %v1632_v6 = vld [vmem:[%s12690_s21 + $0x1b0] sm:$0xff] }
 0x1fd   : > { %v13215_v10 = vadd.f32 %v947_v50, %v12892_v9  ;;  %v10379_v30 = vpop.f32.mrb[135].mxu0 }
 0x1ff   : > { %10487 = vmatmul.mubr.msk.bf16.gmra.mrb[240].mxu0 %vm443_vm2, %v1171_v59  ;;  %v1129_v59 = vld [vmem:[%s12690_s21 + $0x92] sm:$0xff] }
 0x200   : > { %10490 = vmatprep.mubr.msk.bf16.mxu0 %vm12577_vm1, %v13077_v4 }
 0x201   : > { %10665 = vmatmul.mubr.msk.bf16.gmra.mrb[16].mxu1 %vm443_vm2, %v1658_v24 }
 0x202   : > { %v952_v55 = vpop.f32.mrb[136].mxu0  ;;  %10668 = vmatprep.mubr.msk.bf16.mxu1 %vm12577_vm1, %v13077_v4 }
 0x203   : > { %v13228_v9 = vadd.f32 %v952_v55, %v12899_v13  ;;  %v10382_v49 = vpop.f32.mrb[137].mxu0  ;;  %v1128_v13 = vld [vmem:[%s12690_s21 + $0x8a] sm:$0xff]  ;;  %v1660_v55 = vpack.c.bf16 %v1632_v6, %v13115_v63 }
 0x204   : > { %v955_v14 = vpop.f32.mrb[138].mxu0  ;;  %v1173_v62 = vpack.c.bf16 %v1128_v13, %v1127_v8  ;;  %v1131_v49 = vld [vmem:[%s12690_s21 + $0xa2] sm:$0xff]  ;;  %v1633_v13 = vld [vmem:[%s12690_s21 + $0x1b8] sm:$0xff] }
 0x205   : > { %v13231_v31 = vadd.f32 %v955_v14, %v12901_v16  ;;  %v10383_v1 = vpop.f32.mrb[139].mxu0 }
 0x207   : > { %10491 = vmatmul.mubr.msk.bf16.gmra.mrb[244].mxu0 %vm443_vm2, %v1172_v25 }
 0x208   : > { %10494 = vmatprep.mubr.msk.bf16.mxu0 %vm12577_vm1, %v13077_v4 }
 0x209   : > { %10669 = vmatmul.mubr.msk.bf16.gmra.mrb[20].mxu1 %vm443_vm2, %v1659_v56 }
 0x20a   : > { %v960_v48 = vpop.f32.mrb[140].mxu0  ;;  %10672 = vmatprep.mubr.msk.bf16.mxu1 %vm12577_vm1, %v13077_v4 }
 0x20b   : > { %v13244_v16 = vadd.f32 %v960_v48, %v12908_v20  ;;  %v10386_v37 = vpop.f32.mrb[141].mxu0  ;;  %v1130_v20 = vld [vmem:[%s12690_s21 + $0x9a] sm:$0xff] }
 0x20c   : > { %v963_v26 = vpop.f32.mrb[142].mxu0  ;;  %v1174_v22 = vpack.c.bf16 %v1130_v20, %v1129_v59  ;;  %v1634_v48 = vld [vmem:[%s12690_s21 + $0x1c0] sm:$0xff] }
 0x20d   : > { %v13247_v57 = vadd.f32 %v963_v26, %v12910_v23  ;;  %v10387_v15 = vpop.f32.mrb[143].mxu0  ;;  %v1661_v37 = vpack.c.bf16 %v1634_v48, %v1633_v13  ;;  %v1139_v48 = vld [vmem:[%s12690_s21 + $0xe2] sm:$0xff] }
 0x20f   : > { %10495 = vmatmul.mubr.msk.bf16.gmra.mrb[248].mxu0 %vm443_vm2, %v1173_v62  ;;  %v1133_v62 = vld [vmem:[%s12690_s21 + $0xb2] sm:$0xff] }
 0x210   : > { %10498 = vmatprep.mubr.msk.bf16.mxu0 %vm12577_vm1, %v13077_v4 }
 0x211   : > { %10673 = vmatmul.mubr.msk.bf16.gmra.mrb[24].mxu1 %vm443_vm2, %v1660_v55 }
 0x212   : > { %v968_v50 = vpop.f32.mrb[144].mxu0  ;;  %10676 = vmatprep.mubr.msk.bf16.mxu1 %vm12577_vm1, %v13077_v4 }
 0x213   : > { %v13260_v23 = vadd.f32 %v968_v50, %v12917_v28  ;;  %v10390_v30 = vpop.f32.mrb[145].mxu0  ;;  %v1132_v28 = vld [vmem:[%s12690_s21 + $0xaa] sm:$0xff] }
 0x214   : > { %v971_v18 = vpop.f32.mrb[146].mxu0  ;;  %v1175_v1 = vpack.c.bf16 %v1132_v28, %v1131_v49  ;;  %v1135_v30 = vld [vmem:[%s12690_s21 + $0xc2] sm:$0xff]  ;;  %v1137_v28 = vld [vmem:[%s12690_s21 + $0xd2] sm:$0xff] }
 0x215   : > { %v13263_v39 = vadd.f32 %v971_v18, %v12919_v32  ;;  %v10391_v43 = vpop.f32.mrb[147].mxu0 }
 0x217   : > { %10499 = vmatmul.mubr.msk.bf16.gmra.mrb[252].mxu0 %vm443_vm2, %v1174_v22  ;;  %v1136_v22 = vld [vmem:[%s12690_s21 + $0xca] sm:$0xff] }
 0x218   : > { %10502 = vmatprep.mubr.msk.bf16.mxu0 %vm12577_vm1, %v13077_v4  ;;  %v1177_v6 = vpack.c.bf16 %v1136_v22, %v1135_v30 }
 0x219   : > { %10677 = vmatmul.mubr.msk.bf16.gmra.mrb[28].mxu1 %vm443_vm2, %v1661_v37  ;;  %v1140_v37 = vld [vmem:[%s12690_s21 + $0xea] sm:$0xff] }
 0x21a   : > { %v976_v25 = vpop.f32.mrb[148].mxu0  ;;  %10792 = vmatprep.mubr.msk.bf16.mxu1 %vm12577_vm1, %v13077_v4 }
 0x21b   : > { %v13276_v32 = vadd.f32 %v976_v25, %v12926_v38  ;;  %v10394_v14 = vpop.f32.mrb[149].mxu0  ;;  %v1134_v38 = vld [vmem:[%s12690_s21 + $0xba] sm:$0xff] }
 0x21c   : > { %v979_v24 = vpop.f32.mrb[150].mxu0  ;;  %v1176_v56 = vpack.c.bf16 %v1134_v38, %v1133_v62  ;;  %v1138_v25 = vld [vmem:[%s12690_s21 + $0xda] sm:$0xff] }
 0x21d   : > { %v13279_v63 = vadd.f32 %v979_v24, %v12928_v42  ;;  %v10395_v8 = vpop.f32.mrb[151].mxu0  ;;  %v1178_v24 = vpack.c.bf16 %v1138_v25, %v1137_v28 }
 0x21f   : > { %10503 = vmatmul.mubr.msk.bf16.gmra.mrb[0].mxu0 %vm443_vm2, %v1175_v1 }
 0x220   : > { %10506 = vmatprep.mubr.msk.bf16.mxu0 %vm12577_vm1, %v13077_v4 }
 0x222   : > { %v984_v26 = vpop.f32.mrb[152].mxu0 }
 0x223   : > { %v13292_v42 = vadd.f32 %v984_v26, %v12935_v47  ;;  %v10398_v15 = vpop.f32.mrb[153].mxu0  ;;  %v1179_v26 = vpack.c.bf16 %v1140_v37, %v1139_v48 }
 0x224   : > { %v987_v59 = vpop.f32.mrb[154].mxu0 }
 0x225   : > { %v13295_v20 = vadd.f32 %v987_v59, %v12937_v52  ;;  %v10399_v50 = vpop.f32.mrb[155].mxu0  ;;  %v1141_v59 = vld [vmem:[%s12690_s21 + $0xf2] sm:$0xff] }
 0x226   : > { %v1142_v50 = vld [vmem:[%s12690_s21 + $0xfa] sm:$0xff] }
 0x227   : > { %10507 = vmatmul.mubr.msk.bf16.gmra.mrb[4].mxu0 %vm443_vm2, %v1176_v56 }
 0x228   : > { %10510 = vmatprep.mubr.msk.bf16.mxu0 %vm12577_vm1, %v13077_v4 }
 0x22a   : > { %v992_v18 = vpop.f32.mrb[156].mxu0 }
 0x22b   : > { %v13303_v47 = vadd.f32 %v992_v18, %v12951_v60  ;;  %v10402_v43 = vpop.f32.mrb[157].mxu0  ;;  %v1180_v18 = vpack.c.bf16 %v1142_v50, %v1141_v59 }
 0x22c   : > { %v995_v55 = vpop.f32.mrb[158].mxu0 }
 0x22d   : > { %v13306_v52 = vadd.f32 %v995_v55, %v12954_v0  ;;  %v10403_v49 = vpop.f32.mrb[159].mxu0  ;;  %v1143_v55 = vld [vmem:[%s12690_s21 + $0x102] sm:$0xff] }
 0x22e   : > { %v1144_v49 = vld [vmem:[%s12690_s21 + $0x10a] sm:$0xff] }
 0x22f   : > { %10511 = vmatmul.mubr.msk.bf16.gmra.mrb[8].mxu0 %vm443_vm2, %v1177_v6 }
 0x230   : > { %10514 = vmatprep.mubr.msk.bf16.mxu0 %vm12577_vm1, %v13077_v4 }
 0x232   : > { %v1000_v14 = vpop.f32.mrb[160].mxu0 }
 0x233   : > { %v13314_v60 = vadd.f32 %v1000_v14, %v12961_v7  ;;  %v10406_v1 = vpop.f32.mrb[161].mxu0  ;;  %v1181_v14 = vpack.c.bf16 %v1144_v49, %v1143_v55  ;;  %v17006_v49 = vld [vmem:[#allocation6_spill] sm:$0xff] }
 0x234   : > { %v1003_v8 = vpop.f32.mrb[162].mxu0 }
 0x235   : > { %v13317_v0 = vadd.f32 %v1003_v8, %v12963_v11  ;;  %v10407_v13 = vpop.f32.mrb[163].mxu0  ;;  %v1145_v8 = vld [vmem:[%s12690_s21 + $0x112] sm:$0xff] }
 0x236   : > { %v1146_v13 = vld [vmem:[%s12690_s21 + $0x11a] sm:$0xff] }
 0x237   : > { %10515 = vmatmul.mubr.msk.bf16.gmra.mrb[12].mxu0 %vm443_vm2, %v1178_v24 }
 0x238   : > { %10518 = vmatprep.mubr.msk.bf16.mxu0 %vm12577_vm1, %v13077_v4 }
 0x23a   : > { %v1008_v62 = vpop.f32.mrb[164].mxu0 }
 0x23b   : > { %v13325_v7 = vadd.f32 %v1008_v62, %v12970_v17  ;;  %v10410_v38 = vpop.f32.mrb[165].mxu0  ;;  %v1182_v62 = vpack.c.bf16 %v1146_v13, %v1145_v8  ;;  %v1151_v8 = vld [vmem:[%s12690_s21 + $0x142] sm:$0xff]  ;;  %v1152_v13 = vld [vmem:[%s12690_s21 + $0x14a] sm:$0xff] }
 0x23c   : > { %v1011_v15 = vpop.f32.mrb[166].mxu0 }
 0x23d   : > { %v13328_v11 = vadd.f32 %v1011_v15, %v12972_v21  ;;  %v10411_v56 = vpop.f32.mrb[167].mxu0  ;;  %v1147_v15 = vld [vmem:[%s12690_s21 + $0x122] sm:$0xff] }
 0x23e   : > { %v1148_v56 = vld [vmem:[%s12690_s21 + $0x12a] sm:$0xff] }
 0x23f   : > { %10519 = vmatmul.mubr.msk.bf16.gmra.mrb[16].mxu0 %vm443_vm2, %v1179_v26 }
 0x240   : > { %10522 = vmatprep.mubr.msk.bf16.mxu0 %vm12577_vm1, %v13077_v4 }
 0x242   : > { %v1016_v30 = vpop.f32.mrb[168].mxu0 }
 0x243   : > { %v13336_v17 = vadd.f32 %v1016_v30, %v12979_v27  ;;  %v10414_v22 = vpop.f32.mrb[169].mxu0  ;;  %v1183_v30 = vpack.c.bf16 %v1148_v56, %v1147_v15  ;;  %v17009_v56 = vld [vmem:[#allocation9_spill] sm:$0xff] }
 0x244   : > { %v1019_v43 = vpop.f32.mrb[170].mxu0 }
 0x245   : > { %v13339_v21 = vadd.f32 %v1019_v43, %v12981_v33  ;;  %v10415_v6 = vpop.f32.mrb[171].mxu0  ;;  %v1149_v43 = vld [vmem:[%s12690_s21 + $0x132] sm:$0xff] }
 0x246   : > { %v1150_v6 = vld [vmem:[%s12690_s21 + $0x13a] sm:$0xff] }
 0x247   : > { %10523 = vmatmul.mubr.msk.bf16.gmra.mrb[20].mxu0 %vm443_vm2, %v1180_v18 }
 0x248   : > { %10526 = vmatprep.mubr.msk.bf16.mxu0 %vm12577_vm1, %v13077_v4 }
 0x24a   : > { %v1024_v28 = vpop.f32.mrb[172].mxu0 }
 0x24b   : > { %v13347_v27 = vadd.f32 %v1024_v28, %v12988_v40  ;;  %v10418_v25 = vpop.f32.mrb[173].mxu0 }
 0x24c   : > { %v1027_v1 = vpop.f32.mrb[174].mxu0  ;;  %v1184_v25 = vpack.c.bf16 %v1150_v6, %v1149_v43  ;;  %v17010_v43 = vld [vmem:[#allocation10_spill] sm:$0xff] }
 0x24d   : > { %v13350_v33 = vadd.f32 %v1027_v1, %v12990_v46  ;;  %v10419_v24 = vpop.f32.mrb[175].mxu0  ;;  %v17007_v1 = vld [vmem:[#allocation7_spill] sm:$0xff] }
 0x24f   : > { %10527 = vmatmul.mubr.msk.bf16.gmra.mrb[24].mxu0 %vm443_vm2, %v1181_v14 }
 0x250   : > { %10530 = vmatprep.mubr.msk.bf16.mxu0 %vm12577_vm1, %v13077_v4 }
 0x252   : > { %v1032_v48 = vpop.f32.mrb[176].mxu0 }
 0x253   : > { %v13358_v40 = vadd.f32 %v1032_v48, %v12997_v54  ;;  %v10422_v37 = vpop.f32.mrb[177].mxu0 }
 0x254   : > { %v1035_v38 = vpop.f32.mrb[178].mxu0  ;;  %v17008_v37 = vld [vmem:[#allocation8_spill] sm:$0xff] }
 0x255   : > { %v13361_v46 = vadd.f32 %v1035_v38, %v12999_v61  ;;  %v10423_v26 = vpop.f32.mrb[179].mxu0 }
 0x256   : > { %v1185_v26 = vpack.c.bf16 %v1152_v13, %v1151_v8  ;;  %v1156_v8 = vld [vmem:[%s12690_s21 + $0x16a] sm:$0xff] }
 0x257   : > { %10531 = vmatmul.mubr.msk.bf16.gmra.mrb[28].mxu0 %vm443_vm2, %v1182_v62 }
 0x258   : > { %10534 = vmatprep.mubr.msk.bf16.mxu0 %vm12577_vm1, %v13077_v4 }
 0x25a   : > { %v1040_v59 = vpop.f32.mrb[180].mxu0 }
 0x25b   : > { %v13369_v54 = vadd.f32 %v1040_v59, %v13006_v5  ;;  %v10426_v50 = vpop.f32.mrb[181].mxu0 }
 0x25c   : > { %v1043_v22 = vpop.f32.mrb[182].mxu0 }
 0x25d   : > { %v13372_v61 = vadd.f32 %v1043_v22, %v13008_v12  ;;  %v10427_v18 = vpop.f32.mrb[183].mxu0  ;;  %v1154_v22 = vld [vmem:[%s12690_s21 + $0x15a] sm:$0xff] }
 0x25f   : > { %10535 = vmatmul.mubr.msk.bf16.gmra.mrb[32].mxu0 %vm443_vm2, %v1183_v30  ;;  %v1153_v30 = vld [vmem:[%s12690_s21 + $0x152] sm:$0xff] }
 0x260   : > { %10538 = vmatprep.mubr.msk.bf16.mxu0 %vm12577_vm1, %v13077_v4 }
 0x262   : > { %v1048_v55 = vpop.f32.mrb[184].mxu0 }
 0x263   : > { %v13380_v5 = vadd.f32 %v1048_v55, %v17006_v49  ;;  %v10430_v28 = vpop.f32.mrb[185].mxu0  ;;  %v1186_v49 = vpack.c.bf16 %v1154_v22, %v1153_v30  ;;  %v1157_v22 = vld [vmem:[%s12690_s21 + $0x172] sm:$0xff] }
 0x264   : > { %v1051_v14 = vpop.f32.mrb[186].mxu0 }
 0x265   : > { %v13383_v12 = vadd.f32 %v1051_v14, %v17007_v1  ;;  %v10431_v24 = vpop.f32.mrb[187].mxu0 }
 0x266   : > { %v1155_v24 = vld [vmem:[%s12690_s21 + $0x162] sm:$0xff] }
 0x267   : > { %10539 = vmatmul.mubr.msk.bf16.gmra.mrb[36].mxu0 %vm443_vm2, %v1184_v25  ;;  %v17011_v25 = vld [vmem:[#allocation11_spill] sm:$0xff] }
 0x268   : > { %10542 = vmatprep.mubr.msk.bf16.mxu0 %vm12577_vm1, %v13077_v4 }
 0x26a   : > { %v1056_v48 = vpop.f32.mrb[188].mxu0 }
 0x26b   : > { %v13391_v62 = vadd.f32 %v1056_v48, %v17008_v37  ;;  %v10434_v38 = vpop.f32.mrb[189].mxu0  ;;  %v17012_v48 = vld [vmem:[#allocation12_spill] sm:$0xff] }
 0x26c   : > { %v1059_v15 = vpop.f32.mrb[190].mxu0 }
 0x26d   : > { %v13394_v59 = vadd.f32 %v1059_v15, %v17009_v56  ;;  %v10435_v50 = vpop.f32.mrb[191].mxu0  ;;  %v17013_v56 = vld [vmem:[#allocation13_spill] sm:$0xff] }
 0x26f   : > { %10543 = vmatmul.mubr.msk.bf16.gmra.mrb[40].mxu0 %vm443_vm2, %v1185_v26  ;;  %v1187_v26 = vpack.c.bf16 %v1156_v8, %v1155_v24  ;;  %v17015_v24 = vld [vmem:[#allocation15_spill] sm:$0xff] }
 0x270   : > { %10546 = vmatprep.mubr.msk.bf16.mxu0 %vm12577_vm1, %v13077_v4 }
 0x272   : > { %v1064_v18 = vpop.f32.mrb[192].mxu0 }
 0x273   : > { %v13402_v6 = vadd.f32 %v1064_v18, %v17010_v43  ;;  %v10438_v55 = vpop.f32.mrb[193].mxu0  ;;  %v1158_v18 = vld [vmem:[%s12690_s21 + $0x17a] sm:$0xff] }
 0x274   : > { %v1067_v28 = vpop.f32.mrb[194].mxu0  ;;  %v17014_v55 = vld [vmem:[#allocation14_spill] sm:$0xff] }
 0x275   : > { %v13405_v14 = vadd.f32 %v1067_v28, %v17011_v25  ;;  %v10439_v1 = vpop.f32.mrb[195].mxu0  ;;  %v1188_v25 = vpack.c.bf16 %v1158_v18, %v1157_v22 }
 0x277   : > { %10547 = vmatmul.mubr.msk.bf16.gmra.mrb[44].mxu0 %vm443_vm2, %v1186_v49 }
 0x278   : > { %10550 = vmatprep.mubr.msk.bf16.mxu0 %vm12577_vm1, %v13077_v4 }
 0x27a   : > { %v1072_v13 = vpop.f32.mrb[196].mxu0 }
 0x27b   : > { %v13413_v37 = vadd.f32 %v1072_v13, %v17012_v48  ;;  %v10442_v38 = vpop.f32.mrb[197].mxu0  ;;  %v1159_v48 = vld [vmem:[%s12690_s21 + $0x182] sm:$0xff] }
 0x27c   : > { %v1075_v15 = vpop.f32.mrb[198].mxu0  ;;  %v1160_v38 = vld [vmem:[%s12690_s21 + $0x18a] sm:$0xff] }
 0x27d   : > { %v13416_v50 = vadd.f32 %v1075_v15, %v17013_v56  ;;  %v10443_v30 = vpop.f32.mrb[199].mxu0  ;;  %v17016_v15 = vld [vmem:[#allocation16_spill] sm:$0xff]  ;;  %v1189_v22 = vpack.c.bf16 %v1160_v38, %v1159_v48 }
 0x27f   : > { %10551 = vmatmul.mubr.msk.bf16.gmra.mrb[48].mxu0 %vm443_vm2, %v1187_v26 }
 0x280   : > { %10554 = vmatprep.mubr.msk.bf16.mxu0 %vm12577_vm1, %v13077_v4 }
 0x282   : > { %v1080_v43 = vpop.f32.mrb[200].mxu0 }
 0x283   : > { %v13424_v49 = vadd.f32 %v1080_v43, %v17014_v55  ;;  %v10446_v28 = vpop.f32.mrb[201].mxu0  ;;  %v17018_v43 = vld [vmem:[#allocation17_spill] sm:$0xff] }
 0x284   : > { %v1083_v1 = vpop.f32.mrb[202].mxu0 }
 0x285   : > { %v13427_v8 = vadd.f32 %v1083_v1, %v17015_v24  ;;  %v10447_v13 = vpop.f32.mrb[203].mxu0  ;;  %v1162_v1 = vld [vmem:[%s12690_s21 + $0x19a] sm:$0xff] }
 0x286   : > { %v17020_v13 = vld [vmem:[#allocation18_spill] sm:$0xff] }
 0x287   : > { %10555 = vmatmul.mubr.msk.bf16.gmra.mrb[52].mxu0 %vm443_vm2, %v1188_v25  ;;  %v1161_v25 = vld [vmem:[%s12690_s21 + $0x192] sm:$0xff] }
 0x288   : > { %10558 = vmatprep.mubr.msk.bf16.mxu0 %vm12577_vm1, %v13077_v4  ;;  %v1190_v48 = vpack.c.bf16 %v1162_v1, %v1161_v25 }
 0x28a   : > { %v1088_v26 = vpop.f32.mrb[204].mxu0 }
 0x28b   : > { %v13435_v56 = vadd.f32 %v1088_v26, %v17016_v15  ;;  %v10450_v30 = vpop.f32.mrb[205].mxu0 }
 0x28c   : > { %v1091_v18 = vpop.f32.mrb[206].mxu0  ;;  %v17022_v30 = vld [vmem:[#allocation19_spill] sm:$0xff] }
 0x28d   : > { %17017 = vst [vmem:[#allocation6_spill] sm:$0xff] %v13435_v56  ;;  %v13438_v55 = vadd.f32 %v1091_v18, %v17018_v43  ;;  %v10451_v28 = vpop.f32.mrb[207].mxu0  ;;  %v17023_v56 = vld [vmem:[#allocation20_spill] sm:$0xff] }
 0x28e   : > { %v1164_v28 = vld [vmem:[%s12690_s21 + $0x1aa] sm:$0xff] }
 0x28f   : > { %17019 = vst [vmem:[#allocation7_spill] sm:$0xff] %v13438_v55  ;;  %10559 = vmatmul.mubr.msk.bf16.gmra.mrb[56].mxu0 %vm443_vm2, %v1189_v22  ;;  %v1163_v22 = vld [vmem:[%s12690_s21 + $0x1a2] sm:$0xff] }
 0x290   : > { %10562 = vmatprep.mubr.msk.bf16.mxu0 %vm12577_vm1, %v13077_v4  ;;  %v1191_v25 = vpack.c.bf16 %v1164_v28, %v1163_v22 }
 0x292   : > { %v1096_v24 = vpop.f32.mrb[208].mxu0 }
 0x293   : > { %v13446_v26 = vadd.f32 %v1096_v24, %v17020_v13  ;;  %v10454_v15 = vpop.f32.mrb[209].mxu0 }
 0x294   : > { %v1099_v38 = vpop.f32.mrb[210].mxu0  ;;  %v17024_v15 = vld [vmem:[#allocation21_spill] sm:$0xff] }
 0x295   : > { %17021 = vst [vmem:[#allocation8_spill] sm:$0xff] %v13446_v26  ;;  %v13449_v18 = vadd.f32 %v1099_v38, %v17022_v30  ;;  %v10455_v43 = vpop.f32.mrb[211].mxu0  ;;  %v1582_v30 = vld [vmem:[%s12690_s21 + $0x20] sm:$0xff] }
 0x297   : > { %10563 = vmatmul.mubr.msk.bf16.gmra.mrb[60].mxu0 %vm443_vm2, %v1190_v48  ;;  %v1581_v48 = vld [vmem:[%s12690_s21 + $0x18] sm:$0xff] }
 0x298   : > { %10566 = vmatprep.mubr.msk.bf16.mxu0 %vm12577_vm1, %v13077_v4  ;;  %v1635_v28 = vpack.c.bf16 %v1582_v30, %v1581_v48 }
 0x29a   : > { %v1104_v55 = vpop.f32.mrb[212].mxu0 }
 0x29b   : > { %v13457_v24 = vadd.f32 %v1104_v55, %v17023_v56  ;;  %v10458_v13 = vpop.f32.mrb[213].mxu0  ;;  %v9306_v56 = vld [vmem:[%s16845_s2 + $0x8] sm:$0x3] }
 0x29c   : > { %v1107_v1 = vpop.f32.mrb[214].mxu0 }
 0x29d   : > { %v13460_v26 = vadd.f32 %v1107_v1, %v17024_v15  ;;  %v10459_v38 = vpop.f32.mrb[215].mxu0  ;;  %v2216_v15 = vsel %vm525_vm0, %v9306_v56, 0 }
 0x29e   : > { %v1583_v38 = vld [vmem:[%s12690_s21 + $0x28] sm:$0xff] }
 0x29f   : > { %10567 = vmatmul.mubr.msk.bf16.gmra.mrb[64].mxu0 %vm443_vm2, %v1191_v25 }
 0x2a0   : > { %10572 = vmatprep.mubr.msk.bf16.mxu0 %vm12577_vm1, %v13077_v4 }
 0x2a2   : > { %v1312_v43 = vpop.f32.mrb[216].mxu0 }
 0x2a3   : > { %v13471_v55 = vadd.f32 %v1312_v43, %v13129_v36  ;;  %v10464_v22 = vpop.f32.mrb[217].mxu0  ;;  %v1584_v36 = vld [vmem:[%s12690_s21 + $0x30] sm:$0xff] }
 0x2a4   : > { %v1315_v13 = vpop.f32.mrb[218].mxu0  ;;  %v1636_v43 = vpack.c.bf16 %v1584_v36, %v1583_v38 }
 0x2a5   : > { %v13474_v25 = vadd.f32 %v1315_v13, %v13132_v19  ;;  %v10465_v1 = vpop.f32.mrb[219].mxu0  ;;  %v1585_v13 = vld [vmem:[%s12690_s21 + $0x38] sm:$0xff] }
 0x2a6   : > { %v1586_v1 = vld [vmem:[%s12690_s21 + $0x40] sm:$0xff] }
 0x2a7   : > { %10573 = vmatmul.mubr.msk.bf16.vlgmr.msra.gmra.mrb[68].mxu0 %vm443_vm2, %v1635_v28  ;;  %v1637_v38 = vpack.c.bf16 %v1586_v1, %v1585_v13 }
 0x2a8   : > { %10681 = vmatpush3.bf16.msra.mxu0 %v2216_v15  ;;  %10576 = vmatprep.mubr.msk.bf16.mxu0 %vm12577_vm1, %v13077_v4 }
 0x2a9   : > { %10900 = vmatprep.subr.bf16.mxu0 %v13077_v4 }
 0x2aa   : > { %v1320_v48 = vpop.f32.mrb[220].mxu0 }
 0x2ab   : > { %v13484_v30 = vadd.f32 %v1320_v48, %v13142_v45  ;;  %v10468_v19 = vpop.f32.mrb[221].mxu0 }
 0x2ac   : > { %v1323_v22 = vpop.f32.mrb[222].mxu0 }
 0x2ad   : > { %v13487_v56 = vadd.f32 %v1323_v22, %v13145_v3  ;;  %v10469_v28 = vpop.f32.mrb[223].mxu0  ;;  %v1588_v22 = vld [vmem:[%s12690_s21 + $0x50] sm:$0xff] }
 0x2af   : > { %17025 = vst [vmem:[#allocation9_spill] sm:$0xff] %v13487_v56  ;;  %10577 = vmatmul.mubr.msk.bf16.gmra.mrb[72].mxu0 %vm443_vm2, %v1636_v43  ;;  %v1587_v43 = vld [vmem:[%s12690_s21 + $0x48] sm:$0xff] }
 0x2b0   : > { %10580 = vmatprep.mubr.msk.bf16.mxu0 %vm12577_vm1, %v13077_v4  ;;  %v1638_v13 = vpack.c.bf16 %v1588_v22, %v1587_v43  ;;  %v2521_v43 = vld [vmem:[%s12690_s21 + $0x1a] sm:$0xff]  ;;  %v2522_v22 = vld [vmem:[%s12690_s21 + $0x22] sm:$0xff] }
 0x2b2   : > { %v1328_v15 = vpop.f32.mrb[224].mxu0 }
 0x2b3   : > { %v13495_v45 = vadd.f32 %v1328_v15, %v13153_v34  ;;  %v10472_v48 = vpop.f32.mrb[225].mxu0 }
 0x2b4   : > { %v1331_v36 = vpop.f32.mrb[226].mxu0  ;;  %v9334_v48 = vld [vmem:[%s16845_s2 + $0xa] sm:$0x3] }
 0x2b5   : > { %17026 = vst [vmem:[#allocation10_spill] sm:$0xff] %v13495_v45  ;;  %v13498_v19 = vadd.f32 %v1331_v36, %v13156_v29  ;;  %v10473_v3 = vpop.f32.mrb[227].mxu0  ;;  %v13508_v29 = vpop.f32.mrb[0].mxu1  ;;  %v2524_v45 = vld [vmem:[%s12690_s21 + $0x32] sm:$0xff] }
 0x2b6   : > { %v10650_v3 = vpop.f32.mrb[1].mxu1 }
 0x2b7   : > { %17027 = vst [vmem:[#allocation11_spill] sm:$0xff] %v13498_v19  ;;  %10581 = vmatmul.mubr.msk.bf16.gmra.mrb[76].mxu0 %vm443_vm2, %v1637_v38  ;;  %v2686_v19 = vsel %vm525_vm0, %v9334_v48, 0 }
 0x2b8   : > { %10584 = vmatprep.mubr.msk.bf16.mxu0 %vm12577_vm1, %v13077_v4  ;;  %10791 = vmatpush3.bf16.msra.mxu1 %v2686_v19 }
 0x2b9   : > { %11010 = vmatprep.subr.bf16.mxu1 %v13077_v4 }
 0x2ba   : > { %v1336_v28 = vpop.f32.mrb[228].mxu0 }
 0x2bb   : > { %v13506_v34 = vadd.f32 %v1336_v28, %v13164_v41  ;;  %v10476_v15 = vpop.f32.mrb[229].mxu0  ;;  %v13517_v41 = vpop.f32.mrb[2].mxu1  ;;  %v2575_v28 = vpack.c.bf16 %v2522_v22, %v2521_v43 }
 0x2bc   : > { %v1339_v1 = vpop.f32.mrb[230].mxu0  ;;  %v10651_v15 = vpop.f32.mrb[3].mxu1 }
 0x2bd   : > { %17028 = vst [vmem:[#allocation12_spill] sm:$0xff] %v13506_v34  ;;  %v13514_v38 = vadd.f32 %v1339_v1, %v13167_v44  ;;  %v10477_v36 = vpop.f32.mrb[231].mxu0  ;;  %v1589_v44 = vld [vmem:[%s12690_s21 + $0x58] sm:$0xff]  ;;  %v1590_v1 = vld [vmem:[%s12690_s21 + $0x60] sm:$0xff]  ;;  %10793 = vmatmul.mubr.msk.bf16.vlgmr.msra.gmra.mrb[32].mxu1 %vm443_vm2, %v2575_v28  ;;  %v13533_v43 = vpop.f32.mrb[4].mxu1  ;;  %v2523_v34 = vld [vmem:[%s12690_s21 + $0x2a] sm:$0xff] }
 0x2be   : > { %10796 = vmatprep.mubr.msk.bf16.mxu1 %vm12577_vm1, %v13077_v4  ;;  %v1639_v36 = vpack.c.bf16 %v1590_v1, %v1589_v44  ;;  %v2576_v56 = vpack.c.bf16 %v2524_v45, %v2523_v34  ;;  %v1591_v44 = vld [vmem:[%s12690_s21 + $0x68] sm:$0xff]  ;;  %v1592_v1 = vld [vmem:[%s12690_s21 + $0x70] sm:$0xff] }
 0x2bf   : > { %17029 = vst [vmem:[#allocation13_spill] sm:$0xff] %v13514_v38  ;;  %10585 = vmatmul.mubr.msk.bf16.gmra.mrb[80].mxu0 %vm443_vm2, %v1638_v13  ;;  %v10654_v38 = vpop.f32.mrb[5].mxu1  ;;  %v1640_v34 = vpack.c.bf16 %v1592_v1, %v1591_v44  ;;  %v1593_v44 = vld [vmem:[%s12690_s21 + $0x78] sm:$0xff]  ;;  %v1594_v1 = vld [vmem:[%s12690_s21 + $0x80] sm:$0xff] }
 0x2c0   : > { %10588 = vmatprep.mubr.msk.bf16.mxu0 %vm12577_vm1, %v13077_v4  ;;  %v13538_v28 = vpop.f32.mrb[6].mxu1 }
 0x2c2   : > { %v1344_v48 = vpop.f32.mrb[232].mxu0 }
 0x2c3   : > { %v13531_v19 = vadd.f32 %v1344_v48, %v13180_v51  ;;  %v10480_v13 = vpop.f32.mrb[233].mxu0  ;;  %v10655_v51 = vpop.f32.mrb[7].mxu1 }
 0x2c4   : > { %v1347_v3 = vpop.f32.mrb[234].mxu0  ;;  %v13553_v13 = vpop.f32.mrb[8].mxu1  ;;  %v2525_v51 = vld [vmem:[%s12690_s21 + $0x3a] sm:$0xff] }
 0x2c5   : > { %17030 = vst [vmem:[#allocation14_spill] sm:$0xff] %v13531_v19  ;;  %v13536_v22 = vadd.f32 %v1347_v3, %v13183_v35  ;;  %v10481_v15 = vpop.f32.mrb[235].mxu0  ;;  %10797 = vmatmul.mubr.msk.bf16.gmra.mrb[36].mxu1 %vm443_vm2, %v2576_v56 }
 0x2c6   : > { %10800 = vmatprep.mubr.msk.bf16.mxu1 %vm12577_vm1, %v13077_v4  ;;  %v10658_v15 = vpop.f32.mrb[9].mxu1 }
 0x2c7   : > { %17031 = vst [vmem:[#allocation15_spill] sm:$0xff] %v13536_v22  ;;  %10589 = vmatmul.mubr.msk.bf16.gmra.mrb[84].mxu0 %vm443_vm2, %v1639_v36  ;;  %v13558_v56 = vpop.f32.mrb[10].mxu1  ;;  %v2526_v22 = vld [vmem:[%s12690_s21 + $0x42] sm:$0xff] }
 0x2c8   : > { %10592 = vmatprep.mubr.msk.bf16.mxu0 %vm12577_vm1, %v13077_v4  ;;  %v2577_v19 = vpack.c.bf16 %v2526_v22, %v2525_v51 }
 0x2ca   : > { %v1352_v35 = vpop.f32.mrb[236].mxu0 }
 0x2cb   : > { %v13551_v38 = vadd.f32 %v1352_v35, %v13196_v58  ;;  %v10484_v45 = vpop.f32.mrb[237].mxu0  ;;  %v10659_v58 = vpop.f32.mrb[11].mxu1 }
 0x2cc   : > { %v1355_v48 = vpop.f32.mrb[238].mxu0  ;;  %v1641_v45 = vpack.c.bf16 %v1594_v1, %v1593_v44  ;;  %v2527_v58 = vld [vmem:[%s12690_s21 + $0x4a] sm:$0xff] }
 0x2cd   : > { %17032 = vst [vmem:[#allocation16_spill] sm:$0xff] %v13551_v38  ;;  %v13556_v36 = vadd.f32 %v1355_v48, %v13199_v53  ;;  %v10485_v3 = vpop.f32.mrb[239].mxu0  ;;  %10801 = vmatmul.mubr.msk.bf16.gmra.mrb[40].mxu1 %vm443_vm2, %v2577_v19  ;;  %v13573_v48 = vpop.f32.mrb[12].mxu1  ;;  %v1595_v44 = vld [vmem:[%s12690_s21 + $0x88] sm:$0xff]  ;;  %v1596_v1 = vld [vmem:[%s12690_s21 + $0x90] sm:$0xff] }
 0x2ce   : > { %10804 = vmatprep.mubr.msk.bf16.mxu1 %vm12577_vm1, %v13077_v4  ;;  %v10662_v51 = vpop.f32.mrb[13].mxu1 }
 0x2cf   : > { %17033 = vst [vmem:[#allocation17_spill] sm:$0xff] %v13556_v36  ;;  %10593 = vmatmul.mubr.msk.bf16.gmra.mrb[88].mxu0 %vm443_vm2, %v1640_v34  ;;  %v13578_v19 = vpop.f32.mrb[14].mxu1  ;;  %v2528_v36 = vld [vmem:[%s12690_s21 + $0x52] sm:$0xff] }
 0x2d0   : > { %10596 = vmatprep.mubr.msk.bf16.mxu0 %vm12577_vm1, %v13077_v4  ;;  %v2578_v38 = vpack.c.bf16 %v2528_v36, %v2527_v58 }
 0x2d2   : > { %v1360_v53 = vpop.f32.mrb[240].mxu0 }
 0x2d3   : > { %v13571_v35 = vadd.f32 %v1360_v53, %v13212_v2  ;;  %v10488_v22 = vpop.f32.mrb[241].mxu0  ;;  %v10663_v2 = vpop.f32.mrb[15].mxu1 }
 0x2d4   : > { %v1363_v34 = vpop.f32.mrb[242].mxu0  ;;  %v1642_v22 = vpack.c.bf16 %v1596_v1, %v1595_v44  ;;  %v2529_v2 = vld [vmem:[%s12690_s21 + $0x5a] sm:$0xff] }
 0x2d5   : > { %17034 = vst [vmem:[#allocation18_spill] sm:$0xff] %v13571_v35  ;;  %v13576_v3 = vadd.f32 %v1363_v34, %v13215_v10  ;;  %v10489_v15 = vpop.f32.mrb[243].mxu0  ;;  %10805 = vmatmul.mubr.msk.bf16.gmra.mrb[44].mxu1 %vm443_vm2, %v2578_v38  ;;  %v13593_v34 = vpop.f32.mrb[16].mxu1  ;;  %v1597_v44 = vld [vmem:[%s12690_s21 + $0x98] sm:$0xff]  ;;  %v1598_v1 = vld [vmem:[%s12690_s21 + $0xa0] sm:$0xff] }
 0x2d6   : > { %10808 = vmatprep.mubr.msk.bf16.mxu1 %vm12577_vm1, %v13077_v4  ;;  %v10666_v58 = vpop.f32.mrb[17].mxu1 }
 0x2d7   : > { %17035 = vst [vmem:[#allocation19_spill] sm:$0xff] %v13576_v3  ;;  %10597 = vmatmul.mubr.msk.bf16.gmra.mrb[92].mxu0 %vm443_vm2, %v1641_v45  ;;  %v13598_v38 = vpop.f32.mrb[18].mxu1  ;;  %v2530_v3 = vld [vmem:[%s12690_s21 + $0x62] sm:$0xff] }
 0x2d8   : > { %10600 = vmatprep.mubr.msk.bf16.mxu0 %vm12577_vm1, %v13077_v4  ;;  %v2579_v35 = vpack.c.bf16 %v2530_v3, %v2529_v2  ;;  %v1643_v3 = vpack.c.bf16 %v1598_v1, %v1597_v44  ;;  %v1599_v44 = vld [vmem:[%s12690_s21 + $0xa8] sm:$0xff] }
 0x2da   : > { %v1368_v10 = vpop.f32.mrb[244].mxu0 }
 0x2db   : > { %v13591_v53 = vadd.f32 %v1368_v10, %v13228_v9  ;;  %v10492_v36 = vpop.f32.mrb[245].mxu0  ;;  %v10667_v9 = vpop.f32.mrb[19].mxu1 }
 0x2dc   : > { %v1371_v45 = vpop.f32.mrb[246].mxu0  ;;  %v2531_v9 = vld [vmem:[%s12690_s21 + $0x6a] sm:$0xff] }
 0x2dd   : > { %17036 = vst [vmem:[#allocation20_spill] sm:$0xff] %v13591_v53  ;;  %v13596_v15 = vadd.f32 %v1371_v45, %v13231_v31  ;;  %v10493_v51 = vpop.f32.mrb[247].mxu0  ;;  %10809 = vmatmul.mubr.msk.bf16.gmra.mrb[48].mxu1 %vm443_vm2, %v2579_v35  ;;  %v13613_v45 = vpop.f32.mrb[20].mxu1 }
 0x2de   : > { %10812 = vmatprep.mubr.msk.bf16.mxu1 %vm12577_vm1, %v13077_v4  ;;  %v10670_v2 = vpop.f32.mrb[21].mxu1 }
 0x2df   : > { %17037 = vst [vmem:[#allocation21_spill] sm:$0xff] %v13596_v15  ;;  %10601 = vmatmul.mubr.msk.bf16.gmra.mrb[96].mxu0 %vm443_vm2, %v1642_v22  ;;  %v13618_v35 = vpop.f32.mrb[22].mxu1  ;;  %v2532_v15 = vld [vmem:[%s12690_s21 + $0x72] sm:$0xff] }
 0x2e0   : > { %10604 = vmatprep.mubr.msk.bf16.mxu0 %vm12577_vm1, %v13077_v4  ;;  %v2580_v4 = vpack.c.bf16 %v2532_v15, %v2531_v9 }
 0x2e2   : > { %v1376_v31 = vpop.f32.mrb[248].mxu0 }
 0x2e3   : > { %v13611_v10 = vadd.f32 %v1376_v31, %v13244_v16  ;;  %v10496_v36 = vpop.f32.mrb[249].mxu0  ;;  %v10671_v16 = vpop.f32.mrb[23].mxu1  ;;  %v13623_v31 = vld [vmem:[#allocation2 + $0x1b0] sm:$0xff] }
 0x2e4   : > { %v1379_v22 = vpop.f32.mrb[250].mxu0 }
 0x2e5   : > { %17038 = vst [vmem:[#allocation22_spill] sm:$0xff] %v13611_v10  ;;  %v13616_v51 = vadd.f32 %v1379_v22, %v13247_v57  ;;  %v10497_v58 = vpop.f32.mrb[251].mxu0  ;;  %v1600_v57 = vld [vmem:[%s12690_s21 + $0xb0] sm:$0xff]  ;;  %10813 = vmatmul.mubr.msk.bf16.gmra.mrb[52].mxu1 %vm443_vm2, %v2580_v4  ;;  %v2534_v10 = vld [vmem:[%s12690_s21 + $0x82] sm:$0xff] }
 0x2e6   : > { %10816 = vmatprep.mubr.msk.bf16.mxu1 %vm12577_vm1, %v13623_v31  ;;  %v13635_v58 = vpop.f32.mrb[24].mxu1 }
 0x2e7   : > { %17039 = vst [vmem:[#allocation23_spill] sm:$0xff] %v13616_v51  ;;  %10605 = vmatmul.mubr.msk.bf16.gmra.mrb[100].mxu0 %vm443_vm2, %v1643_v3  ;;  %v1644_v3 = vpack.c.bf16 %v1600_v57, %v1599_v44  ;;  %v10674_v16 = vpop.f32.mrb[25].mxu1  ;;  %v2533_v51 = vld [vmem:[%s12690_s21 + $0x7a] sm:$0xff] }
 0x2e8   : > { %10608 = vmatprep.mubr.msk.bf16.mxu0 %vm12577_vm1, %v13623_v31  ;;  %v13640_v4 = vpop.f32.mrb[26].mxu1  ;;  %v2581_v53 = vpack.c.bf16 %v2534_v10, %v2533_v51  ;;  %v1601_v44 = vld [vmem:[%s12690_s21 + $0xb8] sm:$0xff]  ;;  %v1602_v57 = vld [vmem:[%s12690_s21 + $0xc0] sm:$0xff] }
 0x2e9   : > { %v1645_v51 = vpack.c.bf16 %v1602_v57, %v1601_v44  ;;  %v1603_v44 = vld [vmem:[%s12690_s21 + $0xc8] sm:$0xff]  ;;  %v1604_v57 = vld [vmem:[%s12690_s21 + $0xd0] sm:$0xff] }
 0x2ea   : > { %v1384_v1 = vpop.f32.mrb[252].mxu0 }
 0x2eb   : > { %v13633_v36 = vadd.f32 %v1384_v1, %v13260_v23  ;;  %v10500_v15 = vpop.f32.mrb[253].mxu0  ;;  %v10675_v23 = vpop.f32.mrb[27].mxu1 }
 0x2ec   : > { %v1387_v22 = vpop.f32.mrb[254].mxu0  ;;  %v2535_v23 = vld [vmem:[%s12690_s21 + $0x8a] sm:$0xff] }
 0x2ed   : > { %v13638_v2 = vadd.f32 %v1387_v22, %v13263_v39  ;;  %v10501_v9 = vpop.f32.mrb[255].mxu0  ;;  %10817 = vmatmul.mubr.msk.bf16.gmra.mrb[56].mxu1 %vm443_vm2, %v2581_v53 }
 0x2ee   : > { %10820 = vmatprep.mubr.msk.bf16.mxu1 %vm12577_vm1, %v13623_v31 }
 0x2ef   : > { %17040 = vst [vmem:[#allocation24_spill] sm:$0xff] %v13638_v2  ;;  %10609 = vmatmul.mubr.msk.bf16.gmra.mrb[104].mxu0 %vm443_vm2, %v1644_v3  ;;  %v13655_v3 = vpop.f32.mrb[28].mxu1  ;;  %v2536_v2 = vld [vmem:[%s12690_s21 + $0x92] sm:$0xff] }
 0x2f0   : > { %10612 = vmatprep.mubr.msk.bf16.mxu0 %vm12577_vm1, %v13623_v31  ;;  %v10678_v16 = vpop.f32.mrb[29].mxu1 }
 0x2f1   : > { %v13660_v53 = vpop.f32.mrb[30].mxu1 }
 0x2f2   : > { %v1392_v39 = vpop.f32.mrb[0].mxu0 }
 0x2f3   : > { %v13653_v1 = vadd.f32 %v1392_v39, %v13276_v32  ;;  %v10504_v10 = vpop.f32.mrb[1].mxu0  ;;  %v2582_v32 = vpack.c.bf16 %v2536_v2, %v2535_v23  ;;  %v10679_v39 = vpop.f32.mrb[31].mxu1  ;;  %v2537_v23 = vld [vmem:[%s12690_s21 + $0x9a] sm:$0xff] }
 0x2f4   : > { %v1395_v15 = vpop.f32.mrb[2].mxu0  ;;  %v2538_v39 = vld [vmem:[%s12690_s21 + $0xa2] sm:$0xff] }
 0x2f5   : > { %v13658_v22 = vadd.f32 %v1395_v15, %v13279_v63  ;;  %v10505_v9 = vpop.f32.mrb[3].mxu0  ;;  %10821 = vmatmul.mubr.msk.bf16.gmra.mrb[60].mxu1 %vm443_vm2, %v2582_v32  ;;  %v1646_v15 = vpack.c.bf16 %v1604_v57, %v1603_v44  ;;  %v2583_v32 = vpack.c.bf16 %v2538_v39, %v2537_v23  ;;  %v2540_v23 = vld [vmem:[%s12690_s21 + $0xb2] sm:$0xff] }
 0x2f6   : > { %10824 = vmatprep.mubr.msk.bf16.mxu1 %vm12577_vm1, %v13623_v31 }
 0x2f7   : > { %17041 = vst [vmem:[#allocation25_spill] sm:$0xff] %v13658_v22  ;;  %10613 = vmatmul.mubr.msk.bf16.gmra.mrb[108].mxu0 %vm443_vm2, %v1645_v51  ;;  %v1605_v22 = vld [vmem:[%s12690_s21 + $0xd8] sm:$0xff] }
 0x2f8   : > { %10616 = vmatprep.mubr.msk.bf16.mxu0 %vm12577_vm1, %v13623_v31 }
 0x2fa   : > { %v1400_v63 = vpop.f32.mrb[4].mxu0 }
 0x2fb   : > { %v13673_v10 = vadd.f32 %v1400_v63, %v13292_v42  ;;  %v10508_v51 = vpop.f32.mrb[5].mxu0  ;;  %v1606_v42 = vld [vmem:[%s12690_s21 + $0xe0] sm:$0xff] }
 0x2fc   : > { %v1403_v2 = vpop.f32.mrb[6].mxu0  ;;  %v1647_v63 = vpack.c.bf16 %v1606_v42, %v1605_v22 }
 0x2fd   : > { %v13676_v9 = vadd.f32 %v1403_v2, %v13295_v20  ;;  %v10509_v16 = vpop.f32.mrb[7].mxu0  ;;  %10825 = vmatmul.mubr.msk.bf16.gmra.mrb[64].mxu1 %vm443_vm2, %v2583_v32  ;;  %v1607_v32 = vld [vmem:[%s12690_s21 + $0xe8] sm:$0xff] }
 0x2fe   : > { %10828 = vmatprep.mubr.msk.bf16.mxu1 %vm12577_vm1, %v13623_v31  ;;  %v2539_v16 = vld [vmem:[%s12690_s21 + $0xaa] sm:$0xff] }
 0x2ff   : > { %10617 = vmatmul.mubr.msk.bf16.gmra.mrb[112].mxu0 %vm443_vm2, %v1646_v15  ;;  %v2584_v39 = vpack.c.bf16 %v2540_v23, %v2539_v16  ;;  %v2542_v16 = vld [vmem:[%s12690_s21 + $0xc2] sm:$0xff] }
 0x300   : > { %10620 = vmatprep.mubr.msk.bf16.mxu0 %vm12577_vm1, %v13623_v31 }
 0x302   : > { %v1408_v44 = vpop.f32.mrb[8].mxu0 }
 0x303   : > { %v13689_v20 = vadd.f32 %v1408_v44, %v13303_v47  ;;  %v10512_v57 = vpop.f32.mrb[9].mxu0  ;;  %v1608_v47 = vld [vmem:[%s12690_s21 + $0xf0] sm:$0xff] }
 0x304   : > { %v1411_v51 = vpop.f32.mrb[10].mxu0  ;;  %v1648_v44 = vpack.c.bf16 %v1608_v47, %v1607_v32 }
 0x305   : > { %v13692_v15 = vadd.f32 %v1411_v51, %v13306_v52  ;;  %v10513_v2 = vpop.f32.mrb[11].mxu0  ;;  %10829 = vmatmul.mubr.msk.bf16.gmra.mrb[68].mxu1 %vm443_vm2, %v2584_v39  ;;  %v1609_v39 = vld [vmem:[%s12690_s21 + $0xf8] sm:$0xff] }
 0x306   : > { %10832 = vmatprep.mubr.msk.bf16.mxu1 %vm12577_vm1, %v13623_v31  ;;  %v2541_v2 = vld [vmem:[%s12690_s21 + $0xba] sm:$0xff] }
 0x307   : > { %10621 = vmatmul.mubr.msk.bf16.gmra.mrb[116].mxu0 %vm443_vm2, %v1647_v63  ;;  %v2585_v23 = vpack.c.bf16 %v2542_v16, %v2541_v2  ;;  %v2544_v2 = vld [vmem:[%s12690_s21 + $0xd2] sm:$0xff] }
 0x308   : > { %10624 = vmatprep.mubr.msk.bf16.mxu0 %vm12577_vm1, %v13623_v31 }
 0x30a   : > { %v1416_v22 = vpop.f32.mrb[12].mxu0 }
 0x30b   : > { %v13705_v52 = vadd.f32 %v1416_v22, %v13314_v60  ;;  %v10516_v42 = vpop.f32.mrb[13].mxu0  ;;  %v1610_v60 = vld [vmem:[%s12690_s21 + $0x100] sm:$0xff] }
 0x30c   : > { %v1419_v57 = vpop.f32.mrb[14].mxu0  ;;  %v1649_v22 = vpack.c.bf16 %v1610_v60, %v1609_v39 }
 0x30d   : > { %v13708_v63 = vadd.f32 %v1419_v57, %v13317_v0  ;;  %v10517_v51 = vpop.f32.mrb[15].mxu0  ;;  %10833 = vmatmul.mubr.msk.bf16.gmra.mrb[72].mxu1 %vm443_vm2, %v2585_v23  ;;  %v1611_v23 = vld [vmem:[%s12690_s21 + $0x108] sm:$0xff] }
 0x30e   : > { %10836 = vmatprep.mubr.msk.bf16.mxu1 %vm12577_vm1, %v13623_v31  ;;  %v2543_v51 = vld [vmem:[%s12690_s21 + $0xca] sm:$0xff] }
 0x30f   : > { %10625 = vmatmul.mubr.msk.bf16.gmra.mrb[120].mxu0 %vm443_vm2, %v1648_v44  ;;  %v2586_v16 = vpack.c.bf16 %v2544_v2, %v2543_v51  ;;  %v2546_v51 = vld [vmem:[%s12690_s21 + $0xe2] sm:$0xff] }
 0x310   : > { %10628 = vmatprep.mubr.msk.bf16.mxu0 %vm12577_vm1, %v13623_v31 }
 0x312   : > { %v1424_v32 = vpop.f32.mrb[16].mxu0 }
 0x313   : > { %v13721_v0 = vadd.f32 %v1424_v32, %v13325_v7  ;;  %v10520_v47 = vpop.f32.mrb[17].mxu0  ;;  %v1612_v7 = vld [vmem:[%s12690_s21 + $0x110] sm:$0xff] }
 0x314   : > { %v1427_v42 = vpop.f32.mrb[18].mxu0  ;;  %v1650_v32 = vpack.c.bf16 %v1612_v7, %v1611_v23 }
 0x315   : > { %v13724_v44 = vadd.f32 %v1427_v42, %v13328_v11  ;;  %v10521_v57 = vpop.f32.mrb[19].mxu0  ;;  %10837 = vmatmul.mubr.msk.bf16.gmra.mrb[76].mxu1 %vm443_vm2, %v2586_v16  ;;  %v1613_v16 = vld [vmem:[%s12690_s21 + $0x118] sm:$0xff] }
 0x316   : > { %10840 = vmatprep.mubr.msk.bf16.mxu1 %vm12577_vm1, %v13623_v31  ;;  %v2545_v57 = vld [vmem:[%s12690_s21 + $0xda] sm:$0xff] }
 0x317   : > { %10629 = vmatmul.mubr.msk.bf16.gmra.mrb[124].mxu0 %vm443_vm2, %v1649_v22  ;;  %v2587_v2 = vpack.c.bf16 %v2546_v51, %v2545_v57  ;;  %v2548_v57 = vld [vmem:[%s12690_s21 + $0xf2] sm:$0xff] }
 0x318   : > { %10632 = vmatprep.mubr.msk.bf16.mxu0 %vm12577_vm1, %v13623_v31 }
 0x31a   : > { %v1432_v39 = vpop.f32.mrb[20].mxu0 }
 0x31b   : > { %v13737_v11 = vadd.f32 %v1432_v39, %v13336_v17  ;;  %v10524_v60 = vpop.f32.mrb[21].mxu0  ;;  %v1614_v17 = vld [vmem:[%s12690_s21 + $0x120] sm:$0xff] }
 0x31c   : > { %v1435_v47 = vpop.f32.mrb[22].mxu0  ;;  %v1651_v39 = vpack.c.bf16 %v1614_v17, %v1613_v16 }
 0x31d   : > { %v13740_v22 = vadd.f32 %v1435_v47, %v13339_v21  ;;  %v10525_v42 = vpop.f32.mrb[23].mxu0  ;;  %10841 = vmatmul.mubr.msk.bf16.gmra.mrb[80].mxu1 %vm443_vm2, %v2587_v2  ;;  %v1615_v2 = vld [vmem:[%s12690_s21 + $0x128] sm:$0xff] }
 0x31e   : > { %10844 = vmatprep.mubr.msk.bf16.mxu1 %vm12577_vm1, %v13623_v31  ;;  %v2547_v42 = vld [vmem:[%s12690_s21 + $0xea] sm:$0xff] }
 0x31f   : > { %10633 = vmatmul.mubr.msk.bf16.gmra.mrb[128].mxu0 %vm443_vm2, %v1650_v32  ;;  %v2588_v51 = vpack.c.bf16 %v2548_v57, %v2547_v42  ;;  %v2550_v42 = vld [vmem:[%s12690_s21 + $0x102] sm:$0xff] }
 0x320   : > { %10636 = vmatprep.mubr.msk.bf16.mxu0 %vm12577_vm1, %v13623_v31 }
 0x322   : > { %v1440_v23 = vpop.f32.mrb[24].mxu0 }
 0x323   : > { %v13753_v21 = vadd.f32 %v1440_v23, %v13347_v27  ;;  %v10528_v7 = vpop.f32.mrb[25].mxu0  ;;  %v1616_v27 = vld [vmem:[%s12690_s21 + $0x130] sm:$0xff] }
 0x324   : > { %v1443_v60 = vpop.f32.mrb[26].mxu0  ;;  %v1652_v23 = vpack.c.bf16 %v1616_v27, %v1615_v2 }
 0x325   : > { %v13756_v32 = vadd.f32 %v1443_v60, %v13350_v33  ;;  %v10529_v47 = vpop.f32.mrb[27].mxu0  ;;  %10845 = vmatmul.mubr.msk.bf16.gmra.mrb[84].mxu1 %vm443_vm2, %v2588_v51  ;;  %v1617_v51 = vld [vmem:[%s12690_s21 + $0x138] sm:$0xff] }
 0x326   : > { %10848 = vmatprep.mubr.msk.bf16.mxu1 %vm12577_vm1, %v13623_v31  ;;  %v2549_v47 = vld [vmem:[%s12690_s21 + $0xfa] sm:$0xff] }
 0x327   : > { %10637 = vmatmul.mubr.msk.bf16.gmra.mrb[132].mxu0 %vm443_vm2, %v1651_v39  ;;  %v2589_v57 = vpack.c.bf16 %v2550_v42, %v2549_v47  ;;  %v2552_v47 = vld [vmem:[%s12690_s21 + $0x112] sm:$0xff] }
 0x328   : > { %10640 = vmatprep.mubr.msk.bf16.mxu0 %vm12577_vm1, %v13623_v31 }
 0x32a   : > { %v1448_v16 = vpop.f32.mrb[28].mxu0 }
 0x32b   : > { %v13769_v33 = vadd.f32 %v1448_v16, %v13358_v40  ;;  %v10532_v17 = vpop.f32.mrb[29].mxu0  ;;  %v1618_v40 = vld [vmem:[%s12690_s21 + $0x140] sm:$0xff] }
 0x32c   : > { %v1451_v7 = vpop.f32.mrb[30].mxu0  ;;  %v1653_v16 = vpack.c.bf16 %v1618_v40, %v1617_v51 }
 0x32d   : > { %v13772_v39 = vadd.f32 %v1451_v7, %v13361_v46  ;;  %v10533_v60 = vpop.f32.mrb[31].mxu0  ;;  %10849 = vmatmul.mubr.msk.bf16.gmra.mrb[88].mxu1 %vm443_vm2, %v2589_v57  ;;  %v2051_v57 = vld [vmem:[%s12690_s21 + $0x19] sm:$0xff] }
 0x32e   : > { %10852 = vmatprep.mubr.msk.bf16.mxu1 %vm12577_vm1, %v13623_v31  ;;  %v2551_v60 = vld [vmem:[%s12690_s21 + $0x10a] sm:$0xff] }
 0x32f   : > { %17042 = vst [vmem:[#allocation26_spill] sm:$0xff] %v13772_v39  ;;  %10641 = vmatmul.mubr.msk.bf16.gmra.mrb[136].mxu0 %vm443_vm2, %v1652_v23  ;;  %v2590_v42 = vpack.c.bf16 %v2552_v47, %v2551_v60 }
 0x330   : > { %10644 = vmatprep.mubr.msk.bf16.mxu0 %vm12577_vm1, %v13623_v31 }
 0x332   : > { %v1456_v2 = vpop.f32.mrb[32].mxu0 }
 0x333   : > { %v13785_v46 = vadd.f32 %v1456_v2, %v13369_v54  ;;  %v10536_v27 = vpop.f32.mrb[33].mxu0  ;;  %v2052_v54 = vld [vmem:[%s12690_s21 + $0x21] sm:$0xff] }
 0x334   : > { %v1459_v17 = vpop.f32.mrb[34].mxu0  ;;  %v2105_v27 = vpack.c.bf16 %v2052_v54, %v2051_v57 }
 0x335   : > { %17043 = vst [vmem:[#allocation27_spill] sm:$0xff] %v13785_v46  ;;  %v13788_v23 = vadd.f32 %v1459_v17, %v13372_v61  ;;  %v10537_v7 = vpop.f32.mrb[35].mxu0  ;;  %10853 = vmatmul.mubr.msk.bf16.gmra.mrb[92].mxu1 %vm443_vm2, %v2590_v42  ;;  %v9362_v61 = vld [vmem:[%s16845_s2 + $0xc] sm:$0x3]  ;;  %v2553_v42 = vld [vmem:[%s12690_s21 + $0x11a] sm:$0xff] }
 0x336   : > { %10856 = vmatprep.mubr.msk.bf16.mxu1 %vm12577_vm1, %v13623_v31  ;;  %v3156_v60 = vsel %vm525_vm0, %v9362_v61, 0 }
 0x337   : > { %17044 = vst [vmem:[#allocation28_spill] sm:$0xff] %v13788_v23  ;;  %10645 = vmatmul.mubr.msk.bf16.gmra.mrb[140].mxu0 %vm443_vm2, %v1653_v16  ;;  %v2554_v23 = vld [vmem:[%s12690_s21 + $0x122] sm:$0xff] }
 0x338   : > { %10682 = vmatprep.mubr.msk.bf16.mxu0 %vm12577_vm1, %v13623_v31  ;;  %v2591_v46 = vpack.c.bf16 %v2554_v23, %v2553_v42 }
 0x33a   : > { %v1464_v51 = vpop.f32.mrb[36].mxu0 }
 0x33b   : > { %v1565_v40 = vadd.f32 %v1464_v51, %v13380_v5  ;;  %v10540_v2 = vpop.f32.mrb[37].mxu0  ;;  %v2053_v5 = vld [vmem:[%s12690_s21 + $0x29] sm:$0xff] }
 0x33c   : > { %v1467_v16 = vpop.f32.mrb[38].mxu0  ;;  %v2556_v2 = vld [vmem:[%s12690_s21 + $0x132] sm:$0xff] }
 0x33d   : > { %v1566_v17 = vadd.f32 %v1467_v16, %v13383_v12  ;;  %v10541_v7 = vpop.f32.mrb[39].mxu0  ;;  %v13807_v47 = vadd.f32 %v13508_v29, %v1565_v40  ;;  %v13819_v12 = vld [vmem:[%s12690_s21 + $0x31] sm:$0xff]  ;;  %10857 = vmatmul.mubr.msk.bf16.gmra.mrb[96].mxu1 %vm443_vm2, %v2591_v46 }
 0x33e   : > { %10860 = vmatprep.mubr.msk.bf16.mxu1 %vm12577_vm1, %v13623_v31  ;;  %v2106_v57 = vpack.c.bf16 %v13819_v12, %v2053_v5  ;;  %v2555_v46 = vld [vmem:[%s12690_s21 + $0x12a] sm:$0xff] }
 0x33f   : > { %17045 = vst [vmem:[#allocation29_spill] sm:$0xff] %v13807_v47  ;;  %10683 = vmatmul.mubr.msk.bf16.vlgmr.msra.gmra.mrb[144].mxu0 %vm443_vm2, %v2105_v27  ;;  %v13813_v39 = vadd.f32 %v13517_v41, %v1566_v17  ;;  %v2592_v27 = vpack.c.bf16 %v2556_v2, %v2555_v46  ;;  %v14135_v47 = vld [vmem:[%s12690_s21 + $0x101] sm:$0xff] }
 0x340   : > { %10901 = vmatpush3.bf16.msra.mxu0 %v3156_v60  ;;  %10686 = vmatprep.mubr.msk.bf16.mxu0 %vm12577_vm1, %v13623_v31 }
 0x341   : > { %17046 = vst [vmem:[#allocation30_spill] sm:$0xff] %v13813_v39  ;;  %11120 = vmatprep.subr.bf16.mxu0 %v13623_v31 }
 0x342   : > { %v1472_v29 = vpop.f32.mrb[40].mxu0 }
 0x343   : > { %v1567_v41 = vadd.f32 %v1472_v29, %v13391_v62  ;;  %v10544_v23 = vpop.f32.mrb[41].mxu0  ;;  %v13840_v62 = vld [vmem:[%s12690_s21 + $0x39] sm:$0xff] }
 0x344   : > { %v1475_v54 = vpop.f32.mrb[42].mxu0  ;;  %v2558_v23 = vld [vmem:[%s12690_s21 + $0x142] sm:$0xff] }
 0x345   : > { %v1568_v51 = vadd.f32 %v1475_v54, %v13394_v59  ;;  %v10545_v61 = vpop.f32.mrb[43].mxu0  ;;  %v13829_v40 = vadd.f32 %v13533_v43, %v1567_v41  ;;  %v13843_v59 = vld [vmem:[%s12690_s21 + $0x41] sm:$0xff]  ;;  %10861 = vmatmul.mubr.msk.bf16.gmra.mrb[100].mxu1 %vm443_vm2, %v2592_v27  ;;  %v13864_v54 = vld [vmem:[%s12690_s21 + $0x49] sm:$0xff] }
 0x346   : > { %10864 = vmatprep.mubr.msk.bf16.mxu1 %vm12577_vm1, %v13623_v31  ;;  %v2557_v41 = vld [vmem:[%s12690_s21 + $0x13a] sm:$0xff] }
 0x347   : > { %17047 = vst [vmem:[#allocation31_spill] sm:$0xff] %v13829_v40  ;;  %10687 = vmatmul.mubr.msk.bf16.gmra.mrb[148].mxu0 %vm443_vm2, %v2106_v57  ;;  %v13835_v16 = vadd.f32 %v13538_v28, %v1568_v51  ;;  %v2107_v28 = vpack.c.bf16 %v13843_v59, %v13840_v62  ;;  %v2593_v57 = vpack.c.bf16 %v2558_v23, %v2557_v41 }
 0x348   : > { %10690 = vmatprep.mubr.msk.bf16.mxu0 %vm12577_vm1, %v13623_v31 }
 0x349   : > { %17048 = vst [vmem:[#allocation32_spill] sm:$0xff] %v13835_v16 }
 0x34a   : > { %v1480_v43 = vpop.f32.mrb[44].mxu0 }
 0x34b   : > { %v1569_v17 = vadd.f32 %v1480_v43, %v13402_v6  ;;  %v10548_v7 = vpop.f32.mrb[45].mxu0 }
 0x34c   : > { %v1483_v60 = vpop.f32.mrb[46].mxu0  ;;  %v2560_v7 = vld [vmem:[%s12690_s21 + $0x152] sm:$0xff] }
 0x34d   : > { %v1570_v42 = vadd.f32 %v1483_v60, %v13405_v14  ;;  %v10549_v5 = vpop.f32.mrb[47].mxu0  ;;  %v13853_v29 = vadd.f32 %v13553_v13, %v1569_v17  ;;  %v13867_v14 = vld [vmem:[%s12690_s21 + $0x51] sm:$0xff]  ;;  %10865 = vmatmul.mubr.msk.bf16.gmra.mrb[104].mxu1 %vm443_vm2, %v2593_v57  ;;  %v13888_v60 = vld [vmem:[%s12690_s21 + $0x59] sm:$0xff] }
 0x34e   : > { %10868 = vmatprep.mubr.msk.bf16.mxu1 %vm12577_vm1, %v13623_v31  ;;  %v2559_v17 = vld [vmem:[%s12690_s21 + $0x14a] sm:$0xff] }
 0x34f   : > { %17049 = vst [vmem:[#allocation33_spill] sm:$0xff] %v13853_v29  ;;  %10691 = vmatmul.mubr.msk.bf16.gmra.mrb[152].mxu0 %vm443_vm2, %v2107_v28  ;;  %v13859_v6 = vadd.f32 %v13558_v56, %v1570_v42  ;;  %v2108_v56 = vpack.c.bf16 %v13867_v14, %v13864_v54  ;;  %v2594_v28 = vpack.c.bf16 %v2560_v7, %v2559_v17  ;;  %v14109_v29 = vld [vmem:[%s12690_s21 + $0xf1] sm:$0xff] }
 0x350   : > { %10694 = vmatprep.mubr.msk.bf16.mxu0 %vm12577_vm1, %v13623_v31 }
 0x351   : > { %17050 = vst [vmem:[#allocation34_spill] sm:$0xff] %v13859_v6 }
 0x352   : > { %v1488_v13 = vpop.f32.mrb[48].mxu0 }
 0x353   : > { %v1571_v51 = vadd.f32 %v1488_v13, %v13413_v37  ;;  %v10552_v61 = vpop.f32.mrb[49].mxu0 }
 0x354   : > { %v1491_v46 = vpop.f32.mrb[50].mxu0  ;;  %v2562_v61 = vld [vmem:[%s12690_s21 + $0x162] sm:$0xff] }
 0x355   : > { %v1572_v2 = vadd.f32 %v1491_v46, %v13416_v50  ;;  %v10553_v27 = vpop.f32.mrb[51].mxu0  ;;  %v13877_v43 = vadd.f32 %v13573_v48, %v1571_v51  ;;  %v13891_v50 = vld [vmem:[%s12690_s21 + $0x61] sm:$0xff]  ;;  %10869 = vmatmul.mubr.msk.bf16.gmra.mrb[108].mxu1 %vm443_vm2, %v2594_v28  ;;  %v13912_v46 = vld [vmem:[%s12690_s21 + $0x69] sm:$0xff] }
 0x356   : > { %10872 = vmatprep.mubr.msk.bf16.mxu1 %vm12577_vm1, %v13623_v31  ;;  %v2561_v51 = vld [vmem:[%s12690_s21 + $0x15a] sm:$0xff] }
 0x357   : > { %17051 = vst [vmem:[#allocation35_spill] sm:$0xff] %v13877_v43  ;;  %10695 = vmatmul.mubr.msk.bf16.gmra.mrb[156].mxu0 %vm443_vm2, %v2108_v56  ;;  %v13883_v37 = vadd.f32 %v13578_v19, %v1572_v2  ;;  %v2109_v19 = vpack.c.bf16 %v13891_v50, %v13888_v60  ;;  %v2595_v56 = vpack.c.bf16 %v2562_v61, %v2561_v51  ;;  %v17055_v2 = vld [vmem:[#allocation6_spill] sm:$0xff]  ;;  %v17056_v28 = vld [vmem:[#allocation7_spill] sm:$0xff] }
 0x358   : > { %10698 = vmatprep.mubr.msk.bf16.mxu0 %vm12577_vm1, %v13623_v31  ;;  %v13936_v51 = vld [vmem:[%s12690_s21 + $0x79] sm:$0xff]  ;;  %v13939_v61 = vld [vmem:[%s12690_s21 + $0x81] sm:$0xff] }
 0x359   : > { %17052 = vst [vmem:[#allocation36_spill] sm:$0xff] %v13883_v37  ;;  %v14080_v37 = vld [vmem:[%s12690_s21 + $0xd9] sm:$0xff] }
 0x35a   : > { %v1496_v48 = vpop.f32.mrb[52].mxu0 }
 0x35b   : > { %v1573_v42 = vadd.f32 %v1496_v48, %v13424_v49  ;;  %v10556_v5 = vpop.f32.mrb[53].mxu0 }
 0x35c   : > { %v1499_v41 = vpop.f32.mrb[54].mxu0 }
 0x35d   : > { %v1574_v23 = vadd.f32 %v1499_v41, %v13427_v8  ;;  %v10557_v57 = vpop.f32.mrb[55].mxu0  ;;  %v13901_v13 = vadd.f32 %v13593_v34, %v1573_v42  ;;  %v13915_v8 = vld [vmem:[%s12690_s21 + $0x71] sm:$0xff]  ;;  %10873 = vmatmul.mubr.msk.bf16.gmra.mrb[112].mxu1 %vm443_vm2, %v2595_v56  ;;  %v17059_v56 = vld [vmem:[#allocation8_spill] sm:$0xff] }
 0x35e   : > { %10876 = vmatprep.mubr.msk.bf16.mxu1 %vm12577_vm1, %v13623_v31  ;;  %v2564_v41 = vld [vmem:[%s12690_s21 + $0x172] sm:$0xff] }
 0x35f   : > { %17053 = vst [vmem:[#allocation37_spill] sm:$0xff] %v13901_v13  ;;  %10699 = vmatmul.mubr.msk.bf16.gmra.mrb[160].mxu0 %vm443_vm2, %v2109_v19  ;;  %v13907_v49 = vadd.f32 %v13598_v38, %v1574_v23  ;;  %v2110_v38 = vpack.c.bf16 %v13915_v8, %v13912_v46  ;;  %v2563_v19 = vld [vmem:[%s12690_s21 + $0x16a] sm:$0xff] }
 0x360   : > { %10702 = vmatprep.mubr.msk.bf16.mxu0 %vm12577_vm1, %v13623_v31  ;;  %v2596_v23 = vpack.c.bf16 %v2564_v41, %v2563_v19  ;;  %v13960_v41 = vld [vmem:[%s12690_s21 + $0x89] sm:$0xff] }
 0x361   : > { %17054 = vst [vmem:[#allocation38_spill] sm:$0xff] %v13907_v49 }
 0x362   : > { %v1504_v34 = vpop.f32.mrb[56].mxu0 }
 0x363   : > { %v1575_v27 = vadd.f32 %v1504_v34, %v17055_v2  ;;  %v10560_v17 = vpop.f32.mrb[57].mxu0 }
 0x364   : > { %v1507_v7 = vpop.f32.mrb[58].mxu0 }
 0x365   : > { %v1576_v48 = vadd.f32 %v1507_v7, %v17056_v28  ;;  %v10561_v42 = vpop.f32.mrb[59].mxu0  ;;  %v13925_v5 = vadd.f32 %v13613_v45, %v1575_v27  ;;  %10877 = vmatmul.mubr.msk.bf16.gmra.mrb[116].mxu1 %vm443_vm2, %v2596_v23  ;;  %v2565_v28 = vld [vmem:[%s12690_s21 + $0x17a] sm:$0xff] }
 0x366   : > { %10880 = vmatprep.mubr.msk.bf16.mxu1 %vm12577_vm1, %v13623_v31 }
 0x367   : > { %17057 = vst [vmem:[#allocation6_spill] sm:$0xff] %v13925_v5  ;;  %10703 = vmatmul.mubr.msk.bf16.gmra.mrb[164].mxu0 %vm443_vm2, %v2110_v38  ;;  %v13931_v57 = vadd.f32 %v13618_v35, %v1576_v48  ;;  %v2111_v35 = vpack.c.bf16 %v13939_v61, %v13936_v51  ;;  %v2566_v48 = vld [vmem:[%s12690_s21 + $0x182] sm:$0xff] }
 0x368   : > { %10706 = vmatprep.mubr.msk.bf16.mxu0 %vm12577_vm1, %v13623_v31  ;;  %v2597_v42 = vpack.c.bf16 %v2566_v48, %v2565_v28  ;;  %v13984_v28 = vld [vmem:[%s12690_s21 + $0x99] sm:$0xff] }
 0x369   : > { %17058 = vst [vmem:[#allocation7_spill] sm:$0xff] %v13931_v57 }
 0x36a   : > { %v1512_v45 = vpop.f32.mrb[60].mxu0 }
 0x36b   : > { %v1577_v34 = vadd.f32 %v1512_v45, %v17059_v56  ;;  %v10564_v2 = vpop.f32.mrb[61].mxu0 }
 0x36c   : > { %v1515_v27 = vpop.f32.mrb[62].mxu0 }
 0x36d   : > { %v1578_v17 = vadd.f32 %v1515_v27, %v13449_v18  ;;  %v10565_v38 = vpop.f32.mrb[63].mxu0  ;;  %v13949_v7 = vadd.f32 %v13635_v58, %v1577_v34  ;;  %v13963_v18 = vld [vmem:[%s12690_s21 + $0x91] sm:$0xff]  ;;  %10881 = vmatmul.mubr.msk.bf16.gmra.mrb[120].mxu1 %vm443_vm2, %v2597_v42 }
 0x36e   : > { %10884 = vmatprep.mubr.msk.bf16.mxu1 %vm12577_vm1, %v13623_v31  ;;  %v2567_v27 = vld [vmem:[%s12690_s21 + $0x18a] sm:$0xff] }
 0x36f   : > { %17060 = vst [vmem:[#allocation8_spill] sm:$0xff] %v13949_v7  ;;  %10707 = vmatmul.mubr.msk.bf16.gmra.mrb[168].mxu0 %vm443_vm2, %v2111_v35  ;;  %v13955_v19 = vadd.f32 %v13640_v4, %v1578_v17  ;;  %v2112_v4 = vpack.c.bf16 %v13963_v18, %v13960_v41  ;;  %v2568_v17 = vld [vmem:[%s12690_s21 + $0x192] sm:$0xff]  ;;  %v14050_v7 = vld [vmem:[%s12690_s21 + $0xc9] sm:$0xff] }
 0x370   : > { %10710 = vmatprep.mubr.msk.bf16.mxu0 %vm12577_vm1, %v13623_v31  ;;  %v2598_v38 = vpack.c.bf16 %v2568_v17, %v2567_v27 }
 0x371   : > { %17061 = vst [vmem:[#allocation39_spill] sm:$0xff] %v13955_v19  ;;  %v2574_v19 = vld [vmem:[%s12690_s21 + $0x1c2] sm:$0xff] }
 0x372   : > { %v1520_v58 = vpop.f32.mrb[64].mxu0 }
 0x373   : > { %v1579_v23 = vadd.f32 %v1520_v58, %v13457_v24  ;;  %v10568_v45 = vpop.f32.mrb[65].mxu0 }
 0x374   : > { %v1523_v56 = vpop.f32.mrb[66].mxu0 }
 0x375   : > { %v1580_v34 = vadd.f32 %v1523_v56, %v13460_v26  ;;  %v10569_v2 = vpop.f32.mrb[67].mxu0  ;;  %v13973_v35 = vadd.f32 %v13655_v3, %v1579_v23  ;;  %v13987_v26 = vld [vmem:[%s12690_s21 + $0xa1] sm:$0xff]  ;;  %10885 = vmatmul.mubr.msk.bf16.gmra.mrb[124].mxu1 %vm443_vm2, %v2598_v38 }
 0x376   : > { %10888 = vmatprep.mubr.msk.bf16.mxu1 %vm12577_vm1, %v13623_v31  ;;  %v2113_v42 = vpack.c.bf16 %v13987_v26, %v13984_v28  ;;  %v2570_v56 = vld [vmem:[%s12690_s21 + $0x1a2] sm:$0xff]  ;;  %v14009_v2 = vld [vmem:[%s12690_s21 + $0xb1] sm:$0xff] }
 0x377   : > { %17062 = vst [vmem:[#allocation40_spill] sm:$0xff] %v13973_v35  ;;  %10711 = vmatmul.mubr.msk.bf16.gmra.mrb[172].mxu0 %vm443_vm2, %v2112_v4  ;;  %v13979_v24 = vadd.f32 %v13660_v53, %v1580_v34  ;;  %v2569_v4 = vld [vmem:[%s12690_s21 + $0x19a] sm:$0xff] }
 0x378   : > { %10714 = vmatprep.mubr.msk.bf16.mxu0 %vm12577_vm1, %v13623_v31  ;;  %v2599_v34 = vpack.c.bf16 %v2570_v56, %v2569_v4  ;;  %v2572_v4 = vld [vmem:[%s12690_s21 + $0x1b2] sm:$0xff]  ;;  %v2573_v35 = vld [vmem:[%s12690_s21 + $0x1ba] sm:$0xff] }
 0x379   : > { %17063 = vst [vmem:[#allocation41_spill] sm:$0xff] %v13979_v24 }
 0x37a   : > { %v1782_v3 = vpop.f32.mrb[68].mxu0 }
 0x37b   : > { %v13993_v48 = vadd.f32 %v1782_v3, %v13471_v55  ;;  %v10574_v53 = vpop.f32.mrb[69].mxu0  ;;  %v14006_v55 = vld [vmem:[%s12690_s21 + $0xa9] sm:$0xff] }
 0x37c   : > { %v1785_v58 = vpop.f32.mrb[70].mxu0  ;;  %v2114_v38 = vpack.c.bf16 %v14009_v2, %v14006_v55  ;;  %v17064_v53 = vld [vmem:[#allocation9_spill] sm:$0xff] }
 0x37d   : > { %v13998_v23 = vadd.f32 %v1785_v58, %v13474_v25  ;;  %v10575_v45 = vpop.f32.mrb[71].mxu0  ;;  %10889 = vmatmul.mubr.msk.bf16.gmra.mrb[128].mxu1 %vm443_vm2, %v2599_v34  ;;  %v14031_v34 = vld [vmem:[%s12690_s21 + $0xc1] sm:$0xff] }
 0x37e   : > { %10892 = vmatprep.mubr.msk.bf16.mxu1 %vm12577_vm1, %v13623_v31  ;;  %v2571_v45 = vld [vmem:[%s12690_s21 + $0x1aa] sm:$0xff] }
 0x37f   : > { %10715 = vmatmul.mubr.msk.bf16.gmra.mrb[176].mxu0 %vm443_vm2, %v2113_v42  ;;  %v2600_v56 = vpack.c.bf16 %v2572_v4, %v2571_v45  ;;  %v17066_v45 = vld [vmem:[#allocation11_spill] sm:$0xff] }
 0x380   : > { %10718 = vmatprep.mubr.msk.bf16.mxu0 %vm12577_vm1, %v13623_v31 }
 0x382   : > { %v1790_v25 = vpop.f32.mrb[72].mxu0 }
 0x383   : > { %v14015_v27 = vadd.f32 %v1790_v25, %v13484_v30  ;;  %v10578_v17 = vpop.f32.mrb[73].mxu0  ;;  %v14028_v30 = vld [vmem:[%s12690_s21 + $0xb9] sm:$0xff] }
 0x384   : > { %v1793_v3 = vpop.f32.mrb[74].mxu0  ;;  %v17065_v17 = vld [vmem:[#allocation10_spill] sm:$0xff] }
 0x385   : > { %v14020_v42 = vadd.f32 %v1793_v3, %v17064_v53  ;;  %v10579_v58 = vpop.f32.mrb[75].mxu0  ;;  %10893 = vmatmul.mubr.msk.bf16.gmra.mrb[132].mxu1 %vm443_vm2, %v2600_v56  ;;  %v2115_v53 = vpack.c.bf16 %v14031_v34, %v14028_v30  ;;  %v2601_v56 = vpack.c.bf16 %v2574_v19, %v2573_v35 }
 0x386   : > { %10896 = vmatprep.mubr.msk.bf16.mxu1 %vm12577_vm1, %v13623_v31 }
 0x387   : > { %10719 = vmatmul.mubr.msk.bf16.gmra.mrb[180].mxu0 %vm443_vm2, %v2114_v38 }
 0x388   : > { %10722 = vmatprep.mubr.msk.bf16.mxu0 %vm12577_vm1, %v13623_v31 }
 0x38a   : > { %v1798_v25 = vpop.f32.mrb[76].mxu0 }
 0x38b   : > { %v14037_v3 = vadd.f32 %v1798_v25, %v17065_v17  ;;  %v10582_v38 = vpop.f32.mrb[77].mxu0  ;;  %v14053_v25 = vld [vmem:[%s12690_s21 + $0xd1] sm:$0xff] }
 0x38c   : > { %v1801_v58 = vpop.f32.mrb[78].mxu0  ;;  %v17067_v38 = vld [vmem:[#allocation12_spill] sm:$0xff]  ;;  %v2116_v19 = vpack.c.bf16 %v14053_v25, %v14050_v7 }
 0x38d   : > { %v14042_v4 = vadd.f32 %v1801_v58, %v17066_v45  ;;  %v10583_v24 = vpop.f32.mrb[79].mxu0  ;;  %10897 = vmatmul.mubr.msk.bf16.gmra.mrb[136].mxu1 %vm443_vm2, %v2601_v56  ;;  %v9390_v45 = vld [vmem:[%s16845_s2 + $0xe] sm:$0x3]  ;;  %v17068_v56 = vld [vmem:[#allocation13_spill] sm:$0xff] }
 0x38e   : > { %11012 = vmatprep.mubr.msk.bf16.mxu1 %vm12577_vm1, %v13623_v31 }
 0x38f   : > { %10723 = vmatmul.mubr.msk.bf16.gmra.mrb[184].mxu0 %vm443_vm2, %v2115_v53 }
 0x390   : > { %10726 = vmatprep.mubr.msk.bf16.mxu0 %vm12577_vm1, %v13623_v31  ;;  %v14063_v53 = vpop.f32.mrb[32].mxu1 }
 0x391   : > { %v10794_v49 = vpop.f32.mrb[33].mxu1 }
 0x392   : > { %v1806_v17 = vpop.f32.mrb[80].mxu0 }
 0x393   : > { %v14059_v24 = vadd.f32 %v1806_v17, %v17067_v38  ;;  %v10586_v58 = vpop.f32.mrb[81].mxu0  ;;  %v3626_v17 = vsel %vm525_vm0, %v9390_v45, 0  ;;  %v14072_v38 = vpop.f32.mrb[34].mxu1 }
 0x394   : > { %v1809_v35 = vpop.f32.mrb[82].mxu0  ;;  %11011 = vmatpush3.bf16.msra.mxu1 %v3626_v17  ;;  %v3515_v58 = vpack.c.bf16 %v13840_v62, %v13819_v12  ;;  %v10795_v13 = vpop.f32.mrb[35].mxu1 }
 0x395   : > { %v14069_v57 = vadd.f32 %v1809_v35, %v17068_v56  ;;  %v10587_v5 = vpop.f32.mrb[83].mxu0  ;;  %v14083_v35 = vld [vmem:[%s12690_s21 + $0xe1] sm:$0xff] }
 0x396   : > { %v17070_v5 = vld [vmem:[#allocation14_spill] sm:$0xff]  ;;  %v2117_v62 = vpack.c.bf16 %v14083_v35, %v14080_v37  ;;  %v17072_v56 = vld [vmem:[#allocation15_spill] sm:$0xff] }
 0x397   : > { %17069 = vst [vmem:[#allocation9_spill] sm:$0xff] %v14069_v57  ;;  %10727 = vmatmul.mubr.msk.bf16.gmra.mrb[188].mxu0 %vm443_vm2, %v2116_v19  ;;  %11013 = vmatmul.mubr.msk.bf16.vlgmr.msra.gmra.mrb[140].mxu1 %vm443_vm2, %v3515_v58  ;;  %v3520_v57 = vpack.c.bf16 %v13960_v41, %v13939_v61 }
 0x398   : > { %10730 = vmatprep.mubr.msk.bf16.mxu0 %vm12577_vm1, %v13623_v31  ;;  %11016 = vmatprep.mubr.msk.bf16.mxu1 %vm12577_vm1, %v13623_v31  ;;  %v14093_v45 = vpop.f32.mrb[36].mxu1 }
 0x399   : > { %v10798_v43 = vpop.f32.mrb[37].mxu1 }
 0x39a   : > { %v1814_v49 = vpop.f32.mrb[84].mxu0  ;;  %v14098_v6 = vpop.f32.mrb[38].mxu1  ;;  %v17074_v43 = vld [vmem:[#allocation16_spill] sm:$0xff] }
 0x39b   : > { %v14089_v19 = vadd.f32 %v1814_v49, %v17070_v5  ;;  %v10590_v12 = vpop.f32.mrb[85].mxu0  ;;  %v3516_v49 = vpack.c.bf16 %v13864_v54, %v13843_v59  ;;  %v10799_v5 = vpop.f32.mrb[39].mxu1 }
 0x39c   : > { %v1817_v13 = vpop.f32.mrb[86].mxu0  ;;  %v14106_v12 = vld [vmem:[%s12690_s21 + $0xe9] sm:$0xff] }
 0x39d   : > { %17071 = vst [vmem:[#allocation10_spill] sm:$0xff] %v14089_v19  ;;  %v14096_v17 = vadd.f32 %v1817_v13, %v17072_v56  ;;  %v10591_v58 = vpop.f32.mrb[87].mxu0  ;;  %v2118_v54 = vpack.c.bf16 %v14109_v29, %v14106_v12  ;;  %v17076_v5 = vld [vmem:[#allocation17_spill] sm:$0xff] }
 0x39f   : > { %17073 = vst [vmem:[#allocation11_spill] sm:$0xff] %v14096_v17  ;;  %10731 = vmatmul.mubr.msk.bf16.gmra.mrb[192].mxu0 %vm443_vm2, %v2117_v62  ;;  %11017 = vmatmul.mubr.msk.bf16.gmra.mrb[144].mxu1 %vm443_vm2, %v3516_v49 }
 0x3a0   : > { %10734 = vmatprep.mubr.msk.bf16.mxu0 %vm12577_vm1, %v13623_v31  ;;  %11020 = vmatprep.mubr.msk.bf16.mxu1 %vm12577_vm1, %v13623_v31  ;;  %v14119_v58 = vpop.f32.mrb[40].mxu1 }
 0x3a1   : > { %v10802_v40 = vpop.f32.mrb[41].mxu1 }
 0x3a2   : > { %v1822_v13 = vpop.f32.mrb[88].mxu0  ;;  %v14124_v39 = vpop.f32.mrb[42].mxu1  ;;  %v17078_v40 = vld [vmem:[#allocation18_spill] sm:$0xff] }
 0x3a3   : > { %v14115_v62 = vadd.f32 %v1822_v13, %v17074_v43  ;;  %v10594_v59 = vpop.f32.mrb[89].mxu0  ;;  %v3517_v13 = vpack.c.bf16 %v13888_v60, %v13867_v14  ;;  %v10803_v43 = vpop.f32.mrb[43].mxu1 }
 0x3a4   : > { %v1825_v56 = vpop.f32.mrb[90].mxu0  ;;  %v14132_v59 = vld [vmem:[%s12690_s21 + $0xf9] sm:$0xff] }
 0x3a5   : > { %17075 = vst [vmem:[#allocation12_spill] sm:$0xff] %v14115_v62  ;;  %v14122_v16 = vadd.f32 %v1825_v56, %v17076_v5  ;;  %v10595_v49 = vpop.f32.mrb[91].mxu0  ;;  %v2119_v60 = vpack.c.bf16 %v14135_v47, %v14132_v59  ;;  %v17080_v43 = vld [vmem:[#allocation19_spill] sm:$0xff] }
 0x3a7   : > { %17077 = vst [vmem:[#allocation13_spill] sm:$0xff] %v14122_v16  ;;  %10735 = vmatmul.mubr.msk.bf16.gmra.mrb[196].mxu0 %vm443_vm2, %v2118_v54  ;;  %11021 = vmatmul.mubr.msk.bf16.gmra.mrb[148].mxu1 %vm443_vm2, %v3517_v13 }
 0x3a8   : > { %10738 = vmatprep.mubr.msk.bf16.mxu0 %vm12577_vm1, %v13623_v31  ;;  %11024 = vmatprep.mubr.msk.bf16.mxu1 %vm12577_vm1, %v13623_v31  ;;  %v14145_v49 = vpop.f32.mrb[44].mxu1 }
 0x3a9   : > { %v10806_v62 = vpop.f32.mrb[45].mxu1 }
 0x3aa   : > { %v1830_v56 = vpop.f32.mrb[92].mxu0  ;;  %v14150_v17 = vpop.f32.mrb[46].mxu1  ;;  %v17083_v62 = vld [vmem:[#allocation20_spill] sm:$0xff] }
 0x3ab   : > { %v14141_v54 = vadd.f32 %v1830_v56, %v17078_v40  ;;  %v10598_v14 = vpop.f32.mrb[93].mxu0  ;;  %17082 = vst [vmem:[#allocation16_spill] sm:$0xff] %v14150_v17  ;;  %v3518_v56 = vpack.c.bf16 %v13912_v46, %v13891_v50  ;;  %v10807_v40 = vpop.f32.mrb[47].mxu1 }
 0x3ac   : > { %v1833_v5 = vpop.f32.mrb[94].mxu0  ;;  %v14158_v14 = vld [vmem:[%s12690_s21 + $0x109] sm:$0xff] }
 0x3ad   : > { %17079 = vst [vmem:[#allocation14_spill] sm:$0xff] %v14141_v54  ;;  %v14148_v16 = vadd.f32 %v1833_v5, %v17080_v43  ;;  %v10599_v13 = vpop.f32.mrb[95].mxu0  ;;  %v14161_v54 = vld [vmem:[%s12690_s21 + $0x111] sm:$0xff] }
 0x3ae   : > { %v2120_v46 = vpack.c.bf16 %v14161_v54, %v14158_v14  ;;  %v17086_v40 = vld [vmem:[#allocation21_spill] sm:$0xff] }
 0x3af   : > { %17081 = vst [vmem:[#allocation15_spill] sm:$0xff] %v14148_v16  ;;  %10739 = vmatmul.mubr.msk.bf16.gmra.mrb[200].mxu0 %vm443_vm2, %v2119_v60  ;;  %11025 = vmatmul.mubr.msk.bf16.gmra.mrb[152].mxu1 %vm443_vm2, %v3518_v56 }
 0x3b0   : > { %10742 = vmatprep.mubr.msk.bf16.mxu0 %vm12577_vm1, %v13623_v31  ;;  %11028 = vmatprep.mubr.msk.bf16.mxu1 %vm12577_vm1, %v13623_v31  ;;  %v14171_v13 = vpop.f32.mrb[48].mxu1 }
 0x3b1   : > { %17085 = vst [vmem:[#allocation18_spill] sm:$0xff] %v14171_v13  ;;  %v10810_v19 = vpop.f32.mrb[49].mxu1 }
 0x3b2   : > { %v1838_v5 = vpop.f32.mrb[96].mxu0  ;;  %v14176_v17 = vpop.f32.mrb[50].mxu1  ;;  %v17089_v19 = vld [vmem:[#allocation22_spill] sm:$0xff] }
 0x3b3   : > { %v14167_v60 = vadd.f32 %v1838_v5, %v17083_v62  ;;  %v10602_v50 = vpop.f32.mrb[97].mxu0  ;;  %17088 = vst [vmem:[#allocation20_spill] sm:$0xff] %v14176_v17  ;;  %v3519_v5 = vpack.c.bf16 %v13936_v51, %v13915_v8  ;;  %v10811_v62 = vpop.f32.mrb[51].mxu1 }
 0x3b4   : > { %v1841_v43 = vpop.f32.mrb[98].mxu0  ;;  %v14184_v50 = vld [vmem:[%s12690_s21 + $0x119] sm:$0xff] }
 0x3b5   : > { %17084 = vst [vmem:[#allocation17_spill] sm:$0xff] %v14167_v60  ;;  %v14174_v16 = vadd.f32 %v1841_v43, %v17086_v40  ;;  %v10603_v56 = vpop.f32.mrb[99].mxu0  ;;  %v2084_v60 = vld [vmem:[%s12690_s21 + $0x121] sm:$0xff] }
 0x3b6   : > { %v2121_v8 = vpack.c.bf16 %v2084_v60, %v14184_v50  ;;  %v17091_v62 = vld [vmem:[#allocation23_spill] sm:$0xff]  ;;  %v14207_v60 = vld [vmem:[%s12690_s21 + $0x129] sm:$0xff] }
 0x3b7   : > { %17087 = vst [vmem:[#allocation19_spill] sm:$0xff] %v14174_v16  ;;  %10743 = vmatmul.mubr.msk.bf16.gmra.mrb[204].mxu0 %vm443_vm2, %v2120_v46  ;;  %11029 = vmatmul.mubr.msk.bf16.gmra.mrb[156].mxu1 %vm443_vm2, %v3519_v5 }
 0x3b8   : > { %10746 = vmatprep.mubr.msk.bf16.mxu0 %vm12577_vm1, %v13623_v31  ;;  %11032 = vmatprep.mubr.msk.bf16.mxu1 %vm12577_vm1, %v13623_v31  ;;  %v14194_v56 = vpop.f32.mrb[52].mxu1 }
 0x3b9   : > { %v10814_v5 = vpop.f32.mrb[53].mxu1 }
 0x3ba   : > { %v1846_v43 = vpop.f32.mrb[100].mxu0  ;;  %v14199_v13 = vpop.f32.mrb[54].mxu1 }
 0x3bb   : > { %v14191_v46 = vadd.f32 %v1846_v43, %v17089_v19  ;;  %v10606_v40 = vpop.f32.mrb[101].mxu0  ;;  %v10815_v43 = vpop.f32.mrb[55].mxu1  ;;  %v2086_v19 = vld [vmem:[%s12690_s21 + $0x131] sm:$0xff] }
 0x3bc   : > { %v1849_v51 = vpop.f32.mrb[102].mxu0  ;;  %v2122_v61 = vpack.c.bf16 %v2086_v19, %v14207_v60  ;;  %v14230_v19 = vld [vmem:[%s12690_s21 + $0x139] sm:$0xff] }
 0x3bd   : > { %17090 = vst [vmem:[#allocation21_spill] sm:$0xff] %v14191_v46  ;;  %v14197_v16 = vadd.f32 %v1849_v51, %v17091_v62  ;;  %v10607_v17 = vpop.f32.mrb[103].mxu0  ;;  %v17094_v62 = vld [vmem:[#allocation24_spill] sm:$0xff]  ;;  %v3521_v46 = vpack.c.bf16 %v13984_v28, %v13963_v18 }
 0x3bf   : > { %17092 = vst [vmem:[#allocation22_spill] sm:$0xff] %v14197_v16  ;;  %10747 = vmatmul.mubr.msk.bf16.gmra.mrb[208].mxu0 %vm443_vm2, %v2121_v8  ;;  %11033 = vmatmul.mubr.msk.bf16.gmra.mrb[160].mxu1 %vm443_vm2, %v3520_v57 }
 0x3c0   : > { %10750 = vmatprep.mubr.msk.bf16.mxu0 %vm12577_vm1, %v13623_v31  ;;  %11036 = vmatprep.mubr.msk.bf16.mxu1 %vm12577_vm1, %v13623_v31  ;;  %v14217_v51 = vpop.f32.mrb[56].mxu1 }
 0x3c1   : > { %v10818_v57 = vpop.f32.mrb[57].mxu1 }
 0x3c2   : > { %v1854_v40 = vpop.f32.mrb[104].mxu0  ;;  %v14222_v16 = vpop.f32.mrb[58].mxu1 }
 0x3c3   : > { %v14214_v17 = vadd.f32 %v1854_v40, %v13633_v36  ;;  %v10610_v8 = vpop.f32.mrb[105].mxu0  ;;  %v10819_v36 = vpop.f32.mrb[59].mxu1  ;;  %v2088_v40 = vld [vmem:[%s12690_s21 + $0x141] sm:$0xff] }
 0x3c4   : > { %v1857_v41 = vpop.f32.mrb[106].mxu0  ;;  %v2123_v18 = vpack.c.bf16 %v2088_v40, %v14230_v19  ;;  %v2089_v40 = vld [vmem:[%s12690_s21 + $0x149] sm:$0xff] }
 0x3c5   : > { %17093 = vst [vmem:[#allocation23_spill] sm:$0xff] %v14214_v17  ;;  %v14220_v5 = vadd.f32 %v1857_v41, %v17094_v62  ;;  %v10611_v43 = vpop.f32.mrb[107].mxu0  ;;  %v3522_v17 = vpack.c.bf16 %v14006_v55, %v13987_v26 }
 0x3c6   : > { %v17097_v43 = vld [vmem:[#allocation25_spill] sm:$0xff] }
 0x3c7   : > { %17095 = vst [vmem:[#allocation24_spill] sm:$0xff] %v14220_v5  ;;  %10751 = vmatmul.mubr.msk.bf16.gmra.mrb[212].mxu0 %vm443_vm2, %v2122_v61  ;;  %11037 = vmatmul.mubr.msk.bf16.gmra.mrb[164].mxu1 %vm443_vm2, %v3521_v46 }
 0x3c8   : > { %10754 = vmatprep.mubr.msk.bf16.mxu0 %vm12577_vm1, %v13623_v31  ;;  %11040 = vmatprep.mubr.msk.bf16.mxu1 %vm12577_vm1, %v13623_v31  ;;  %v14240_v62 = vpop.f32.mrb[60].mxu1 }
 0x3c9   : > { %v10822_v46 = vpop.f32.mrb[61].mxu1 }
 0x3ca   : > { %v1862_v8 = vpop.f32.mrb[108].mxu0  ;;  %v14245_v5 = vpop.f32.mrb[62].mxu1 }
 0x3cb   : > { %v14237_v61 = vadd.f32 %v1862_v8, %v13653_v1  ;;  %v10614_v41 = vpop.f32.mrb[109].mxu0  ;;  %v10823_v1 = vpop.f32.mrb[63].mxu1  ;;  %v2090_v8 = vld [vmem:[%s12690_s21 + $0x151] sm:$0xff] }
 0x3cc   : > { %v1865_v28 = vpop.f32.mrb[110].mxu0  ;;  %v2124_v55 = vpack.c.bf16 %v2090_v8, %v2089_v40  ;;  %v2092_v40 = vld [vmem:[%s12690_s21 + $0x161] sm:$0xff] }
 0x3cd   : > { %17096 = vst [vmem:[#allocation42_spill] sm:$0xff] %v14237_v61  ;;  %v14243_v57 = vadd.f32 %v1865_v28, %v17097_v43  ;;  %v10615_v36 = vpop.f32.mrb[111].mxu0  ;;  %v14255_v28 = vld [vmem:[#allocation2 + $0x1b0] sm:$0xff] }
 0x3cf   : > { %17098 = vst [vmem:[#allocation25_spill] sm:$0xff] %v14243_v57  ;;  %10755 = vmatmul.mubr.msk.bf16.gmra.mrb[216].mxu0 %vm443_vm2, %v2123_v18  ;;  %11041 = vmatmul.mubr.msk.bf16.gmra.mrb[168].mxu1 %vm443_vm2, %v3522_v17  ;;  %v3523_v57 = vpack.c.bf16 %v14028_v30, %v14009_v2 }
 0x3d0   : > { %10758 = vmatprep.mubr.msk.bf16.mxu0 %vm12577_vm1, %v13623_v31  ;;  %11044 = vmatprep.mubr.msk.bf16.mxu1 %vm12577_vm1, %v14255_v28  ;;  %v14262_v36 = vpop.f32.mrb[64].mxu1 }
 0x3d1   : > { %v10826_v46 = vpop.f32.mrb[65].mxu1 }
 0x3d2   : > { %v1870_v41 = vpop.f32.mrb[112].mxu0  ;;  %v14267_v1 = vpop.f32.mrb[66].mxu1 }
 0x3d3   : > { %v14260_v18 = vadd.f32 %v1870_v41, %v13673_v10  ;;  %v10618_v26 = vpop.f32.mrb[113].mxu0  ;;  %v10827_v61 = vpop.f32.mrb[67].mxu1  ;;  %v2091_v10 = vld [vmem:[%s12690_s21 + $0x159] sm:$0xff] }
 0x3d4   : > { %v1873_v43 = vpop.f32.mrb[114].mxu0  ;;  %v2125_v26 = vpack.c.bf16 %v2092_v40, %v2091_v10  ;;  %v2094_v10 = vld [vmem:[%s12690_s21 + $0x171] sm:$0xff] }
 0x3d5   : > { %v14265_v31 = vadd.f32 %v1873_v43, %v13676_v9  ;;  %v10619_v17 = vpop.f32.mrb[115].mxu0 }
 0x3d6   : > { %v3524_v17 = vpack.c.bf16 %v14050_v7, %v14031_v34 }
 0x3d7   : > { %10759 = vmatmul.mubr.msk.bf16.gmra.mrb[220].mxu0 %vm443_vm2, %v2124_v55  ;;  %11045 = vmatmul.mubr.msk.bf16.gmra.mrb[172].mxu1 %vm443_vm2, %v3523_v57 }
 0x3d8   : > { %10762 = vmatprep.mubr.msk.bf16.mxu0 %vm12577_vm1, %v14255_v28  ;;  %11048 = vmatprep.mubr.msk.bf16.mxu1 %vm12577_vm1, %v14255_v28  ;;  %v14282_v30 = vpop.f32.mrb[68].mxu1 }
 0x3d9   : > { %v10830_v43 = vpop.f32.mrb[69].mxu1 }
 0x3da   : > { %v1878_v9 = vpop.f32.mrb[116].mxu0  ;;  %v14287_v57 = vpop.f32.mrb[70].mxu1 }
 0x3db   : > { %v14280_v8 = vadd.f32 %v1878_v9, %v13689_v20  ;;  %v10622_v41 = vpop.f32.mrb[117].mxu0  ;;  %v10831_v46 = vpop.f32.mrb[71].mxu1  ;;  %v2093_v20 = vld [vmem:[%s12690_s21 + $0x169] sm:$0xff] }
 0x3dc   : > { %v1881_v2 = vpop.f32.mrb[118].mxu0  ;;  %v2126_v41 = vpack.c.bf16 %v2094_v10, %v2093_v20  ;;  %v2096_v20 = vld [vmem:[%s12690_s21 + $0x181] sm:$0xff] }
 0x3dd   : > { %v14285_v61 = vadd.f32 %v1881_v2, %v13692_v15  ;;  %v10623_v55 = vpop.f32.mrb[119].mxu0 }
 0x3df   : > { %10763 = vmatmul.mubr.msk.bf16.gmra.mrb[224].mxu0 %vm443_vm2, %v2125_v26  ;;  %11049 = vmatmul.mubr.msk.bf16.gmra.mrb[176].mxu1 %vm443_vm2, %v3524_v17  ;;  %v3525_v17 = vpack.c.bf16 %v14080_v37, %v14053_v25 }
 0x3e0   : > { %10766 = vmatprep.mubr.msk.bf16.mxu0 %vm12577_vm1, %v14255_v28  ;;  %11052 = vmatprep.mubr.msk.bf16.mxu1 %vm12577_vm1, %v14255_v28  ;;  %v14302_v34 = vpop.f32.mrb[72].mxu1 }
 0x3e1   : > { %v10834_v55 = vpop.f32.mrb[73].mxu1 }
 0x3e2   : > { %v1886_v15 = vpop.f32.mrb[120].mxu0  ;;  %v14307_v43 = vpop.f32.mrb[74].mxu1 }
 0x3e3   : > { %v14300_v40 = vadd.f32 %v1886_v15, %v13705_v52  ;;  %v10626_v9 = vpop.f32.mrb[121].mxu0  ;;  %v10835_v46 = vpop.f32.mrb[75].mxu1  ;;  %v2095_v52 = vld [vmem:[%s12690_s21 + $0x179] sm:$0xff] }
 0x3e4   : > { %v1889_v7 = vpop.f32.mrb[122].mxu0  ;;  %v2127_v9 = vpack.c.bf16 %v2096_v20, %v2095_v52  ;;  %v2098_v52 = vld [vmem:[%s12690_s21 + $0x191] sm:$0xff] }
 0x3e5   : > { %v14305_v26 = vadd.f32 %v1889_v7, %v13708_v63  ;;  %v10627_v2 = vpop.f32.mrb[123].mxu0 }
 0x3e7   : > { %10767 = vmatmul.mubr.msk.bf16.gmra.mrb[228].mxu0 %vm443_vm2, %v2126_v41  ;;  %11053 = vmatmul.mubr.msk.bf16.gmra.mrb[180].mxu1 %vm443_vm2, %v3525_v17  ;;  %v3526_v17 = vpack.c.bf16 %v14106_v12, %v14083_v35 }
 0x3e8   : > { %10770 = vmatprep.mubr.msk.bf16.mxu0 %vm12577_vm1, %v14255_v28  ;;  %11056 = vmatprep.mubr.msk.bf16.mxu1 %vm12577_vm1, %v14255_v28  ;;  %v14322_v25 = vpop.f32.mrb[76].mxu1 }
 0x3e9   : > { %v10838_v2 = vpop.f32.mrb[77].mxu1 }
 0x3ea   : > { %v1894_v63 = vpop.f32.mrb[124].mxu0  ;;  %v14327_v55 = vpop.f32.mrb[78].mxu1 }
 0x3eb   : > { %v14320_v10 = vadd.f32 %v1894_v63, %v13721_v0  ;;  %v10630_v15 = vpop.f32.mrb[125].mxu0  ;;  %v10839_v46 = vpop.f32.mrb[79].mxu1  ;;  %v2097_v0 = vld [vmem:[%s12690_s21 + $0x189] sm:$0xff] }
 0x3ec   : > { %v1897_v37 = vpop.f32.mrb[126].mxu0  ;;  %v2128_v15 = vpack.c.bf16 %v2098_v52, %v2097_v0  ;;  %v2100_v0 = vld [vmem:[%s12690_s21 + $0x1a1] sm:$0xff] }
 0x3ed   : > { %v14325_v41 = vadd.f32 %v1897_v37, %v13724_v44  ;;  %v10631_v7 = vpop.f32.mrb[127].mxu0 }
 0x3ef   : > { %10771 = vmatmul.mubr.msk.bf16.gmra.mrb[232].mxu0 %vm443_vm2, %v2127_v9  ;;  %11057 = vmatmul.mubr.msk.bf16.gmra.mrb[184].mxu1 %vm443_vm2, %v3526_v17  ;;  %v3527_v17 = vpack.c.bf16 %v14132_v59, %v14109_v29 }
 0x3f0   : > { %10774 = vmatprep.mubr.msk.bf16.mxu0 %vm12577_vm1, %v14255_v28  ;;  %11060 = vmatprep.mubr.msk.bf16.mxu1 %vm12577_vm1, %v14255_v28  ;;  %v14342_v12 = vpop.f32.mrb[80].mxu1 }
 0x3f1   : > { %v10842_v7 = vpop.f32.mrb[81].mxu1 }
 0x3f2   : > { %v1902_v44 = vpop.f32.mrb[128].mxu0  ;;  %v14347_v2 = vpop.f32.mrb[82].mxu1 }
 0x3f3   : > { %v14340_v20 = vadd.f32 %v1902_v44, %v13737_v11  ;;  %v10634_v63 = vpop.f32.mrb[129].mxu0  ;;  %v10843_v46 = vpop.f32.mrb[83].mxu1  ;;  %v2099_v11 = vld [vmem:[%s12690_s21 + $0x199] sm:$0xff] }
 0x3f4   : > { %v1905_v35 = vpop.f32.mrb[130].mxu0  ;;  %v2129_v63 = vpack.c.bf16 %v2100_v0, %v2099_v11  ;;  %v2102_v11 = vld [vmem:[%s12690_s21 + $0x1b1] sm:$0xff] }
 0x3f5   : > { %v14345_v9 = vadd.f32 %v1905_v35, %v13740_v22  ;;  %v10635_v37 = vpop.f32.mrb[131].mxu0 }
 0x3f7   : > { %10775 = vmatmul.mubr.msk.bf16.gmra.mrb[236].mxu0 %vm443_vm2, %v2128_v15  ;;  %11061 = vmatmul.mubr.msk.bf16.gmra.mrb[188].mxu1 %vm443_vm2, %v3527_v17  ;;  %v3528_v17 = vpack.c.bf16 %v14158_v14, %v14135_v47 }
 0x3f8   : > { %10778 = vmatprep.mubr.msk.bf16.mxu0 %vm12577_vm1, %v14255_v28  ;;  %11064 = vmatprep.mubr.msk.bf16.mxu1 %vm12577_vm1, %v14255_v28  ;;  %v14362_v59 = vpop.f32.mrb[84].mxu1 }
 0x3f9   : > { %v10846_v37 = vpop.f32.mrb[85].mxu1 }
 0x3fa   : > { %v1910_v22 = vpop.f32.mrb[132].mxu0  ;;  %v14367_v7 = vpop.f32.mrb[86].mxu1 }
 0x3fb   : > { %v14360_v52 = vadd.f32 %v1910_v22, %v13753_v21  ;;  %v10638_v44 = vpop.f32.mrb[133].mxu0  ;;  %v10847_v46 = vpop.f32.mrb[87].mxu1  ;;  %v2101_v21 = vld [vmem:[%s12690_s21 + $0x1a9] sm:$0xff] }
 0x3fc   : > { %v1913_v29 = vpop.f32.mrb[134].mxu0  ;;  %v2130_v22 = vpack.c.bf16 %v2102_v11, %v2101_v21  ;;  %v3529_v46 = vpack.c.bf16 %v14184_v50, %v14161_v54  ;;  %v2104_v21 = vld [vmem:[%s12690_s21 + $0x1c1] sm:$0xff] }
 0x3fd   : > { %17099 = vst [vmem:[#allocation43_spill] sm:$0xff] %v14360_v52  ;;  %v14365_v15 = vadd.f32 %v1913_v29, %v13756_v32  ;;  %v10639_v35 = vpop.f32.mrb[135].mxu0  ;;  %v3493_v52 = vld [vmem:[%s12690_s21 + $0x131] sm:$0xff] }
 0x3fe   : > { %v17102_v35 = vld [vmem:[#allocation26_spill] sm:$0xff] }
 0x3ff   : > { %17100 = vst [vmem:[#allocation44_spill] sm:$0xff] %v14365_v15  ;;  %10779 = vmatmul.mubr.msk.bf16.gmra.mrb[240].mxu0 %vm443_vm2, %v2129_v63  ;;  %11065 = vmatmul.mubr.msk.bf16.gmra.mrb[192].mxu1 %vm443_vm2, %v3528_v17 }
 0x400   : > { %10782 = vmatprep.mubr.msk.bf16.mxu0 %vm12577_vm1, %v14255_v28  ;;  %11068 = vmatprep.mubr.msk.bf16.mxu1 %vm12577_vm1, %v14255_v28  ;;  %v14382_v14 = vpop.f32.mrb[88].mxu1 }
 0x401   : > { %v10850_v29 = vpop.f32.mrb[89].mxu1 }
 0x402   : > { %v1918_v32 = vpop.f32.mrb[136].mxu0  ;;  %v14387_v17 = vpop.f32.mrb[90].mxu1 }
 0x403   : > { %v10642_v0 = vpop.f32.mrb[137].mxu0  ;;  %v14380_v44 = vadd.f32 %v1918_v32, %v13769_v33  ;;  %v2103_v33 = vld [vmem:[%s12690_s21 + $0x1b9] sm:$0xff] }
 0x404   : > { %v1921_v47 = vpop.f32.mrb[138].mxu0  ;;  %v10851_v0 = vpop.f32.mrb[91].mxu1 }
 0x405   : > { %17101 = vst [vmem:[#allocation45_spill] sm:$0xff] %v14380_v44  ;;  %v10643_v63 = vpop.f32.mrb[139].mxu0  ;;  %v14385_v37 = vadd.f32 %v1921_v47, %v17102_v35  ;;  %v17104_v47 = vld [vmem:[#allocation27_spill] sm:$0xff]  ;;  %v17106_v0 = vld [vmem:[#allocation28_spill] sm:$0xff] }
 0x406   : > { %v3491_v44 = vld [vmem:[%s12690_s21 + $0x121] sm:$0xff] }
 0x407   : > { %17103 = vst [vmem:[#allocation26_spill] sm:$0xff] %v14385_v37  ;;  %10783 = vmatmul.mubr.msk.bf16.gmra.mrb[244].mxu0 %vm443_vm2, %v2130_v22  ;;  %11069 = vmatmul.mubr.msk.bf16.gmra.mrb[196].mxu1 %vm443_vm2, %v3529_v46  ;;  %v2131_v22 = vpack.c.bf16 %v2104_v21, %v2103_v33  ;;  %v3530_v15 = vpack.c.bf16 %v14207_v60, %v3491_v44  ;;  %v2991_v33 = vld [vmem:[%s12690_s21 + $0x30] sm:$0xff]  ;;  %v2992_v21 = vld [vmem:[%s12690_s21 + $0x38] sm:$0xff] }
 0x408   : > { %10786 = vmatprep.mubr.msk.bf16.mxu0 %vm12577_vm1, %v14255_v28  ;;  %11072 = vmatprep.mubr.msk.bf16.mxu1 %vm12577_vm1, %v14255_v28  ;;  %v14402_v50 = vpop.f32.mrb[92].mxu1  ;;  %v3045_v44 = vpack.c.bf16 %v2992_v21, %v2991_v33 }
 0x409   : > { %v10854_v35 = vpop.f32.mrb[93].mxu1 }
 0x40a   : > { %v1926_v11 = vpop.f32.mrb[140].mxu0  ;;  %v14407_v46 = vpop.f32.mrb[94].mxu1 }
 0x40b   : > { %v10646_v32 = vpop.f32.mrb[141].mxu0  ;;  %v14400_v63 = vadd.f32 %v1926_v11, %v17104_v47  ;;  %v9418_v47 = vld [vmem:[%s16845_s2 + $0x10] sm:$0x3] }
 0x40c   : > { %v1929_v54 = vpop.f32.mrb[142].mxu0  ;;  %v10855_v32 = vpop.f32.mrb[95].mxu1 }
 0x40d   : > { %17105 = vst [vmem:[#allocation27_spill] sm:$0xff] %v14400_v63  ;;  %v10647_v29 = vpop.f32.mrb[143].mxu0  ;;  %v14405_v37 = vadd.f32 %v1929_v54, %v17106_v0  ;;  %v4096_v0 = vsel %vm525_vm0, %v9418_v47, 0 }
 0x40f   : > { %17107 = vst [vmem:[#allocation28_spill] sm:$0xff] %v14405_v37  ;;  %10787 = vmatmul.mubr.msk.bf16.gmra.mrb[248].mxu0 %vm443_vm2, %v2131_v22  ;;  %11073 = vmatmul.mubr.msk.bf16.gmra.mrb[200].mxu1 %vm443_vm2, %v3530_v15 }
 0x410   : > { %10902 = vmatprep.mubr.msk.bf16.mxu0 %vm12577_vm1, %v14255_v28  ;;  %11076 = vmatprep.mubr.msk.bf16.mxu1 %vm12577_vm1, %v14255_v28  ;;  %v14423_v29 = vpop.f32.mrb[96].mxu1 }
 0x411   : > { %v10858_v32 = vpop.f32.mrb[97].mxu1 }
 0x412   : > { %v2252_v11 = vpop.f32.mrb[144].mxu0  ;;  %v14430_v63 = vpop.f32.mrb[98].mxu1  ;;  %v3496_v32 = vld [vmem:[%s12690_s21 + $0x149] sm:$0xff] }
 0x413   : > { %v2467_v22 = vadd.f32 %v2252_v11, %v13993_v48  ;;  %v10684_v60 = vpop.f32.mrb[145].mxu0  ;;  %v3531_v48 = vpack.c.bf16 %v14230_v19, %v3493_v52  ;;  %v10859_v33 = vpop.f32.mrb[99].mxu1 }
 0x414   : > { %v2255_v54 = vpop.f32.mrb[146].mxu0 }
 0x415   : > { %v2468_v35 = vadd.f32 %v2255_v54, %v13998_v23  ;;  %v10685_v15 = vpop.f32.mrb[147].mxu0  ;;  %v14428_v37 = vadd.f32 %v14063_v53, %v2467_v22  ;;  %v2993_v23 = vld [vmem:[%s12690_s21 + $0x40] sm:$0xff]  ;;  %v2994_v53 = vld [vmem:[%s12690_s21 + $0x48] sm:$0xff] }
 0x417   : > { %10903 = vmatmul.mubr.msk.bf16.vlgmr.msra.gmra.mrb[252].mxu0 %vm443_vm2, %v3045_v44  ;;  %v14436_v21 = vadd.f32 %v14072_v38, %v2468_v35  ;;  %11077 = vmatmul.mubr.msk.bf16.gmra.mrb[204].mxu1 %vm443_vm2, %v3531_v48  ;;  %v3046_v38 = vpack.c.bf16 %v2994_v53, %v2993_v23  ;;  %v2996_v23 = vld [vmem:[%s12690_s21 + $0x58] sm:$0xff] }
 0x418   : > { %11121 = vmatpush3.bf16.msra.mxu0 %v4096_v0  ;;  %10906 = vmatprep.mubr.msk.bf16.mxu0 %vm12577_vm1, %v14255_v28  ;;  %v14446_v22 = vpop.f32.mrb[100].mxu1  ;;  %v3495_v0 = vld [vmem:[%s12690_s21 + $0x141] sm:$0xff] }
 0x419   : > { %11080 = vmatprep.mubr.msk.bf16.mxu1 %vm12577_vm1, %v14255_v28  ;;  %v10862_v54 = vpop.f32.mrb[101].mxu1 }
 0x41a   : > { %v2260_v11 = vpop.f32.mrb[148].mxu0  ;;  %v14452_v15 = vpop.f32.mrb[102].mxu1 }
 0x41b   : > { %v2469_v19 = vadd.f32 %v2260_v11, %v14015_v27  ;;  %v10688_v52 = vpop.f32.mrb[149].mxu0  ;;  %v3532_v27 = vpack.c.bf16 %v3496_v32, %v3495_v0  ;;  %v10863_v48 = vpop.f32.mrb[103].mxu1  ;;  %v3497_v0 = vld [vmem:[%s12690_s21 + $0x151] sm:$0xff]  ;;  %v3498_v32 = vld [vmem:[%s12690_s21 + $0x159] sm:$0xff] }
 0x41c   : > { %v2263_v47 = vpop.f32.mrb[150].mxu0 }
 0x41d   : > { %v2470_v60 = vadd.f32 %v2263_v47, %v14020_v42  ;;  %v10689_v44 = vpop.f32.mrb[151].mxu0  ;;  %v14450_v35 = vadd.f32 %v14093_v45, %v2469_v19  ;;  %v2995_v42 = vld [vmem:[%s12690_s21 + $0x50] sm:$0xff] }
 0x41e   : > { %v3047_v19 = vpack.c.bf16 %v2996_v23, %v2995_v42  ;;  %v2998_v42 = vld [vmem:[%s12690_s21 + $0x68] sm:$0xff] }
 0x41f   : > { %10907 = vmatmul.mubr.msk.bf16.gmra.mrb[0].mxu0 %vm443_vm2, %v3046_v38  ;;  %v14458_v33 = vadd.f32 %v14098_v6, %v2470_v60  ;;  %11081 = vmatmul.mubr.msk.bf16.gmra.mrb[208].mxu1 %vm443_vm2, %v3532_v27 }
 0x420   : > { %10910 = vmatprep.mubr.msk.bf16.mxu0 %vm12577_vm1, %v14255_v28  ;;  %11084 = vmatprep.mubr.msk.bf16.mxu1 %vm12577_vm1, %v14255_v28  ;;  %v14468_v52 = vpop.f32.mrb[104].mxu1 }
 0x421   : > { %v10866_v44 = vpop.f32.mrb[105].mxu1 }
 0x422   : > { %v2268_v45 = vpop.f32.mrb[152].mxu0  ;;  %v14474_v54 = vpop.f32.mrb[106].mxu1 }
 0x423   : > { %v10692_v53 = vpop.f32.mrb[153].mxu0  ;;  %v2471_v11 = vadd.f32 %v2268_v45, %v14037_v3  ;;  %v3533_v3 = vpack.c.bf16 %v3498_v32, %v3497_v0  ;;  %v10867_v48 = vpop.f32.mrb[107].mxu1  ;;  %v3499_v32 = vld [vmem:[%s12690_s21 + $0x161] sm:$0xff] }
 0x424   : > { %v2271_v6 = vpop.f32.mrb[154].mxu0  ;;  %v17112_v48 = vld [vmem:[#allocation16_spill] sm:$0xff] }
 0x425   : > { %v14471_v38 = vadd.f32 %v14119_v58, %v2471_v11  ;;  %v10693_v47 = vpop.f32.mrb[155].mxu0  ;;  %v2472_v60 = vadd.f32 %v2271_v6, %v14042_v4  ;;  %v2997_v58 = vld [vmem:[%s12690_s21 + $0x60] sm:$0xff] }
 0x426   : > { %v3048_v45 = vpack.c.bf16 %v2998_v42, %v2997_v58  ;;  %v17111_v47 = vld [vmem:[#allocation9_spill] sm:$0xff]  ;;  %v3000_v42 = vld [vmem:[%s12690_s21 + $0x78] sm:$0xff] }
 0x427   : > { %17108 = vst [vmem:[#allocation46_spill] sm:$0xff] %v14471_v38  ;;  %v14479_v27 = vadd.f32 %v14124_v39, %v2472_v60  ;;  %10911 = vmatmul.mubr.msk.bf16.gmra.mrb[4].mxu0 %vm443_vm2, %v3047_v19  ;;  %11085 = vmatmul.mubr.msk.bf16.gmra.mrb[212].mxu1 %vm443_vm2, %v3533_v3  ;;  %v3500_v3 = vld [vmem:[%s12690_s21 + $0x169] sm:$0xff] }
 0x428   : > { %10914 = vmatprep.mubr.msk.bf16.mxu0 %vm12577_vm1, %v14255_v28  ;;  %11088 = vmatprep.mubr.msk.bf16.mxu1 %vm12577_vm1, %v14255_v28  ;;  %v14490_v11 = vpop.f32.mrb[108].mxu1 }
 0x429   : > { %17109 = vst [vmem:[#allocation47_spill] sm:$0xff] %v14479_v27  ;;  %v10870_v44 = vpop.f32.mrb[109].mxu1  ;;  %v3502_v27 = vld [vmem:[%s12690_s21 + $0x179] sm:$0xff] }
 0x42a   : > { %v2276_v4 = vpop.f32.mrb[156].mxu0  ;;  %v14496_v0 = vpop.f32.mrb[110].mxu1  ;;  %v17115_v44 = vld [vmem:[#allocation18_spill] sm:$0xff] }
 0x42b   : > { %v10696_v23 = vpop.f32.mrb[157].mxu0  ;;  %v2473_v39 = vadd.f32 %v2276_v4, %v14059_v24  ;;  %v3534_v24 = vpack.c.bf16 %v3500_v3, %v3499_v32  ;;  %v10871_v58 = vpop.f32.mrb[111].mxu1 }
 0x42c   : > { %v2279_v53 = vpop.f32.mrb[158].mxu0 }
 0x42d   : > { %v14493_v19 = vadd.f32 %v14145_v49, %v2473_v39  ;;  %v10697_v6 = vpop.f32.mrb[159].mxu0  ;;  %v2474_v60 = vadd.f32 %v2279_v53, %v17111_v47  ;;  %v2999_v49 = vld [vmem:[%s12690_s21 + $0x70] sm:$0xff]  ;;  %v17114_v53 = vld [vmem:[#allocation10_spill] sm:$0xff] }
 0x42f   : > { %17110 = vst [vmem:[#allocation48_spill] sm:$0xff] %v14493_v19  ;;  %v14501_v23 = vadd.f32 %v17112_v48, %v2474_v60  ;;  %10915 = vmatmul.mubr.msk.bf16.gmra.mrb[8].mxu0 %vm443_vm2, %v3048_v45  ;;  %11089 = vmatmul.mubr.msk.bf16.gmra.mrb[216].mxu1 %vm443_vm2, %v3534_v24  ;;  %v3049_v45 = vpack.c.bf16 %v3000_v42, %v2999_v49  ;;  %v17117_v48 = vld [vmem:[#allocation11_spill] sm:$0xff]  ;;  %v3501_v19 = vld [vmem:[%s12690_s21 + $0x171] sm:$0xff] }
 0x430   : > { %10918 = vmatprep.mubr.msk.bf16.mxu0 %vm12577_vm1, %v14255_v28  ;;  %11092 = vmatprep.mubr.msk.bf16.mxu1 %vm12577_vm1, %v14255_v28  ;;  %v14512_v60 = vpop.f32.mrb[112].mxu1  ;;  %v3535_v49 = vpack.c.bf16 %v3502_v27, %v3501_v19 }
 0x431   : > { %17113 = vst [vmem:[#allocation9_spill] sm:$0xff] %v14501_v23  ;;  %v10874_v24 = vpop.f32.mrb[113].mxu1 }
 0x432   : > { %v2284_v4 = vpop.f32.mrb[160].mxu0  ;;  %v14518_v23 = vpop.f32.mrb[114].mxu1  ;;  %v17122_v24 = vld [vmem:[#allocation13_spill] sm:$0xff] }
 0x433   : > { %v10700_v39 = vpop.f32.mrb[161].mxu0  ;;  %v2475_v6 = vadd.f32 %v2284_v4, %v17114_v53  ;;  %v10875_v42 = vpop.f32.mrb[115].mxu1  ;;  %v3001_v4 = vld [vmem:[%s12690_s21 + $0x80] sm:$0xff]  ;;  %v3002_v53 = vld [vmem:[%s12690_s21 + $0x88] sm:$0xff] }
 0x434   : > { %v2287_v47 = vpop.f32.mrb[162].mxu0  ;;  %v17118_v39 = vld [vmem:[#allocation20_spill] sm:$0xff] }
 0x435   : > { %v14515_v32 = vadd.f32 %v17115_v44, %v2475_v6  ;;  %v10701_v3 = vpop.f32.mrb[163].mxu0  ;;  %v2476_v58 = vadd.f32 %v2287_v47, %v17117_v48  ;;  %v17120_v44 = vld [vmem:[#allocation12_spill] sm:$0xff] }
 0x437   : > { %17116 = vst [vmem:[#allocation16_spill] sm:$0xff] %v14515_v32  ;;  %v14523_v38 = vadd.f32 %v17118_v39, %v2476_v58  ;;  %10919 = vmatmul.mubr.msk.bf16.gmra.mrb[12].mxu0 %vm443_vm2, %v3049_v45  ;;  %11093 = vmatmul.mubr.msk.bf16.gmra.mrb[220].mxu1 %vm443_vm2, %v3535_v49  ;;  %v3050_v45 = vpack.c.bf16 %v3002_v53, %v3001_v4  ;;  %v3504_v32 = vld [vmem:[%s12690_s21 + $0x189] sm:$0xff] }
 0x438   : > { %10922 = vmatprep.mubr.msk.bf16.mxu0 %vm12577_vm1, %v14255_v28  ;;  %11096 = vmatprep.mubr.msk.bf16.mxu1 %vm12577_vm1, %v14255_v28  ;;  %v14534_v19 = vpop.f32.mrb[116].mxu1 }
 0x439   : > { %17119 = vst [vmem:[#allocation10_spill] sm:$0xff] %v14523_v38  ;;  %v10878_v49 = vpop.f32.mrb[117].mxu1  ;;  %v3503_v38 = vld [vmem:[%s12690_s21 + $0x181] sm:$0xff] }
 0x43a   : > { %v2292_v6 = vpop.f32.mrb[164].mxu0  ;;  %v14540_v42 = vpop.f32.mrb[118].mxu1  ;;  %v3536_v4 = vpack.c.bf16 %v3504_v32, %v3503_v38 }
 0x43b   : > { %v10704_v47 = vpop.f32.mrb[165].mxu0  ;;  %v2477_v3 = vadd.f32 %v2292_v6, %v17120_v44  ;;  %v10879_v53 = vpop.f32.mrb[119].mxu1  ;;  %v3004_v6 = vld [vmem:[%s12690_s21 + $0x98] sm:$0xff] }
 0x43c   : > { %v2295_v27 = vpop.f32.mrb[166].mxu0 }
 0x43d   : > { %v14537_v48 = vadd.f32 %v14194_v56, %v2477_v3  ;;  %v10705_v58 = vpop.f32.mrb[167].mxu0  ;;  %v2478_v39 = vadd.f32 %v2295_v27, %v17122_v24  ;;  %v3003_v56 = vld [vmem:[%s12690_s21 + $0x90] sm:$0xff] }
 0x43f   : > { %17121 = vst [vmem:[#allocation18_spill] sm:$0xff] %v14537_v48  ;;  %v14545_v47 = vadd.f32 %v14199_v13, %v2478_v39  ;;  %10923 = vmatmul.mubr.msk.bf16.gmra.mrb[16].mxu0 %vm443_vm2, %v3050_v45  ;;  %11097 = vmatmul.mubr.msk.bf16.gmra.mrb[224].mxu1 %vm443_vm2, %v3536_v4  ;;  %v17124_v13 = vld [vmem:[#allocation14_spill] sm:$0xff]  ;;  %v3051_v45 = vpack.c.bf16 %v3004_v6, %v3003_v56  ;;  %v17126_v39 = vld [vmem:[#allocation15_spill] sm:$0xff] }
 0x440   : > { %10926 = vmatprep.mubr.msk.bf16.mxu0 %vm12577_vm1, %v14255_v28  ;;  %11100 = vmatprep.mubr.msk.bf16.mxu1 %vm12577_vm1, %v14255_v28  ;;  %v14556_v32 = vpop.f32.mrb[120].mxu1  ;;  %v3506_v48 = vld [vmem:[%s12690_s21 + $0x199] sm:$0xff] }
 0x441   : > { %17123 = vst [vmem:[#allocation11_spill] sm:$0xff] %v14545_v47  ;;  %v10882_v4 = vpop.f32.mrb[121].mxu1  ;;  %v3505_v47 = vld [vmem:[%s12690_s21 + $0x191] sm:$0xff] }
 0x442   : > { %v2300_v44 = vpop.f32.mrb[168].mxu0  ;;  %v14562_v53 = vpop.f32.mrb[122].mxu1  ;;  %v3537_v56 = vpack.c.bf16 %v3506_v48, %v3505_v47 }
 0x443   : > { %v10708_v3 = vpop.f32.mrb[169].mxu0  ;;  %v2479_v27 = vadd.f32 %v2300_v44, %v17124_v13  ;;  %v10883_v6 = vpop.f32.mrb[123].mxu1  ;;  %v3006_v44 = vld [vmem:[%s12690_s21 + $0xa8] sm:$0xff] }
 0x444   : > { %v2303_v38 = vpop.f32.mrb[170].mxu0 }
 0x445   : > { %v14559_v58 = vadd.f32 %v14217_v51, %v2479_v27  ;;  %v10709_v24 = vpop.f32.mrb[171].mxu0  ;;  %v2480_v49 = vadd.f32 %v2303_v38, %v17126_v39  ;;  %v3005_v51 = vld [vmem:[%s12690_s21 + $0xa0] sm:$0xff] }
 0x447   : > { %17125 = vst [vmem:[#allocation20_spill] sm:$0xff] %v14559_v58  ;;  %v14567_v3 = vadd.f32 %v14222_v16, %v2480_v49  ;;  %10927 = vmatmul.mubr.msk.bf16.gmra.mrb[20].mxu0 %vm443_vm2, %v3051_v45  ;;  %11101 = vmatmul.mubr.msk.bf16.gmra.mrb[228].mxu1 %vm443_vm2, %v3537_v56  ;;  %v17128_v16 = vld [vmem:[#allocation17_spill] sm:$0xff]  ;;  %v3052_v45 = vpack.c.bf16 %v3006_v44, %v3005_v51  ;;  %v17130_v49 = vld [vmem:[#allocation19_spill] sm:$0xff] }
 0x448   : > { %10930 = vmatprep.mubr.msk.bf16.mxu0 %vm12577_vm1, %v14255_v28  ;;  %11104 = vmatprep.mubr.msk.bf16.mxu1 %vm12577_vm1, %v14255_v28  ;;  %v14578_v47 = vpop.f32.mrb[124].mxu1  ;;  %v3508_v58 = vld [vmem:[%s12690_s21 + $0x1a9] sm:$0xff] }
 0x449   : > { %17127 = vst [vmem:[#allocation12_spill] sm:$0xff] %v14567_v3  ;;  %v10886_v56 = vpop.f32.mrb[125].mxu1  ;;  %v3507_v3 = vld [vmem:[%s12690_s21 + $0x1a1] sm:$0xff] }
 0x44a   : > { %v2308_v13 = vpop.f32.mrb[172].mxu0  ;;  %v14584_v6 = vpop.f32.mrb[126].mxu1  ;;  %v3538_v51 = vpack.c.bf16 %v3508_v58, %v3507_v3 }
 0x44b   : > { %v10712_v27 = vpop.f32.mrb[173].mxu0  ;;  %v2481_v38 = vadd.f32 %v2308_v13, %v17128_v16  ;;  %v10887_v44 = vpop.f32.mrb[127].mxu1  ;;  %v3008_v13 = vld [vmem:[%s12690_s21 + $0xb8] sm:$0xff] }
 0x44c   : > { %v2311_v48 = vpop.f32.mrb[174].mxu0 }
 0x44d   : > { %v14581_v24 = vadd.f32 %v14240_v62, %v2481_v38  ;;  %v10713_v39 = vpop.f32.mrb[175].mxu0  ;;  %v2482_v4 = vadd.f32 %v2311_v48, %v17130_v49  ;;  %v3007_v62 = vld [vmem:[%s12690_s21 + $0xb0] sm:$0xff] }
 0x44f   : > { %17129 = vst [vmem:[#allocation13_spill] sm:$0xff] %v14581_v24  ;;  %v14589_v27 = vadd.f32 %v14245_v5, %v2482_v4  ;;  %10931 = vmatmul.mubr.msk.bf16.gmra.mrb[24].mxu0 %vm443_vm2, %v3052_v45  ;;  %11105 = vmatmul.mubr.msk.bf16.gmra.mrb[232].mxu1 %vm443_vm2, %v3538_v51  ;;  %v17132_v5 = vld [vmem:[#allocation21_spill] sm:$0xff]  ;;  %v3053_v45 = vpack.c.bf16 %v3008_v13, %v3007_v62  ;;  %v17134_v4 = vld [vmem:[#allocation22_spill] sm:$0xff] }
 0x450   : > { %10934 = vmatprep.mubr.msk.bf16.mxu0 %vm12577_vm1, %v14255_v28  ;;  %11108 = vmatprep.mubr.msk.bf16.mxu1 %vm12577_vm1, %v14255_v28  ;;  %v14600_v3 = vpop.f32.mrb[128].mxu1  ;;  %v3510_v24 = vld [vmem:[%s12690_s21 + $0x1b9] sm:$0xff] }
 0x451   : > { %17131 = vst [vmem:[#allocation14_spill] sm:$0xff] %v14589_v27  ;;  %v10890_v51 = vpop.f32.mrb[129].mxu1  ;;  %v3509_v27 = vld [vmem:[%s12690_s21 + $0x1b1] sm:$0xff] }
 0x452   : > { %v2316_v16 = vpop.f32.mrb[176].mxu0  ;;  %v14606_v44 = vpop.f32.mrb[130].mxu1  ;;  %v3539_v62 = vpack.c.bf16 %v3510_v24, %v3509_v27 }
 0x453   : > { %v10716_v38 = vpop.f32.mrb[177].mxu0  ;;  %v2483_v48 = vadd.f32 %v2316_v16, %v17132_v5  ;;  %v10891_v13 = vpop.f32.mrb[131].mxu1  ;;  %v3010_v16 = vld [vmem:[%s12690_s21 + $0xc8] sm:$0xff] }
 0x454   : > { %v2319_v58 = vpop.f32.mrb[178].mxu0 }
 0x455   : > { %v14603_v39 = vadd.f32 %v14262_v36, %v2483_v48  ;;  %v10717_v49 = vpop.f32.mrb[179].mxu0  ;;  %v2484_v56 = vadd.f32 %v2319_v58, %v17134_v4  ;;  %v3009_v36 = vld [vmem:[%s12690_s21 + $0xc0] sm:$0xff] }
 0x457   : > { %17133 = vst [vmem:[#allocation15_spill] sm:$0xff] %v14603_v39  ;;  %v14611_v38 = vadd.f32 %v14267_v1, %v2484_v56  ;;  %10935 = vmatmul.mubr.msk.bf16.gmra.mrb[28].mxu0 %vm443_vm2, %v3053_v45  ;;  %11109 = vmatmul.mubr.msk.bf16.gmra.mrb[236].mxu1 %vm443_vm2, %v3539_v62  ;;  %v17136_v1 = vld [vmem:[#allocation23_spill] sm:$0xff]  ;;  %v3054_v45 = vpack.c.bf16 %v3010_v16, %v3009_v36  ;;  %v17137_v56 = vld [vmem:[#allocation24_spill] sm:$0xff] }
 0x458   : > { %10938 = vmatprep.mubr.msk.bf16.mxu0 %vm12577_vm1, %v14255_v28  ;;  %11112 = vmatprep.mubr.msk.bf16.mxu1 %vm12577_vm1, %v14255_v28  ;;  %v14622_v27 = vpop.f32.mrb[132].mxu1  ;;  %v3512_v39 = vld [vmem:[%s12690_s21 + $0x1c9] sm:$0xff] }
 0x459   : > { %17135 = vst [vmem:[#allocation17_spill] sm:$0xff] %v14611_v38  ;;  %v10894_v62 = vpop.f32.mrb[133].mxu1  ;;  %v3511_v38 = vld [vmem:[%s12690_s21 + $0x1c1] sm:$0xff] }
 0x45a   : > { %v2324_v5 = vpop.f32.mrb[180].mxu0  ;;  %v14628_v13 = vpop.f32.mrb[134].mxu1  ;;  %v3540_v36 = vpack.c.bf16 %v3512_v39, %v3511_v38 }
 0x45b   : > { %v10720_v48 = vpop.f32.mrb[181].mxu0  ;;  %v2485_v58 = vadd.f32 %v2324_v5, %v17136_v1  ;;  %v10895_v16 = vpop.f32.mrb[135].mxu1  ;;  %v3012_v5 = vld [vmem:[%s12690_s21 + $0xd8] sm:$0xff] }
 0x45c   : > { %v2327_v24 = vpop.f32.mrb[182].mxu0 }
 0x45d   : > { %v14625_v49 = vadd.f32 %v14282_v30, %v2485_v58  ;;  %v10721_v4 = vpop.f32.mrb[183].mxu0  ;;  %v2486_v51 = vadd.f32 %v2327_v24, %v17137_v56  ;;  %v3011_v30 = vld [vmem:[%s12690_s21 + $0xd0] sm:$0xff] }
 0x45f   : > { %v14633_v48 = vadd.f32 %v14287_v57, %v2486_v51  ;;  %10939 = vmatmul.mubr.msk.bf16.gmra.mrb[32].mxu0 %vm443_vm2, %v3054_v45  ;;  %11113 = vmatmul.mubr.msk.bf16.gmra.mrb[240].mxu1 %vm443_vm2, %v3540_v36  ;;  %v17139_v57 = vld [vmem:[#allocation42_spill] sm:$0xff]  ;;  %v3055_v45 = vpack.c.bf16 %v3012_v5, %v3011_v30  ;;  %v17141_v51 = vld [vmem:[#allocation25_spill] sm:$0xff] }
 0x460   : > { %10942 = vmatprep.mubr.msk.bf16.mxu0 %vm12577_vm1, %v14255_v28  ;;  %11116 = vmatprep.mubr.msk.bf16.mxu1 %vm12577_vm1, %v14255_v28  ;;  %v14644_v38 = vpop.f32.mrb[136].mxu1 }
 0x461   : > { %17138 = vst [vmem:[#allocation19_spill] sm:$0xff] %v14633_v48  ;;  %v10898_v36 = vpop.f32.mrb[137].mxu1  ;;  %v3513_v48 = vld [vmem:[%s12690_s21 + $0x1d1] sm:$0xff] }
 0x462   : > { %v2332_v1 = vpop.f32.mrb[184].mxu0  ;;  %v14650_v16 = vpop.f32.mrb[138].mxu1 }
 0x463   : > { %v10724_v58 = vpop.f32.mrb[185].mxu0  ;;  %v2487_v24 = vadd.f32 %v2332_v1, %v17139_v57  ;;  %v10899_v5 = vpop.f32.mrb[139].mxu1  ;;  %v3014_v57 = vld [vmem:[%s12690_s21 + $0xe8] sm:$0xff] }
 0x464   : > { %v2335_v39 = vpop.f32.mrb[186].mxu0  ;;  %v3514_v58 = vld [vmem:[%s12690_s21 + $0x1d9] sm:$0xff] }
 0x465   : > { %v14647_v4 = vadd.f32 %v14302_v34, %v2487_v24  ;;  %v10725_v56 = vpop.f32.mrb[187].mxu0  ;;  %v2488_v62 = vadd.f32 %v2335_v39, %v17141_v51  ;;  %v3541_v30 = vpack.c.bf16 %v3514_v58, %v3513_v48  ;;  %v3013_v34 = vld [vmem:[%s12690_s21 + $0xe0] sm:$0xff] }
 0x466   : > { %v3056_v51 = vpack.c.bf16 %v3014_v57, %v3013_v34  ;;  %v3932_v48 = vld [vmem:[%s12690_s21 + $0x3a] sm:$0xff] }
 0x467   : > { %17140 = vst [vmem:[#allocation21_spill] sm:$0xff] %v14647_v4  ;;  %v14655_v1 = vadd.f32 %v14307_v43, %v2488_v62  ;;  %10943 = vmatmul.mubr.msk.bf16.gmra.mrb[36].mxu0 %vm443_vm2, %v3055_v45  ;;  %11117 = vmatmul.mubr.msk.bf16.gmra.mrb[244].mxu1 %vm443_vm2, %v3541_v30  ;;  %v3931_v45 = vld [vmem:[%s12690_s21 + $0x32] sm:$0xff] }
 0x468   : > { %10946 = vmatprep.mubr.msk.bf16.mxu0 %vm12577_vm1, %v14255_v28  ;;  %v14672_v30 = vpack.c.bf16 %v3932_v48, %v3931_v45  ;;  %v3016_v57 = vld [vmem:[%s12690_s21 + $0xf8] sm:$0xff] }
 0x469   : > { %17142 = vst [vmem:[#allocation22_spill] sm:$0xff] %v14655_v1 }
 0x46a   : > { %v2340_v24 = vpop.f32.mrb[188].mxu0  ;;  %v14664_v43 = vpop.f32.mrb[140].mxu1  ;;  %11232 = vmatprep.mubr.msk.bf16.mxu1 %vm443_vm2, %v14672_v30 }
 0x46b   : > { %v10728_v39 = vpop.f32.mrb[189].mxu0  ;;  %v2489_v56 = vadd.f32 %v2340_v24, %v14260_v18  ;;  %v11014_v1 = vpop.f32.mrb[141].mxu1 }
 0x46c   : > { %v2343_v36 = vpop.f32.mrb[190].mxu0  ;;  %v14674_v39 = vpop.f32.mrb[142].mxu1 }
 0x46d   : > { %v14669_v62 = vadd.f32 %v14322_v25, %v2489_v56  ;;  %v10729_v58 = vpop.f32.mrb[191].mxu0  ;;  %v2490_v5 = vadd.f32 %v2343_v36, %v14265_v31  ;;  %v11015_v34 = vpop.f32.mrb[143].mxu1  ;;  %v3015_v25 = vld [vmem:[%s12690_s21 + $0xf0] sm:$0xff] }
 0x46e   : > { %v3057_v56 = vpack.c.bf16 %v3016_v57, %v3015_v25  ;;  %v3017_v25 = vld [vmem:[%s12690_s21 + $0x100] sm:$0xff] }
 0x46f   : > { %17143 = vst [vmem:[#allocation23_spill] sm:$0xff] %v14669_v62  ;;  %v14677_v18 = vadd.f32 %v14327_v55, %v2490_v5  ;;  %10947 = vmatmul.mubr.msk.bf16.gmra.mrb[40].mxu0 %vm443_vm2, %v3056_v51 }
 0x470   : > { %10950 = vmatprep.mubr.msk.bf16.mxu0 %vm12577_vm1, %v14255_v28 }
 0x471   : > { %17144 = vst [vmem:[#allocation24_spill] sm:$0xff] %v14677_v18 }
 0x472   : > { %v2348_v31 = vpop.f32.mrb[192].mxu0  ;;  %v14687_v36 = vpop.f32.mrb[144].mxu1 }
 0x473   : > { %v10732_v1 = vpop.f32.mrb[193].mxu0  ;;  %v2491_v24 = vadd.f32 %v2348_v31, %v14280_v8  ;;  %v11018_v58 = vpop.f32.mrb[145].mxu1 }
 0x474   : > { %v2351_v55 = vpop.f32.mrb[194].mxu0  ;;  %v14693_v5 = vpop.f32.mrb[146].mxu1  ;;  %v3019_v58 = vld [vmem:[%s12690_s21 + $0x110] sm:$0xff] }
 0x475   : > { %v14690_v51 = vadd.f32 %v14342_v12, %v2491_v24  ;;  %v10733_v45 = vpop.f32.mrb[195].mxu0  ;;  %v2492_v48 = vadd.f32 %v2351_v55, %v14285_v61  ;;  %v11019_v8 = vpop.f32.mrb[147].mxu1  ;;  %v3018_v12 = vld [vmem:[%s12690_s21 + $0x108] sm:$0xff] }
 0x476   : > { %v3058_v1 = vpack.c.bf16 %v3018_v12, %v3017_v25  ;;  %v3934_v25 = vld [vmem:[%s12690_s21 + $0x4a] sm:$0xff] }
 0x477   : > { %17145 = vst [vmem:[#allocation42_spill] sm:$0xff] %v14690_v51  ;;  %v14696_v34 = vadd.f32 %v14347_v2, %v2492_v48  ;;  %10951 = vmatmul.mubr.msk.bf16.gmra.mrb[44].mxu0 %vm443_vm2, %v3057_v56 }
 0x478   : > { %10954 = vmatprep.mubr.msk.bf16.mxu0 %vm12577_vm1, %v14255_v28 }
 0x479   : > { %17146 = vst [vmem:[#allocation25_spill] sm:$0xff] %v14696_v34 }
 0x47a   : > { %v2356_v57 = vpop.f32.mrb[196].mxu0  ;;  %v14704_v2 = vpop.f32.mrb[148].mxu1 }
 0x47b   : > { %v10736_v31 = vpop.f32.mrb[197].mxu0  ;;  %v2493_v61 = vadd.f32 %v2356_v57, %v14300_v40  ;;  %v11022_v48 = vpop.f32.mrb[149].mxu1  ;;  %v3933_v40 = vld [vmem:[%s12690_s21 + $0x42] sm:$0xff]  ;;  %v3935_v57 = vld [vmem:[%s12690_s21 + $0x52] sm:$0xff] }
 0x47c   : > { %v2359_v24 = vpop.f32.mrb[198].mxu0  ;;  %v14711_v8 = vpop.f32.mrb[150].mxu1 }
 0x47d   : > { %v14707_v56 = vadd.f32 %v14362_v59, %v2493_v61  ;;  %v10737_v55 = vpop.f32.mrb[199].mxu0  ;;  %v2494_v45 = vadd.f32 %v2359_v24, %v14305_v26  ;;  %v5021_v59 = vld [vmem:[%s16848_s5] sm:$0x3]  ;;  %v11023_v12 = vpop.f32.mrb[151].mxu1  ;;  %v3020_v26 = vld [vmem:[%s12690_s21 + $0x118] sm:$0xff] }
 0x47e   : > { %12338 = vmatprep.subr.msk.bf16.mxu1 %vm525_vm0, %v5021_v59  ;;  %v3936_v61 = vld [vmem:[%s12690_s21 + $0x5a] sm:$0xff]  ;;  %v3059_v48 = vpack.c.bf16 %v3020_v26, %v3019_v58  ;;  %v3937_v26 = vld [vmem:[%s12690_s21 + $0x62] sm:$0xff] }
 0x47f   : > { %17147 = vst [vmem:[#allocation49_spill] sm:$0xff] %v14707_v56  ;;  %v14714_v31 = vadd.f32 %v14367_v7, %v2494_v45  ;;  %10955 = vmatmul.mubr.msk.bf16.gmra.mrb[48].mxu0 %vm443_vm2, %v3058_v1  ;;  %v5102_v7 = vsel %vm525_vm0, %v5021_v59, 0  ;;  %v14729_v1 = vpack.c.bf16 %v3934_v25, %v3933_v40  ;;  %v14732_v12 = vpack.c.bf16 %v3936_v61, %v3935_v57  ;;  %v3938_v57 = vld [vmem:[%s12690_s21 + $0x6a] sm:$0xff] }
 0x480   : > { %10958 = vmatprep.mubr.msk.bf16.mxu0 %vm12577_vm1, %v14255_v28  ;;  %11231 = vmatpush3.bf16.msra.mxu1 %v5102_v7 }
 0x481   : > { %17148 = vst [vmem:[#allocation50_spill] sm:$0xff] %v14714_v31 }
 0x482   : > { %v2364_v24 = vpop.f32.mrb[200].mxu0  ;;  %v14734_v56 = vpop.f32.mrb[152].mxu1 }
 0x483   : > { %v10740_v55 = vpop.f32.mrb[201].mxu0  ;;  %v2495_v45 = vadd.f32 %v2364_v24, %v14320_v10  ;;  %11233 = vmatmul.mubr.msk.bf16.vlgmr.msra.gmra.mrb[248].mxu1 %vm443_vm2, %v14729_v1  ;;  %v11026_v7 = vpop.f32.mrb[153].mxu1  ;;  %v14756_v24 = vpack.c.bf16 %v3938_v57, %v3937_v26 }
 0x484   : > { %v2367_v31 = vpop.f32.mrb[202].mxu0  ;;  %11236 = vmatprep.mubr.msk.bf16.mxu1 %vm443_vm2, %v14732_v12  ;;  %v14744_v10 = vpop.f32.mrb[154].mxu1  ;;  %v3940_v7 = vld [vmem:[%s12690_s21 + $0x7a] sm:$0xff] }
 0x485   : > { %v14739_v59 = vadd.f32 %v14382_v14, %v2495_v45  ;;  %v10741_v40 = vpop.f32.mrb[203].mxu0  ;;  %v2496_v25 = vadd.f32 %v2367_v31, %v14325_v41  ;;  %v11027_v14 = vpop.f32.mrb[155].mxu1  ;;  %v3021_v41 = vld [vmem:[%s12690_s21 + $0x120] sm:$0xff]  ;;  %v3022_v31 = vld [vmem:[%s12690_s21 + $0x128] sm:$0xff] }
 0x486   : > { %v3060_v40 = vpack.c.bf16 %v3022_v31, %v3021_v41 }
 0x487   : > { %17149 = vst [vmem:[#allocation51_spill] sm:$0xff] %v14739_v59  ;;  %v14747_v58 = vadd.f32 %v14387_v17, %v2496_v25  ;;  %10959 = vmatmul.mubr.msk.bf16.gmra.mrb[52].mxu0 %vm443_vm2, %v3059_v48  ;;  %v3939_v48 = vld [vmem:[%s12690_s21 + $0x72] sm:$0xff] }
 0x488   : > { %10962 = vmatprep.mubr.msk.bf16.mxu0 %vm12577_vm1, %v14255_v28 }
 0x489   : > { %17150 = vst [vmem:[#allocation52_spill] sm:$0xff] %v14747_v58 }
 0x48a   : > { %v2372_v61 = vpop.f32.mrb[204].mxu0  ;;  %v14759_v25 = vpop.f32.mrb[156].mxu1 }
 0x48b   : > { %v10744_v55 = vpop.f32.mrb[205].mxu0  ;;  %v2497_v45 = vadd.f32 %v2372_v61, %v14340_v20  ;;  %11237 = vmatmul.mubr.msk.bf16.gmra.mrb[252].mxu1 %vm443_vm2, %v14756_v24  ;;  %v11030_v57 = vpop.f32.mrb[157].mxu1  ;;  %v14769_v20 = vpack.c.bf16 %v3940_v7, %v3939_v48 }
 0x48c   : > { %v2375_v17 = vpop.f32.mrb[206].mxu0  ;;  %v14771_v41 = vpop.f32.mrb[158].mxu1 }
 0x48d   : > { %v14766_v14 = vadd.f32 %v14402_v50, %v2497_v45  ;;  %v10745_v58 = vpop.f32.mrb[207].mxu0  ;;  %v2498_v26 = vadd.f32 %v2375_v17, %v14345_v9  ;;  %v11031_v61 = vpop.f32.mrb[159].mxu1  ;;  %11240 = vmatprep.mubr.msk.bf16.mxu1 %vm443_vm2, %v14769_v20  ;;  %v3023_v9 = vld [vmem:[%s12690_s21 + $0x130] sm:$0xff]  ;;  %v3024_v50 = vld [vmem:[%s12690_s21 + $0x138] sm:$0xff]  ;;  %v17153_v45 = vld [vmem:[#allocation43_spill] sm:$0xff] }
 0x48e   : > { %v3061_v48 = vpack.c.bf16 %v3024_v50, %v3023_v9 }
 0x48f   : > { %17151 = vst [vmem:[#allocation53_spill] sm:$0xff] %v14766_v14  ;;  %v14774_v31 = vadd.f32 %v14407_v46, %v2498_v26  ;;  %10963 = vmatmul.mubr.msk.bf16.gmra.mrb[56].mxu0 %vm443_vm2, %v3060_v40  ;;  %v3941_v40 = vld [vmem:[%s12690_s21 + $0x82] sm:$0xff]  ;;  %v3942_v26 = vld [vmem:[%s12690_s21 + $0x8a] sm:$0xff] }
 0x490   : > { %10966 = vmatprep.mubr.msk.bf16.mxu0 %vm12577_vm1, %v14255_v28  ;;  %v14792_v59 = vpack.c.bf16 %v3942_v26, %v3941_v40  ;;  %v3943_v26 = vld [vmem:[%s12690_s21 + $0x92] sm:$0xff] }
 0x491   : > { %17152 = vst [vmem:[#allocation54_spill] sm:$0xff] %v14774_v31  ;;  %v17155_v31 = vld [vmem:[#allocation44_spill] sm:$0xff] }
 0x492   : > { %v2380_v58 = vpop.f32.mrb[208].mxu0  ;;  %v14784_v46 = vpop.f32.mrb[160].mxu1 }
 0x493   : > { %v10748_v55 = vpop.f32.mrb[209].mxu0  ;;  %v2499_v17 = vadd.f32 %v2380_v58, %v17153_v45  ;;  %v11034_v14 = vpop.f32.mrb[161].mxu1  ;;  %11241 = vmatmul.mubr.msk.bf16.gmra.mrb[0].mxu1 %vm443_vm2, %v14792_v59  ;;  %v17157_v45 = vld [vmem:[#allocation45_spill] sm:$0xff] }
 0x494   : > { %v2383_v7 = vpop.f32.mrb[210].mxu0  ;;  %v14794_v55 = vpop.f32.mrb[162].mxu1  ;;  %v3025_v14 = vld [vmem:[%s12690_s21 + $0x140] sm:$0xff] }
 0x495   : > { %v14789_v57 = vadd.f32 %v14423_v29, %v2499_v17  ;;  %v10749_v61 = vpop.f32.mrb[211].mxu0  ;;  %v2500_v28 = vadd.f32 %v2383_v7, %v17155_v31  ;;  %v11035_v50 = vpop.f32.mrb[163].mxu1  ;;  %v14802_v29 = vld [vmem:[#allocation2 + $0x1b0] sm:$0xff]  ;;  %v3026_v31 = vld [vmem:[%s12690_s21 + $0x148] sm:$0xff] }
 0x496   : > { %v3062_v40 = vpack.c.bf16 %v3026_v31, %v3025_v14  ;;  %v3944_v61 = vld [vmem:[%s12690_s21 + $0x9a] sm:$0xff] }
 0x497   : > { %17154 = vst [vmem:[#allocation43_spill] sm:$0xff] %v14789_v57  ;;  %v14797_v9 = vadd.f32 %v14430_v63, %v2500_v28  ;;  %10967 = vmatmul.mubr.msk.bf16.gmra.mrb[60].mxu0 %vm443_vm2, %v3061_v48  ;;  %v17158_v28 = vld [vmem:[#allocation26_spill] sm:$0xff]  ;;  %v14817_v51 = vpack.c.bf16 %v3944_v61, %v3943_v26  ;;  %v3946_v61 = vld [vmem:[%s12690_s21 + $0xaa] sm:$0xff] }
 0x498   : > { %10970 = vmatprep.mubr.msk.bf16.mxu0 %vm12577_vm1, %v14802_v29 }
 0x499   : > { %17156 = vst [vmem:[#allocation44_spill] sm:$0xff] %v14797_v9  ;;  %11244 = vmatprep.mubr.msk.bf16.mxu1 %vm443_vm2, %v14817_v51 }
 0x49a   : > { %v2388_v58 = vpop.f32.mrb[212].mxu0  ;;  %v14809_v48 = vpop.f32.mrb[164].mxu1 }
 0x49b   : > { %v2501_v17 = vadd.f32 %v2388_v58, %v17157_v45  ;;  %v10752_v7 = vpop.f32.mrb[213].mxu0  ;;  %v11038_v34 = vpop.f32.mrb[165].mxu1  ;;  %v17161_v45 = vld [vmem:[#allocation27_spill] sm:$0xff] }
 0x49c   : > { %v2391_v63 = vpop.f32.mrb[214].mxu0  ;;  %v14819_v58 = vpop.f32.mrb[166].mxu1  ;;  %v3028_v34 = vld [vmem:[%s12690_s21 + $0x158] sm:$0xff] }
 0x49d   : > { %v2502_v50 = vadd.f32 %v2391_v63, %v17158_v28  ;;  %v14815_v9 = vadd.f32 %v14446_v22, %v2501_v17  ;;  %v10753_v57 = vpop.f32.mrb[215].mxu0  ;;  %v11039_v31 = vpop.f32.mrb[167].mxu1  ;;  %v3027_v22 = vld [vmem:[%s12690_s21 + $0x150] sm:$0xff]  ;;  %v17162_v28 = vld [vmem:[#allocation28_spill] sm:$0xff] }
 0x49e   : > { %v3063_v63 = vpack.c.bf16 %v3028_v34, %v3027_v22 }
 0x49f   : > { %17159 = vst [vmem:[#allocation45_spill] sm:$0xff] %v14815_v9  ;;  %v14822_v14 = vadd.f32 %v14452_v15, %v2502_v50  ;;  %10971 = vmatmul.mubr.msk.bf16.gmra.mrb[64].mxu0 %vm443_vm2, %v3062_v40  ;;  %v3945_v40 = vld [vmem:[%s12690_s21 + $0xa2] sm:$0xff] }
 0x4a0   : > { %10974 = vmatprep.mubr.msk.bf16.mxu0 %vm12577_vm1, %v14802_v29  ;;  %v14840_v18 = vpack.c.bf16 %v3946_v61, %v3945_v40  ;;  %v3948_v61 = vld [vmem:[%s12690_s21 + $0xba] sm:$0xff] }
 0x4a1   : > { %17160 = vst [vmem:[#allocation26_spill] sm:$0xff] %v14822_v14 }
 0x4a2   : > { %v2396_v57 = vpop.f32.mrb[216].mxu0  ;;  %v14832_v15 = vpop.f32.mrb[168].mxu1  ;;  %11245 = vmatmul.mubr.msk.bf16.gmra.mrb[4].mxu1 %vm443_vm2, %v14840_v18 }
 0x4a3   : > { %v2503_v17 = vadd.f32 %v2396_v57, %v17161_v45  ;;  %v10756_v7 = vpop.f32.mrb[217].mxu0  ;;  %v11042_v9 = vpop.f32.mrb[169].mxu1  ;;  %v17165_v45 = vld [vmem:[#allocation29_spill] sm:$0xff] }
 0x4a4   : > { %v2399_v26 = vpop.f32.mrb[218].mxu0  ;;  %v14842_v57 = vpop.f32.mrb[170].mxu1  ;;  %v3030_v9 = vld [vmem:[%s12690_s21 + $0x168] sm:$0xff] }
 0x4a5   : > { %v2504_v50 = vadd.f32 %v2399_v26, %v17162_v28  ;;  %v14838_v31 = vadd.f32 %v14468_v52, %v2503_v17  ;;  %v10757_v14 = vpop.f32.mrb[219].mxu0  ;;  %v11043_v34 = vpop.f32.mrb[171].mxu1  ;;  %v3029_v52 = vld [vmem:[%s12690_s21 + $0x160] sm:$0xff]  ;;  %v17166_v28 = vld [vmem:[#allocation30_spill] sm:$0xff] }
 0x4a6   : > { %v3064_v26 = vpack.c.bf16 %v3030_v9, %v3029_v52 }
 0x4a7   : > { %17163 = vst [vmem:[#allocation27_spill] sm:$0xff] %v14838_v31  ;;  %v14845_v22 = vadd.f32 %v14474_v54, %v2504_v50  ;;  %10975 = vmatmul.mubr.msk.bf16.gmra.mrb[68].mxu0 %vm443_vm2, %v3063_v63  ;;  %v3947_v63 = vld [vmem:[%s12690_s21 + $0xb2] sm:$0xff] }
 0x4a8   : > { %10978 = vmatprep.mubr.msk.bf16.mxu0 %vm12577_vm1, %v14802_v29  ;;  %v14863_v62 = vpack.c.bf16 %v3948_v61, %v3947_v63  ;;  %v3950_v61 = vld [vmem:[%s12690_s21 + $0xca] sm:$0xff] }
 0x4a9   : > { %17164 = vst [vmem:[#allocation28_spill] sm:$0xff] %v14845_v22 }
 0x4aa   : > { %v2404_v14 = vpop.f32.mrb[220].mxu0  ;;  %v14855_v54 = vpop.f32.mrb[172].mxu1  ;;  %11248 = vmatprep.mubr.msk.bf16.mxu1 %vm443_vm2, %v14863_v62 }
 0x4ab   : > { %v2505_v17 = vadd.f32 %v2404_v14, %v17165_v45  ;;  %v10760_v7 = vpop.f32.mrb[221].mxu0  ;;  %v11046_v31 = vpop.f32.mrb[173].mxu1  ;;  %v17169_v45 = vld [vmem:[#allocation31_spill] sm:$0xff] }
 0x4ac   : > { %v2407_v40 = vpop.f32.mrb[222].mxu0  ;;  %v14865_v14 = vpop.f32.mrb[174].mxu1  ;;  %v3032_v31 = vld [vmem:[%s12690_s21 + $0x178] sm:$0xff] }
 0x4ad   : > { %v2506_v50 = vadd.f32 %v2407_v40, %v17166_v28  ;;  %v14861_v34 = vadd.f32 %v14490_v11, %v2505_v17  ;;  %v10761_v22 = vpop.f32.mrb[223].mxu0  ;;  %v11047_v9 = vpop.f32.mrb[175].mxu1  ;;  %v3031_v11 = vld [vmem:[%s12690_s21 + $0x170] sm:$0xff]  ;;  %v17170_v28 = vld [vmem:[#allocation32_spill] sm:$0xff] }
 0x4ae   : > { %v3065_v40 = vpack.c.bf16 %v3032_v31, %v3031_v11 }
 0x4af   : > { %17167 = vst [vmem:[#allocation29_spill] sm:$0xff] %v14861_v34  ;;  %v14868_v52 = vadd.f32 %v14496_v0, %v2506_v50  ;;  %10979 = vmatmul.mubr.msk.bf16.gmra.mrb[72].mxu0 %vm443_vm2, %v3064_v26  ;;  %v3949_v26 = vld [vmem:[%s12690_s21 + $0xc2] sm:$0xff] }
 0x4b0   : > { %10982 = vmatprep.mubr.msk.bf16.mxu0 %vm12577_vm1, %v14802_v29  ;;  %v14886_v4 = vpack.c.bf16 %v3950_v61, %v3949_v26 }
 0x4b1   : > { %17168 = vst [vmem:[#allocation30_spill] sm:$0xff] %v14868_v52 }
 0x4b2   : > { %v2412_v22 = vpop.f32.mrb[224].mxu0  ;;  %v14878_v0 = vpop.f32.mrb[176].mxu1  ;;  %17172 = vst [vmem:[#allocation32_spill] sm:$0xff] %v14886_v4  ;;  %11249 = vmatmul.mubr.msk.bf16.gmra.mrb[8].mxu1 %vm443_vm2, %v14886_v4 }
 0x4b3   : > { %v2507_v17 = vadd.f32 %v2412_v22, %v17169_v45  ;;  %v10764_v7 = vpop.f32.mrb[225].mxu0  ;;  %v11050_v34 = vpop.f32.mrb[177].mxu1  ;;  %v17174_v45 = vld [vmem:[#allocation33_spill] sm:$0xff] }
 0x4b4   : > { %v2415_v63 = vpop.f32.mrb[226].mxu0  ;;  %v14888_v22 = vpop.f32.mrb[178].mxu1  ;;  %v3034_v34 = vld [vmem:[%s12690_s21 + $0x188] sm:$0xff] }
 0x4b5   : > { %v2508_v50 = vadd.f32 %v2415_v63, %v17170_v28  ;;  %v14884_v9 = vadd.f32 %v14512_v60, %v2507_v17  ;;  %v10765_v52 = vpop.f32.mrb[227].mxu0  ;;  %v11051_v31 = vpop.f32.mrb[179].mxu1  ;;  %v3033_v60 = vld [vmem:[%s12690_s21 + $0x180] sm:$0xff] }
 0x4b6   : > { %v3066_v63 = vpack.c.bf16 %v3034_v34, %v3033_v60  ;;  %v3952_v28 = vld [vmem:[%s12690_s21 + $0xda] sm:$0xff] }
 0x4b7   : > { %17171 = vst [vmem:[#allocation31_spill] sm:$0xff] %v14884_v9  ;;  %v14891_v11 = vadd.f32 %v14518_v23, %v2508_v50  ;;  %10983 = vmatmul.mubr.msk.bf16.gmra.mrb[76].mxu0 %vm443_vm2, %v3065_v40  ;;  %v3951_v23 = vld [vmem:[%s12690_s21 + $0xd2] sm:$0xff]  ;;  %v12578_v9 = vmov 0   ;;  %v4516_v60 = vld [vmem:[%s16844_s1] sm:$0xff] }
 0x4b8   : > { %10986 = vmatprep.mubr.msk.bf16.mxu0 %vm12577_vm1, %v14802_v29  ;;  %v17175_v40 = vld [vmem:[#allocation34_spill] sm:$0xff]  ;;  %12386 = vset.pattern.permute.xlu0 %v12578_v9 }
 0x4b9   : > { %17173 = vst [vmem:[#allocation55_spill] sm:$0xff] %v14891_v11  ;;  %12387 = vset.pattern.permute.xlu1 %v12578_v9  ;;  %4572 = vperm.xlu0 %12386, %v4516_v60   ;;  %v3953_v60 = vld [vmem:[%s12690_s21 + $0xe2] sm:$0xff] }
 0x4ba   : > { %v2420_v52 = vpop.f32.mrb[228].mxu0  ;;  %v14901_v61 = vpop.f32.mrb[180].mxu1 }
 0x4bb   : > { %v2509_v17 = vadd.f32 %v2420_v52, %v17174_v45  ;;  %v10768_v7 = vpop.f32.mrb[229].mxu0  ;;  %v11054_v4 = vpop.f32.mrb[181].mxu1  ;;  %v4518_v52 = vld [vmem:[%s16844_s1 + $0x10] sm:$0xff] }
 0x4bc   : > { %v2423_v26 = vpop.f32.mrb[230].mxu0  ;;  %v14912_v34 = vpop.f32.mrb[182].mxu1  ;;  %4582 = vperm.xlu1 %12387, %v4518_v52   ;;  %v4517_v4 = vld [vmem:[%s16844_s1 + $0x8] sm:$0xff]  ;;  %v3035_v45 = vld [vmem:[%s12690_s21 + $0x190] sm:$0xff]  ;;  %v4519_v7 = vld [vmem:[%s16844_s1 + $0x18] sm:$0xff] }
 0x4bd   : > { %v2510_v50 = vadd.f32 %v2423_v26, %v17175_v40  ;;  %v14907_v31 = vadd.f32 %v14534_v19, %v2509_v17  ;;  %v10769_v11 = vpop.f32.mrb[231].mxu0  ;;  %v14917_v19 = vpack.c.bf16 %v3952_v28, %v3951_v23  ;;  %v11055_v9 = vpop.f32.mrb[183].mxu1  ;;  %v3036_v17 = vld [vmem:[%s12690_s21 + $0x198] sm:$0xff]  ;;  %4577 = vperm.xlu0 %12386, %v4517_v4   ;;  %v3954_v52 = vld [vmem:[%s12690_s21 + $0xea] sm:$0xff] }
 0x4be   : > { %v3067_v28 = vpack.c.bf16 %v3036_v17, %v3035_v45  ;;  %v17180_v9 = vld [vmem:[#allocation36_spill] sm:$0xff] }
 0x4bf   : > { %17176 = vst [vmem:[#allocation33_spill] sm:$0xff] %v14907_v31  ;;  %17177 = vst [vmem:[#allocation34_spill] sm:$0xff] %v14917_v19  ;;  %v14920_v11 = vadd.f32 %v14540_v42, %v2510_v50  ;;  %10987 = vmatmul.mubr.msk.bf16.gmra.mrb[80].mxu0 %vm443_vm2, %v3066_v63  ;;  %11252 = vmatprep.mubr.msk.bf16.mxu1 %vm443_vm2, %v14917_v19  ;;  %v17179_v63 = vld [vmem:[#allocation35_spill] sm:$0xff]  ;;  %v4521_v17 = vld [vmem:[%s16844_s1 + $0x28] sm:$0xff] }
 0x4c0   : > { %10990 = vmatprep.mubr.msk.bf16.mxu0 %vm12577_vm1, %v14802_v29  ;;  %4587 = vperm.xlu1 %12387, %v4519_v7   ;;  %v14952_v7 = vpack.c.bf16 %v3954_v52, %v3953_v60 }
 0x4c1   : > { %17178 = vst [vmem:[#allocation56_spill] sm:$0xff] %v14920_v11 }
 0x4c2   : > { %v2428_v42 = vpop.f32.mrb[232].mxu0  ;;  %v14936_v50 = vpop.f32.mrb[184].mxu1  ;;  %17182 = vst [vmem:[#allocation36_spill] sm:$0xff] %v14952_v7  ;;  %11253 = vmatmul.mubr.msk.bf16.gmra.mrb[12].mxu1 %vm443_vm2, %v14952_v7 }
 0x4c3   : > { %v2511_v26 = vadd.f32 %v2428_v42, %v17179_v63  ;;  %v10772_v23 = vpop.f32.mrb[233].mxu0  ;;  %v11058_v19 = vpop.f32.mrb[185].mxu1  ;;  %v4520_v42 = vld [vmem:[%s16844_s1 + $0x20] sm:$0xff] }
 0x4c4   : > { %v2431_v40 = vpop.f32.mrb[234].mxu0  ;;  %4592 = vperm.xlu0 %12386, %v4520_v42   ;;  %v14947_v45 = vpop.f32.mrb[186].mxu1  ;;  %4597 = vperm.xlu1 %12387, %v4521_v17   ;;  %v3037_v19 = vld [vmem:[%s12690_s21 + $0x1a0] sm:$0xff]  ;;  %v17184_v23 = vld [vmem:[#allocation37_spill] sm:$0xff] }
 0x4c5   : > { %v2512_v11 = vadd.f32 %v2431_v40, %v17180_v9  ;;  %v14942_v4 = vadd.f32 %v14556_v32, %v2511_v26  ;;  %v10773_v31 = vpop.f32.mrb[235].mxu0  ;;  %v4522_v32 = vld [vmem:[%s16844_s1 + $0x30] sm:$0xff]  ;;  %v3038_v26 = vld [vmem:[%s12690_s21 + $0x1a8] sm:$0xff]  ;;  %v3956_v17 = vld [vmem:[%s12690_s21 + $0xfa] sm:$0xff] }
 0x4c6   : > { %v11059_v31 = vpop.f32.mrb[187].mxu1  ;;  %v3068_v60 = vpack.c.bf16 %v3038_v26, %v3037_v19  ;;  %v3955_v42 = vld [vmem:[%s12690_s21 + $0xf2] sm:$0xff]  ;;  %v4525_v26 = vld [vmem:[%s16844_s1 + $0x48] sm:$0xff] }
 0x4c7   : > { %17181 = vst [vmem:[#allocation35_spill] sm:$0xff] %v14942_v4  ;;  %v14955_v63 = vadd.f32 %v14562_v53, %v2512_v11  ;;  %10991 = vmatmul.mubr.msk.bf16.gmra.mrb[84].mxu0 %vm443_vm2, %v3067_v28  ;;  %v4523_v11 = vld [vmem:[%s16844_s1 + $0x38] sm:$0xff] }
 0x4c8   : > { %10994 = vmatprep.mubr.msk.bf16.mxu0 %vm12577_vm1, %v14802_v29  ;;  %4602 = vperm.xlu0 %12386, %v4522_v32   ;;  %v17185_v31 = vld [vmem:[#allocation38_spill] sm:$0xff] }
 0x4c9   : > { %17183 = vst [vmem:[#allocation57_spill] sm:$0xff] %v14955_v63  ;;  %4607 = vperm.xlu1 %12387, %v4523_v11   ;;  %v14987_v11 = vpack.c.bf16 %v3956_v17, %v3955_v42 }
 0x4ca   : > { %v2436_v53 = vpop.f32.mrb[236].mxu0  ;;  %v14971_v9 = vpop.f32.mrb[188].mxu1 }
 0x4cb   : > { %v2513_v28 = vadd.f32 %v2436_v53, %v17184_v23  ;;  %v10776_v40 = vpop.f32.mrb[237].mxu0  ;;  %v11062_v7 = vpop.f32.mrb[189].mxu1  ;;  %v4524_v53 = vld [vmem:[%s16844_s1 + $0x40] sm:$0xff]  ;;  %17187 = vst [vmem:[#allocation38_spill] sm:$0xff] %v14987_v11  ;;  %11256 = vmatprep.mubr.msk.bf16.mxu1 %vm443_vm2, %v14987_v11 }
 0x4cc   : > { %v2439_v52 = vpop.f32.mrb[238].mxu0  ;;  %4612 = vperm.xlu0 %12386, %v4524_v53   ;;  %v14982_v19 = vpop.f32.mrb[190].mxu1  ;;  %v3039_v7 = vld [vmem:[%s12690_s21 + $0x1b0] sm:$0xff]  ;;  %v17189_v40 = vld [vmem:[#allocation6_spill] sm:$0xff]  ;;  %v3957_v53 = vld [vmem:[%s12690_s21 + $0x102] sm:$0xff] }
 0x4cd   : > { %v2514_v63 = vadd.f32 %v2439_v52, %v17185_v31  ;;  %v14977_v32 = vadd.f32 %v14578_v47, %v2513_v28  ;;  %v10777_v4 = vpop.f32.mrb[239].mxu0  ;;  %4617 = vperm.xlu1 %12387, %v4525_v26   ;;  %v4526_v47 = vld [vmem:[%s16844_s1 + $0x50] sm:$0xff]  ;;  %v3040_v28 = vld [vmem:[%s12690_s21 + $0x1b8] sm:$0xff] }
 0x4ce   : > { %v11063_v4 = vpop.f32.mrb[191].mxu1  ;;  %v3069_v42 = vpack.c.bf16 %v3040_v28, %v3039_v7  ;;  %v3958_v26 = vld [vmem:[%s12690_s21 + $0x10a] sm:$0xff] }
 0x4cf   : > { %17186 = vst [vmem:[#allocation37_spill] sm:$0xff] %v14977_v32  ;;  %v14990_v23 = vadd.f32 %v14584_v6, %v2514_v63  ;;  %10995 = vmatmul.mubr.msk.bf16.gmra.mrb[88].mxu0 %vm443_vm2, %v3068_v60  ;;  %v4527_v63 = vld [vmem:[%s16844_s1 + $0x58] sm:$0xff]  ;;  %v17190_v4 = vld [vmem:[#allocation7_spill] sm:$0xff]  ;;  %v4529_v28 = vld [vmem:[%s16844_s1 + $0x68] sm:$0xff] }
 0x4d0   : > { %10998 = vmatprep.mubr.msk.bf16.mxu0 %vm12577_vm1, %v14802_v29  ;;  %4622 = vperm.xlu0 %12386, %v4526_v47  }
 0x4d1   : > { %17188 = vst [vmem:[#allocation58_spill] sm:$0xff] %v14990_v23  ;;  %4627 = vperm.xlu1 %12387, %v4527_v63   ;;  %v15022_v63 = vpack.c.bf16 %v3958_v26, %v3957_v53 }
 0x4d2   : > { %v2444_v6 = vpop.f32.mrb[240].mxu0  ;;  %v15006_v31 = vpop.f32.mrb[192].mxu1 }
 0x4d3   : > { %v2515_v60 = vadd.f32 %v2444_v6, %v17189_v40  ;;  %v10780_v52 = vpop.f32.mrb[241].mxu0  ;;  %v11066_v11 = vpop.f32.mrb[193].mxu1  ;;  %v4528_v6 = vld [vmem:[%s16844_s1 + $0x60] sm:$0xff]  ;;  %17192 = vst [vmem:[#allocation7_spill] sm:$0xff] %v15022_v63  ;;  %11257 = vmatmul.mubr.msk.bf16.gmra.mrb[16].mxu1 %vm443_vm2, %v15022_v63 }
 0x4d4   : > { %v2447_v17 = vpop.f32.mrb[242].mxu0  ;;  %4632 = vperm.xlu0 %12386, %v4528_v6   ;;  %v15017_v7 = vpop.f32.mrb[194].mxu1  ;;  %v3041_v11 = vld [vmem:[%s12690_s21 + $0x1c0] sm:$0xff]  ;;  %v17194_v52 = vld [vmem:[#allocation8_spill] sm:$0xff]  ;;  %v3959_v6 = vld [vmem:[%s12690_s21 + $0x112] sm:$0xff] }
 0x4d5   : > { %v2516_v23 = vadd.f32 %v2447_v17, %v17190_v4  ;;  %v15012_v47 = vadd.f32 %v14600_v3, %v2515_v60  ;;  %v10781_v32 = vpop.f32.mrb[243].mxu0  ;;  %4637 = vperm.xlu1 %12387, %v4529_v28   ;;  %v4530_v3 = vld [vmem:[%s16844_s1 + $0x70] sm:$0xff]  ;;  %v3042_v60 = vld [vmem:[%s12690_s21 + $0x1c8] sm:$0xff]  ;;  %v3960_v28 = vld [vmem:[%s12690_s21 + $0x11a] sm:$0xff] }
 0x4d6   : > { %v11067_v32 = vpop.f32.mrb[195].mxu1  ;;  %v3070_v53 = vpack.c.bf16 %v3042_v60, %v3041_v11  ;;  %v4533_v60 = vld [vmem:[%s16844_s1 + $0x88] sm:$0xff] }
 0x4d7   : > { %17191 = vst [vmem:[#allocation6_spill] sm:$0xff] %v15012_v47  ;;  %v15025_v40 = vadd.f32 %v14606_v44, %v2516_v23  ;;  %10999 = vmatmul.mubr.msk.bf16.gmra.mrb[92].mxu0 %vm443_vm2, %v3069_v42  ;;  %v4531_v23 = vld [vmem:[%s16844_s1 + $0x78] sm:$0xff]  ;;  %v17195_v32 = vld [vmem:[#allocation39_spill] sm:$0xff] }
 0x4d8   : > { %11002 = vmatprep.mubr.msk.bf16.mxu0 %vm12577_vm1, %v14802_v29  ;;  %4642 = vperm.xlu0 %12386, %v4530_v3  }
 0x4d9   : > { %17193 = vst [vmem:[#allocation59_spill] sm:$0xff] %v15025_v40  ;;  %4647 = vperm.xlu1 %12387, %v4531_v23   ;;  %v15057_v23 = vpack.c.bf16 %v3960_v28, %v3959_v6 }
 0x4da   : > { %v2452_v44 = vpop.f32.mrb[244].mxu0  ;;  %v15041_v4 = vpop.f32.mrb[196].mxu1 }
 0x4db   : > { %v2517_v42 = vadd.f32 %v2452_v44, %v17194_v52  ;;  %v10784_v17 = vpop.f32.mrb[245].mxu0  ;;  %v11070_v63 = vpop.f32.mrb[197].mxu1  ;;  %v4532_v44 = vld [vmem:[%s16844_s1 + $0x80] sm:$0xff]  ;;  %17198 = vst [vmem:[#allocation60_spill] sm:$0xff] %v15057_v23  ;;  %11260 = vmatprep.mubr.msk.bf16.mxu1 %vm443_vm2, %v15057_v23 }
 0x4dc   : > { %v2455_v26 = vpop.f32.mrb[246].mxu0  ;;  %4652 = vperm.xlu0 %12386, %v4532_v44   ;;  %v15052_v11 = vpop.f32.mrb[198].mxu1  ;;  %v3043_v63 = vld [vmem:[%s12690_s21 + $0x1d0] sm:$0xff]  ;;  %v17200_v17 = vld [vmem:[#allocation40_spill] sm:$0xff] }
 0x4dd   : > { %v2518_v40 = vadd.f32 %v2455_v26, %v17195_v32  ;;  %v15047_v3 = vadd.f32 %v14622_v27, %v2517_v42  ;;  %v10785_v47 = vpop.f32.mrb[247].mxu0  ;;  %17197 = vst [vmem:[#allocation39_spill] sm:$0xff] %v15052_v11  ;;  %4657 = vperm.xlu1 %12387, %v4533_v60   ;;  %v4534_v27 = vld [vmem:[%s16844_s1 + $0x90] sm:$0xff]  ;;  %v3044_v42 = vld [vmem:[%s12690_s21 + $0x1d8] sm:$0xff]  ;;  %v3961_v44 = vld [vmem:[%s12690_s21 + $0x122] sm:$0xff] }
 0x4de   : > { %v11071_v47 = vpop.f32.mrb[199].mxu1  ;;  %v3071_v6 = vpack.c.bf16 %v3044_v42, %v3043_v63  ;;  %v3962_v60 = vld [vmem:[%s12690_s21 + $0x12a] sm:$0xff]  ;;  %v4536_v11 = vld [vmem:[%s16844_s1 + $0xa0] sm:$0xff] }
 0x4df   : > { %17196 = vst [vmem:[#allocation8_spill] sm:$0xff] %v15047_v3  ;;  %v15060_v52 = vadd.f32 %v14628_v13, %v2518_v40  ;;  %11003 = vmatmul.mubr.msk.bf16.gmra.mrb[96].mxu0 %vm443_vm2, %v3070_v53  ;;  %v4535_v40 = vld [vmem:[%s16844_s1 + $0x98] sm:$0xff]  ;;  %v17201_v47 = vld [vmem:[#allocation41_spill] sm:$0xff]  ;;  %v4537_v63 = vld [vmem:[%s16844_s1 + $0xa8] sm:$0xff]  ;;  %v15092_v42 = vpack.c.bf16 %v3962_v60, %v3961_v44 }
 0x4e0   : > { %11006 = vmatprep.mubr.msk.bf16.mxu0 %vm12577_vm1, %v14802_v29  ;;  %4662 = vperm.xlu0 %12386, %v4534_v27  }
 0x4e1   : > { %17199 = vst [vmem:[#allocation61_spill] sm:$0xff] %v15060_v52  ;;  %4667 = vperm.xlu1 %12387, %v4535_v40   ;;  %11261 = vmatmul.mubr.msk.bf16.gmra.mrb[20].mxu1 %vm443_vm2, %v15092_v42 }
 0x4e2   : > { %v2460_v13 = vpop.f32.mrb[248].mxu0  ;;  %v15076_v32 = vpop.f32.mrb[200].mxu1 }
 0x4e3   : > { %v2519_v53 = vadd.f32 %v2460_v13, %v17200_v17  ;;  %v10788_v26 = vpop.f32.mrb[249].mxu0  ;;  %v11074_v23 = vpop.f32.mrb[201].mxu1 }
 0x4e4   : > { %v2463_v28 = vpop.f32.mrb[250].mxu0  ;;  %4672 = vperm.xlu0 %12386, %v4536_v11   ;;  %v15087_v13 = vpop.f32.mrb[202].mxu1 }
 0x4e5   : > { %v2520_v52 = vadd.f32 %v2463_v28, %v17201_v47  ;;  %v15082_v3 = vadd.f32 %v14644_v38, %v2519_v53  ;;  %v10789_v27 = vpop.f32.mrb[251].mxu0  ;;  %4677 = vperm.xlu1 %12387, %v4537_v63   ;;  %v4538_v38 = vld [vmem:[%s16844_s1 + $0xb0] sm:$0xff]  ;;  %v11075_v11 = vpop.f32.mrb[203].mxu1  ;;  %v3964_v28 = vld [vmem:[%s12690_s21 + $0x13a] sm:$0xff] }
 0x4e6   : > { %v4540_v63 = vld [vmem:[%s16844_s1 + $0xc0] sm:$0xff] }
 0x4e7   : > { %v15095_v40 = vadd.f32 %v14650_v16, %v2520_v52  ;;  %11007 = vmatmul.mubr.msk.bf16.gmra.mrb[100].mxu0 %vm443_vm2, %v3071_v6  ;;  %v4539_v16 = vld [vmem:[%s16844_s1 + $0xb8] sm:$0xff] }
 0x4e8   : > { %11122 = vmatprep.mubr.msk.bf16.mxu0 %vm12577_vm1, %v14802_v29  ;;  %4682 = vperm.xlu0 %12386, %v4538_v38   ;;  %v3963_v6 = vld [vmem:[%s12690_s21 + $0x132] sm:$0xff]  ;;  %v4541_v38 = vld [vmem:[%s16844_s1 + $0xc8] sm:$0xff] }
 0x4e9   : > { %4687 = vperm.xlu1 %12387, %v4539_v16   ;;  %v15125_v11 = vpack.c.bf16 %v3964_v28, %v3963_v6  ;;  %v3965_v6 = vld [vmem:[%s12690_s21 + $0x142] sm:$0xff]  ;;  %v3966_v28 = vld [vmem:[%s12690_s21 + $0x14a] sm:$0xff] }
 0x4ea   : > { %v3192_v23 = vpop.f32.mrb[252].mxu0  ;;  %v15109_v26 = vpop.f32.mrb[204].mxu1 }
 0x4eb   : > { %v3407_v52 = vadd.f32 %v3192_v23, %v14428_v37  ;;  %v10904_v17 = vpop.f32.mrb[253].mxu0  ;;  %v11078_v27 = vpop.f32.mrb[205].mxu1  ;;  %11264 = vmatprep.mubr.msk.bf16.mxu1 %vm443_vm2, %v15125_v11 }
 0x4ec   : > { %v3195_v53 = vpop.f32.mrb[254].mxu0  ;;  %4692 = vperm.xlu0 %12386, %v4540_v63   ;;  %v15120_v37 = vpop.f32.mrb[206].mxu1 }
 0x4ed   : > { %v3408_v44 = vadd.f32 %v3195_v53, %v14436_v21  ;;  %v15115_v60 = vadd.f32 %v14664_v43, %v3407_v52  ;;  %v10905_v47 = vpop.f32.mrb[255].mxu0  ;;  %4697 = vperm.xlu1 %12387, %v4541_v38   ;;  %v4542_v43 = vld [vmem:[%s16844_s1 + $0xd0] sm:$0xff]  ;;  %v11079_v23 = vpop.f32.mrb[207].mxu1  ;;  %v4544_v38 = vld [vmem:[%s16844_s1 + $0xe0] sm:$0xff] }
 0x4ee   : > { %v15159_v23 = vpack.c.bf16 %v3966_v28, %v3965_v6  ;;  %v3967_v28 = vld [vmem:[%s12690_s21 + $0x152] sm:$0xff] }
 0x4ef   : > { %v15128_v21 = vadd.f32 %v14674_v39, %v3408_v44  ;;  %11123 = vmatmul.mubr.msk.bf16.vlgmr.msra.gmra.mrb[104].mxu0 %vm443_vm2, %v14672_v30  ;;  %v4543_v39 = vld [vmem:[%s16844_s1 + $0xd8] sm:$0xff] }
 0x4f0   : > { %11126 = vmatprep.mubr.msk.bf16.mxu0 %vm12577_vm1, %v14802_v29  ;;  %4702 = vperm.xlu0 %12386, %v4542_v43   ;;  %v4545_v43 = vld [vmem:[%s16844_s1 + $0xe8] sm:$0xff] }
 0x4f1   : > { %4707 = vperm.xlu1 %12387, %v4543_v39   ;;  %11265 = vmatmul.mubr.msk.bf16.gmra.mrb[24].mxu1 %vm443_vm2, %v15159_v23 }
 0x4f2   : > { %v3200_v16 = vpop.f32.mrb[0].mxu0  ;;  %v15143_v53 = vpop.f32.mrb[208].mxu1 }
 0x4f3   : > { %v3409_v30 = vadd.f32 %v3200_v16, %v14450_v35  ;;  %v10908_v52 = vpop.f32.mrb[1].mxu0  ;;  %v11082_v63 = vpop.f32.mrb[209].mxu1 }
 0x4f4   : > { %v3203_v17 = vpop.f32.mrb[2].mxu0  ;;  %4712 = vperm.xlu0 %12386, %v4544_v38   ;;  %v15154_v35 = vpop.f32.mrb[210].mxu1 }
 0x4f5   : > { %v3410_v44 = vadd.f32 %v3203_v17, %v14458_v33  ;;  %v15149_v47 = vadd.f32 %v14687_v36, %v3409_v30  ;;  %v10909_v27 = vpop.f32.mrb[3].mxu0  ;;  %4717 = vperm.xlu1 %12387, %v4545_v43   ;;  %v4546_v36 = vld [vmem:[%s16844_s1 + $0xf0] sm:$0xff]  ;;  %v11083_v16 = vpop.f32.mrb[211].mxu1  ;;  %v17202_v30 = vld [vmem:[#allocation46_spill] sm:$0xff] }
 0x4f6   : > { %v17203_v27 = vld [vmem:[#allocation47_spill] sm:$0xff] }
 0x4f7   : > { %v15162_v33 = vadd.f32 %v14693_v5, %v3410_v44  ;;  %11127 = vmatmul.mubr.msk.bf16.gmra.mrb[108].mxu0 %vm443_vm2, %v14729_v1  ;;  %v4547_v5 = vld [vmem:[%s16844_s1 + $0xf8] sm:$0xff]  ;;  %v4548_v16 = vld [vmem:[%s16844_s1 + $0x100] sm:$0xff] }
 0x4f8   : > { %11130 = vmatprep.mubr.msk.bf16.mxu0 %vm12577_vm1, %v14802_v29  ;;  %4722 = vperm.xlu0 %12386, %v4546_v36   ;;  %v3968_v44 = vld [vmem:[%s12690_s21 + $0x15a] sm:$0xff] }
 0x4f9   : > { %4727 = vperm.xlu1 %12387, %v4547_v5   ;;  %v4549_v5 = vld [vmem:[%s16844_s1 + $0x108] sm:$0xff] }
 0x4fa   : > { %v3208_v39 = vpop.f32.mrb[4].mxu0  ;;  %v15177_v6 = vpop.f32.mrb[212].mxu1 }
 0x4fb   : > { %v3411_v1 = vadd.f32 %v3208_v39, %v17202_v30  ;;  %v10912_v52 = vpop.f32.mrb[5].mxu0  ;;  %v11086_v36 = vpop.f32.mrb[213].mxu1  ;;  %v15193_v30 = vpack.c.bf16 %v3968_v44, %v3967_v28  ;;  %v17206_v28 = vld [vmem:[#allocation48_spill] sm:$0xff] }
 0x4fc   : > { %v3211_v17 = vpop.f32.mrb[6].mxu0  ;;  %4732 = vperm.xlu0 %12386, %v4548_v16   ;;  %v15188_v39 = vpop.f32.mrb[214].mxu1  ;;  %v3970_v36 = vld [vmem:[%s12690_s21 + $0x16a] sm:$0xff] }
 0x4fd   : > { %v3412_v63 = vadd.f32 %v3211_v17, %v17203_v27  ;;  %v15183_v38 = vadd.f32 %v14704_v2, %v3411_v1  ;;  %v10913_v43 = vpop.f32.mrb[7].mxu0  ;;  %4737 = vperm.xlu1 %12387, %v4549_v5   ;;  %v4550_v2 = vld [vmem:[%s16844_s1 + $0x110] sm:$0xff]  ;;  %v11087_v1 = vpop.f32.mrb[215].mxu1  ;;  %11268 = vmatprep.mubr.msk.bf16.mxu1 %vm443_vm2, %v15193_v30 }
 0x4fe   : > { %v3969_v43 = vld [vmem:[%s12690_s21 + $0x162] sm:$0xff]  ;;  %v17207_v16 = vld [vmem:[#allocation9_spill] sm:$0xff] }
 0x4ff   : > { %17204 = vst [vmem:[#allocation40_spill] sm:$0xff] %v15183_v38  ;;  %v15196_v52 = vadd.f32 %v14711_v8, %v3412_v63  ;;  %11131 = vmatmul.mubr.msk.bf16.gmra.mrb[112].mxu0 %vm443_vm2, %v14732_v12  ;;  %v4551_v8 = vld [vmem:[%s16844_s1 + $0x118] sm:$0xff]  ;;  %v4552_v38 = vld [vmem:[%s16844_s1 + $0x120] sm:$0xff] }
 0x500   : > { %11134 = vmatprep.mubr.msk.bf16.mxu0 %vm12577_vm1, %v14802_v29  ;;  %4742 = vperm.xlu0 %12386, %v4550_v2  }
 0x501   : > { %17205 = vst [vmem:[#allocation41_spill] sm:$0xff] %v15196_v52  ;;  %4747 = vperm.xlu1 %12387, %v4551_v8   ;;  %v4553_v8 = vld [vmem:[%s16844_s1 + $0x128] sm:$0xff] }
 0x502   : > { %v3216_v17 = vpop.f32.mrb[8].mxu0  ;;  %v15211_v63 = vpop.f32.mrb[216].mxu1 }
 0x503   : > { %v3413_v12 = vadd.f32 %v3216_v17, %v17206_v28  ;;  %v10916_v44 = vpop.f32.mrb[9].mxu0  ;;  %v11090_v2 = vpop.f32.mrb[217].mxu1  ;;  %v15227_v28 = vpack.c.bf16 %v3970_v36, %v3969_v43 }
 0x504   : > { %v3219_v27 = vpop.f32.mrb[10].mxu0  ;;  %4752 = vperm.xlu0 %12386, %v4552_v38   ;;  %v15222_v17 = vpop.f32.mrb[218].mxu1  ;;  %v17211_v2 = vld [vmem:[#allocation10_spill] sm:$0xff] }
 0x505   : > { %v3414_v5 = vadd.f32 %v3219_v27, %v17207_v16  ;;  %v15217_v1 = vadd.f32 %v14734_v56, %v3413_v12  ;;  %v10917_v52 = vpop.f32.mrb[11].mxu0  ;;  %4757 = vperm.xlu1 %12387, %v4553_v8   ;;  %v4554_v56 = vld [vmem:[%s16844_s1 + $0x130] sm:$0xff]  ;;  %v11091_v38 = vpop.f32.mrb[219].mxu1  ;;  %11269 = vmatmul.mubr.msk.bf16.gmra.mrb[28].mxu1 %vm443_vm2, %v15227_v28  ;;  %v17210_v12 = vld [vmem:[#allocation16_spill] sm:$0xff] }
 0x506   : > { %v3971_v16 = vld [vmem:[%s12690_s21 + $0x172] sm:$0xff] }
 0x507   : > { %17208 = vst [vmem:[#allocation46_spill] sm:$0xff] %v15217_v1  ;;  %v15230_v44 = vadd.f32 %v14744_v10, %v3414_v5  ;;  %11135 = vmatmul.mubr.msk.bf16.gmra.mrb[116].mxu0 %vm443_vm2, %v14756_v24  ;;  %v4555_v10 = vld [vmem:[%s16844_s1 + $0x138] sm:$0xff]  ;;  %v4556_v1 = vld [vmem:[%s16844_s1 + $0x140] sm:$0xff] }
 0x508   : > { %11138 = vmatprep.mubr.msk.bf16.mxu0 %vm12577_vm1, %v14802_v29  ;;  %4762 = vperm.xlu0 %12386, %v4554_v56   ;;  %v3972_v5 = vld [vmem:[%s12690_s21 + $0x17a] sm:$0xff] }
 0x509   : > { %17209 = vst [vmem:[#allocation47_spill] sm:$0xff] %v15230_v44  ;;  %4767 = vperm.xlu1 %12387, %v4555_v10   ;;  %v4557_v10 = vld [vmem:[%s16844_s1 + $0x148] sm:$0xff] }
 0x50a   : > { %v3224_v52 = vpop.f32.mrb[12].mxu0  ;;  %v15245_v36 = vpop.f32.mrb[220].mxu1 }
 0x50b   : > { %v3415_v24 = vadd.f32 %v3224_v52, %v17210_v12  ;;  %v10920_v27 = vpop.f32.mrb[13].mxu0  ;;  %v11094_v56 = vpop.f32.mrb[221].mxu1  ;;  %v15261_v12 = vpack.c.bf16 %v3972_v5, %v3971_v16 }
 0x50c   : > { %v3227_v43 = vpop.f32.mrb[14].mxu0  ;;  %4772 = vperm.xlu0 %12386, %v4556_v1   ;;  %v15256_v52 = vpop.f32.mrb[222].mxu1  ;;  %v17215_v56 = vld [vmem:[#allocation11_spill] sm:$0xff] }
 0x50d   : > { %v3416_v8 = vadd.f32 %v3227_v43, %v17211_v2  ;;  %v15251_v38 = vadd.f32 %v14759_v25, %v3415_v24  ;;  %v10921_v44 = vpop.f32.mrb[15].mxu0  ;;  %4777 = vperm.xlu1 %12387, %v4557_v10   ;;  %v4558_v25 = vld [vmem:[%s16844_s1 + $0x150] sm:$0xff]  ;;  %v11095_v1 = vpop.f32.mrb[223].mxu1  ;;  %11272 = vmatprep.mubr.msk.bf16.mxu1 %vm443_vm2, %v15261_v12  ;;  %v17214_v24 = vld [vmem:[#allocation18_spill] sm:$0xff]  ;;  %v3973_v2 = vld [vmem:[%s12690_s21 + $0x182] sm:$0xff] }
 0x50f   : > { %17212 = vst [vmem:[#allocation48_spill] sm:$0xff] %v15251_v38  ;;  %v15264_v27 = vadd.f32 %v14771_v41, %v3416_v8  ;;  %11139 = vmatmul.mubr.msk.bf16.gmra.mrb[120].mxu0 %vm443_vm2, %v14769_v20  ;;  %v4559_v41 = vld [vmem:[%s16844_s1 + $0x158] sm:$0xff]  ;;  %v3974_v8 = vld [vmem:[%s12690_s21 + $0x18a] sm:$0xff]  ;;  %v4560_v38 = vld [vmem:[%s16844_s1 + $0x160] sm:$0xff] }
 0x510   : > { %11142 = vmatprep.mubr.msk.bf16.mxu0 %vm12577_vm1, %v14802_v29  ;;  %4782 = vperm.xlu0 %12386, %v4558_v25  }
 0x511   : > { %17213 = vst [vmem:[#allocation9_spill] sm:$0xff] %v15264_v27  ;;  %4787 = vperm.xlu1 %12387, %v4559_v41   ;;  %v4561_v41 = vld [vmem:[%s16844_s1 + $0x168] sm:$0xff] }
 0x512   : > { %v3232_v44 = vpop.f32.mrb[16].mxu0  ;;  %v15279_v5 = vpop.f32.mrb[224].mxu1 }
 0x513   : > { %v3417_v20 = vadd.f32 %v3232_v44, %v17214_v24  ;;  %v10924_v43 = vpop.f32.mrb[17].mxu0  ;;  %v11098_v25 = vpop.f32.mrb[225].mxu1  ;;  %v15295_v24 = vpack.c.bf16 %v3974_v8, %v3973_v2 }
 0x514   : > { %v3235_v16 = vpop.f32.mrb[18].mxu0  ;;  %4792 = vperm.xlu0 %12386, %v4560_v38   ;;  %v15290_v44 = vpop.f32.mrb[226].mxu1  ;;  %v17219_v25 = vld [vmem:[#allocation12_spill] sm:$0xff] }
 0x515   : > { %v3418_v10 = vadd.f32 %v3235_v16, %v17215_v56  ;;  %v15285_v1 = vadd.f32 %v14784_v46, %v3417_v20  ;;  %v10925_v27 = vpop.f32.mrb[19].mxu0  ;;  %4797 = vperm.xlu1 %12387, %v4561_v41   ;;  %v4562_v46 = vld [vmem:[%s16844_s1 + $0x170] sm:$0xff]  ;;  %v11099_v38 = vpop.f32.mrb[227].mxu1  ;;  %11273 = vmatmul.mubr.msk.bf16.gmra.mrb[32].mxu1 %vm443_vm2, %v15295_v24  ;;  %v17218_v20 = vld [vmem:[#allocation20_spill] sm:$0xff] }
 0x516   : > { %v3975_v56 = vld [vmem:[%s12690_s21 + $0x192] sm:$0xff] }
 0x517   : > { %17216 = vst [vmem:[#allocation16_spill] sm:$0xff] %v15285_v1  ;;  %v15298_v43 = vadd.f32 %v14794_v55, %v3418_v10  ;;  %11143 = vmatmul.mubr.msk.bf16.gmra.mrb[124].mxu0 %vm443_vm2, %v14792_v59  ;;  %v4563_v55 = vld [vmem:[%s16844_s1 + $0x178] sm:$0xff]  ;;  %v4564_v1 = vld [vmem:[%s16844_s1 + $0x180] sm:$0xff] }
 0x518   : > { %11146 = vmatprep.mubr.msk.bf16.mxu0 %vm12577_vm1, %v14802_v29  ;;  %4802 = vperm.xlu0 %12386, %v4562_v46   ;;  %v3976_v10 = vld [vmem:[%s12690_s21 + $0x19a] sm:$0xff] }
 0x519   : > { %17217 = vst [vmem:[#allocation10_spill] sm:$0xff] %v15298_v43  ;;  %4807 = vperm.xlu1 %12387, %v4563_v55   ;;  %v4565_v55 = vld [vmem:[%s16844_s1 + $0x188] sm:$0xff] }
 0x51a   : > { %v3240_v27 = vpop.f32.mrb[20].mxu0  ;;  %v15313_v8 = vpop.f32.mrb[228].mxu1 }
 0x51b   : > { %v3419_v59 = vadd.f32 %v3240_v27, %v17218_v20  ;;  %v10928_v16 = vpop.f32.mrb[21].mxu0  ;;  %v11102_v46 = vpop.f32.mrb[229].mxu1  ;;  %v15329_v20 = vpack.c.bf16 %v3976_v10, %v3975_v56 }
 0x51c   : > { %v3243_v2 = vpop.f32.mrb[22].mxu0  ;;  %4812 = vperm.xlu0 %12386, %v4564_v1   ;;  %v15324_v27 = vpop.f32.mrb[230].mxu1  ;;  %v17223_v46 = vld [vmem:[#allocation14_spill] sm:$0xff] }
 0x51d   : > { %v3420_v41 = vadd.f32 %v3243_v2, %v17219_v25  ;;  %v15319_v38 = vadd.f32 %v14809_v48, %v3419_v59  ;;  %v10929_v43 = vpop.f32.mrb[23].mxu0  ;;  %4817 = vperm.xlu1 %12387, %v4565_v55   ;;  %v4566_v48 = vld [vmem:[%s16844_s1 + $0x190] sm:$0xff]  ;;  %v11103_v1 = vpop.f32.mrb[231].mxu1  ;;  %11276 = vmatprep.mubr.msk.bf16.mxu1 %vm443_vm2, %v15329_v20  ;;  %v3977_v25 = vld [vmem:[%s12690_s21 + $0x1a2] sm:$0xff] }
 0x51e   : > { %v17222_v59 = vld [vmem:[#allocation13_spill] sm:$0xff] }
 0x51f   : > { %17220 = vst [vmem:[#allocation18_spill] sm:$0xff] %v15319_v38  ;;  %v15332_v16 = vadd.f32 %v14819_v58, %v3420_v41  ;;  %11147 = vmatmul.mubr.msk.bf16.gmra.mrb[128].mxu0 %vm443_vm2, %v14817_v51  ;;  %v4567_v58 = vld [vmem:[%s16844_s1 + $0x198] sm:$0xff]  ;;  %v3978_v41 = vld [vmem:[%s12690_s21 + $0x1aa] sm:$0xff]  ;;  %v4568_v38 = vld [vmem:[%s16844_s1 + $0x1a0] sm:$0xff] }
 0x520   : > { %11150 = vmatprep.mubr.msk.bf16.mxu0 %vm12577_vm1, %v14802_v29  ;;  %4822 = vperm.xlu0 %12386, %v4566_v48  }
 0x521   : > { %17221 = vst [vmem:[#allocation11_spill] sm:$0xff] %v15332_v16  ;;  %4827 = vperm.xlu1 %12387, %v4567_v58   ;;  %v4569_v58 = vld [vmem:[%s16844_s1 + $0x1a8] sm:$0xff] }
 0x522   : > { %v3248_v43 = vpop.f32.mrb[24].mxu0  ;;  %v15347_v10 = vpop.f32.mrb[232].mxu1 }
 0x523   : > { %v3421_v51 = vadd.f32 %v3248_v43, %v17222_v59  ;;  %v10932_v2 = vpop.f32.mrb[25].mxu0  ;;  %v11106_v48 = vpop.f32.mrb[233].mxu1  ;;  %v15363_v59 = vpack.c.bf16 %v3978_v41, %v3977_v25 }
 0x524   : > { %v3251_v56 = vpop.f32.mrb[26].mxu0  ;;  %4832 = vperm.xlu0 %12386, %v4568_v38   ;;  %v15358_v43 = vpop.f32.mrb[234].mxu1 }
 0x525   : > { %v3422_v55 = vadd.f32 %v3251_v56, %v17223_v46  ;;  %v15353_v1 = vadd.f32 %v14832_v15, %v3421_v51  ;;  %v10933_v16 = vpop.f32.mrb[27].mxu0  ;;  %4837 = vperm.xlu1 %12387, %v4569_v58   ;;  %v11107_v15 = vpop.f32.mrb[235].mxu1  ;;  %11277 = vmatmul.mubr.msk.bf16.gmra.mrb[36].mxu1 %vm443_vm2, %v15363_v59 }
 0x526   : > { %v17224_v16 = vld [vmem:[#allocation15_spill] sm:$0xff] }
 0x527   : > { %v15366_v2 = vadd.f32 %v14842_v57, %v3422_v55  ;;  %11151 = vmatmul.mubr.msk.bf16.gmra.mrb[132].mxu0 %vm443_vm2, %v14840_v18  ;;  %v17225_v57 = vld [vmem:[#allocation17_spill] sm:$0xff] }
 0x528   : > { %11154 = vmatprep.mubr.msk.bf16.mxu0 %vm12577_vm1, %v14802_v29 }
 0x52a   : > { %v3256_v38 = vpop.f32.mrb[28].mxu0  ;;  %v15375_v41 = vpop.f32.mrb[236].mxu1 }
 0x52b   : > { %v3423_v51 = vadd.f32 %v3256_v38, %v17224_v16  ;;  %v10936_v56 = vpop.f32.mrb[29].mxu0  ;;  %v11110_v48 = vpop.f32.mrb[237].mxu1 }
 0x52c   : > { %v3259_v25 = vpop.f32.mrb[30].mxu0  ;;  %v15381_v58 = vpop.f32.mrb[238].mxu1 }
 0x52d   : > { %v3424_v46 = vadd.f32 %v3259_v25, %v17225_v57  ;;  %v15379_v55 = vadd.f32 %v14855_v54, %v3423_v51  ;;  %v10937_v18 = vpop.f32.mrb[31].mxu0  ;;  %v11111_v38 = vpop.f32.mrb[239].mxu1  ;;  %v17227_v57 = vld [vmem:[#allocation19_spill] sm:$0xff] }
 0x52f   : > { %v15384_v15 = vadd.f32 %v14865_v14, %v3424_v46  ;;  %11155 = vmatmul.mubr.msk.bf16.gmra.mrb[136].mxu0 %vm443_vm2, %v14863_v62  ;;  %v12388_v62 = vld [vmem:[%s16847_s4] sm:$0xff]  }
 0x530   : > { %11158 = vmatprep.mubr.msk.bf16.mxu0 %vm12577_vm1, %v14802_v29  ;;  %11280 = vmatprep.subr.bf16.mxu1 %v12388_v62 }
 0x531   : > { %17226 = vst [vmem:[#allocation20_spill] sm:$0xff] %v15384_v15  ;;  %11281 = vmatpush3.bf16.msra.mxu1 %v12388_v62  ;;  %v12390_v62 = vld [vmem:[%s16847_s4 + $0x10] sm:$0xff]  }
 0x532   : > { %v3264_v16 = vpop.f32.mrb[32].mxu0  ;;  %v15391_v51 = vpop.f32.mrb[240].mxu1 }
 0x533   : > { %v3425_v56 = vadd.f32 %v3264_v16, %v14625_v49  ;;  %v10940_v25 = vpop.f32.mrb[33].mxu0  ;;  %v11114_v46 = vpop.f32.mrb[241].mxu1  ;;  %v17229_v49 = vld [vmem:[#allocation32_spill] sm:$0xff] }
 0x534   : > { %v3267_v54 = vpop.f32.mrb[34].mxu0  ;;  %v15400_v38 = vpop.f32.mrb[242].mxu1  ;;  %v17230_v25 = vld [vmem:[#allocation21_spill] sm:$0xff] }
 0x535   : > { %v3426_v18 = vadd.f32 %v3267_v54, %v17227_v57  ;;  %v15395_v48 = vadd.f32 %v14878_v0, %v3425_v56  ;;  %v10941_v14 = vpop.f32.mrb[35].mxu0  ;;  %v11115_v16 = vpop.f32.mrb[243].mxu1  ;;  %v12389_v0 = vld [vmem:[%s16847_s4 + $0x8] sm:$0xff]  }
 0x536   : > { %11282 = vmatprep.subr.bf16.mxu1 %v12389_v0  ;;  %v17231_v14 = vld [vmem:[#allocation22_spill] sm:$0xff] }
 0x537   : > { %v15403_v15 = vadd.f32 %v14888_v22, %v3426_v18  ;;  %11159 = vmatmul.mubr.msk.bf16.gmra.mrb[140].mxu0 %vm443_vm2, %v17229_v49  ;;  %11283 = vmatpush3.bf16.msra.mxu1 %v12389_v0  ;;  %v15429_v0 = vld [vmem:[#allocation2 + $0x1b0] sm:$0xff] }
 0x538   : > { %11162 = vmatprep.mubr.msk.bf16.mxu0 %vm12577_vm1, %v14802_v29  ;;  %11284 = vmatprep.subr.bf16.mxu1 %v12390_v62 }
 0x539   : > { %17228 = vst [vmem:[#allocation12_spill] sm:$0xff] %v15403_v15 }
 0x53a   : > { %v3272_v56 = vpop.f32.mrb[36].mxu0  ;;  %v15413_v18 = vpop.f32.mrb[244].mxu1 }
 0x53b   : > { %v3427_v54 = vadd.f32 %v3272_v56, %v17230_v25  ;;  %v10944_v57 = vpop.f32.mrb[37].mxu0  ;;  %v11118_v16 = vpop.f32.mrb[245].mxu1  ;;  %v17234_v56 = vld [vmem:[#allocation34_spill] sm:$0xff]  ;;  %11285 = vmatpush3.bf16.msra.mxu1 %v12390_v62  ;;  %v12392_v62 = vld [vmem:[%s16847_s4 + $0x20] sm:$0xff]  }
 0x53c   : > { %v3275_v22 = vpop.f32.mrb[38].mxu0  ;;  %v15427_v25 = vpop.f32.mrb[246].mxu1 }
 0x53d   : > { %v3428_v46 = vadd.f32 %v3275_v22, %v17231_v14  ;;  %v15417_v49 = vadd.f32 %v14901_v61, %v3427_v54  ;;  %v10945_v29 = vpop.f32.mrb[39].mxu0  ;;  %v11119_v61 = vpop.f32.mrb[247].mxu1  ;;  %v12391_v54 = vld [vmem:[%s16847_s4 + $0x18] sm:$0xff]  }
 0x53e   : > { %11286 = vmatprep.subr.bf16.mxu1 %v12391_v54  ;;  %v17236_v29 = vld [vmem:[#allocation24_spill] sm:$0xff] }
 0x53f   : > { %17232 = vst [vmem:[#allocation13_spill] sm:$0xff] %v15417_v49  ;;  %v15423_v15 = vadd.f32 %v14912_v34, %v3428_v46  ;;  %11163 = vmatmul.mubr.msk.bf16.gmra.mrb[144].mxu0 %vm443_vm2, %v17234_v56  ;;  %v17235_v34 = vld [vmem:[#allocation23_spill] sm:$0xff]  ;;  %11287 = vmatpush3.bf16.msra.mxu1 %v12391_v54  ;;  %v17237_v49 = vld [vmem:[#allocation36_spill] sm:$0xff]  ;;  %v17238_v54 = vld [vmem:[#allocation42_spill] sm:$0xff] }
 0x540   : > { %11166 = vmatprep.mubr.msk.bf16.mxu0 %vm12577_vm1, %v15429_v0  ;;  %11288 = vmatprep.subr.bf16.mxu1 %v12392_v62 }
 0x541   : > { %17233 = vst [vmem:[#allocation14_spill] sm:$0xff] %v15423_v15 }
 0x542   : > { %v3280_v57 = vpop.f32.mrb[40].mxu0 }
 0x543   : > { %v3429_v22 = vadd.f32 %v3280_v57, %v17235_v34  ;;  %v10948_v14 = vpop.f32.mrb[41].mxu0  ;;  %11289 = vmatpush3.bf16.msra.mxu1 %v12392_v62  ;;  %v17241_v62 = vld [vmem:[#allocation38_spill] sm:$0xff] }
 0x544   : > { %v3283_v46 = vpop.f32.mrb[42].mxu0 }
 0x545   : > { %v3430_v16 = vadd.f32 %v3283_v46, %v17236_v29  ;;  %v15439_v56 = vadd.f32 %v14936_v50, %v3429_v22  ;;  %v10949_v15 = vpop.f32.mrb[43].mxu0  ;;  %v12393_v50 = vld [vmem:[%s16847_s4 + $0x28] sm:$0xff]   ;;  %v12394_v29 = vld [vmem:[%s16847_s4 + $0x30] sm:$0xff]  }
 0x546   : > { %11290 = vmatprep.subr.bf16.mxu1 %v12393_v50 }
 0x547   : > { %v15445_v61 = vadd.f32 %v14947_v45, %v3430_v16  ;;  %11167 = vmatmul.mubr.msk.bf16.gmra.mrb[148].mxu0 %vm443_vm2, %v17237_v49  ;;  %11291 = vmatpush3.bf16.msra.mxu1 %v12393_v50  ;;  %v17239_v45 = vld [vmem:[#allocation25_spill] sm:$0xff] }
 0x548   : > { %11170 = vmatprep.mubr.msk.bf16.mxu0 %vm12577_vm1, %v15429_v0  ;;  %11292 = vmatprep.subr.bf16.mxu1 %v12394_v29 }
 0x54a   : > { %v3288_v15 = vpop.f32.mrb[44].mxu0 }
 0x54b   : > { %v3431_v57 = vadd.f32 %v3288_v15, %v17238_v54  ;;  %v10952_v34 = vpop.f32.mrb[45].mxu0  ;;  %11293 = vmatpush3.bf16.msra.mxu1 %v12394_v29  ;;  %v17242_v15 = vld [vmem:[#allocation49_spill] sm:$0xff]  ;;  %v17245_v29 = vld [vmem:[#allocation7_spill] sm:$0xff] }
 0x54c   : > { %v3291_v22 = vpop.f32.mrb[46].mxu0 }
 0x54d   : > { %v3432_v14 = vadd.f32 %v3291_v22, %v17239_v45  ;;  %v15457_v49 = vadd.f32 %v14971_v9, %v3431_v57  ;;  %v10953_v46 = vpop.f32.mrb[47].mxu0  ;;  %v12395_v9 = vld [vmem:[%s16847_s4 + $0x38] sm:$0xff]  }
 0x54e   : > { %11294 = vmatprep.subr.bf16.mxu1 %v12395_v9 }
 0x54f   : > { %v15463_v16 = vadd.f32 %v14982_v19, %v3432_v14  ;;  %11171 = vmatmul.mubr.msk.bf16.gmra.mrb[152].mxu0 %vm443_vm2, %v17241_v62  ;;  %11295 = vmatpush3.bf16.msra.mxu1 %v12395_v9  ;;  %v17243_v19 = vld [vmem:[#allocation50_spill] sm:$0xff] }
 0x550   : > { %11174 = vmatprep.mubr.msk.bf16.mxu0 %vm12577_vm1, %v15429_v0 }
 0x551   : > { %17240 = vst [vmem:[#allocation15_spill] sm:$0xff] %v15463_v16  ;;  %v17247_v16 = vld [vmem:[#allocation52_spill] sm:$0xff] }
 0x552   : > { %v3296_v50 = vpop.f32.mrb[48].mxu0 }
 0x553   : > { %v3433_v54 = vadd.f32 %v3296_v50, %v17242_v15  ;;  %v10956_v57 = vpop.f32.mrb[49].mxu0  ;;  %v17246_v50 = vld [vmem:[#allocation51_spill] sm:$0xff] }
 0x554   : > { %v3299_v34 = vpop.f32.mrb[50].mxu0 }
 0x555   : > { %v3434_v22 = vadd.f32 %v3299_v34, %v17243_v19  ;;  %v15475_v45 = vadd.f32 %v15006_v31, %v3433_v54  ;;  %v10957_v14 = vpop.f32.mrb[51].mxu0  ;;  %v17248_v19 = vld [vmem:[#allocation39_spill] sm:$0xff] }
 0x557   : > { %v15478_v46 = vadd.f32 %v15017_v7, %v3434_v22  ;;  %11175 = vmatmul.mubr.msk.bf16.gmra.mrb[156].mxu0 %vm443_vm2, %v17245_v29  ;;  %v17249_v22 = vld [vmem:[#allocation60_spill] sm:$0xff]  ;;  %v17250_v29 = vld [vmem:[#allocation53_spill] sm:$0xff] }
 0x558   : > { %11178 = vmatprep.mubr.msk.bf16.mxu0 %vm12577_vm1, %v15429_v0 }
 0x559   : > { %17244 = vst [vmem:[#allocation17_spill] sm:$0xff] %v15478_v46  ;;  %v17251_v46 = vld [vmem:[#allocation54_spill] sm:$0xff] }
 0x55a   : > { %v3304_v62 = vpop.f32.mrb[52].mxu0 }
 0x55b   : > { %v3435_v15 = vadd.f32 %v3304_v62, %v17246_v50  ;;  %v10960_v57 = vpop.f32.mrb[53].mxu0 }
 0x55c   : > { %v3307_v9 = vpop.f32.mrb[54].mxu0 }
 0x55d   : > { %v3436_v34 = vadd.f32 %v3307_v9, %v17247_v16  ;;  %v15487_v31 = vadd.f32 %v15041_v4, %v3435_v15  ;;  %v10961_v54 = vpop.f32.mrb[55].mxu0 }
 0x55e   : > { %v17252_v54 = vld [vmem:[#allocation43_spill] sm:$0xff] }
 0x55f   : > { %v15490_v7 = vadd.f32 %v17248_v19, %v3436_v34  ;;  %11179 = vmatmul.mubr.msk.bf16.gmra.mrb[160].mxu0 %vm443_vm2, %v17249_v22 }
 0x560   : > { %11182 = vmatprep.mubr.msk.bf16.mxu0 %vm12577_vm1, %v15429_v0 }
 0x562   : > { %v3312_v14 = vpop.f32.mrb[56].mxu0 }
 0x563   : > { %v3437_v62 = vadd.f32 %v3312_v14, %v17250_v29  ;;  %v10964_v50 = vpop.f32.mrb[57].mxu0  ;;  %v17253_v29 = vld [vmem:[#allocation44_spill] sm:$0xff] }
 0x564   : > { %v3315_v57 = vpop.f32.mrb[58].mxu0  ;;  %v17254_v50 = vld [vmem:[#allocation45_spill] sm:$0xff] }
 0x565   : > { %v3438_v16 = vadd.f32 %v3315_v57, %v17251_v46  ;;  %v15499_v4 = vadd.f32 %v15076_v32, %v3437_v62  ;;  %v10965_v15 = vpop.f32.mrb[59].mxu0 }
 0x567   : > { %v15502_v9 = vadd.f32 %v15087_v13, %v3438_v16  ;;  %11183 = vmatmul.mubr.msk.bf16.gmra.mrb[164].mxu0 %vm443_vm2, %v15092_v42 }
 0x568   : > { %11186 = vmatprep.mubr.msk.bf16.mxu0 %vm12577_vm1, %v15429_v0 }
 0x56a   : > { %v3320_v34 = vpop.f32.mrb[60].mxu0 }
 0x56b   : > { %v3439_v19 = vadd.f32 %v3320_v34, %v17252_v54  ;;  %v10968_v22 = vpop.f32.mrb[61].mxu0  ;;  %v17255_v34 = vld [vmem:[#allocation26_spill] sm:$0xff] }
 0x56c   : > { %v3323_v14 = vpop.f32.mrb[62].mxu0  ;;  %v17256_v22 = vld [vmem:[#allocation27_spill] sm:$0xff] }
 0x56d   : > { %v3440_v46 = vadd.f32 %v3323_v14, %v17253_v29  ;;  %v15511_v32 = vadd.f32 %v15109_v26, %v3439_v19  ;;  %v10969_v62 = vpop.f32.mrb[63].mxu0 }
 0x56e   : > { %v17257_v62 = vld [vmem:[#allocation28_spill] sm:$0xff] }
 0x56f   : > { %v15514_v13 = vadd.f32 %v15120_v37, %v3440_v46  ;;  %11187 = vmatmul.mubr.msk.bf16.gmra.mrb[168].mxu0 %vm443_vm2, %v15125_v11 }
 0x570   : > { %11190 = vmatprep.mubr.msk.bf16.mxu0 %vm12577_vm1, %v15429_v0 }
 0x572   : > { %v3328_v42 = vpop.f32.mrb[64].mxu0 }
 0x573   : > { %v3441_v57 = vadd.f32 %v3328_v42, %v17254_v50  ;;  %v10972_v16 = vpop.f32.mrb[65].mxu0 }
 0x574   : > { %v3331_v15 = vpop.f32.mrb[66].mxu0 }
 0x575   : > { %v3442_v54 = vadd.f32 %v3331_v15, %v17255_v34  ;;  %v15523_v26 = vadd.f32 %v15143_v53, %v3441_v57  ;;  %v10973_v19 = vpop.f32.mrb[67].mxu0  ;;  %v17258_v57 = vld [vmem:[#allocation29_spill] sm:$0xff] }
 0x577   : > { %v15526_v37 = vadd.f32 %v15154_v35, %v3442_v54  ;;  %11191 = vmatmul.mubr.msk.bf16.gmra.mrb[172].mxu0 %vm443_vm2, %v15159_v23  ;;  %v17259_v54 = vld [vmem:[#allocation30_spill] sm:$0xff] }
 0x578   : > { %11194 = vmatprep.mubr.msk.bf16.mxu0 %vm12577_vm1, %v15429_v0 }
 0x57a   : > { %v3336_v11 = vpop.f32.mrb[68].mxu0 }
 0x57b   : > { %v3443_v14 = vadd.f32 %v3336_v11, %v17256_v22  ;;  %v10976_v29 = vpop.f32.mrb[69].mxu0  ;;  %v17260_v22 = vld [vmem:[#allocation31_spill] sm:$0xff] }
 0x57c   : > { %v3339_v46 = vpop.f32.mrb[70].mxu0 }
 0x57d   : > { %v3444_v42 = vadd.f32 %v3339_v46, %v17257_v62  ;;  %v15535_v53 = vadd.f32 %v15177_v6, %v3443_v14  ;;  %v10977_v50 = vpop.f32.mrb[71].mxu0  ;;  %v17261_v62 = vld [vmem:[#allocation55_spill] sm:$0xff] }
 0x57f   : > { %v15538_v35 = vadd.f32 %v15188_v39, %v3444_v42  ;;  %11195 = vmatmul.mubr.msk.bf16.gmra.mrb[176].mxu0 %vm443_vm2, %v15193_v30 }
 0x580   : > { %11198 = vmatprep.mubr.msk.bf16.mxu0 %vm12577_vm1, %v15429_v0 }
 0x582   : > { %v3344_v23 = vpop.f32.mrb[72].mxu0 }
 0x583   : > { %v3445_v16 = vadd.f32 %v3344_v23, %v17258_v57  ;;  %v10980_v15 = vpop.f32.mrb[73].mxu0  ;;  %v17262_v23 = vld [vmem:[#allocation33_spill] sm:$0xff] }
 0x584   : > { %v3347_v34 = vpop.f32.mrb[74].mxu0 }
 0x585   : > { %v3446_v19 = vadd.f32 %v3347_v34, %v17259_v54  ;;  %v15547_v6 = vadd.f32 %v15211_v63, %v3445_v16  ;;  %v10981_v11 = vpop.f32.mrb[75].mxu0  ;;  %v17263_v34 = vld [vmem:[#allocation56_spill] sm:$0xff] }
 0x586   : > { %v17264_v11 = vld [vmem:[#allocation35_spill] sm:$0xff] }
 0x587   : > { %v15550_v39 = vadd.f32 %v15222_v17, %v3446_v19  ;;  %11199 = vmatmul.mubr.msk.bf16.gmra.mrb[180].mxu0 %vm443_vm2, %v15227_v28 }
 0x588   : > { %11202 = vmatprep.mubr.msk.bf16.mxu0 %vm12577_vm1, %v15429_v0 }
 0x58a   : > { %v3352_v30 = vpop.f32.mrb[76].mxu0 }
 0x58b   : > { %v3447_v14 = vadd.f32 %v3352_v30, %v17260_v22  ;;  %v10984_v29 = vpop.f32.mrb[77].mxu0 }
 0x58c   : > { %v3355_v46 = vpop.f32.mrb[78].mxu0  ;;  %v17265_v29 = vld [vmem:[#allocation57_spill] sm:$0xff] }
 0x58d   : > { %v3448_v42 = vadd.f32 %v3355_v46, %v17261_v62  ;;  %v15559_v63 = vadd.f32 %v15245_v36, %v3447_v14  ;;  %v10985_v50 = vpop.f32.mrb[79].mxu0 }
 0x58f   : > { %v15562_v17 = vadd.f32 %v15256_v52, %v3448_v42  ;;  %11203 = vmatmul.mubr.msk.bf16.gmra.mrb[184].mxu0 %vm443_vm2, %v15261_v12  ;;  %v17266_v42 = vld [vmem:[#allocation37_spill] sm:$0xff] }
 0x590   : > { %11206 = vmatprep.mubr.msk.bf16.mxu0 %vm12577_vm1, %v15429_v0 }
 0x592   : > { %v3360_v28 = vpop.f32.mrb[80].mxu0 }
 0x593   : > { %v3449_v57 = vadd.f32 %v3360_v28, %v17262_v23  ;;  %v10988_v16 = vpop.f32.mrb[81].mxu0 }
 0x594   : > { %v3363_v15 = vpop.f32.mrb[82].mxu0 }
 0x595   : > { %v3450_v54 = vadd.f32 %v3363_v15, %v17263_v34  ;;  %v15571_v36 = vadd.f32 %v15279_v5, %v3449_v57  ;;  %v10989_v19 = vpop.f32.mrb[83].mxu0  ;;  %v17267_v57 = vld [vmem:[#allocation58_spill] sm:$0xff] }
 0x596   : > { %v3980_v34 = vld [vmem:[%s12690_s21 + $0x1ba] sm:$0xff] }
 0x597   : > { %v15574_v52 = vadd.f32 %v15290_v44, %v3450_v54  ;;  %11207 = vmatmul.mubr.msk.bf16.gmra.mrb[188].mxu0 %vm443_vm2, %v15295_v24  ;;  %v17268_v19 = vld [vmem:[#allocation6_spill] sm:$0xff] }
 0x598   : > { %11210 = vmatprep.mubr.msk.bf16.mxu0 %vm12577_vm1, %v15429_v0 }
 0x59a   : > { %v3368_v12 = vpop.f32.mrb[84].mxu0 }
 0x59b   : > { %v3451_v30 = vadd.f32 %v3368_v12, %v17264_v11  ;;  %v10992_v22 = vpop.f32.mrb[85].mxu0 }
 0x59c   : > { %v3371_v14 = vpop.f32.mrb[86].mxu0  ;;  %v17269_v22 = vld [vmem:[#allocation59_spill] sm:$0xff] }
 0x59d   : > { %v3452_v46 = vadd.f32 %v3371_v14, %v17265_v29  ;;  %v15583_v5 = vadd.f32 %v15313_v8, %v3451_v30  ;;  %v10993_v44 = vpop.f32.mrb[87].mxu0 }
 0x59e   : > { %v3982_v44 = vld [vmem:[%s12690_s21 + $0x1ca] sm:$0xff] }
 0x59f   : > { %v15586_v62 = vadd.f32 %v15324_v27, %v3452_v46  ;;  %11211 = vmatmul.mubr.msk.bf16.gmra.mrb[192].mxu0 %vm443_vm2, %v15329_v20  ;;  %v3979_v20 = vld [vmem:[%s12690_s21 + $0x1b2] sm:$0xff]  ;;  %v3981_v46 = vld [vmem:[%s12690_s21 + $0x1c2] sm:$0xff] }
 0x5a0   : > { %11214 = vmatprep.mubr.msk.bf16.mxu0 %vm12577_vm1, %v15429_v0 }
 0x5a2   : > { %v3376_v24 = vpop.f32.mrb[88].mxu0 }
 0x5a3   : > { %v3453_v50 = vadd.f32 %v3376_v24, %v17266_v42  ;;  %v10996_v28 = vpop.f32.mrb[89].mxu0  ;;  %v17270_v42 = vld [vmem:[#allocation8_spill] sm:$0xff] }
 0x5a4   : > { %v3379_v23 = vpop.f32.mrb[90].mxu0 }
 0x5a5   : > { %v3454_v16 = vadd.f32 %v3379_v23, %v17267_v57  ;;  %v15595_v8 = vadd.f32 %v15347_v10, %v3453_v50  ;;  %v10997_v15 = vpop.f32.mrb[91].mxu0  ;;  %v4009_v10 = vpack.c.bf16 %v3980_v34, %v3979_v20  ;;  %v4010_v23 = vpack.c.bf16 %v3982_v44, %v3981_v46  ;;  %v17271_v57 = vld [vmem:[#allocation61_spill] sm:$0xff]  ;;  %v4573_v46 = vpop.permute.xlu0 %4572 }
 0x5a6   : > { %v3983_v34 = vld [vmem:[%s12690_s21 + $0x1d2] sm:$0xff] }
 0x5a7   : > { %v15598_v27 = vadd.f32 %v15358_v43, %v3454_v16  ;;  %11215 = vmatmul.mubr.msk.bf16.gmra.mrb[196].mxu0 %vm443_vm2, %v15363_v59 }
 0x5a8   : > { %11218 = vmatprep.mubr.msk.bf16.mxu0 %vm12577_vm1, %v15429_v0 }
 0x5aa   : > { %v3384_v54 = vpop.f32.mrb[92].mxu0 }
 0x5ab   : > { %v3455_v12 = vadd.f32 %v3384_v54, %v17268_v19  ;;  %v11000_v11 = vpop.f32.mrb[93].mxu0  ;;  %v3984_v54 = vld [vmem:[%s12690_s21 + $0x1da] sm:$0xff]  ;;  %s12512_s21 = scalar_lea.vmem %s16796_s16, 6144 }
 0x5ac   : > { %v3387_v30 = vpop.f32.mrb[94].mxu0  ;;  %p12513_p11 = scmp.ne.s32.totalorder %s16796_s16, %s12512_s21  ;;  %p12520_p1 = scmp.lt.s32.totalorder %s12518_s23, %s12512_s21 }
 0x5ad   : > { %v3456_v14 = vadd.f32 %v3387_v30, %v17269_v22  ;;  %v15609_v43 = vadd.f32 %v15375_v41, %v3455_v12  ;;  %v11001_v29 = vpop.f32.mrb[95].mxu0 }
 0x5ae   : > { %v15647_v29 = vld [vmem:[%s16846_s3] ss:$0 sm:$0xff]  ;;  %p12514_p12 = pnand %p12513_p11, %p12660_p5  ;;  %p12521_p2 = por %p12520_p1, %p12519_p0 }
 0x5af   : > { %v15612_v59 = vadd.f32 %v15381_v58, %v3456_v14  ;;  %11219 = vmatmul.mubr.msk.bf16.gmra.mrb[200].mxu0 %vm443_vm2, %v4009_v10  ;;  %v4011_v10 = vpack.c.bf16 %v3984_v54, %v3983_v34  ;;  %v12396_v14 = vld [vmem:[%s16847_s4 + $0x40] sm:$0xff]   ;;  %v4583_v54 = vpop.permute.xlu1 %4582 }
 0x5b0   : > { %11222 = vmatprep.mubr.msk.bf16.mxu0 %vm12577_vm1, %v15429_v0  ;;  %11344 = vmatprep.subr.bf16.mxu1 %v12396_v14  ;;  %p12515_p13 = pneg %p12514_p12 }
 0x5b2   : > { %v3392_v24 = vpop.f32.mrb[96].mxu0  ;;  %p12522_p3 = pnand %p12521_p2, %p12515_p13 }
 0x5b3   : > { %v3457_v50 = vadd.f32 %v3392_v24, %v17270_v42  ;;  %v11004_v28 = vpop.f32.mrb[97].mxu0 }
 0x5b4   : > { %v3395_v41 = vpop.f32.mrb[98].mxu0 }
 0x5b5   : > { %v3458_v16 = vadd.f32 %v3395_v41, %v17271_v57  ;;  %v15622_v58 = vadd.f32 %v15391_v51, %v3457_v50  ;;  %v11005_v15 = vpop.f32.mrb[99].mxu0  ;;  %v4578_v57 = vpop.permute.xlu0 %4577 }
 0x5b7   : > { %v15625_v20 = vadd.f32 %v15400_v38, %v3458_v16  ;;  %11223 = vmatmul.mubr.msk.bf16.gmra.mrb[204].mxu0 %vm443_vm2, %v4010_v23 }
 0x5b8   : > { %11226 = vmatprep.mubr.msk.bf16.mxu0 %vm12577_vm1, %v15429_v0 }
 0x5ba   : > { %v3400_v19 = vpop.f32.mrb[100].mxu0 }
 0x5bb   : > { %v3459_v12 = vadd.f32 %v3400_v19, %v15082_v3  ;;  %v11008_v11 = vpop.f32.mrb[101].mxu0 }
 0x5bc   : > { %v3403_v30 = vpop.f32.mrb[102].mxu0 }
 0x5bd   : > { %v3460_v51 = vadd.f32 %v3403_v30, %v15095_v40  ;;  %v15635_v22 = vadd.f32 %v15413_v18, %v3459_v12  ;;  %v11009_v38 = vpop.f32.mrb[103].mxu0 }
 0x5bf   : > { %v15641_v0 = vadd.f32 %v15427_v25, %v3460_v51  ;;  %11227 = vmatmul.mubr.msk.bf16.gmra.mrb[208].mxu0 %vm443_vm2, %v4011_v10 }
 0x5c2   : > { %v4132_v3 = vpop.f32.mrb[104].mxu0 }
 0x5c3   : > { %v4347_v40 = vadd.f32 %v4132_v3, %v15115_v60  ;;  %v11124_v18 = vpop.f32.mrb[105].mxu0 }
 0x5c4   : > { %v4135_v44 = vpop.f32.mrb[106].mxu0 }
 0x5c5   : > { %v4408_v24 = vadd.f32 %v15647_v29, %v4347_v40  ;;  %v4348_v42 = vadd.f32 %v4135_v44, %v15128_v21  ;;  %v11125_v25 = vpop.f32.mrb[107].mxu0  ;;  %v4588_v40 = vpop.permute.xlu1 %4587 }
 0x5c7   : > { %v4462_v50 = vmax.f32 %v4408_v24, 0.0  ;;  %v4409_v28 = vadd.f32 %v15647_v29, %v4348_v42 }
 0x5c9   : > { %v4840_v23 = vmul.f32 %v4573_v46, %v4462_v50  ;;  %v4463_v41 = vmax.f32 %v4409_v28, 0.0  ;;  %v17272_v46 = vld [vmem:[#allocation40_spill] sm:$0xff] }
 0x5ca   : > { %v4140_v16 = vpop.f32.mrb[108].mxu0 }
 0x5cb   : > { %4894 = vst [vmem:[#allocation2] sm:$0xff] %v4840_v23  ;;  %v4841_v15 = vmul.f32 %v4578_v57, %v4463_v41  ;;  %v4349_v34 = vadd.f32 %v4140_v16, %v15149_v47  ;;  %v11128_v60 = vpop.f32.mrb[109].mxu0  ;;  %v12397_v41 = vld [vmem:[%s16847_s4 + $0x48] sm:$0xff]  }
 0x5cc   : > { %v4143_v19 = vpop.f32.mrb[110].mxu0 }
 0x5cd   : > { %4895 = vst [vmem:[#allocation2 + $0x8] sm:$0xff] %v4841_v15  ;;  %v4410_v12 = vadd.f32 %v15647_v29, %v4349_v34  ;;  %v4350_v21 = vadd.f32 %v4143_v19, %v15162_v33  ;;  %v11129_v11 = vpop.f32.mrb[111].mxu0  ;;  %v5377_v10 = vpack.c.bf16 %v4841_v15, %v4840_v23  ;;  %v17273_v33 = vld [vmem:[#allocation41_spill] sm:$0xff]  ;;  %v4593_v15 = vpop.permute.xlu0 %4592 }
 0x5ce   : > { %v4598_v19 = vpop.permute.xlu1 %4597  ;;  %v17274_v11 = vld [vmem:[#allocation46_spill] sm:$0xff] }
 0x5cf   : > { %v4464_v30 = vmax.f32 %v4410_v12, 0.0  ;;  %v4411_v51 = vadd.f32 %v15647_v29, %v4350_v21  ;;  %11296 = vmatprep.mubr.bf16.mxu1 %v5377_v10 }
 0x5d1   : > { %v4842_v38 = vmul.f32 %v4583_v54, %v4464_v30  ;;  %v4465_v3 = vmax.f32 %v4411_v51, 0.0  ;;  %v12398_v54 = vld [vmem:[%s16847_s4 + $0x50] sm:$0xff]  }
 0x5d2   : > { %v4148_v18 = vpop.f32.mrb[112].mxu0 }
 0x5d3   : > { %4896 = vst [vmem:[#allocation2 + $0x10] sm:$0xff] %v4842_v38  ;;  %v4843_v47 = vmul.f32 %v4588_v40, %v4465_v3  ;;  %v4351_v44 = vadd.f32 %v4148_v18, %v17272_v46  ;;  %v11132_v24 = vpop.f32.mrb[113].mxu0 }
 0x5d4   : > { %v4151_v42 = vpop.f32.mrb[114].mxu0 }
 0x5d5   : > { %4897 = vst [vmem:[#allocation2 + $0x18] sm:$0xff] %v4843_v47  ;;  %v4412_v25 = vadd.f32 %v15647_v29, %v4351_v44  ;;  %v4352_v50 = vadd.f32 %v4151_v42, %v17273_v33  ;;  %v11133_v28 = vpop.f32.mrb[115].mxu0  ;;  %v5378_v23 = vpack.c.bf16 %v4843_v47, %v4842_v38  ;;  %v4603_v44 = vpop.permute.xlu0 %4602 }
 0x5d6   : > { %v17276_v28 = vld [vmem:[#allocation48_spill] sm:$0xff] }
 0x5d7   : > { %v4466_v57 = vmax.f32 %v4412_v25, 0.0  ;;  %v4413_v16 = vadd.f32 %v15647_v29, %v4352_v50  ;;  %11297 = vmatmul.mubr.bf16.vlgmr.msra.gmra.mrb[248].mxu1 %v5378_v23  ;;  %v4608_v25 = vpop.permute.xlu1 %4607 }
 0x5d8   : > { %11345 = vmatpush3.bf16.msra.mxu1 %v12396_v14  ;;  %v17275_v14 = vld [vmem:[#allocation47_spill] sm:$0xff] }
 0x5d9   : > { %v4844_v34 = vmul.f32 %v4593_v15, %v4466_v57  ;;  %v4467_v60 = vmax.f32 %v4413_v16, 0.0  ;;  %11346 = vmatprep.subr.bf16.mxu1 %v12397_v41  ;;  %v12399_v57 = vld [vmem:[%s16847_s4 + $0x58] sm:$0xff]  }
 0x5da   : > { %v4156_v12 = vpop.f32.mrb[116].mxu0 }
 0x5db   : > { %4898 = vst [vmem:[#allocation2 + $0x20] sm:$0xff] %v4844_v34  ;;  %v4845_v21 = vmul.f32 %v4598_v19, %v4467_v60  ;;  %v4353_v10 = vadd.f32 %v4156_v12, %v17274_v11  ;;  %v11136_v30 = vpop.f32.mrb[117].mxu0  ;;  %v17280_v19 = vld [vmem:[#allocation9_spill] sm:$0xff] }
 0x5dc   : > { %v4159_v51 = vpop.f32.mrb[118].mxu0  ;;  %11347 = vmatpush3.bf16.msra.mxu1 %v12397_v41 }
 0x5dd   : > { %4899 = vst [vmem:[#allocation2 + $0x28] sm:$0xff] %v4845_v21  ;;  %v4414_v38 = vadd.f32 %v15647_v29, %v4353_v10  ;;  %v4354_v3 = vadd.f32 %v4159_v51, %v17275_v14  ;;  %v11137_v40 = vpop.f32.mrb[119].mxu0  ;;  %v5379_v18 = vpack.c.bf16 %v4845_v21, %v4844_v34  ;;  %11348 = vmatprep.subr.bf16.mxu1 %v12398_v54 }
 0x5df   : > { %v4468_v47 = vmax.f32 %v4414_v38, 0.0  ;;  %v4415_v46 = vadd.f32 %v15647_v29, %v4354_v3  ;;  %11300 = vmatprep.mubr.bf16.mxu1 %v5379_v18  ;;  %v4613_v3 = vpop.permute.xlu0 %4612 }
 0x5e0   : > { %11349 = vmatpush3.bf16.msra.mxu1 %v12398_v54 }
 0x5e1   : > { %v4846_v24 = vmul.f32 %v4603_v44, %v4468_v47  ;;  %v4469_v42 = vmax.f32 %v4415_v46, 0.0  ;;  %11350 = vmatprep.subr.bf16.mxu1 %v12399_v57  ;;  %v4618_v47 = vpop.permute.xlu1 %4617 }
 0x5e2   : > { %v4164_v33 = vpop.f32.mrb[120].mxu0  ;;  %v15675_v15 = vld [vmem:[#allocation2 + $0x19] sm:$0xff] }
 0x5e3   : > { %4900 = vst [vmem:[#allocation2 + $0x30] sm:$0xff] %v4846_v24  ;;  %v4847_v50 = vmul.f32 %v4608_v25, %v4469_v42  ;;  %v4355_v23 = vadd.f32 %v4164_v33, %v17276_v28  ;;  %v11140_v41 = vpop.f32.mrb[121].mxu0  ;;  %17277 = vst [vmem:[#allocation19_spill] sm:$0xff] %v15675_v15  ;;  %v15683_v10 = vld [vmem:[#allocation2 + $0x1a] sm:$0xff] }
 0x5e4   : > { %v4167_v16 = vpop.f32.mrb[122].mxu0  ;;  %v15677_v34 = vld [vmem:[#allocation2 + $0x21] sm:$0xff]  ;;  %17281 = vst [vmem:[#allocation22_spill] sm:$0xff] %v15683_v10  ;;  %11351 = vmatpush3.bf16.msra.mxu1 %v12399_v57 }
 0x5e5   : > { %17278 = vst [vmem:[#allocation32_spill] sm:$0xff] %v15677_v34  ;;  %v15679_v60 = vld [vmem:[#allocation2 + $0x22] sm:$0xff]  ;;  %4901 = vst [vmem:[#allocation2 + $0x38] sm:$0xff] %v4847_v50  ;;  %v4416_v54 = vadd.f32 %v15647_v29, %v4355_v23  ;;  %v4356_v12 = vadd.f32 %v4167_v16, %v17280_v19  ;;  %v11141_v21 = vpop.f32.mrb[123].mxu0  ;;  %v5380_v11 = vpack.c.bf16 %v4847_v50, %v4846_v24  ;;  %v17287_v16 = vld [vmem:[#allocation10_spill] sm:$0xff] }
 0x5e6   : > { %17279 = vst [vmem:[#allocation21_spill] sm:$0xff] %v15679_v60  ;;  %v17282_v24 = vld [vmem:[#allocation16_spill] sm:$0xff]  ;;  %v12400_v21 = vld [vmem:[%s16847_s4 + $0x60] sm:$0xff]  }
 0x5e7   : > { %v4470_v38 = vmax.f32 %v4416_v54, 0.0  ;;  %v4417_v14 = vadd.f32 %v15647_v29, %v4356_v12  ;;  %11301 = vmatmul.mubr.bf16.gmra.mrb[252].mxu1 %v5380_v11  ;;  %11352 = vmatprep.subr.bf16.mxu1 %v12400_v21 }
 0x5e8   : > { %11353 = vmatpush3.bf16.msra.mxu1 %v12400_v21  ;;  %v17295_v21 = vld [vmem:[#allocation11_spill] sm:$0xff] }
 0x5e9   : > { %v4848_v40 = vmul.f32 %v4613_v3, %v4470_v38  ;;  %v4471_v18 = vmax.f32 %v4417_v14, 0.0 }
 0x5ea   : > { %v4172_v46 = vpop.f32.mrb[124].mxu0  ;;  %v15691_v33 = vld [vmem:[#allocation2 + $0x29] sm:$0xff] }
 0x5eb   : > { %4902 = vst [vmem:[#allocation2 + $0x40] sm:$0xff] %v4848_v40  ;;  %v4849_v44 = vmul.f32 %v4618_v47, %v4471_v18  ;;  %v4357_v42 = vadd.f32 %v4172_v46, %v17282_v24  ;;  %v11144_v25 = vpop.f32.mrb[125].mxu0  ;;  %17283 = vst [vmem:[#allocation34_spill] sm:$0xff] %v15691_v33  ;;  %v15704_v11 = vld [vmem:[#allocation2 + $0x2a] sm:$0xff]  ;;  %v4623_v46 = vpop.permute.xlu0 %4622 }
 0x5ec   : > { %v4175_v50 = vpop.f32.mrb[126].mxu0  ;;  %v15693_v28 = vld [vmem:[#allocation2 + $0x31] sm:$0xff]  ;;  %17288 = vst [vmem:[#allocation42_spill] sm:$0xff] %v15704_v11 }
 0x5ed   : > { %17284 = vst [vmem:[#allocation23_spill] sm:$0xff] %v15693_v28  ;;  %v15695_v23 = vld [vmem:[#allocation2 + $0x32] sm:$0xff]  ;;  %4903 = vst [vmem:[#allocation2 + $0x48] sm:$0xff] %v4849_v44  ;;  %v4418_v57 = vadd.f32 %v15647_v29, %v4357_v42  ;;  %v4358_v54 = vadd.f32 %v4175_v50, %v17287_v16  ;;  %v11145_v19 = vpop.f32.mrb[127].mxu0  ;;  %v5381_v12 = vpack.c.bf16 %v4849_v44, %v4848_v40  ;;  %v4628_v42 = vpop.permute.xlu1 %4627 }
 0x5ee   : > { %17285 = vst [vmem:[#allocation24_spill] sm:$0xff] %v15695_v23  ;;  %v15697_v41 = vld [vmem:[#allocation2 + $0x38] sm:$0xff]  ;;  %v15706_v38 = vld [vmem:[#allocation2 + $0x30] sm:$0xff] }
 0x5ef   : > { %17286 = vst [vmem:[#allocation36_spill] sm:$0xff] %v15697_v41  ;;  %17289 = vst [vmem:[#allocation25_spill] sm:$0xff] %v15706_v38  ;;  %v4472_v47 = vmax.f32 %v4418_v57, 0.0  ;;  %v4419_v40 = vadd.f32 %v15647_v29, %v4358_v54  ;;  %11304 = vmatprep.mubr.bf16.mxu1 %v5381_v12  ;;  %v17290_v16 = vld [vmem:[#allocation18_spill] sm:$0xff]  ;;  %v17316_v23 = vld [vmem:[#allocation13_spill] sm:$0xff] }
 0x5f1   : > { %v4850_v44 = vmul.f32 %v4623_v46, %v4472_v47  ;;  %v4473_v24 = vmax.f32 %v4419_v40, 0.0 }
 0x5f2   : > { %v4180_v25 = vpop.f32.mrb[128].mxu0  ;;  %v15716_v3 = vld [vmem:[#allocation2 + $0x39] sm:$0xff] }
 0x5f3   : > { %4904 = vst [vmem:[#allocation2 + $0x50] sm:$0xff] %v4850_v44  ;;  %v4851_v50 = vmul.f32 %v4628_v42, %v4473_v24  ;;  %v4359_v19 = vadd.f32 %v4180_v25, %v17290_v16  ;;  %v11148_v51 = vpop.f32.mrb[129].mxu0  ;;  %17291 = vst [vmem:[#allocation38_spill] sm:$0xff] %v15716_v3  ;;  %v15726_v24 = vld [vmem:[#allocation2 + $0x3a] sm:$0xff]  ;;  %v12401_v25 = vld [vmem:[%s16847_s4 + $0x68] sm:$0xff]  }
 0x5f4   : > { %v4183_v14 = vpop.f32.mrb[130].mxu0  ;;  %v15718_v18 = vld [vmem:[#allocation2 + $0x41] sm:$0xff]  ;;  %17296 = vst [vmem:[#allocation51_spill] sm:$0xff] %v15726_v24  ;;  %11354 = vmatprep.subr.bf16.mxu1 %v12401_v25 }
 0x5f5   : > { %17292 = vst [vmem:[#allocation49_spill] sm:$0xff] %v15718_v18  ;;  %v15720_v57 = vld [vmem:[#allocation2 + $0x42] sm:$0xff]  ;;  %4905 = vst [vmem:[#allocation2 + $0x58] sm:$0xff] %v4851_v50  ;;  %v4420_v12 = vadd.f32 %v15647_v29, %v4359_v19  ;;  %v4360_v47 = vadd.f32 %v4183_v14, %v17295_v21  ;;  %v11149_v40 = vpop.f32.mrb[131].mxu0  ;;  %v5382_v46 = vpack.c.bf16 %v4851_v50, %v4850_v44  ;;  %v4633_v14 = vpop.permute.xlu0 %4632  ;;  %11355 = vmatpush3.bf16.msra.mxu1 %v12401_v25 }
 0x5f6   : > { %17293 = vst [vmem:[#allocation50_spill] sm:$0xff] %v15720_v57  ;;  %v15722_v54 = vld [vmem:[#allocation2 + $0x48] sm:$0xff]  ;;  %v15728_v42 = vld [vmem:[#allocation2 + $0x40] sm:$0xff]  ;;  %v4638_v50 = vpop.permute.xlu1 %4637 }
 0x5f7   : > { %17294 = vst [vmem:[#allocation7_spill] sm:$0xff] %v15722_v54  ;;  %17297 = vst [vmem:[#allocation52_spill] sm:$0xff] %v15728_v42  ;;  %v4474_v30 = vmax.f32 %v4420_v12, 0.0  ;;  %v4421_v19 = vadd.f32 %v15647_v29, %v4360_v47  ;;  %11305 = vmatmul.mubr.bf16.gmra.mrb[0].mxu1 %v5382_v46 }
 0x5f9   : > { %v4852_v21 = vmul.f32 %v4633_v14, %v4474_v30  ;;  %v4475_v44 = vmax.f32 %v4421_v19, 0.0 }
 0x5fa   : > { %v4188_v40 = vpop.f32.mrb[132].mxu0  ;;  %v15741_v24 = vld [vmem:[#allocation2 + $0x49] sm:$0xff] }
 0x5fb   : > { %4906 = vst [vmem:[#allocation2 + $0x60] sm:$0xff] %v4852_v21  ;;  %v4853_v38 = vmul.f32 %v4638_v50, %v4475_v44  ;;  %v4361_v41 = vadd.f32 %v4188_v40, %v15353_v1  ;;  %v11152_v51 = vpop.f32.mrb[133].mxu0  ;;  %17298 = vst [vmem:[#allocation39_spill] sm:$0xff] %v15741_v24  ;;  %v15751_v14 = vld [vmem:[#allocation2 + $0x4a] sm:$0xff] }
 0x5fc   : > { %v4191_v12 = vpop.f32.mrb[134].mxu0  ;;  %v15743_v16 = vld [vmem:[#allocation2 + $0x51] sm:$0xff]  ;;  %17302 = vst [vmem:[#allocation43_spill] sm:$0xff] %v15751_v14 }
 0x5fd   : > { %17299 = vst [vmem:[#allocation60_spill] sm:$0xff] %v15743_v16  ;;  %v15745_v47 = vld [vmem:[#allocation2 + $0x52] sm:$0xff]  ;;  %4907 = vst [vmem:[#allocation2 + $0x68] sm:$0xff] %v4853_v38  ;;  %v4422_v46 = vadd.f32 %v15647_v29, %v4361_v41  ;;  %v4362_v19 = vadd.f32 %v4191_v12, %v15366_v2  ;;  %v11153_v1 = vpop.f32.mrb[135].mxu0  ;;  %v5383_v51 = vpack.c.bf16 %v4853_v38, %v4852_v21  ;;  %v4643_v38 = vpop.permute.xlu0 %4642 }
 0x5fe   : > { %17300 = vst [vmem:[#allocation53_spill] sm:$0xff] %v15745_v47  ;;  %v15747_v30 = vld [vmem:[#allocation2 + $0x58] sm:$0xff]  ;;  %v15753_v44 = vld [vmem:[#allocation2 + $0x50] sm:$0xff]  ;;  %v4648_v1 = vpop.permute.xlu1 %4647 }
 0x5ff   : > { %17301 = vst [vmem:[#allocation54_spill] sm:$0xff] %v15747_v30  ;;  %17303 = vst [vmem:[#allocation44_spill] sm:$0xff] %v15753_v44  ;;  %v4476_v41 = vmax.f32 %v4422_v46, 0.0  ;;  %v4423_v2 = vadd.f32 %v15647_v29, %v4362_v19  ;;  %11308 = vmatprep.mubr.bf16.mxu1 %v5383_v51  ;;  %v17308_v51 = vld [vmem:[#allocation20_spill] sm:$0xff]  ;;  %v12403_v44 = vld [vmem:[%s16847_s4 + $0x78] sm:$0xff]  }
 0x601   : > { %v4854_v21 = vmul.f32 %v4643_v38, %v4476_v41  ;;  %v4477_v12 = vmax.f32 %v4423_v2, 0.0 }
 0x602   : > { %v4196_v54 = vpop.f32.mrb[136].mxu0  ;;  %v15763_v11 = vld [vmem:[#allocation2 + $0x59] sm:$0xff] }
 0x603   : > { %4908 = vst [vmem:[#allocation2 + $0x70] sm:$0xff] %v4854_v21  ;;  %v4855_v57 = vmul.f32 %v4648_v1, %v4477_v12  ;;  %v4363_v50 = vadd.f32 %v4196_v54, %v15379_v55  ;;  %v11156_v25 = vpop.f32.mrb[137].mxu0  ;;  %17304 = vst [vmem:[#allocation45_spill] sm:$0xff] %v15763_v11  ;;  %v12402_v55 = vld [vmem:[%s16847_s4 + $0x70] sm:$0xff]   ;;  %v15776_v54 = vld [vmem:[#allocation2 + $0x5a] sm:$0xff]  ;;  %v4658_v1 = vpop.permute.xlu1 %4657 }
 0x604   : > { %v4199_v40 = vpop.f32.mrb[138].mxu0  ;;  %v15765_v14 = vld [vmem:[#allocation2 + $0x61] sm:$0xff]  ;;  %17309 = vst [vmem:[#allocation29_spill] sm:$0xff] %v15776_v54  ;;  %11356 = vmatprep.subr.bf16.mxu1 %v12402_v55 }
 0x605   : > { %17305 = vst [vmem:[#allocation26_spill] sm:$0xff] %v15765_v14  ;;  %v15767_v42 = vld [vmem:[#allocation2 + $0x62] sm:$0xff]  ;;  %4909 = vst [vmem:[#allocation2 + $0x78] sm:$0xff] %v4855_v57  ;;  %v4424_v19 = vadd.f32 %v15647_v29, %v4363_v50  ;;  %v4364_v41 = vadd.f32 %v4199_v40, %v17308_v51  ;;  %v11157_v2 = vpop.f32.mrb[139].mxu0  ;;  %v5384_v38 = vpack.c.bf16 %v4855_v57, %v4854_v21  ;;  %v4653_v21 = vpop.permute.xlu0 %4652  ;;  %11357 = vmatpush3.bf16.msra.mxu1 %v12402_v55 }
 0x606   : > { %17306 = vst [vmem:[#allocation27_spill] sm:$0xff] %v15767_v42  ;;  %v15769_v46 = vld [vmem:[#allocation2 + $0x68] sm:$0xff]  ;;  %v15778_v12 = vld [vmem:[#allocation2 + $0x60] sm:$0xff]  ;;  %11358 = vmatprep.subr.bf16.mxu1 %v12403_v44 }
 0x607   : > { %17307 = vst [vmem:[#allocation28_spill] sm:$0xff] %v15769_v46  ;;  %17310 = vst [vmem:[#allocation30_spill] sm:$0xff] %v15778_v12  ;;  %v4478_v40 = vmax.f32 %v4424_v19, 0.0  ;;  %v4425_v57 = vadd.f32 %v15647_v29, %v4364_v41  ;;  %11309 = vmatmul.mubr.bf16.gmra.mrb[4].mxu1 %v5384_v38 }
 0x609   : > { %v4856_v51 = vmul.f32 %v4653_v21, %v4478_v40  ;;  %v4479_v2 = vmax.f32 %v4425_v57, 0.0  ;;  %11359 = vmatpush3.bf16.msra.mxu1 %v12403_v44  ;;  %v17313_v21 = vld [vmem:[#allocation12_spill] sm:$0xff] }
 0x60a   : > { %v4204_v30 = vpop.f32.mrb[140].mxu0  ;;  %v15791_v19 = vld [vmem:[#allocation2 + $0x69] sm:$0xff] }
 0x60b   : > { %4910 = vst [vmem:[#allocation2 + $0x80] sm:$0xff] %v4856_v51  ;;  %v4857_v25 = vmul.f32 %v4658_v1, %v4479_v2  ;;  %v4365_v54 = vadd.f32 %v4204_v30, %v15395_v48  ;;  %v11160_v50 = vpop.f32.mrb[141].mxu0  ;;  %v15801_v48 = vld [vmem:[#allocation2 + $0x6a] sm:$0xff] }
 0x60c   : > { %v4207_v41 = vpop.f32.mrb[142].mxu0  ;;  %v15793_v38 = vld [vmem:[#allocation2 + $0x71] sm:$0xff]  ;;  %17314 = vst [vmem:[#allocation33_spill] sm:$0xff] %v15801_v48 }
 0x60d   : > { %v15795_v55 = vld [vmem:[#allocation2 + $0x72] sm:$0xff]  ;;  %4911 = vst [vmem:[#allocation2 + $0x88] sm:$0xff] %v4857_v25  ;;  %v4426_v57 = vadd.f32 %v15647_v29, %v4365_v54  ;;  %v4366_v12 = vadd.f32 %v4207_v41, %v17313_v21  ;;  %v11161_v1 = vpop.f32.mrb[143].mxu0  ;;  %v5385_v2 = vpack.c.bf16 %v4857_v25, %v4856_v51  ;;  %v4663_v41 = vpop.permute.xlu0 %4662 }
 0x60e   : > { %17311 = vst [vmem:[#allocation31_spill] sm:$0xff] %v15795_v55  ;;  %v15797_v40 = vld [vmem:[#allocation2 + $0x78] sm:$0xff]  ;;  %v15803_v30 = vld [vmem:[#allocation2 + $0x70] sm:$0xff]  ;;  %v4668_v51 = vpop.permute.xlu1 %4667 }
 0x60f   : > { %17312 = vst [vmem:[#allocation55_spill] sm:$0xff] %v15797_v40  ;;  %17315 = vst [vmem:[#allocation56_spill] sm:$0xff] %v15803_v30  ;;  %v4480_v42 = vmax.f32 %v4426_v57, 0.0  ;;  %v4427_v54 = vadd.f32 %v15647_v29, %v4366_v12  ;;  %11312 = vmatprep.mubr.bf16.mxu1 %v5385_v2  ;;  %v17319_v12 = vld [vmem:[#allocation14_spill] sm:$0xff] }
 0x611   : > { %v4858_v21 = vmul.f32 %v4663_v41, %v4480_v42  ;;  %v4481_v25 = vmax.f32 %v4427_v54, 0.0 }
 0x612   : > { %v4212_v1 = vpop.f32.mrb[144].mxu0  ;;  %v15813_v60 = vld [vmem:[#allocation2 + $0x79] sm:$0xff] }
 0x613   : > { %4912 = vst [vmem:[#allocation2 + $0x90] sm:$0xff] %v4858_v21  ;;  %v4859_v47 = vmul.f32 %v4668_v51, %v4481_v25  ;;  %v4367_v10 = vadd.f32 %v4212_v1, %v17316_v23  ;;  %v11164_v44 = vpop.f32.mrb[145].mxu0  ;;  %v15823_v25 = vld [vmem:[#allocation2 + $0x7a] sm:$0xff] }
 0x614   : > { %v4215_v50 = vpop.f32.mrb[146].mxu0  ;;  %v15815_v48 = vld [vmem:[#allocation2 + $0x81] sm:$0xff]  ;;  %17320 = vst [vmem:[#allocation37_spill] sm:$0xff] %v15823_v25 }
 0x615   : > { %v15817_v46 = vld [vmem:[#allocation2 + $0x82] sm:$0xff]  ;;  %4913 = vst [vmem:[#allocation2 + $0x98] sm:$0xff] %v4859_v47  ;;  %v4428_v42 = vadd.f32 %v15647_v29, %v4367_v10  ;;  %v4368_v2 = vadd.f32 %v4215_v50, %v17319_v12  ;;  %v11165_v54 = vpop.f32.mrb[147].mxu0  ;;  %v5386_v41 = vpack.c.bf16 %v4859_v47, %v4858_v21  ;;  %v4673_v50 = vpop.permute.xlu0 %4672 }
 0x616   : > { %17317 = vst [vmem:[#allocation35_spill] sm:$0xff] %v15817_v46  ;;  %v15819_v57 = vld [vmem:[#allocation2 + $0x88] sm:$0xff]  ;;  %v15825_v23 = vld [vmem:[#allocation2 + $0x80] sm:$0xff]  ;;  %v4678_v21 = vpop.permute.xlu1 %4677 }
 0x617   : > { %17318 = vst [vmem:[#allocation57_spill] sm:$0xff] %v15819_v57  ;;  %17321 = vst [vmem:[#allocation58_spill] sm:$0xff] %v15825_v23  ;;  %v4482_v30 = vmax.f32 %v4428_v42, 0.0  ;;  %v4429_v10 = vadd.f32 %v15647_v29, %v4368_v2  ;;  %11313 = vmatmul.mubr.bf16.gmra.mrb[8].mxu1 %v5386_v41 }
 0x619   : > { %v4860_v12 = vmul.f32 %v4673_v50, %v4482_v30  ;;  %v4483_v47 = vmax.f32 %v4429_v10, 0.0 }
 0x61a   : > { %v4220_v54 = vpop.f32.mrb[148].mxu0  ;;  %v15835_v11 = vld [vmem:[#allocation2 + $0x89] sm:$0xff] }
 0x61b   : > { %4914 = vst [vmem:[#allocation2 + $0xa0] sm:$0xff] %v4860_v12  ;;  %v4861_v40 = vmul.f32 %v4678_v21, %v4483_v47  ;;  %v4369_v55 = vadd.f32 %v4220_v54, %v15439_v56  ;;  %v11168_v44 = vpop.f32.mrb[149].mxu0  ;;  %v15848_v56 = vld [vmem:[%s16847_s4 + $0x80] sm:$0xff]   ;;  %v15852_v50 = vld [vmem:[#allocation2 + $0x90] sm:$0xff] }
 0x61c   : > { %v4223_v51 = vpop.f32.mrb[150].mxu0  ;;  %v15837_v25 = vld [vmem:[#allocation2 + $0x91] sm:$0xff]  ;;  %17325 = vst [vmem:[#allocation61_spill] sm:$0xff] %v15852_v50  ;;  %11408 = vmatprep.subr.bf16.mxu1 %v15848_v56 }
 0x61d   : > { %v15839_v1 = vld [vmem:[#allocation2 + $0x92] sm:$0xff]  ;;  %4915 = vst [vmem:[#allocation2 + $0xa8] sm:$0xff] %v4861_v40  ;;  %v4430_v30 = vadd.f32 %v15647_v29, %v4369_v55  ;;  %v4370_v2 = vadd.f32 %v4223_v51, %v15445_v61  ;;  %v11169_v41 = vpop.f32.mrb[151].mxu0  ;;  %v5387_v10 = vpack.c.bf16 %v4861_v40, %v4860_v12  ;;  %v15850_v44 = vld [vmem:[#allocation2 + $0x8a] sm:$0xff]  ;;  %v4683_v51 = vpop.permute.xlu0 %4682 }
 0x61e   : > { %17322 = vst [vmem:[#allocation6_spill] sm:$0xff] %v15839_v1  ;;  %v15841_v42 = vld [vmem:[#allocation2 + $0x98] sm:$0xff]  ;;  %17324 = vst [vmem:[#allocation8_spill] sm:$0xff] %v15850_v44  ;;  %v4688_v41 = vpop.permute.xlu1 %4687 }
 0x61f   : > { %17323 = vst [vmem:[#allocation59_spill] sm:$0xff] %v15841_v42  ;;  %v4484_v55 = vmax.f32 %v4430_v30, 0.0  ;;  %v4431_v40 = vadd.f32 %v15647_v29, %v4370_v2  ;;  %11316 = vmatprep.mubr.bf16.mxu1 %v5387_v10 }
 0x621   : > { %v4862_v12 = vmul.f32 %v4683_v51, %v4484_v55  ;;  %v4485_v54 = vmax.f32 %v4431_v40, 0.0  ;;  %v17327_v55 = vld [vmem:[#allocation15_spill] sm:$0xff] }
 0x622   : > { %v4228_v23 = vpop.f32.mrb[152].mxu0  ;;  %v15863_v21 = vld [vmem:[#allocation2 + $0x99] sm:$0xff] }
 0x623   : > { %4916 = vst [vmem:[#allocation2 + $0xb0] sm:$0xff] %v4862_v12  ;;  %v4863_v57 = vmul.f32 %v4688_v41, %v4485_v54  ;;  %v4371_v47 = vadd.f32 %v4228_v23, %v15457_v49  ;;  %v11172_v46 = vpop.f32.mrb[153].mxu0  ;;  %v15873_v54 = vld [vmem:[#allocation2 + $0x9a] sm:$0xff] }
 0x624   : > { %v4231_v44 = vpop.f32.mrb[154].mxu0  ;;  %v15865_v61 = vld [vmem:[#allocation2 + $0xa1] sm:$0xff] }
 0x625   : > { %v15867_v30 = vld [vmem:[#allocation2 + $0xa2] sm:$0xff]  ;;  %4917 = vst [vmem:[#allocation2 + $0xb8] sm:$0xff] %v4863_v57  ;;  %v4432_v10 = vadd.f32 %v15647_v29, %v4371_v47  ;;  %v4372_v40 = vadd.f32 %v4231_v44, %v17327_v55  ;;  %v11173_v51 = vpop.f32.mrb[155].mxu0  ;;  %v5388_v50 = vpack.c.bf16 %v4863_v57, %v4862_v12  ;;  %v4693_v44 = vpop.permute.xlu0 %4692 }
 0x626   : > { %v15869_v2 = vld [vmem:[#allocation2 + $0xa8] sm:$0xff]  ;;  %v15875_v49 = vld [vmem:[#allocation2 + $0xa0] sm:$0xff]  ;;  %v4698_v12 = vpop.permute.xlu1 %4697 }
 0x627   : > { %17326 = vst [vmem:[#allocation40_spill] sm:$0xff] %v15869_v2  ;;  %17328 = vst [vmem:[#allocation41_spill] sm:$0xff] %v15875_v49  ;;  %v4486_v42 = vmax.f32 %v4432_v10, 0.0  ;;  %v4433_v47 = vadd.f32 %v15647_v29, %v4372_v40  ;;  %11317 = vmatmul.mubr.bf16.gmra.mrb[12].mxu1 %v5388_v50  ;;  %v17330_v50 = vld [vmem:[#allocation17_spill] sm:$0xff] }
 0x629   : > { %v4864_v55 = vmul.f32 %v4693_v44, %v4486_v42  ;;  %v4487_v57 = vmax.f32 %v4433_v47, 0.0 }
 0x62a   : > { %v4236_v51 = vpop.f32.mrb[156].mxu0  ;;  %v15885_v24 = vld [vmem:[#allocation2 + $0xa9] sm:$0xff] }
 0x62b   : > { %4918 = vst [vmem:[#allocation2 + $0xc0] sm:$0xff] %v4864_v55  ;;  %v4865_v1 = vmul.f32 %v4698_v12, %v4487_v57  ;;  %v4373_v14 = vadd.f32 %v4236_v51, %v15475_v45  ;;  %v11176_v46 = vpop.f32.mrb[157].mxu0  ;;  %v15895_v57 = vld [vmem:[#allocation2 + $0xaa] sm:$0xff] }
 0x62c   : > { %v4239_v23 = vpop.f32.mrb[158].mxu0  ;;  %v15887_v16 = vld [vmem:[#allocation2 + $0xb1] sm:$0xff]  ;;  %17331 = vst [vmem:[#allocation47_spill] sm:$0xff] %v15895_v57 }
 0x62d   : > { %v15889_v41 = vld [vmem:[#allocation2 + $0xb2] sm:$0xff]  ;;  %4919 = vst [vmem:[#allocation2 + $0xc8] sm:$0xff] %v4865_v1  ;;  %v4434_v42 = vadd.f32 %v15647_v29, %v4373_v14  ;;  %v4374_v40 = vadd.f32 %v4239_v23, %v17330_v50  ;;  %v11177_v47 = vpop.f32.mrb[159].mxu0  ;;  %v5389_v44 = vpack.c.bf16 %v4865_v1, %v4864_v55  ;;  %v4703_v23 = vpop.permute.xlu0 %4702 }
 0x62e   : > { %v15891_v10 = vld [vmem:[#allocation2 + $0xb8] sm:$0xff]  ;;  %v15897_v45 = vld [vmem:[#allocation2 + $0xb0] sm:$0xff]  ;;  %v4708_v55 = vpop.permute.xlu1 %4707 }
 0x62f   : > { %17329 = vst [vmem:[#allocation46_spill] sm:$0xff] %v15891_v10  ;;  %17332 = vst [vmem:[#allocation48_spill] sm:$0xff] %v15897_v45  ;;  %v4488_v49 = vmax.f32 %v4434_v42, 0.0  ;;  %v4435_v14 = vadd.f32 %v15647_v29, %v4374_v40  ;;  %11320 = vmatprep.mubr.bf16.mxu1 %v5389_v44 }
 0x631   : > { %v4866_v50 = vmul.f32 %v4703_v23, %v4488_v49  ;;  %v4489_v1 = vmax.f32 %v4435_v14, 0.0 }
 0x632   : > { %v4244_v47 = vpop.f32.mrb[160].mxu0  ;;  %v15907_v18 = vld [vmem:[#allocation2 + $0xb9] sm:$0xff] }
 0x633   : > { %4920 = vst [vmem:[#allocation2 + $0xd0] sm:$0xff] %v4866_v50  ;;  %v4867_v2 = vmul.f32 %v4708_v55, %v4489_v1  ;;  %v4375_v3 = vadd.f32 %v4244_v47, %v15487_v31  ;;  %v11180_v46 = vpop.f32.mrb[161].mxu0  ;;  %v15917_v23 = vld [vmem:[#allocation2 + $0xba] sm:$0xff] }
 0x634   : > { %v4247_v12 = vpop.f32.mrb[162].mxu0  ;;  %v15909_v33 = vld [vmem:[#allocation2 + $0xc1] sm:$0xff]  ;;  %17335 = vst [vmem:[#allocation10_spill] sm:$0xff] %v15917_v23 }
 0x635   : > { %v15911_v51 = vld [vmem:[#allocation2 + $0xc2] sm:$0xff]  ;;  %4921 = vst [vmem:[#allocation2 + $0xd8] sm:$0xff] %v4867_v2  ;;  %v4436_v49 = vadd.f32 %v15647_v29, %v4375_v3  ;;  %v4376_v40 = vadd.f32 %v4247_v12, %v15490_v7  ;;  %v11181_v44 = vpop.f32.mrb[163].mxu0  ;;  %v5390_v14 = vpack.c.bf16 %v4867_v2, %v4866_v50  ;;  %v4713_v7 = vpop.permute.xlu0 %4712 }
 0x636   : > { %17333 = vst [vmem:[#allocation9_spill] sm:$0xff] %v15911_v51  ;;  %v15913_v42 = vld [vmem:[#allocation2 + $0xc8] sm:$0xff]  ;;  %v15919_v31 = vld [vmem:[#allocation2 + $0xc0] sm:$0xff]  ;;  %v4718_v50 = vpop.permute.xlu1 %4717 }
 0x637   : > { %17334 = vst [vmem:[#allocation16_spill] sm:$0xff] %v15913_v42  ;;  %17336 = vst [vmem:[#allocation18_spill] sm:$0xff] %v15919_v31  ;;  %v4490_v47 = vmax.f32 %v4436_v49, 0.0  ;;  %v4437_v3 = vadd.f32 %v15647_v29, %v4376_v40  ;;  %11321 = vmatmul.mubr.bf16.gmra.mrb[16].mxu1 %v5390_v14 }
 0x639   : > { %v4868_v12 = vmul.f32 %v4713_v7, %v4490_v47  ;;  %v4491_v2 = vmax.f32 %v4437_v3, 0.0 }
 0x63a   : > { %v4252_v44 = vpop.f32.mrb[164].mxu0  ;;  %v15929_v28 = vld [vmem:[#allocation2 + $0xc9] sm:$0xff] }
 0x63b   : > { %4922 = vst [vmem:[#allocation2 + $0xe0] sm:$0xff] %v4868_v12  ;;  %v4869_v45 = vmul.f32 %v4718_v50, %v4491_v2  ;;  %v4377_v10 = vadd.f32 %v4252_v44, %v15499_v4  ;;  %v11184_v46 = vpop.f32.mrb[165].mxu0  ;;  %v15939_v7 = vld [vmem:[#allocation2 + $0xca] sm:$0xff] }
 0x63c   : > { %v4255_v1 = vpop.f32.mrb[166].mxu0  ;;  %v15931_v15 = vld [vmem:[#allocation2 + $0xd1] sm:$0xff]  ;;  %17339 = vst [vmem:[#allocation12_spill] sm:$0xff] %v15939_v7 }
 0x63d   : > { %v15933_v55 = vld [vmem:[#allocation2 + $0xd2] sm:$0xff]  ;;  %4923 = vst [vmem:[#allocation2 + $0xe8] sm:$0xff] %v4869_v45  ;;  %v4438_v40 = vadd.f32 %v15647_v29, %v4377_v10  ;;  %v4378_v14 = vadd.f32 %v4255_v1, %v15502_v9  ;;  %v11185_v47 = vpop.f32.mrb[167].mxu0  ;;  %v5391_v3 = vpack.c.bf16 %v4869_v45, %v4868_v12  ;;  %v4723_v9 = vpop.permute.xlu0 %4722 }
 0x63e   : > { %17337 = vst [vmem:[#allocation11_spill] sm:$0xff] %v15933_v55  ;;  %v15935_v49 = vld [vmem:[#allocation2 + $0xd8] sm:$0xff]  ;;  %v15941_v4 = vld [vmem:[#allocation2 + $0xd0] sm:$0xff]  ;;  %v4728_v12 = vpop.permute.xlu1 %4727 }
 0x63f   : > { %17338 = vst [vmem:[#allocation20_spill] sm:$0xff] %v15935_v49  ;;  %17340 = vst [vmem:[#allocation13_spill] sm:$0xff] %v15941_v4  ;;  %v4492_v44 = vmax.f32 %v4438_v40, 0.0  ;;  %v4439_v10 = vadd.f32 %v15647_v29, %v4378_v14  ;;  %11324 = vmatprep.mubr.bf16.mxu1 %v5391_v3 }
 0x641   : > { %v4870_v1 = vmul.f32 %v4723_v9, %v4492_v44  ;;  %v4493_v45 = vmax.f32 %v4439_v10, 0.0 }
 0x642   : > { %v4260_v47 = vpop.f32.mrb[168].mxu0  ;;  %v15951_v34 = vld [vmem:[#allocation2 + $0xd9] sm:$0xff] }
 0x643   : > { %4924 = vst [vmem:[#allocation2 + $0xf0] sm:$0xff] %v4870_v1  ;;  %v4871_v31 = vmul.f32 %v4728_v12, %v4493_v45  ;;  %v4379_v42 = vadd.f32 %v4260_v47, %v15511_v32  ;;  %v11188_v46 = vpop.f32.mrb[169].mxu0  ;;  %v15961_v9 = vld [vmem:[#allocation2 + $0xda] sm:$0xff] }
 0x644   : > { %v4263_v2 = vpop.f32.mrb[170].mxu0  ;;  %v15953_v55 = vld [vmem:[#allocation2 + $0xe1] sm:$0xff]  ;;  %17343 = vst [vmem:[#allocation17_spill] sm:$0xff] %v15961_v9 }
 0x645   : > { %v15955_v50 = vld [vmem:[#allocation2 + $0xe2] sm:$0xff]  ;;  %4925 = vst [vmem:[#allocation2 + $0xf8] sm:$0xff] %v4871_v31  ;;  %v4440_v14 = vadd.f32 %v15647_v29, %v4379_v42  ;;  %v4380_v3 = vadd.f32 %v4263_v2, %v15514_v13  ;;  %v11189_v44 = vpop.f32.mrb[171].mxu0  ;;  %v5392_v10 = vpack.c.bf16 %v4871_v31, %v4870_v1  ;;  %v4733_v13 = vpop.permute.xlu0 %4732 }
 0x646   : > { %17341 = vst [vmem:[#allocation14_spill] sm:$0xff] %v15955_v50  ;;  %v15957_v40 = vld [vmem:[#allocation2 + $0xe8] sm:$0xff]  ;;  %v15963_v32 = vld [vmem:[#allocation2 + $0xe0] sm:$0xff]  ;;  %v4738_v1 = vpop.permute.xlu1 %4737 }
 0x647   : > { %17342 = vst [vmem:[#allocation15_spill] sm:$0xff] %v15957_v40  ;;  %17344 = vst [vmem:[#allocation62_spill] sm:$0xff] %v15963_v32  ;;  %v4494_v47 = vmax.f32 %v4440_v14, 0.0  ;;  %v4441_v42 = vadd.f32 %v15647_v29, %v4380_v3  ;;  %11325 = vmatmul.mubr.bf16.gmra.mrb[20].mxu1 %v5392_v10 }
 0x649   : > { %v4872_v2 = vmul.f32 %v4733_v13, %v4494_v47  ;;  %v4495_v31 = vmax.f32 %v4441_v42, 0.0 }
 0x64a   : > { %v4268_v44 = vpop.f32.mrb[172].mxu0  ;;  %v15973_v7 = vld [vmem:[#allocation2 + $0xe9] sm:$0xff] }
 0x64b   : > { %4926 = vst [vmem:[#allocation2 + $0x100] sm:$0xff] %v4872_v2  ;;  %v4873_v49 = vmul.f32 %v4738_v1, %v4495_v31  ;;  %v4381_v4 = vadd.f32 %v4268_v44, %v15523_v26  ;;  %v11192_v46 = vpop.f32.mrb[173].mxu0  ;;  %v15983_v13 = vld [vmem:[#allocation2 + $0xea] sm:$0xff] }
 0x64c   : > { %v4271_v45 = vpop.f32.mrb[174].mxu0  ;;  %v15975_v50 = vld [vmem:[#allocation2 + $0xf1] sm:$0xff]  ;;  %17347 = vst [vmem:[#allocation65_spill] sm:$0xff] %v15983_v13 }
 0x64d   : > { %v15977_v12 = vld [vmem:[#allocation2 + $0xf2] sm:$0xff]  ;;  %4927 = vst [vmem:[#allocation2 + $0x108] sm:$0xff] %v4873_v49  ;;  %v4442_v3 = vadd.f32 %v15647_v29, %v4381_v4  ;;  %v4382_v10 = vadd.f32 %v4271_v45, %v15526_v37  ;;  %v11193_v47 = vpop.f32.mrb[175].mxu0  ;;  %v5393_v42 = vpack.c.bf16 %v4873_v49, %v4872_v2  ;;  %v4743_v37 = vpop.permute.xlu0 %4742 }
 0x64e   : > { %17345 = vst [vmem:[#allocation63_spill] sm:$0xff] %v15977_v12  ;;  %v15979_v14 = vld [vmem:[#allocation2 + $0xf8] sm:$0xff]  ;;  %v15985_v26 = vld [vmem:[#allocation2 + $0xf0] sm:$0xff]  ;;  %v4748_v2 = vpop.permute.xlu1 %4747 }
 0x64f   : > { %17346 = vst [vmem:[#allocation64_spill] sm:$0xff] %v15979_v14  ;;  %17348 = vst [vmem:[#allocation66_spill] sm:$0xff] %v15985_v26  ;;  %v4496_v44 = vmax.f32 %v4442_v3, 0.0  ;;  %v4443_v4 = vadd.f32 %v15647_v29, %v4382_v10  ;;  %11328 = vmatprep.mubr.bf16.mxu1 %v5393_v42 }
 0x651   : > { %v4874_v45 = vmul.f32 %v4743_v37, %v4496_v44  ;;  %v4497_v49 = vmax.f32 %v4443_v4, 0.0 }
 0x652   : > { %v4276_v47 = vpop.f32.mrb[176].mxu0  ;;  %v15995_v9 = vld [vmem:[#allocation2 + $0xf9] sm:$0xff] }
 0x653   : > { %4928 = vst [vmem:[#allocation2 + $0x110] sm:$0xff] %v4874_v45  ;;  %v4875_v40 = vmul.f32 %v4748_v2, %v4497_v49  ;;  %v4383_v32 = vadd.f32 %v4276_v47, %v15535_v53  ;;  %v11196_v46 = vpop.f32.mrb[177].mxu0  ;;  %v16005_v37 = vld [vmem:[#allocation2 + $0xfa] sm:$0xff] }
 0x654   : > { %v4279_v31 = vpop.f32.mrb[178].mxu0  ;;  %v15997_v12 = vld [vmem:[#allocation2 + $0x101] sm:$0xff]  ;;  %17351 = vst [vmem:[#allocation69_spill] sm:$0xff] %v16005_v37 }
 0x655   : > { %v15999_v1 = vld [vmem:[#allocation2 + $0x102] sm:$0xff]  ;;  %4929 = vst [vmem:[#allocation2 + $0x118] sm:$0xff] %v4875_v40  ;;  %v4444_v10 = vadd.f32 %v15647_v29, %v4383_v32  ;;  %v4384_v42 = vadd.f32 %v4279_v31, %v15538_v35  ;;  %v11197_v44 = vpop.f32.mrb[179].mxu0  ;;  %v5394_v4 = vpack.c.bf16 %v4875_v40, %v4874_v45  ;;  %v4753_v35 = vpop.permute.xlu0 %4752 }
 0x656   : > { %17349 = vst [vmem:[#allocation67_spill] sm:$0xff] %v15999_v1  ;;  %v16001_v3 = vld [vmem:[#allocation2 + $0x108] sm:$0xff]  ;;  %v16007_v53 = vld [vmem:[#allocation2 + $0x100] sm:$0xff]  ;;  %v4758_v45 = vpop.permute.xlu1 %4757 }
 0x657   : > { %17350 = vst [vmem:[#allocation68_spill] sm:$0xff] %v16001_v3  ;;  %17352 = vst [vmem:[#allocation70_spill] sm:$0xff] %v16007_v53  ;;  %v4498_v47 = vmax.f32 %v4444_v10, 0.0  ;;  %v4445_v32 = vadd.f32 %v15647_v29, %v4384_v42  ;;  %11329 = vmatmul.mubr.bf16.gmra.mrb[24].mxu1 %v5394_v4 }
 0x659   : > { %v4876_v31 = vmul.f32 %v4753_v35, %v4498_v47  ;;  %v4499_v40 = vmax.f32 %v4445_v32, 0.0 }
 0x65a   : > { %v4284_v44 = vpop.f32.mrb[180].mxu0  ;;  %v16017_v13 = vld [vmem:[#allocation2 + $0x109] sm:$0xff] }
 0x65b   : > { %4930 = vst [vmem:[#allocation2 + $0x120] sm:$0xff] %v4876_v31  ;;  %v4877_v14 = vmul.f32 %v4758_v45, %v4499_v40  ;;  %v4385_v26 = vadd.f32 %v4284_v44, %v15547_v6  ;;  %v11200_v46 = vpop.f32.mrb[181].mxu0  ;;  %v16027_v35 = vld [vmem:[#allocation2 + $0x10a] sm:$0xff] }
 0x65c   : > { %v4287_v49 = vpop.f32.mrb[182].mxu0  ;;  %v16019_v1 = vld [vmem:[#allocation2 + $0x111] sm:$0xff]  ;;  %17355 = vst [vmem:[#allocation73_spill] sm:$0xff] %v16027_v35 }
 0x65d   : > { %v16021_v2 = vld [vmem:[#allocation2 + $0x112] sm:$0xff]  ;;  %4931 = vst [vmem:[#allocation2 + $0x128] sm:$0xff] %v4877_v14  ;;  %v4446_v42 = vadd.f32 %v15647_v29, %v4385_v26  ;;  %v4386_v4 = vadd.f32 %v4287_v49, %v15550_v39  ;;  %v11201_v47 = vpop.f32.mrb[183].mxu0  ;;  %v5395_v32 = vpack.c.bf16 %v4877_v14, %v4876_v31  ;;  %v16040_v39 = vld [vmem:[%s16846_s3] ss:$0 sm:$0xff]  ;;  %v4763_v14 = vpop.permute.xlu0 %4762 }
 0x65e   : > { %17353 = vst [vmem:[#allocation71_spill] sm:$0xff] %v16021_v2  ;;  %v16023_v10 = vld [vmem:[#allocation2 + $0x118] sm:$0xff]  ;;  %v16029_v6 = vld [vmem:[#allocation2 + $0x110] sm:$0xff]  ;;  %v4768_v31 = vpop.permute.xlu1 %4767 }
 0x65f   : > { %17354 = vst [vmem:[#allocation72_spill] sm:$0xff] %v16023_v10  ;;  %17356 = vst [vmem:[#allocation74_spill] sm:$0xff] %v16029_v6  ;;  %v4500_v44 = vmax.f32 %v4446_v42, 0.0  ;;  %v4447_v29 = vadd.f32 %v16040_v39, %v4386_v4  ;;  %11332 = vmatprep.mubr.bf16.mxu1 %v5395_v32 }
 0x661   : > { %v4878_v26 = vmul.f32 %v4763_v14, %v4500_v44  ;;  %v4501_v49 = vmax.f32 %v4447_v29, 0.0 }
 0x662   : > { %v4292_v47 = vpop.f32.mrb[184].mxu0  ;;  %v16044_v45 = vld [vmem:[#allocation2 + $0x119] sm:$0xff] }
 0x663   : > { %4932 = vst [vmem:[#allocation2 + $0x130] sm:$0xff] %v4878_v26  ;;  %v4879_v46 = vmul.f32 %v4768_v31, %v4501_v49  ;;  %v4387_v40 = vadd.f32 %v4292_v47, %v15559_v63  ;;  %v11204_v3 = vpop.f32.mrb[185].mxu0  ;;  %v16054_v14 = vld [vmem:[#allocation2 + $0x11a] sm:$0xff] }
 0x664   : > { %v4295_v42 = vpop.f32.mrb[186].mxu0  ;;  %v16046_v10 = vld [vmem:[#allocation2 + $0x121] sm:$0xff]  ;;  %17359 = vst [vmem:[#allocation77_spill] sm:$0xff] %v16054_v14 }
 0x665   : > { %v16048_v6 = vld [vmem:[#allocation2 + $0x122] sm:$0xff]  ;;  %4933 = vst [vmem:[#allocation2 + $0x138] sm:$0xff] %v4879_v46  ;;  %v4448_v4 = vadd.f32 %v16040_v39, %v4387_v40  ;;  %v4388_v32 = vadd.f32 %v4295_v42, %v15562_v17  ;;  %v11205_v44 = vpop.f32.mrb[187].mxu0  ;;  %v5396_v29 = vpack.c.bf16 %v4879_v46, %v4878_v26  ;;  %v4773_v17 = vpop.permute.xlu0 %4772 }
 0x666   : > { %17357 = vst [vmem:[#allocation75_spill] sm:$0xff] %v16048_v6  ;;  %v16050_v53 = vld [vmem:[#allocation2 + $0x128] sm:$0xff]  ;;  %v16056_v63 = vld [vmem:[#allocation2 + $0x120] sm:$0xff]  ;;  %v4778_v26 = vpop.permute.xlu1 %4777 }
 0x667   : > { %17358 = vst [vmem:[#allocation76_spill] sm:$0xff] %v16050_v53  ;;  %17360 = vst [vmem:[#allocation78_spill] sm:$0xff] %v16056_v63  ;;  %v4502_v47 = vmax.f32 %v4448_v4, 0.0  ;;  %v4449_v40 = vadd.f32 %v16040_v39, %v4388_v32  ;;  %11333 = vmatmul.mubr.bf16.gmra.mrb[28].mxu1 %v5396_v29 }
 0x669   : > { %v16065_v42 = vmul.f32 %v4773_v17, %v4502_v47  ;;  %v4503_v46 = vmax.f32 %v4449_v40, 0.0 }
 0x66a   : > { %v4300_v44 = vpop.f32.mrb[188].mxu0  ;;  %v4788_v53 = vpop.permute.xlu1 %4787 }
 0x66b   : > { %17361 = vst [vmem:[#allocation79_spill] sm:$0xff] %v16065_v42  ;;  %4934 = vst [vmem:[#allocation2 + $0x140] sm:$0xff] %v16065_v42  ;;  %v16068_v2 = vmul.f32 %v4778_v26, %v4503_v46  ;;  %v4389_v3 = vadd.f32 %v4300_v44, %v15571_v36  ;;  %v11208_v49 = vpop.f32.mrb[189].mxu0  ;;  %v16082_v46 = vld [vmem:[#allocation2 + $0x129] sm:$0xff] }
 0x66c   : > { %v4303_v6 = vpop.f32.mrb[190].mxu0  ;;  %v16071_v14 = vld [vmem:[#allocation2 + $0x131] sm:$0xff] }
 0x66d   : > { %17362 = vst [vmem:[#allocation80_spill] sm:$0xff] %v16068_v2  ;;  %v16073_v4 = vld [vmem:[#allocation2 + $0x132] sm:$0xff]  ;;  %4935 = vst [vmem:[#allocation2 + $0x148] sm:$0xff] %v16068_v2  ;;  %v4450_v29 = vadd.f32 %v16040_v39, %v4389_v3  ;;  %v4390_v47 = vadd.f32 %v4303_v6, %v15574_v52  ;;  %v11209_v40 = vpop.f32.mrb[191].mxu0  ;;  %v5397_v17 = vpack.c.bf16 %v16068_v2, %v16065_v42  ;;  %v16084_v36 = vld [vmem:[#allocation2 + $0x12a] sm:$0xff] }
 0x66e   : > { %17363 = vst [vmem:[#allocation81_spill] sm:$0xff] %v16073_v4  ;;  %v16075_v32 = vld [vmem:[#allocation2 + $0x138] sm:$0xff]  ;;  %17365 = vst [vmem:[#allocation83_spill] sm:$0xff] %v16084_v36  ;;  %v16086_v49 = vld [vmem:[#allocation2 + $0x130] sm:$0xff]  ;;  %v4783_v40 = vpop.permute.xlu0 %4782 }
 0x66f   : > { %17364 = vst [vmem:[#allocation82_spill] sm:$0xff] %v16075_v32  ;;  %17366 = vst [vmem:[#allocation84_spill] sm:$0xff] %v16086_v49  ;;  %v4504_v52 = vmax.f32 %v4450_v29, 0.0  ;;  %v4451_v6 = vadd.f32 %v16040_v39, %v4390_v47  ;;  %11336 = vmatprep.mubr.bf16.mxu1 %v5397_v17 }
 0x671   : > { %v16095_v31 = vmul.f32 %v4783_v40, %v4504_v52  ;;  %v4505_v42 = vmax.f32 %v4451_v6, 0.0 }
 0x672   : > { %v4308_v63 = vpop.f32.mrb[192].mxu0  ;;  %v16101_v36 = vld [vmem:[#allocation2 + $0x139] sm:$0xff]  ;;  %v4793_v17 = vpop.permute.xlu0 %4792 }
 0x673   : > { %17367 = vst [vmem:[#allocation85_spill] sm:$0xff] %v16095_v31  ;;  %4936 = vst [vmem:[#allocation2 + $0x150] sm:$0xff] %v16095_v31  ;;  %v16098_v35 = vmul.f32 %v4788_v53, %v4505_v42  ;;  %v4391_v26 = vadd.f32 %v4308_v63, %v15583_v5  ;;  %v11212_v44 = vpop.f32.mrb[193].mxu0  ;;  %v16114_v63 = vld [vmem:[#allocation2 + $0x13a] sm:$0xff] }
 0x674   : > { %v4311_v4 = vpop.f32.mrb[194].mxu0  ;;  %v16103_v29 = vld [vmem:[#allocation2 + $0x141] sm:$0xff]  ;;  %17370 = vst [vmem:[#allocation88_spill] sm:$0xff] %v16114_v63 }
 0x675   : > { %17368 = vst [vmem:[#allocation86_spill] sm:$0xff] %v16098_v35  ;;  %v16105_v47 = vld [vmem:[#allocation2 + $0x142] sm:$0xff]  ;;  %4937 = vst [vmem:[#allocation2 + $0x158] sm:$0xff] %v16098_v35  ;;  %v4452_v52 = vadd.f32 %v16040_v39, %v4391_v26  ;;  %v4392_v53 = vadd.f32 %v4311_v4, %v15586_v62  ;;  %v11213_v42 = vpop.f32.mrb[195].mxu0  ;;  %v5398_v5 = vpack.c.bf16 %v16098_v35, %v16095_v31  ;;  %v4798_v4 = vpop.permute.xlu1 %4797 }
 0x676   : > { %17369 = vst [vmem:[#allocation87_spill] sm:$0xff] %v16105_v47  ;;  %v5739_v47 = vld [vmem:[#allocation2 + $0x9] sm:$0xff] }
 0x677   : > { %v4506_v40 = vmax.f32 %v4452_v52, 0.0  ;;  %v4453_v3 = vadd.f32 %v16040_v39, %v4392_v53  ;;  %11337 = vmatmul.mubr.bf16.gmra.mrb[32].mxu1 %v5398_v5 }
 0x679   : > { %v16121_v26 = vmul.f32 %v4793_v17, %v4506_v40  ;;  %v4507_v62 = vmax.f32 %v4453_v3, 0.0  ;;  %v4803_v17 = vpop.permute.xlu0 %4802 }
 0x67a   : > { %v4316_v42 = vpop.f32.mrb[196].mxu0  ;;  %v16127_v49 = vld [vmem:[#allocation2 + $0x149] sm:$0xff] }
 0x67b   : > { %17371 = vst [vmem:[#allocation89_spill] sm:$0xff] %v16121_v26  ;;  %4938 = vst [vmem:[#allocation2 + $0x160] sm:$0xff] %v16121_v26  ;;  %v16124_v2 = vmul.f32 %v4798_v4, %v4507_v62  ;;  %v4393_v31 = vadd.f32 %v4316_v42, %v15595_v8  ;;  %v11216_v44 = vpop.f32.mrb[197].mxu0 }
 0x67c   : > { %v4319_v32 = vpop.f32.mrb[198].mxu0  ;;  %v16129_v52 = vld [vmem:[#allocation2 + $0x151] sm:$0xff] }
 0x67d   : > { %17372 = vst [vmem:[#allocation90_spill] sm:$0xff] %v16124_v2  ;;  %v16131_v53 = vld [vmem:[#allocation2 + $0x152] sm:$0xff]  ;;  %4939 = vst [vmem:[#allocation2 + $0x168] sm:$0xff] %v16124_v2  ;;  %v4454_v3 = vadd.f32 %v16040_v39, %v4393_v31  ;;  %v4394_v5 = vadd.f32 %v4319_v32, %v15598_v27  ;;  %v11217_v40 = vpop.f32.mrb[199].mxu0  ;;  %v5399_v8 = vpack.c.bf16 %v16124_v2, %v16121_v26  ;;  %v16140_v44 = vld [vmem:[#allocation2 + $0x14a] sm:$0xff]  ;;  %v4808_v32 = vpop.permute.xlu1 %4807 }
 0x67e   : > { %17373 = vst [vmem:[#allocation91_spill] sm:$0xff] %v16131_v53  ;;  %17374 = vst [vmem:[#allocation92_spill] sm:$0xff] %v16140_v44 }
 0x67f   : > { %v4508_v42 = vmax.f32 %v4454_v3, 0.0  ;;  %v4455_v6 = vadd.f32 %v16040_v39, %v4394_v5  ;;  %11340 = vmatprep.mubr.bf16.mxu1 %v5399_v8 }
 0x681   : > { %v16147_v31 = vmul.f32 %v4803_v17, %v4508_v42  ;;  %v4509_v27 = vmax.f32 %v4455_v6, 0.0 }
 0x682   : > { %v4324_v40 = vpop.f32.mrb[200].mxu0  ;;  %v16153_v4 = vld [vmem:[#allocation2 + $0x159] sm:$0xff] }
 0x683   : > { %17375 = vst [vmem:[#allocation93_spill] sm:$0xff] %v16147_v31  ;;  %4940 = vst [vmem:[#allocation2 + $0x170] sm:$0xff] %v16147_v31  ;;  %v16150_v35 = vmul.f32 %v4808_v32, %v4509_v27  ;;  %v4395_v26 = vadd.f32 %v4324_v40, %v15609_v43  ;;  %v11220_v62 = vpop.f32.mrb[201].mxu0  ;;  %v16166_v27 = vld [vmem:[#allocation2 + $0x15a] sm:$0xff]  ;;  %v5740_v32 = vld [vmem:[#allocation2 + $0x11] sm:$0xff] }
 0x684   : > { %v4327_v63 = vpop.f32.mrb[202].mxu0  ;;  %v16155_v3 = vld [vmem:[#allocation2 + $0x161] sm:$0xff]  ;;  %17378 = vst [vmem:[#allocation96_spill] sm:$0xff] %v16166_v27 }
 0x685   : > { %17376 = vst [vmem:[#allocation94_spill] sm:$0xff] %v16150_v35  ;;  %v16157_v5 = vld [vmem:[#allocation2 + $0x162] sm:$0xff]  ;;  %4941 = vst [vmem:[#allocation2 + $0x178] sm:$0xff] %v16150_v35  ;;  %v4456_v17 = vadd.f32 %v16040_v39, %v4395_v26  ;;  %v4396_v8 = vadd.f32 %v4327_v63, %v15612_v59  ;;  %v11221_v42 = vpop.f32.mrb[203].mxu0  ;;  %v5400_v43 = vpack.c.bf16 %v16150_v35, %v16147_v31  ;;  %v4813_v26 = vpop.permute.xlu0 %4812 }
 0x686   : > { %17377 = vst [vmem:[#allocation95_spill] sm:$0xff] %v16157_v5  ;;  %v5738_v62 = vld [vmem:[#allocation2 + $0x1] sm:$0xff]  ;;  %v4818_v42 = vpop.permute.xlu1 %4817 }
 0x687   : > { %v5786_v40 = vpack.c.bf16 %v5739_v47, %v5738_v62  ;;  %v4510_v2 = vmax.f32 %v4456_v17, 0.0  ;;  %v4457_v53 = vadd.f32 %v16040_v39, %v4396_v8  ;;  %11341 = vmatmul.mubr.bf16.gmra.mrb[36].mxu1 %v5400_v43  ;;  %v12466_v8 = vld [vmem:[#allocation2 + $0x19] sm:$0xff] }
 0x688   : > { %v5787_v43 = vpack.c.bf16 %v12466_v8, %v5740_v32  ;;  %v12405_v32 = vld [vmem:[%s16847_s4 + $0x88] sm:$0xff]  }
 0x689   : > { %11360 = vmatprep.mubr.bf16.mxu1 %v5786_v40  ;;  %v16173_v59 = vmul.f32 %v4813_v26, %v4510_v2  ;;  %v4511_v63 = vmax.f32 %v4457_v53, 0.0  ;;  %v12468_v8 = vld [vmem:[#allocation2 + $0x29] sm:$0xff] }
 0x68a   : > { %v4332_v31 = vpop.f32.mrb[204].mxu0  ;;  %v16179_v6 = vld [vmem:[#allocation2 + $0x169] sm:$0xff] }
 0x68b   : > { %17379 = vst [vmem:[#allocation97_spill] sm:$0xff] %v16173_v59  ;;  %4942 = vst [vmem:[#allocation2 + $0x180] sm:$0xff] %v16173_v59  ;;  %v16176_v44 = vmul.f32 %v4818_v42, %v4511_v63  ;;  %v4397_v47 = vadd.f32 %v4332_v31, %v15622_v58  ;;  %v11224_v62 = vpop.f32.mrb[205].mxu0  ;;  %v16183_v2 = vld [vmem:[#allocation2 + $0x16a] sm:$0xff]  ;;  %v4828_v42 = vpop.permute.xlu1 %4827 }
 0x68c   : > { %v4335_v17 = vpop.f32.mrb[206].mxu0  ;;  %v16181_v5 = vld [vmem:[#allocation2 + $0x171] sm:$0xff]  ;;  %17380 = vst [vmem:[#allocation98_spill] sm:$0xff] %v16183_v2  ;;  %v12467_v62 = vld [vmem:[#allocation2 + $0x21] sm:$0xff] }
 0x68d   : > { %v16185_v53 = vld [vmem:[#allocation2 + $0x172] sm:$0xff]  ;;  %4943 = vst [vmem:[#allocation2 + $0x188] sm:$0xff] %v16176_v44  ;;  %v4458_v58 = vadd.f32 %v16040_v39, %v4397_v47  ;;  %v4398_v31 = vadd.f32 %v4335_v17, %v15625_v20  ;;  %v11225_v26 = vpop.f32.mrb[207].mxu0  ;;  %v5788_v40 = vpack.c.bf16 %v12468_v8, %v12467_v62  ;;  %v4823_v47 = vpop.permute.xlu0 %4822 }
 0x68e   : > { %17381 = vst [vmem:[#allocation99_spill] sm:$0xff] %v16185_v53  ;;  %v12406_v26 = vld [vmem:[%s16847_s4 + $0x90] sm:$0xff]   ;;  %v12470_v8 = vld [vmem:[#allocation2 + $0x39] sm:$0xff] }
 0x68f   : > { %v4512_v35 = vmax.f32 %v4458_v58, 0.0  ;;  %v4459_v59 = vadd.f32 %v16040_v39, %v4398_v31  ;;  %11361 = vmatmul.mubr.bf16.vlgmr.msra.gmra.mrb[248].mxu1 %v5787_v43 }
 0x690   : > { %11409 = vmatpush3.bf16.msra.mxu1 %v15848_v56  ;;  %11364 = vmatprep.mubr.bf16.mxu1 %v5788_v40  ;;  %v12469_v40 = vld [vmem:[#allocation2 + $0x31] sm:$0xff] }
 0x691   : > { %v16201_v20 = vmul.f32 %v4823_v47, %v4512_v35  ;;  %v4513_v17 = vmax.f32 %v4459_v59, 0.0  ;;  %11410 = vmatprep.subr.bf16.mxu1 %v12405_v32  ;;  %v5789_v47 = vpack.c.bf16 %v12470_v8, %v12469_v40  ;;  %v4838_v8 = vpop.permute.xlu1 %4837 }
 0x692   : > { %v4340_v63 = vpop.f32.mrb[208].mxu0 }
 0x693   : > { %4944 = vst [vmem:[#allocation2 + $0x190] sm:$0xff] %v16201_v20  ;;  %v4891_v58 = vmul.f32 %v4828_v42, %v4513_v17  ;;  %v4399_v31 = vadd.f32 %v4340_v63, %v15635_v22  ;;  %v11228_v43 = vpop.f32.mrb[209].mxu0  ;;  %v12407_v42 = vld [vmem:[%s16847_s4 + $0x98] sm:$0xff]   ;;  %v12471_v63 = vld [vmem:[#allocation2 + $0x41] sm:$0xff]  ;;  %v12472_v17 = vld [vmem:[#allocation2 + $0x49] sm:$0xff] }
 0x694   : > { %v4343_v62 = vpop.f32.mrb[210].mxu0  ;;  %11411 = vmatpush3.bf16.msra.mxu1 %v12405_v32  ;;  %v5790_v32 = vpack.c.bf16 %v12472_v17, %v12471_v63  ;;  %v16219_v40 = vld [vmem:[#allocation2 + $0x181] sm:$0xff] }
 0x695   : > { %4945 = vst [vmem:[#allocation2 + $0x198] sm:$0xff] %v4891_v58  ;;  %v4460_v35 = vadd.f32 %v16040_v39, %v4399_v31  ;;  %v4400_v59 = vadd.f32 %v4343_v62, %v15641_v0  ;;  %11412 = vmatprep.subr.bf16.mxu1 %v12406_v26  ;;  %v11229_v22 = vpop.f32.mrb[211].mxu0  ;;  %v4833_v58 = vpop.permute.xlu0 %4832  ;;  %v12408_v62 = vld [vmem:[%s16847_s4 + $0xa0] sm:$0xff]  }
 0x696   : > { %v16223_v63 = vld [vmem:[#allocation2 + $0x182] sm:$0xff] }
 0x697   : > { %v4514_v43 = vmax.f32 %v4460_v35, 0.0  ;;  %v4461_v56 = vadd.f32 %v16040_v39, %v4400_v59  ;;  %11365 = vmatmul.mubr.bf16.gmra.mrb[252].mxu1 %v5789_v47  ;;  %17382 = vst [vmem:[#allocation100_spill] sm:$0xff] %v16223_v63  ;;  %v12473_v59 = vld [vmem:[#allocation2 + $0x51] sm:$0xff]  ;;  %v12474_v47 = vld [vmem:[#allocation2 + $0x59] sm:$0xff] }
 0x698   : > { %11368 = vmatprep.mubr.bf16.mxu1 %v5790_v32  ;;  %11413 = vmatpush3.bf16.msra.mxu1 %v12406_v26  ;;  %v5791_v17 = vpack.c.bf16 %v12474_v47, %v12473_v59  ;;  %v12409_v32 = vld [vmem:[%s16847_s4 + $0xa8] sm:$0xff]   ;;  %v5796_v59 = vpack.c.bf16 %v15885_v24, %v15865_v61  ;;  %v5797_v47 = vpack.c.bf16 %v15907_v18, %v15887_v16 }
 0x699   : > { %v4892_v0 = vmul.f32 %v4833_v58, %v4514_v43  ;;  %v4515_v31 = vmax.f32 %v4461_v56, 0.0  ;;  %11414 = vmatprep.subr.bf16.mxu1 %v12407_v42  ;;  %v12475_v43 = vld [vmem:[#allocation2 + $0x61] sm:$0xff]  ;;  %v12482_v26 = vld [vmem:[#allocation2 + $0x4a] sm:$0xff] }
 0x69a   : > { %v16221_v22 = vld [vmem:[#allocation2 + $0x189] sm:$0xff]  ;;  %v5792_v58 = vpack.c.bf16 %v15791_v19, %v12475_v43  ;;  %v5800_v43 = vpack.c.bf16 %v15973_v7, %v15953_v55 }
 0x69b   : > { %v16225_v35 = vld [vmem:[#allocation2 + $0x18a] sm:$0xff]  ;;  %4946 = vst [vmem:[#allocation2 + $0x1a0] sm:$0xff] %v4892_v0  ;;  %v4893_v39 = vmul.f32 %v4838_v8, %v4515_v31  ;;  %v5793_v0 = vpack.c.bf16 %v15813_v60, %v15793_v38  ;;  %v12411_v31 = vld [vmem:[%s16847_s4 + $0xb8] sm:$0xff]   ;;  %v5794_v8 = vpack.c.bf16 %v15835_v11, %v15815_v48  ;;  %v12477_v56 = vld [vmem:[#allocation2 + $0x22] sm:$0xff] }
 0x69c   : > { %17383 = vst [vmem:[#allocation101_spill] sm:$0xff] %v16225_v35  ;;  %11415 = vmatpush3.bf16.msra.mxu1 %v12407_v42  ;;  %v12410_v42 = vld [vmem:[%s16847_s4 + $0xb0] sm:$0xff]  }
 0x69d   : > { %4947 = vst [vmem:[#allocation2 + $0x1a8] sm:$0xff] %v4893_v39  ;;  %11416 = vmatprep.subr.bf16.mxu1 %v12408_v62  ;;  %v5795_v39 = vpack.c.bf16 %v15863_v21, %v15837_v25  ;;  %v17391_v35 = vld [vmem:[#allocation73_spill] sm:$0xff] }
 0x69f   : > { %11369 = vmatmul.mubr.bf16.gmra.mrb[0].mxu1 %v5791_v17  ;;  %v5798_v17 = vpack.c.bf16 %v15929_v28, %v15909_v33 }
 0x6a0   : > { %11372 = vmatprep.mubr.bf16.mxu1 %v5792_v58  ;;  %11417 = vmatpush3.bf16.msra.mxu1 %v12408_v62  ;;  %v12412_v62 = vld [vmem:[%s16847_s4 + $0xc0] sm:$0xff]   ;;  %v5801_v58 = vpack.c.bf16 %v15995_v9, %v15975_v50 }
 0x6a1   : > { %11418 = vmatprep.subr.bf16.mxu1 %v12409_v32 }
 0x6a4   : > { %11419 = vmatpush3.bf16.msra.mxu1 %v12409_v32  ;;  %v5799_v32 = vpack.c.bf16 %v15951_v34, %v15931_v15 }
 0x6a5   : > { %11420 = vmatprep.subr.bf16.mxu1 %v12410_v42 }
 0x6a7   : > { %11373 = vmatmul.mubr.bf16.gmra.mrb[4].mxu1 %v5793_v0  ;;  %v5803_v0 = vpack.c.bf16 %v16044_v45, %v16019_v1 }
 0x6a8   : > { %11376 = vmatprep.mubr.bf16.mxu1 %v5794_v8  ;;  %11421 = vmatpush3.bf16.msra.mxu1 %v12410_v42  ;;  %v5802_v42 = vpack.c.bf16 %v16017_v13, %v15997_v12  ;;  %v5805_v8 = vpack.c.bf16 %v16101_v36, %v16071_v14 }
 0x6a9   : > { %11422 = vmatprep.subr.bf16.mxu1 %v12411_v31 }
 0x6ac   : > { %11423 = vmatpush3.bf16.msra.mxu1 %v12411_v31  ;;  %v5804_v31 = vpack.c.bf16 %v16082_v46, %v16046_v10 }
 0x6ad   : > { %11472 = vmatprep.subr.bf16.mxu1 %v12412_v62 }
 0x6af   : > { %11377 = vmatmul.mubr.bf16.gmra.mrb[8].mxu1 %v5795_v39  ;;  %v5806_v39 = vpack.c.bf16 %v16127_v49, %v16103_v29 }
 0x6b0   : > { %11380 = vmatprep.mubr.bf16.mxu1 %v5796_v59  ;;  %v5807_v59 = vpack.c.bf16 %v16153_v4, %v16129_v52 }
 0x6b7   : > { %11381 = vmatmul.mubr.bf16.gmra.mrb[12].mxu1 %v5797_v47  ;;  %v5808_v47 = vpack.c.bf16 %v16179_v6, %v16155_v3 }
 0x6b8   : > { %11384 = vmatprep.mubr.bf16.mxu1 %v5798_v17  ;;  %v16276_v17 = vld [vmem:[#allocation2 + $0x179] sm:$0xff] }
 0x6bf   : > { %11385 = vmatmul.mubr.bf16.gmra.mrb[16].mxu1 %v5799_v32  ;;  %v6149_v32 = vld [vmem:[#allocation2 + $0xa] sm:$0xff] }
 0x6c0   : > { %11388 = vmatprep.mubr.bf16.mxu1 %v5800_v43  ;;  %v5809_v43 = vpack.c.bf16 %v16276_v17, %v16181_v5 }
 0x6c7   : > { %11389 = vmatmul.mubr.bf16.gmra.mrb[20].mxu1 %v5801_v58  ;;  %v6148_v58 = vld [vmem:[#allocation2 + $0x2] sm:$0xff] }
 0x6c8   : > { %11392 = vmatprep.mubr.bf16.mxu1 %v5802_v42  ;;  %v6196_v42 = vpack.c.bf16 %v6149_v32, %v6148_v58  ;;  %v12414_v32 = vld [vmem:[%s16847_s4 + $0xd0] sm:$0xff]   ;;  %v12480_v58 = vld [vmem:[#allocation2 + $0x3a] sm:$0xff] }
 0x6cf   : > { %11393 = vmatmul.mubr.bf16.gmra.mrb[24].mxu1 %v5803_v0  ;;  %v6150_v0 = vld [vmem:[#allocation2 + $0x12] sm:$0xff] }
 0x6d0   : > { %11396 = vmatprep.mubr.bf16.mxu1 %v5804_v31  ;;  %v12476_v31 = vld [vmem:[#allocation2 + $0x1a] sm:$0xff] }
 0x6d7   : > { %11397 = vmatmul.mubr.bf16.gmra.mrb[28].mxu1 %v5805_v8  ;;  %v6197_v8 = vpack.c.bf16 %v12476_v31, %v6150_v0  ;;  %v12415_v0 = vld [vmem:[%s16847_s4 + $0xd8] sm:$0xff]   ;;  %v12481_v31 = vld [vmem:[#allocation2 + $0x42] sm:$0xff] }
 0x6d8   : > { %11400 = vmatprep.mubr.bf16.mxu1 %v5806_v39  ;;  %v12413_v39 = vld [vmem:[%s16847_s4 + $0xc8] sm:$0xff]  }
 0x6df   : > { %11401 = vmatmul.mubr.bf16.gmra.mrb[32].mxu1 %v5807_v59  ;;  %v12478_v59 = vld [vmem:[#allocation2 + $0x2a] sm:$0xff] }
 0x6e0   : > { %11404 = vmatprep.mubr.bf16.mxu1 %v5808_v47  ;;  %v6198_v47 = vpack.c.bf16 %v12478_v59, %v12477_v56  ;;  %v6200_v56 = vpack.c.bf16 %v12482_v26, %v12481_v31 }
 0x6e7   : > { %11405 = vmatmul.mubr.bf16.gmra.mrb[36].mxu1 %v5809_v43  ;;  %v12479_v43 = vld [vmem:[#allocation2 + $0x32] sm:$0xff] }
 0x6e8   : > { %11424 = vmatprep.mubr.bf16.mxu1 %v6196_v42  ;;  %v6199_v42 = vpack.c.bf16 %v12480_v58, %v12479_v43  ;;  %v12485_v43 = vld [vmem:[#allocation2 + $0x62] sm:$0xff]  ;;  %v12486_v58 = vld [vmem:[#allocation2 + $0x6a] sm:$0xff] }
 0x6e9   : > { %v6202_v26 = vpack.c.bf16 %v12486_v58, %v12485_v43  ;;  %v6206_v58 = vpack.c.bf16 %v15895_v57, %v15867_v30 }
 0x6ef   : > { %11425 = vmatmul.mubr.bf16.vlgmr.msra.gmra.mrb[248].mxu1 %v6197_v8  ;;  %v12483_v8 = vld [vmem:[#allocation2 + $0x52] sm:$0xff] }
 0x6f0   : > { %11473 = vmatpush3.bf16.msra.mxu1 %v12412_v62  ;;  %11428 = vmatprep.mubr.bf16.mxu1 %v6198_v47  ;;  %v12416_v62 = vld [vmem:[%s16847_s4 + $0xe0] sm:$0xff]   ;;  %v12417_v47 = vld [vmem:[%s16847_s4 + $0xe8] sm:$0xff]  }
 0x6f1   : > { %11474 = vmatprep.subr.bf16.mxu1 %v12413_v39 }
 0x6f4   : > { %11475 = vmatpush3.bf16.msra.mxu1 %v12413_v39  ;;  %v12484_v39 = vld [vmem:[#allocation2 + $0x5a] sm:$0xff] }
 0x6f5   : > { %11476 = vmatprep.subr.bf16.mxu1 %v12414_v32  ;;  %v6201_v59 = vpack.c.bf16 %v12484_v39, %v12483_v8  ;;  %v12489_v8 = vld [vmem:[#allocation2 + $0x82] sm:$0xff]  ;;  %v12490_v39 = vld [vmem:[#allocation2 + $0x8a] sm:$0xff] }
 0x6f6   : > { %v6204_v43 = vpack.c.bf16 %v12490_v39, %v12489_v8  ;;  %v17387_v8 = vld [vmem:[#allocation14_spill] sm:$0xff]  ;;  %v17388_v39 = vld [vmem:[#allocation65_spill] sm:$0xff] }
 0x6f7   : > { %11429 = vmatmul.mubr.bf16.gmra.mrb[252].mxu1 %v6199_v42  ;;  %v12487_v42 = vld [vmem:[#allocation2 + $0x72] sm:$0xff] }
 0x6f8   : > { %11432 = vmatprep.mubr.bf16.mxu1 %v6200_v56  ;;  %11477 = vmatpush3.bf16.msra.mxu1 %v12414_v32  ;;  %v12418_v32 = vld [vmem:[%s16847_s4 + $0xf0] sm:$0xff]   ;;  %v12419_v56 = vld [vmem:[%s16847_s4 + $0xf8] sm:$0xff]  }
 0x6f9   : > { %11478 = vmatprep.subr.bf16.mxu1 %v12415_v0 }
 0x6fc   : > { %11479 = vmatpush3.bf16.msra.mxu1 %v12415_v0  ;;  %v12488_v0 = vld [vmem:[#allocation2 + $0x7a] sm:$0xff] }
 0x6fd   : > { %11480 = vmatprep.subr.bf16.mxu1 %v12416_v62  ;;  %v6203_v31 = vpack.c.bf16 %v12488_v0, %v12487_v42  ;;  %v17385_v0 = vld [vmem:[#allocation11_spill] sm:$0xff] }
 0x6ff   : > { %11433 = vmatmul.mubr.bf16.gmra.mrb[0].mxu1 %v6201_v59  ;;  %v12491_v59 = vld [vmem:[#allocation2 + $0x92] sm:$0xff] }
 0x700   : > { %11436 = vmatprep.mubr.bf16.mxu1 %v6202_v26  ;;  %11481 = vmatpush3.bf16.msra.mxu1 %v12416_v62  ;;  %v12420_v62 = vld [vmem:[%s16847_s4 + $0x100] sm:$0xff]   ;;  %v6207_v26 = vpack.c.bf16 %v15917_v23, %v15889_v41 }
 0x701   : > { %11482 = vmatprep.subr.bf16.mxu1 %v12417_v47  ;;  %v17392_v23 = vld [vmem:[#allocation71_spill] sm:$0xff] }
 0x704   : > { %11483 = vmatpush3.bf16.msra.mxu1 %v12417_v47  ;;  %v6205_v47 = vpack.c.bf16 %v15873_v54, %v12491_v59  ;;  %v17389_v59 = vld [vmem:[#allocation63_spill] sm:$0xff] }
 0x705   : > { %11484 = vmatprep.subr.bf16.mxu1 %v12418_v32 }
 0x707   : > { %11437 = vmatmul.mubr.bf16.gmra.mrb[4].mxu1 %v6203_v31  ;;  %v17386_v31 = vld [vmem:[#allocation17_spill] sm:$0xff] }
 0x708   : > { %11440 = vmatprep.mubr.bf16.mxu1 %v6204_v43  ;;  %11485 = vmatpush3.bf16.msra.mxu1 %v12418_v32  ;;  %v17384_v32 = vld [vmem:[#allocation12_spill] sm:$0xff]  ;;  %v6210_v43 = vpack.c.bf16 %v17388_v39, %v17387_v8 }
 0x709   : > { %11486 = vmatprep.subr.bf16.mxu1 %v12419_v56  ;;  %v6208_v42 = vpack.c.bf16 %v17384_v32, %v15911_v51  ;;  %v17393_v32 = vld [vmem:[#allocation77_spill] sm:$0xff]  ;;  %v17395_v51 = vld [vmem:[#allocation83_spill] sm:$0xff]  ;;  %v17397_v39 = vld [vmem:[#allocation88_spill] sm:$0xff] }
 0x70a   : > { %v17399_v8 = vld [vmem:[#allocation92_spill] sm:$0xff] }
 0x70c   : > { %11487 = vmatpush3.bf16.msra.mxu1 %v12419_v56  ;;  %v6209_v56 = vpack.c.bf16 %v17386_v31, %v17385_v0  ;;  %v17396_v31 = vld [vmem:[#allocation81_spill] sm:$0xff] }
 0x70d   : > { %11536 = vmatprep.subr.bf16.mxu1 %v12420_v62 }
 0x70f   : > { %11441 = vmatmul.mubr.bf16.gmra.mrb[8].mxu1 %v6205_v47  ;;  %v6211_v47 = vpack.c.bf16 %v16005_v37, %v17389_v59  ;;  %v17400_v37 = vld [vmem:[#allocation91_spill] sm:$0xff] }
 0x710   : > { %11444 = vmatprep.mubr.bf16.mxu1 %v6206_v58  ;;  %v17390_v58 = vld [vmem:[#allocation67_spill] sm:$0xff] }
 0x711   : > { %v6212_v63 = vpack.c.bf16 %v17391_v35, %v17390_v58 }
 0x717   : > { %11445 = vmatmul.mubr.bf16.gmra.mrb[12].mxu1 %v6207_v26  ;;  %v6213_v26 = vpack.c.bf16 %v17393_v32, %v17392_v23  ;;  %v16331_v32 = vld [vmem:[#allocation2 + $0x17a] sm:$0xff] }
 0x718   : > { %11448 = vmatprep.mubr.bf16.mxu1 %v6208_v42  ;;  %v17394_v42 = vld [vmem:[#allocation75_spill] sm:$0xff]  ;;  %17402 = vst [vmem:[#allocation63_spill] sm:$0xff] %v16331_v32 }
 0x719   : > { %v6214_v57 = vpack.c.bf16 %v17395_v51, %v17394_v42 }
 0x71f   : > { %11449 = vmatmul.mubr.bf16.gmra.mrb[16].mxu1 %v6209_v56  ;;  %v6215_v56 = vpack.c.bf16 %v17397_v39, %v17396_v31  ;;  %v6558_v39 = vld [vmem:[#allocation2 + $0x18] sm:$0xff] }
 0x720   : > { %11452 = vmatprep.mubr.bf16.mxu1 %v6210_v43  ;;  %v17398_v43 = vld [vmem:[#allocation87_spill] sm:$0xff]  ;;  %v17409_v31 = vld [vmem:[#allocation70_spill] sm:$0xff] }
 0x721   : > { %v6216_v0 = vpack.c.bf16 %v17399_v8, %v17398_v43  ;;  %v17408_v43 = vld [vmem:[#allocation64_spill] sm:$0xff] }
 0x727   : > { %11453 = vmatmul.mubr.bf16.gmra.mrb[20].mxu1 %v6211_v47  ;;  %v6217_v47 = vpack.c.bf16 %v16166_v27, %v17400_v37  ;;  %v12421_v27 = vld [vmem:[%s16847_s4 + $0x108] sm:$0xff]   ;;  %v17407_v37 = vld [vmem:[#allocation66_spill] sm:$0xff] }
 0x728   : > { %11456 = vmatprep.mubr.bf16.mxu1 %v6212_v63  ;;  %v17401_v63 = vld [vmem:[#allocation95_spill] sm:$0xff] }
 0x729   : > { %v6218_v35 = vpack.c.bf16 %v16183_v2, %v17401_v63  ;;  %v12493_v2 = vld [vmem:[#allocation2 + $0x38] sm:$0xff]  ;;  %v17406_v63 = vld [vmem:[#allocation15_spill] sm:$0xff] }
 0x72f   : > { %11457 = vmatmul.mubr.bf16.gmra.mrb[24].mxu1 %v6213_v26  ;;  %v6559_v26 = vld [vmem:[#allocation2 + $0x20] sm:$0xff] }
 0x730   : > { %11460 = vmatprep.mubr.bf16.mxu1 %v6214_v57  ;;  %v6219_v57 = vpack.c.bf16 %v16331_v32, %v16185_v53  ;;  %v6606_v51 = vpack.c.bf16 %v6559_v26, %v6558_v39  ;;  %v12422_v39 = vld [vmem:[%s16847_s4 + $0x110] sm:$0xff]   ;;  %v12498_v53 = vld [vmem:[#allocation2 + $0x60] sm:$0xff]  ;;  %v12511_v32 = vld [vmem:[#allocation2 + $0xc8] sm:$0xff] }
 0x731   : > { %v12496_v26 = vld [vmem:[#allocation2 + $0x50] sm:$0xff] }
 0x737   : > { %11461 = vmatmul.mubr.bf16.gmra.mrb[28].mxu1 %v6215_v56  ;;  %v6560_v56 = vld [vmem:[#allocation2 + $0x28] sm:$0xff] }
 0x738   : > { %11464 = vmatprep.mubr.bf16.mxu1 %v6216_v0  ;;  %v12492_v0 = vld [vmem:[#allocation2 + $0x30] sm:$0xff] }
 0x739   : > { %v6607_v8 = vpack.c.bf16 %v12492_v0, %v6560_v56  ;;  %v12423_v56 = vld [vmem:[%s16847_s4 + $0x118] sm:$0xff]  }
 0x73a   : > { %v12497_v0 = vld [vmem:[#allocation2 + $0x58] sm:$0xff] }
 0x73f   : > { %11465 = vmatmul.mubr.bf16.gmra.mrb[32].mxu1 %v6217_v47  ;;  %v12494_v47 = vld [vmem:[#allocation2 + $0x40] sm:$0xff] }
 0x740   : > { %11468 = vmatprep.mubr.bf16.mxu1 %v6218_v35  ;;  %v6608_v35 = vpack.c.bf16 %v12494_v47, %v12493_v2  ;;  %v6610_v2 = vpack.c.bf16 %v12498_v53, %v12497_v0 }
 0x747   : > { %11469 = vmatmul.mubr.bf16.gmra.mrb[36].mxu1 %v6219_v57 }
 0x748   : > { %11488 = vmatprep.mubr.bf16.mxu1 %v6606_v51  ;;  %v12495_v51 = vld [vmem:[#allocation2 + $0x48] sm:$0xff] }
 0x749   : > { %v6609_v57 = vpack.c.bf16 %v12496_v26, %v12495_v51  ;;  %v12501_v51 = vld [vmem:[#allocation2 + $0x78] sm:$0xff]  ;;  %v12502_v26 = vld [vmem:[#allocation2 + $0x80] sm:$0xff] }
 0x74a   : > { %v6612_v53 = vpack.c.bf16 %v12502_v26, %v12501_v51 }
 0x74f   : > { %11489 = vmatmul.mubr.bf16.vlgmr.msra.gmra.mrb[248].mxu1 %v6607_v8  ;;  %v12500_v8 = vld [vmem:[#allocation2 + $0x70] sm:$0xff] }
 0x750   : > { %11537 = vmatpush3.bf16.msra.mxu1 %v12420_v62  ;;  %11492 = vmatprep.mubr.bf16.mxu1 %v6608_v35  ;;  %v12424_v62 = vld [vmem:[%s16847_s4 + $0x120] sm:$0xff]   ;;  %v12425_v35 = vld [vmem:[%s16847_s4 + $0x128] sm:$0xff]  }
 0x751   : > { %11538 = vmatprep.subr.bf16.mxu1 %v12421_v27 }
 0x754   : > { %11539 = vmatpush3.bf16.msra.mxu1 %v12421_v27  ;;  %v12499_v27 = vld [vmem:[#allocation2 + $0x68] sm:$0xff] }
 0x755   : > { %11540 = vmatprep.subr.bf16.mxu1 %v12422_v39  ;;  %v6611_v47 = vpack.c.bf16 %v12500_v8, %v12499_v27  ;;  %v12505_v27 = vld [vmem:[#allocation2 + $0x98] sm:$0xff]  ;;  %v12506_v8 = vld [vmem:[#allocation2 + $0xa0] sm:$0xff] }
 0x756   : > { %v6614_v51 = vpack.c.bf16 %v12506_v8, %v12505_v27  ;;  %v17403_v27 = vld [vmem:[#allocation13_spill] sm:$0xff]  ;;  %v17404_v8 = vld [vmem:[#allocation20_spill] sm:$0xff] }
 0x757   : > { %11493 = vmatmul.mubr.bf16.gmra.mrb[252].mxu1 %v6609_v57  ;;  %v12503_v57 = vld [vmem:[#allocation2 + $0x88] sm:$0xff] }
 0x758   : > { %11496 = vmatprep.mubr.bf16.mxu1 %v6610_v2  ;;  %11541 = vmatpush3.bf16.msra.mxu1 %v12422_v39  ;;  %v12426_v39 = vld [vmem:[%s16847_s4 + $0x130] sm:$0xff]   ;;  %v12427_v2 = vld [vmem:[%s16847_s4 + $0x138] sm:$0xff]  }
 0x759   : > { %11542 = vmatprep.subr.bf16.mxu1 %v12423_v56 }
 0x75c   : > { %11543 = vmatpush3.bf16.msra.mxu1 %v12423_v56  ;;  %v12504_v56 = vld [vmem:[#allocation2 + $0x90] sm:$0xff] }
 0x75d   : > { %11544 = vmatprep.subr.bf16.mxu1 %v12424_v62  ;;  %v6613_v0 = vpack.c.bf16 %v12504_v56, %v12503_v57  ;;  %v12510_v57 = vld [vmem:[#allocation2 + $0xc0] sm:$0xff] }
 0x75f   : > { %11497 = vmatmul.mubr.bf16.gmra.mrb[0].mxu1 %v6611_v47  ;;  %v12507_v47 = vld [vmem:[#allocation2 + $0xa8] sm:$0xff] }
 0x760   : > { %11500 = vmatprep.mubr.bf16.mxu1 %v6612_v53  ;;  %11545 = vmatpush3.bf16.msra.mxu1 %v12424_v62  ;;  %v12428_v62 = vld [vmem:[%s16847_s4 + $0x140] sm:$0xff]   ;;  %v12509_v53 = vld [vmem:[#allocation2 + $0xb8] sm:$0xff] }
 0x761   : > { %11546 = vmatprep.subr.bf16.mxu1 %v12425_v35  ;;  %v6616_v56 = vpack.c.bf16 %v12510_v57, %v12509_v53  ;;  %v17411_v53 = vld [vmem:[#allocation74_spill] sm:$0xff]  ;;  %v17412_v57 = vld [vmem:[#allocation72_spill] sm:$0xff] }
 0x764   : > { %11547 = vmatpush3.bf16.msra.mxu1 %v12425_v35  ;;  %v12508_v35 = vld [vmem:[#allocation2 + $0xb0] sm:$0xff] }
 0x765   : > { %11548 = vmatprep.subr.bf16.mxu1 %v12426_v39  ;;  %v6615_v26 = vpack.c.bf16 %v12508_v35, %v12507_v47  ;;  %v6620_v47 = vpack.c.bf16 %v17409_v31, %v17408_v43  ;;  %v17410_v35 = vld [vmem:[#allocation68_spill] sm:$0xff]  ;;  %v17422_v43 = vld [vmem:[#allocation86_spill] sm:$0xff] }
 0x766   : > { %v17419_v31 = vld [vmem:[#allocation80_spill] sm:$0xff] }
 0x767   : > { %11501 = vmatmul.mubr.bf16.gmra.mrb[4].mxu1 %v6613_v0  ;;  %v6617_v0 = vpack.c.bf16 %v17403_v27, %v12511_v32  ;;  %v17414_v32 = vld [vmem:[#allocation76_spill] sm:$0xff]  ;;  %v17417_v27 = vld [vmem:[#allocation79_spill] sm:$0xff] }
 0x768   : > { %11504 = vmatprep.mubr.bf16.mxu1 %v6614_v51  ;;  %11549 = vmatpush3.bf16.msra.mxu1 %v12426_v39  ;;  %v17405_v39 = vld [vmem:[#allocation62_spill] sm:$0xff] }
 0x769   : > { %11550 = vmatprep.subr.bf16.mxu1 %v12427_v2  ;;  %v6618_v51 = vpack.c.bf16 %v17405_v39, %v17404_v8  ;;  %v17415_v39 = vld [vmem:[#allocation84_spill] sm:$0xff] }
 0x76c   : > { %11551 = vmatpush3.bf16.msra.mxu1 %v12427_v2  ;;  %v6619_v2 = vpack.c.bf16 %v17407_v37, %v17406_v63  ;;  %v17418_v37 = vld [vmem:[#allocation85_spill] sm:$0xff] }
 0x76d   : > { %11600 = vmatprep.subr.bf16.mxu1 %v12428_v62 }
 0x76f   : > { %11505 = vmatmul.mubr.bf16.gmra.mrb[8].mxu1 %v6615_v26  ;;  %v6621_v26 = vpack.c.bf16 %v17411_v53, %v17410_v35  ;;  %v17424_v35 = vld [vmem:[#allocation93_spill] sm:$0xff] }
 0x770   : > { %11508 = vmatprep.mubr.bf16.mxu1 %v6616_v56  ;;  %v17413_v56 = vld [vmem:[#allocation78_spill] sm:$0xff] }
 0x771   : > { %v6622_v42 = vpack.c.bf16 %v17413_v56, %v17412_v57  ;;  %v17425_v56 = vld [vmem:[#allocation90_spill] sm:$0xff] }
 0x772   : > { %v17428_v57 = vld [vmem:[#allocation94_spill] sm:$0xff] }
 0x777   : > { %11509 = vmatmul.mubr.bf16.gmra.mrb[12].mxu1 %v6617_v0  ;;  %v6623_v0 = vpack.c.bf16 %v17415_v39, %v17414_v32 }
 0x778   : > { %11512 = vmatprep.mubr.bf16.mxu1 %v6618_v51  ;;  %v17416_v51 = vld [vmem:[#allocation82_spill] sm:$0xff] }
 0x779   : > { %v6624_v8 = vpack.c.bf16 %v17417_v27, %v17416_v51  ;;  %v17430_v27 = vpack.c.bf16 %v16201_v20, %v16176_v44  ;;  %v12430_v44 = vld [vmem:[%s16847_s4 + $0x150] sm:$0xff]   ;;  %v12431_v20 = vld [vmem:[%s16847_s4 + $0x158] sm:$0xff]  }
 0x77f   : > { %11513 = vmatmul.mubr.bf16.gmra.mrb[16].mxu1 %v6619_v2  ;;  %v17420_v2 = vpack.c.bf16 %v17418_v37, %v17419_v31  ;;  %v12429_v31 = vld [vmem:[%s16847_s4 + $0x148] sm:$0xff]  }
 0x780   : > { %11516 = vmatprep.mubr.bf16.mxu1 %v6620_v47  ;;  %v17421_v47 = vld [vmem:[#allocation89_spill] sm:$0xff] }
 0x781   : > { %v17423_v53 = vpack.c.bf16 %v17421_v47, %v17422_v43  ;;  %v17434_v43 = vld [vmem:[#allocation23_spill] sm:$0xff] }
 0x782   : > { %v17441_v47 = vld [vmem:[#allocation39_spill] sm:$0xff] }
 0x787   : > { %11517 = vmatmul.mubr.bf16.gmra.mrb[20].mxu1 %v6621_v26  ;;  %v17426_v26 = vpack.c.bf16 %v17424_v35, %v17425_v56  ;;  %v17437_v56 = vld [vmem:[#allocation49_spill] sm:$0xff] }
 0x788   : > { %11520 = vmatprep.mubr.bf16.mxu1 %v6622_v42  ;;  %v17427_v42 = vld [vmem:[#allocation97_spill] sm:$0xff] }
 0x789   : > { %v17429_v39 = vpack.c.bf16 %v17427_v42, %v17428_v57  ;;  %v17438_v57 = vld [vmem:[#allocation38_spill] sm:$0xff]  ;;  %v17444_v42 = vld [vmem:[#allocation45_spill] sm:$0xff] }
 0x78f   : > { %11521 = vmatmul.mubr.bf16.gmra.mrb[24].mxu1 %v6623_v0  ;;  %v17432_v0 = vld [vmem:[#allocation19_spill] sm:$0xff] }
 0x790   : > { %11524 = vmatprep.mubr.bf16.mxu1 %v6624_v8  ;;  %v17431_v8 = vld [vmem:[#allocation32_spill] sm:$0xff] }
 0x791   : > { %v17433_v37 = vpack.c.bf16 %v17431_v8, %v17432_v0  ;;  %v12432_v8 = vld [vmem:[%s16847_s4 + $0x160] sm:$0xff]   ;;  %v12433_v0 = vld [vmem:[%s16847_s4 + $0x168] sm:$0xff]  }
 0x797   : > { %11525 = vmatmul.mubr.bf16.gmra.mrb[28].mxu1 %v17420_v2  ;;  %v17440_v2 = vld [vmem:[#allocation60_spill] sm:$0xff] }
 0x798   : > { %11528 = vmatprep.mubr.bf16.mxu1 %v17423_v53  ;;  %v17435_v53 = vld [vmem:[#allocation34_spill] sm:$0xff] }
 0x799   : > { %v17436_v35 = vpack.c.bf16 %v17434_v43, %v17435_v53  ;;  %v12434_v43 = vld [vmem:[%s16847_s4 + $0x170] sm:$0xff]   ;;  %v12435_v53 = vld [vmem:[%s16847_s4 + $0x178] sm:$0xff]  }
 0x79f   : > { %11529 = vmatmul.mubr.bf16.gmra.mrb[32].mxu1 %v17426_v26  ;;  %v17442_v26 = vpack.c.bf16 %v17440_v2, %v17441_v47  ;;  %v17481_v47 = vld [vmem:[#allocation35_spill] sm:$0xff] }
 0x7a0   : > { %11532 = vmatprep.mubr.bf16.mxu1 %v17429_v39  ;;  %v17439_v39 = vpack.c.bf16 %v17437_v56, %v17438_v57  ;;  %v12440_v57 = vld [vmem:[%s16847_s4 + $0x1a0] sm:$0xff]  }
 0x7a7   : > { %11533 = vmatmul.mubr.bf16.gmra.mrb[36].mxu1 %v17430_v27 }
 0x7a8   : > { %11552 = vmatprep.mubr.bf16.mxu1 %v17433_v37  ;;  %v17446_v37 = vpack.c.bf16 %v15793_v38, %v15791_v19  ;;  %v17448_v19 = vpack.c.bf16 %v15837_v25, %v15835_v11  ;;  %v12436_v38 = vld [vmem:[%s16847_s4 + $0x180] sm:$0xff]   ;;  %v17451_v11 = vpack.c.bf16 %v15909_v33, %v15907_v18  ;;  %v17452_v25 = vpack.c.bf16 %v15931_v15, %v15929_v28 }
 0x7a9   : > { %v17456_v33 = vpack.c.bf16 %v16019_v1, %v16017_v13  ;;  %v17457_v15 = vpack.c.bf16 %v16046_v10, %v16044_v45  ;;  %v17459_v28 = vpack.c.bf16 %v16103_v29, %v16101_v36  ;;  %v17460_v18 = vpack.c.bf16 %v16129_v52, %v16127_v49  ;;  %v17464_v13 = vld [vmem:[#allocation22_spill] sm:$0xff]  ;;  %v12437_v10 = vld [vmem:[%s16847_s4 + $0x188] sm:$0xff]   ;;  %v17470_v49 = vld [vmem:[#allocation51_spill] sm:$0xff] }
 0x7aa   : > { %v17466_v45 = vld [vmem:[#allocation24_spill] sm:$0xff]  ;;  %v17469_v36 = vld [vmem:[#allocation50_spill] sm:$0xff]  ;;  %v12438_v52 = vld [vmem:[%s16847_s4 + $0x190] sm:$0xff]  }
 0x7ab   : > { %v17471_v29 = vpack.c.bf16 %v17469_v36, %v17470_v49  ;;  %v17520_v36 = vld [vmem:[#allocation63_spill] sm:$0xff]  ;;  %v17521_v49 = vld [vmem:[#allocation100_spill] sm:$0xff] }
 0x7af   : > { %11553 = vmatmul.mubr.bf16.vlgmr.msra.gmra.mrb[248].mxu1 %v17436_v35  ;;  %v17476_v35 = vld [vmem:[#allocation29_spill] sm:$0xff] }
 0x7b0   : > { %11601 = vmatpush3.bf16.msra.mxu1 %v12428_v62  ;;  %11556 = vmatprep.mubr.bf16.mxu1 %v17439_v39  ;;  %v17443_v62 = vld [vmem:[#allocation26_spill] sm:$0xff]  ;;  %v12441_v39 = vld [vmem:[%s16847_s4 + $0x1a8] sm:$0xff]  }
 0x7b1   : > { %11602 = vmatprep.subr.bf16.mxu1 %v12429_v31  ;;  %v17445_v27 = vpack.c.bf16 %v17443_v62, %v17444_v42  ;;  %v12442_v42 = vld [vmem:[%s16847_s4 + $0x1b0] sm:$0xff]  }
 0x7b4   : > { %11603 = vmatpush3.bf16.msra.mxu1 %v12429_v31  ;;  %v17447_v31 = vpack.c.bf16 %v15815_v48, %v15813_v60  ;;  %v17449_v60 = vpack.c.bf16 %v15865_v61, %v15863_v21  ;;  %v17450_v48 = vpack.c.bf16 %v15887_v16, %v15885_v24  ;;  %v17453_v21 = vpack.c.bf16 %v15953_v55, %v15951_v34 }
 0x7b5   : > { %11604 = vmatprep.subr.bf16.mxu1 %v12430_v44  ;;  %v17454_v61 = vpack.c.bf16 %v15975_v50, %v15973_v7  ;;  %v17455_v24 = vpack.c.bf16 %v15997_v12, %v15995_v9  ;;  %v17458_v34 = vpack.c.bf16 %v16071_v14, %v16082_v46  ;;  %v17461_v16 = vpack.c.bf16 %v16155_v3, %v16153_v4  ;;  %v16481_v50 = vld [vmem:[#allocation2 + $0x191] sm:$0xff] }
 0x7b6   : > { %v7038_v55 = vpack.c.bf16 %v16219_v40, %v16276_v17  ;;  %v17462_v7 = vpack.c.bf16 %v16181_v5, %v16179_v6  ;;  %v7039_v9 = vpack.c.bf16 %v16481_v50, %v16221_v22  ;;  %v17463_v12 = vld [vmem:[#allocation21_spill] sm:$0xff]  ;;  %v17467_v14 = vld [vmem:[#allocation42_spill] sm:$0xff]  ;;  %v17473_v5 = vld [vmem:[#allocation43_spill] sm:$0xff] }
 0x7b7   : > { %11557 = vmatmul.mubr.bf16.gmra.mrb[252].mxu1 %v17442_v26  ;;  %v17465_v1 = vpack.c.bf16 %v17463_v12, %v17464_v13  ;;  %v17468_v46 = vpack.c.bf16 %v17466_v45, %v17467_v14  ;;  %v12439_v4 = vld [vmem:[%s16847_s4 + $0x198] sm:$0xff]   ;;  %v17472_v3 = vld [vmem:[#allocation53_spill] sm:$0xff]  ;;  %v17475_v17 = vld [vmem:[#allocation27_spill] sm:$0xff] }
 0x7b8   : > { %11560 = vmatprep.mubr.bf16.mxu1 %v17445_v27  ;;  %11605 = vmatpush3.bf16.msra.mxu1 %v12430_v44  ;;  %v17474_v6 = vpack.c.bf16 %v17472_v3, %v17473_v5  ;;  %v17477_v56 = vpack.c.bf16 %v17475_v17, %v17476_v35  ;;  %v17478_v44 = vld [vmem:[#allocation31_spill] sm:$0xff]  ;;  %v17482_v26 = vld [vmem:[#allocation37_spill] sm:$0xff]  ;;  %v12443_v27 = vld [vmem:[%s16847_s4 + $0x1b8] sm:$0xff]  }
 0x7b9   : > { %11606 = vmatprep.subr.bf16.mxu1 %v12431_v20  ;;  %v17483_v62 = vpack.c.bf16 %v17481_v47, %v17482_v26  ;;  %v17511_v13 = vld [vmem:[#allocation87_spill] sm:$0xff]  ;;  %v17515_v45 = vld [vmem:[#allocation92_spill] sm:$0xff]  ;;  %v16577_v5 = vld [vmem:[#allocation2 + $0x192] sm:$0xff] }
 0x7ba   : > { %v17517_v14 = vld [vmem:[#allocation95_spill] sm:$0xff]  ;;  %v17526_v35 = vld [vmem:[#allocation36_spill] sm:$0xff]  ;;  %v17532_v47 = vld [vmem:[#allocation54_spill] sm:$0xff] }
 0x7bb   : > { %v17533_v26 = vld [vmem:[#allocation44_spill] sm:$0xff] }
 0x7bc   : > { %11607 = vmatpush3.bf16.msra.mxu1 %v12431_v20  ;;  %v17479_v20 = vld [vmem:[#allocation33_spill] sm:$0xff] }
 0x7bd   : > { %11608 = vmatprep.subr.bf16.mxu1 %v12432_v8  ;;  %v17480_v2 = vpack.c.bf16 %v17478_v44, %v17479_v20  ;;  %v17529_v44 = vld [vmem:[#allocation7_spill] sm:$0xff]  ;;  %v17530_v20 = vld [vmem:[#allocation52_spill] sm:$0xff] }
 0x7bf   : > { %11561 = vmatmul.mubr.bf16.gmra.mrb[0].mxu1 %v17446_v37 }
 0x7c0   : > { %11564 = vmatprep.mubr.bf16.mxu1 %v17447_v31  ;;  %11609 = vmatpush3.bf16.msra.mxu1 %v12432_v8  ;;  %v17484_v8 = vld [vmem:[#allocation6_spill] sm:$0xff]  ;;  %v17487_v31 = vpack.c.bf16 %v15867_v30, %v15873_v54 }
 0x7c1   : > { %11610 = vmatprep.subr.bf16.mxu1 %v12433_v0  ;;  %v17496_v54 = vld [vmem:[#allocation14_spill] sm:$0xff] }
 0x7c4   : > { %11611 = vmatpush3.bf16.msra.mxu1 %v12433_v0  ;;  %v17485_v0 = vld [vmem:[#allocation8_spill] sm:$0xff] }
 0x7c5   : > { %11612 = vmatprep.subr.bf16.mxu1 %v12434_v43  ;;  %v17486_v37 = vpack.c.bf16 %v17484_v8, %v17485_v0  ;;  %v17535_v8 = vld [vmem:[#allocation28_spill] sm:$0xff]  ;;  %v17536_v0 = vld [vmem:[#allocation30_spill] sm:$0xff] }
 0x7c7   : > { %11565 = vmatmul.mubr.bf16.gmra.mrb[4].mxu1 %v17448_v19 }
 0x7c8   : > { %11568 = vmatprep.mubr.bf16.mxu1 %v17449_v60  ;;  %11613 = vmatpush3.bf16.msra.mxu1 %v12434_v43  ;;  %v12444_v43 = vld [vmem:[%s16847_s4 + $0x1c0] sm:$0xff]   ;;  %v17490_v60 = vld [vmem:[#allocation9_spill] sm:$0xff] }
 0x7c9   : > { %11614 = vmatprep.subr.bf16.mxu1 %v12435_v53 }
 0x7cc   : > { %11615 = vmatpush3.bf16.msra.mxu1 %v12435_v53  ;;  %v17488_v53 = vld [vmem:[#allocation47_spill] sm:$0xff] }
 0x7cd   : > { %11664 = vmatprep.subr.bf16.mxu1 %v12436_v38  ;;  %v17489_v19 = vpack.c.bf16 %v15889_v41, %v17488_v53 }
 0x7cf   : > { %11569 = vmatmul.mubr.bf16.gmra.mrb[8].mxu1 %v17450_v48 }
 0x7d0   : > { %11572 = vmatprep.mubr.bf16.mxu1 %v17451_v11  ;;  %v17493_v11 = vld [vmem:[#allocation11_spill] sm:$0xff] }
 0x7d7   : > { %11573 = vmatmul.mubr.bf16.gmra.mrb[12].mxu1 %v17452_v25  ;;  %v17494_v25 = vld [vmem:[#allocation12_spill] sm:$0xff] }
 0x7d8   : > { %11576 = vmatprep.mubr.bf16.mxu1 %v17453_v21  ;;  %v17495_v30 = vpack.c.bf16 %v17493_v11, %v17494_v25  ;;  %v17497_v21 = vld [vmem:[#allocation17_spill] sm:$0xff]  ;;  %v17544_v25 = vld [vmem:[#allocation59_spill] sm:$0xff] }
 0x7df   : > { %11577 = vmatmul.mubr.bf16.gmra.mrb[16].mxu1 %v17454_v61  ;;  %v17498_v61 = vpack.c.bf16 %v17496_v54, %v17497_v21  ;;  %v12450_v21 = vld [vmem:[%s16847_s4 + $0x1f0] sm:$0xff]  }
 0x7e0   : > { %11580 = vmatprep.mubr.bf16.mxu1 %v17455_v24  ;;  %v17499_v24 = vld [vmem:[#allocation65_spill] sm:$0xff] }
 0x7e7   : > { %11581 = vmatmul.mubr.bf16.gmra.mrb[20].mxu1 %v17456_v33  ;;  %v17500_v33 = vpack.c.bf16 %v17389_v59, %v17499_v24  ;;  %v17547_v24 = vld [vmem:[#allocation40_spill] sm:$0xff] }
 0x7e8   : > { %11584 = vmatprep.mubr.bf16.mxu1 %v17457_v15  ;;  %v17501_v15 = vld [vmem:[#allocation69_spill] sm:$0xff] }
 0x7e9   : > { %v17502_v41 = vpack.c.bf16 %v17390_v58, %v17501_v15 }
 0x7ef   : > { %11585 = vmatmul.mubr.bf16.gmra.mrb[24].mxu1 %v17458_v34  ;;  %v17503_v34 = vld [vmem:[#allocation73_spill] sm:$0xff] }
 0x7f0   : > { %11588 = vmatprep.mubr.bf16.mxu1 %v17459_v28  ;;  %v17504_v28 = vpack.c.bf16 %v17392_v23, %v17503_v34  ;;  %v17551_v34 = vld [vmem:[#allocation48_spill] sm:$0xff] }
 0x7f7   : > { %11589 = vmatmul.mubr.bf16.gmra.mrb[28].mxu1 %v17460_v18  ;;  %v17505_v18 = vld [vmem:[#allocation75_spill] sm:$0xff] }
 0x7f8   : > { %11592 = vmatprep.mubr.bf16.mxu1 %v17461_v16  ;;  %v17506_v16 = vld [vmem:[#allocation77_spill] sm:$0xff] }
 0x7ff   : > { %11593 = vmatmul.mubr.bf16.gmra.mrb[32].mxu1 %v17462_v7  ;;  %v17508_v7 = vld [vmem:[#allocation81_spill] sm:$0xff] }
 0x800   : > { %11596 = vmatprep.mubr.bf16.mxu1 %v7038_v55  ;;  %v17507_v55 = vpack.c.bf16 %v17505_v18, %v17506_v16  ;;  %v12452_v18 = vld [vmem:[%s16847_s4 + $0x200] sm:$0xff]   ;;  %v17553_v16 = vld [vmem:[#allocation16_spill] sm:$0xff] }
 0x807   : > { %11597 = vmatmul.mubr.bf16.gmra.mrb[36].mxu1 %v7039_v9  ;;  %v17509_v9 = vld [vmem:[#allocation83_spill] sm:$0xff] }
 0x808   : > { %11616 = vmatprep.mubr.bf16.mxu1 %v17465_v1  ;;  %v17510_v12 = vpack.c.bf16 %v17508_v7, %v17509_v9  ;;  %v17512_v1 = vld [vmem:[#allocation88_spill] sm:$0xff] }
 0x809   : > { %v17513_v59 = vpack.c.bf16 %v17511_v13, %v17512_v1  ;;  %v17556_v9 = vld [vmem:[#allocation20_spill] sm:$0xff]  ;;  %v17559_v1 = vld [vmem:[#allocation62_spill] sm:$0xff] }
 0x80f   : > { %11617 = vmatmul.mubr.bf16.vlgmr.msra.gmra.mrb[248].mxu1 %v17468_v46  ;;  %v17518_v46 = vld [vmem:[#allocation96_spill] sm:$0xff] }
 0x810   : > { %11665 = vmatpush3.bf16.msra.mxu1 %v12436_v38  ;;  %11620 = vmatprep.mubr.bf16.mxu1 %v17471_v29  ;;  %v17491_v38 = vld [vmem:[#allocation10_spill] sm:$0xff]  ;;  %v17519_v23 = vpack.c.bf16 %v17517_v14, %v17518_v46  ;;  %v7448_v29 = vpack.c.bf16 %v17521_v49, %v17520_v36  ;;  %v17564_v14 = vld [vmem:[#allocation68_spill] sm:$0xff] }
 0x811   : > { %11666 = vmatprep.subr.bf16.mxu1 %v12437_v10  ;;  %v17492_v48 = vpack.c.bf16 %v17490_v60, %v17491_v38  ;;  %v12449_v60 = vld [vmem:[%s16847_s4 + $0x1e8] sm:$0xff]   ;;  %v17541_v38 = vld [vmem:[#allocation57_spill] sm:$0xff]  ;;  %v17565_v46 = vld [vmem:[#allocation70_spill] sm:$0xff] }
 0x812   : > { %v17567_v36 = vld [vmem:[#allocation72_spill] sm:$0xff] }
 0x814   : > { %11667 = vmatpush3.bf16.msra.mxu1 %v12437_v10  ;;  %v17514_v10 = vld [vmem:[#allocation91_spill] sm:$0xff] }
 0x815   : > { %11668 = vmatprep.subr.bf16.mxu1 %v12438_v52  ;;  %v17516_v58 = vpack.c.bf16 %v17514_v10, %v17515_v45  ;;  %v17561_v10 = vld [vmem:[#allocation64_spill] sm:$0xff]  ;;  %v17562_v45 = vld [vmem:[#allocation66_spill] sm:$0xff] }
 0x817   : > { %11621 = vmatmul.mubr.bf16.gmra.mrb[252].mxu1 %v17474_v6  ;;  %v17525_v6 = vld [vmem:[#allocation101_spill] sm:$0xff] }
 0x818   : > { %11624 = vmatprep.mubr.bf16.mxu1 %v17477_v56  ;;  %11669 = vmatpush3.bf16.msra.mxu1 %v12438_v52  ;;  %v17522_v52 = vld [vmem:[#allocation99_spill] sm:$0xff]  ;;  %v7449_v17 = vpack.c.bf16 %v16577_v5, %v17525_v6  ;;  %v17527_v56 = vld [vmem:[#allocation25_spill] sm:$0xff] }
 0x819   : > { %11670 = vmatprep.subr.bf16.mxu1 %v12439_v4 }
 0x81c   : > { %11671 = vmatpush3.bf16.msra.mxu1 %v12439_v4  ;;  %v17523_v4 = vld [vmem:[#allocation98_spill] sm:$0xff] }
 0x81d   : > { %11672 = vmatprep.subr.bf16.mxu1 %v12440_v57  ;;  %v17524_v3 = vpack.c.bf16 %v17522_v52, %v17523_v4  ;;  %v17570_v4 = vld [vmem:[#allocation78_spill] sm:$0xff] }
 0x81f   : > { %11625 = vmatmul.mubr.bf16.gmra.mrb[0].mxu1 %v17480_v2  ;;  %v17531_v2 = vpack.c.bf16 %v17529_v44, %v17530_v20  ;;  %v7824_v44 = vld [vmem:[#allocation2 + $0x150] sm:$0xff] }
 0x820   : > { %11628 = vmatprep.mubr.bf16.mxu1 %v17483_v62  ;;  %11673 = vmatpush3.bf16.msra.mxu1 %v12440_v57  ;;  %v17528_v57 = vpack.c.bf16 %v17526_v35, %v17527_v56  ;;  %v17534_v62 = vpack.c.bf16 %v17532_v47, %v17533_v26  ;;  %v7823_v35 = vld [vmem:[#allocation2 + $0x148] sm:$0xff]  ;;  %v7825_v56 = vld [vmem:[#allocation2 + $0x158] sm:$0xff]  ;;  %v7826_v26 = vld [vmem:[#allocation2 + $0x160] sm:$0xff] }
 0x821   : > { %11674 = vmatprep.subr.bf16.mxu1 %v12441_v39  ;;  %v7854_v20 = vpack.c.bf16 %v7825_v56, %v7824_v44  ;;  %v7829_v47 = vld [vmem:[#allocation2 + $0x178] sm:$0xff] }
 0x822   : > { %v8218_v56 = vld [vmem:[#allocation2 + $0xd1] sm:$0xff]  ;;  %v8223_v44 = vld [vmem:[#allocation2 + $0xf9] sm:$0xff] }
 0x824   : > { %11675 = vmatpush3.bf16.msra.mxu1 %v12441_v39  ;;  %v12445_v39 = vld [vmem:[%s16847_s4 + $0x1c8] sm:$0xff]  }
 0x825   : > { %11676 = vmatprep.subr.bf16.mxu1 %v12442_v42 }
 0x827   : > { %11629 = vmatmul.mubr.bf16.gmra.mrb[4].mxu1 %v17486_v37  ;;  %v17537_v37 = vpack.c.bf16 %v17535_v8, %v17536_v0  ;;  %v7833_v8 = vld [vmem:[#allocation2 + $0x198] sm:$0xff] }
 0x828   : > { %11632 = vmatprep.mubr.bf16.mxu1 %v17487_v31  ;;  %11677 = vmatpush3.bf16.msra.mxu1 %v12442_v42  ;;  %v12446_v42 = vld [vmem:[%s16847_s4 + $0x1d0] sm:$0xff]   ;;  %v17538_v31 = vld [vmem:[#allocation55_spill] sm:$0xff] }
 0x829   : > { %11678 = vmatprep.subr.bf16.mxu1 %v12443_v27 }
 0x82c   : > { %11679 = vmatpush3.bf16.msra.mxu1 %v12443_v27  ;;  %v12447_v27 = vld [vmem:[%s16847_s4 + $0x1d8] sm:$0xff]  }
 0x82d   : > { %11728 = vmatprep.subr.bf16.mxu1 %v12444_v43 }
 0x82f   : > { %11633 = vmatmul.mubr.bf16.gmra.mrb[8].mxu1 %v17489_v19  ;;  %v12448_v19 = vld [vmem:[%s16847_s4 + $0x1e0] sm:$0xff]  }
 0x830   : > { %11636 = vmatprep.mubr.bf16.mxu1 %v17492_v48  ;;  %v17542_v48 = vld [vmem:[#allocation58_spill] sm:$0xff] }
 0x831   : > { %v17543_v11 = vpack.c.bf16 %v17541_v38, %v17542_v48  ;;  %v8198_v38 = vld [vmem:[#allocation2 + $0x31] sm:$0xff] }
 0x837   : > { %11637 = vmatmul.mubr.bf16.gmra.mrb[12].mxu1 %v17495_v30  ;;  %v17545_v30 = vld [vmem:[#allocation61_spill] sm:$0xff] }
 0x838   : > { %11640 = vmatprep.mubr.bf16.mxu1 %v17498_v61  ;;  %v17546_v54 = vpack.c.bf16 %v17544_v25, %v17545_v30  ;;  %v12451_v61 = vld [vmem:[%s16847_s4 + $0x1f8] sm:$0xff]   ;;  %v8200_v30 = vld [vmem:[#allocation2 + $0x41] sm:$0xff] }
 0x839   : > { %v8203_v25 = vld [vmem:[#allocation2 + $0x59] sm:$0xff] }
 0x83f   : > { %11641 = vmatmul.mubr.bf16.gmra.mrb[16].mxu1 %v17500_v33  ;;  %v17548_v33 = vld [vmem:[#allocation41_spill] sm:$0xff] }
 0x840   : > { %11644 = vmatprep.mubr.bf16.mxu1 %v17502_v41  ;;  %v17549_v15 = vpack.c.bf16 %v17547_v24, %v17548_v33  ;;  %v17550_v41 = vld [vmem:[#allocation46_spill] sm:$0xff]  ;;  %v12454_v33 = vld [vmem:[%s16847_s4 + $0x210] sm:$0xff]  }
 0x847   : > { %11645 = vmatmul.mubr.bf16.gmra.mrb[20].mxu1 %v17504_v28  ;;  %v17552_v28 = vpack.c.bf16 %v17550_v41, %v17551_v34  ;;  %v8207_v41 = vld [vmem:[#allocation2 + $0x79] sm:$0xff]  ;;  %v8204_v34 = vld [vmem:[#allocation2 + $0x61] sm:$0xff] }
 0x848   : > { %11648 = vmatprep.mubr.bf16.mxu1 %v17507_v55  ;;  %v17554_v55 = vld [vmem:[#allocation18_spill] sm:$0xff] }
 0x849   : > { %v17555_v7 = vpack.c.bf16 %v17553_v16, %v17554_v55  ;;  %v8206_v16 = vld [vmem:[#allocation2 + $0x71] sm:$0xff] }
 0x84a   : > { %v12455_v55 = vld [vmem:[%s16847_s4 + $0x218] sm:$0xff]  }
 0x84f   : > { %11649 = vmatmul.mubr.bf16.gmra.mrb[24].mxu1 %v17510_v12  ;;  %v17557_v12 = vld [vmem:[#allocation13_spill] sm:$0xff] }
 0x850   : > { %11652 = vmatprep.mubr.bf16.mxu1 %v17513_v59  ;;  %v17558_v13 = vpack.c.bf16 %v17556_v9, %v17557_v12  ;;  %v17560_v59 = vpack.c.bf16 %v17406_v63, %v17559_v1  ;;  %v8209_v9 = vld [vmem:[#allocation2 + $0x89] sm:$0xff]  ;;  %v8211_v12 = vld [vmem:[#allocation2 + $0x99] sm:$0xff] }
 0x857   : > { %11653 = vmatmul.mubr.bf16.gmra.mrb[28].mxu1 %v17516_v58  ;;  %v17563_v58 = vpack.c.bf16 %v17561_v10, %v17562_v45  ;;  %v12457_v10 = vld [vmem:[%s16847_s4 + $0x228] sm:$0xff]  }
 0x858   : > { %11656 = vmatprep.mubr.bf16.mxu1 %v17519_v23  ;;  %v17566_v23 = vpack.c.bf16 %v17564_v14, %v17565_v46  ;;  %v8213_v14 = vld [vmem:[#allocation2 + $0xa9] sm:$0xff]  ;;  %v8215_v46 = vld [vmem:[#allocation2 + $0xb9] sm:$0xff] }
 0x85f   : > { %11657 = vmatmul.mubr.bf16.gmra.mrb[32].mxu1 %v17524_v3  ;;  %v17571_v3 = vpack.c.bf16 %v17414_v32, %v17570_v4  ;;  %v7831_v32 = vld [vmem:[#allocation2 + $0x188] sm:$0xff] }
 0x860   : > { %11660 = vmatprep.mubr.bf16.mxu1 %v7448_v29  ;;  %v17568_v29 = vld [vmem:[#allocation74_spill] sm:$0xff] }
 0x861   : > { %v17569_v52 = vpack.c.bf16 %v17567_v36, %v17568_v29  ;;  %v8214_v29 = vld [vmem:[#allocation2 + $0xb1] sm:$0xff] }
 0x862   : > { %v8254_v4 = vpack.c.bf16 %v8215_v46, %v8214_v29  ;;  %v8616_v46 = vld [vmem:[#allocation2 + $0x72] sm:$0xff]  ;;  %v8621_v29 = vld [vmem:[#allocation2 + $0x9a] sm:$0xff] }
 0x867   : > { %11661 = vmatmul.mubr.bf16.gmra.mrb[36].mxu1 %v7449_v17  ;;  %v17572_v17 = vld [vmem:[#allocation84_spill] sm:$0xff] }
 0x868   : > { %11680 = vmatprep.mubr.bf16.mxu1 %v17528_v57  ;;  %v17573_v63 = vpack.c.bf16 %v17416_v51, %v17572_v17  ;;  %v7822_v57 = vld [vmem:[#allocation2 + $0x140] sm:$0xff] }
 0x869   : > { %v7830_v51 = vld [vmem:[#allocation2 + $0x180] sm:$0xff] }
 0x86a   : > { %v7857_v0 = vpack.c.bf16 %v7831_v32, %v7830_v51  ;;  %v8219_v17 = vld [vmem:[#allocation2 + $0xd9] sm:$0xff] }
 0x86f   : > { %11681 = vmatmul.mubr.bf16.vlgmr.msra.gmra.mrb[248].mxu1 %v17531_v2  ;;  %v7827_v2 = vld [vmem:[#allocation2 + $0x168] sm:$0xff] }
 0x870   : > { %11729 = vmatpush3.bf16.msra.mxu1 %v12444_v43  ;;  %11684 = vmatprep.mubr.bf16.mxu1 %v17534_v62  ;;  %v17539_v43 = vld [vmem:[#allocation56_spill] sm:$0xff]  ;;  %v7855_v62 = vpack.c.bf16 %v7827_v2, %v7826_v26 }
 0x871   : > { %11730 = vmatprep.subr.bf16.mxu1 %v12445_v39  ;;  %v17540_v53 = vpack.c.bf16 %v17538_v31, %v17539_v43  ;;  %v7835_v43 = vld [vmem:[#allocation2 + $0x1a8] sm:$0xff] }
 0x874   : > { %11731 = vmatpush3.bf16.msra.mxu1 %v12445_v39  ;;  %v7853_v39 = vpack.c.bf16 %v7823_v35, %v7822_v57  ;;  %v8256_v57 = vpack.c.bf16 %v8219_v17, %v8218_v56  ;;  %v8622_v56 = vld [vmem:[#allocation2 + $0xa2] sm:$0xff] }
 0x875   : > { %11732 = vmatprep.subr.bf16.mxu1 %v12446_v42 }
 0x877   : > { %11685 = vmatmul.mubr.bf16.gmra.mrb[252].mxu1 %v17537_v37  ;;  %v7832_v37 = vld [vmem:[#allocation2 + $0x190] sm:$0xff] }
 0x878   : > { %11688 = vmatprep.mubr.bf16.mxu1 %v17540_v53  ;;  %11733 = vmatpush3.bf16.msra.mxu1 %v12446_v42  ;;  %v7828_v42 = vld [vmem:[#allocation2 + $0x170] sm:$0xff]  ;;  %v7858_v31 = vpack.c.bf16 %v7833_v8, %v7832_v37  ;;  %v8199_v53 = vld [vmem:[#allocation2 + $0x39] sm:$0xff] }
 0x879   : > { %11734 = vmatprep.subr.bf16.mxu1 %v12447_v27  ;;  %v8246_v48 = vpack.c.bf16 %v8199_v53, %v8198_v38  ;;  %v8226_v8 = vld [vmem:[#allocation2 + $0x111] sm:$0xff]  ;;  %v8231_v37 = vld [vmem:[#allocation2 + $0x139] sm:$0xff] }
 0x87a   : > { %v8230_v53 = vld [vmem:[#allocation2 + $0x131] sm:$0xff]  ;;  %v8235_v38 = vld [vmem:[#allocation2 + $0x159] sm:$0xff] }
 0x87c   : > { %11735 = vmatpush3.bf16.msra.mxu1 %v12447_v27  ;;  %v7856_v27 = vpack.c.bf16 %v7829_v47, %v7828_v42  ;;  %v8222_v47 = vld [vmem:[#allocation2 + $0xf1] sm:$0xff]  ;;  %v8227_v42 = vld [vmem:[#allocation2 + $0x119] sm:$0xff] }
 0x87d   : > { %11736 = vmatprep.subr.bf16.mxu1 %v12448_v19  ;;  %v8258_v26 = vpack.c.bf16 %v8223_v44, %v8222_v47  ;;  %v8260_v51 = vpack.c.bf16 %v8227_v42, %v8226_v8  ;;  %v8626_v47 = vld [vmem:[#allocation2 + $0xc2] sm:$0xff] }
 0x87e   : > { %v8630_v8 = vld [vmem:[#allocation2 + $0xe2] sm:$0xff] }
 0x87f   : > { %11689 = vmatmul.mubr.bf16.gmra.mrb[0].mxu1 %v17543_v11  ;;  %v8201_v11 = vld [vmem:[#allocation2 + $0x49] sm:$0xff] }
 0x880   : > { %11692 = vmatprep.mubr.bf16.mxu1 %v17546_v54  ;;  %11737 = vmatpush3.bf16.msra.mxu1 %v12448_v19  ;;  %v7834_v19 = vld [vmem:[#allocation2 + $0x1a0] sm:$0xff]  ;;  %v8247_v54 = vpack.c.bf16 %v8201_v11, %v8200_v30 }
 0x881   : > { %11738 = vmatprep.subr.bf16.mxu1 %v12449_v60 }
 0x884   : > { %11739 = vmatpush3.bf16.msra.mxu1 %v12449_v60  ;;  %v7859_v60 = vpack.c.bf16 %v7835_v43, %v7834_v19  ;;  %v8262_v19 = vpack.c.bf16 %v8231_v37, %v8230_v53  ;;  %v8634_v53 = vld [vmem:[#allocation2 + $0x102] sm:$0xff] }
 0x885   : > { %11740 = vmatprep.subr.bf16.mxu1 %v12450_v21 }
 0x887   : > { %11693 = vmatmul.mubr.bf16.gmra.mrb[4].mxu1 %v17549_v15  ;;  %v8205_v15 = vld [vmem:[#allocation2 + $0x69] sm:$0xff] }
 0x888   : > { %11696 = vmatprep.mubr.bf16.mxu1 %v17552_v28  ;;  %11741 = vmatpush3.bf16.msra.mxu1 %v12450_v21  ;;  %v8202_v21 = vld [vmem:[#allocation2 + $0x51] sm:$0xff]  ;;  %v8249_v28 = vpack.c.bf16 %v8205_v15, %v8204_v34 }
 0x889   : > { %11742 = vmatprep.subr.bf16.mxu1 %v12451_v61  ;;  %v8248_v24 = vpack.c.bf16 %v8203_v25, %v8202_v21  ;;  %v8234_v25 = vld [vmem:[#allocation2 + $0x151] sm:$0xff]  ;;  %v8239_v21 = vld [vmem:[#allocation2 + $0x179] sm:$0xff] }
 0x88a   : > { %v8264_v30 = vpack.c.bf16 %v8235_v38, %v8234_v25  ;;  %v8638_v25 = vld [vmem:[#allocation2 + $0x122] sm:$0xff] }
 0x88c   : > { %11743 = vmatpush3.bf16.msra.mxu1 %v12451_v61  ;;  %v12453_v61 = vld [vmem:[%s16847_s4 + $0x208] sm:$0xff]  }
 0x88d   : > { %11792 = vmatprep.subr.bf16.mxu1 %v12452_v18 }
 0x88f   : > { %11697 = vmatmul.mubr.bf16.gmra.mrb[8].mxu1 %v17555_v7  ;;  %v8250_v7 = vpack.c.bf16 %v8207_v41, %v8206_v16  ;;  %v8243_v41 = vld [vmem:[#allocation2 + $0x199] sm:$0xff]  ;;  %v8244_v16 = vld [vmem:[#allocation2 + $0x1a1] sm:$0xff] }
 0x890   : > { %11700 = vmatprep.mubr.bf16.mxu1 %v17558_v13  ;;  %v8208_v13 = vld [vmem:[#allocation2 + $0x81] sm:$0xff]  ;;  %v8268_v34 = vpack.c.bf16 %v8243_v41, %v16481_v50  ;;  %v8615_v50 = vld [vmem:[#allocation2 + $0x6a] sm:$0xff]  ;;  %v8644_v41 = vld [vmem:[#allocation2 + $0x152] sm:$0xff] }
 0x891   : > { %v8251_v1 = vpack.c.bf16 %v8209_v9, %v8208_v13  ;;  %v8608_v9 = vld [vmem:[#allocation2 + $0x32] sm:$0xff]  ;;  %v8611_v13 = vld [vmem:[#allocation2 + $0x4a] sm:$0xff] }
 0x897   : > { %11701 = vmatmul.mubr.bf16.gmra.mrb[12].mxu1 %v17560_v59  ;;  %v8210_v59 = vld [vmem:[#allocation2 + $0x91] sm:$0xff] }
 0x898   : > { %11704 = vmatprep.mubr.bf16.mxu1 %v17563_v58  ;;  %v8252_v45 = vpack.c.bf16 %v8211_v12, %v8210_v59  ;;  %v12458_v58 = vld [vmem:[%s16847_s4 + $0x230] sm:$0xff]   ;;  %v8610_v59 = vld [vmem:[#allocation2 + $0x42] sm:$0xff] }
 0x89f   : > { %11705 = vmatmul.mubr.bf16.gmra.mrb[16].mxu1 %v17566_v23  ;;  %v8212_v23 = vld [vmem:[#allocation2 + $0xa1] sm:$0xff] }
 0x8a0   : > { %11708 = vmatprep.mubr.bf16.mxu1 %v17569_v52  ;;  %v8253_v36 = vpack.c.bf16 %v8213_v14, %v8212_v23  ;;  %v12459_v52 = vld [vmem:[%s16847_s4 + $0x238] sm:$0xff]  }
 0x8a7   : > { %11709 = vmatmul.mubr.bf16.gmra.mrb[20].mxu1 %v17571_v3  ;;  %v8217_v3 = vld [vmem:[#allocation2 + $0xc9] sm:$0xff] }
 0x8a8   : > { %11712 = vmatprep.mubr.bf16.mxu1 %v17573_v63  ;;  %v8216_v63 = vld [vmem:[#allocation2 + $0xc1] sm:$0xff] }
 0x8a9   : > { %v8255_v35 = vpack.c.bf16 %v8217_v3, %v8216_v63  ;;  %v8620_v3 = vld [vmem:[#allocation2 + $0x92] sm:$0xff]  ;;  %v8623_v63 = vld [vmem:[#allocation2 + $0xaa] sm:$0xff] }
 0x8aa   : > { %v8662_v17 = vpack.c.bf16 %v8621_v29, %v8620_v3 }
 0x8af   : > { %11713 = vmatmul.mubr.bf16.gmra.mrb[24].mxu1 %v7853_v39  ;;  %v8221_v39 = vld [vmem:[#allocation2 + $0xe9] sm:$0xff] }
 0x8b0   : > { %11716 = vmatprep.mubr.bf16.mxu1 %v7854_v20  ;;  %v8220_v20 = vld [vmem:[#allocation2 + $0xe1] sm:$0xff] }
 0x8b1   : > { %v8257_v2 = vpack.c.bf16 %v8221_v39, %v8220_v20  ;;  %v8624_v39 = vld [vmem:[#allocation2 + $0xb2] sm:$0xff]  ;;  %v8627_v20 = vld [vmem:[#allocation2 + $0xca] sm:$0xff] }
 0x8b7   : > { %11717 = vmatmul.mubr.bf16.gmra.mrb[28].mxu1 %v7855_v62  ;;  %v8225_v62 = vld [vmem:[#allocation2 + $0x109] sm:$0xff] }
 0x8b8   : > { %11720 = vmatprep.mubr.bf16.mxu1 %v7856_v27  ;;  %v8224_v27 = vld [vmem:[#allocation2 + $0x101] sm:$0xff] }
 0x8b9   : > { %v8259_v32 = vpack.c.bf16 %v8225_v62, %v8224_v27  ;;  %v8628_v62 = vld [vmem:[#allocation2 + $0xd2] sm:$0xff]  ;;  %v8631_v27 = vld [vmem:[#allocation2 + $0xea] sm:$0xff] }
 0x8bf   : > { %11721 = vmatmul.mubr.bf16.gmra.mrb[32].mxu1 %v7857_v0  ;;  %v8229_v0 = vld [vmem:[#allocation2 + $0x129] sm:$0xff] }
 0x8c0   : > { %11724 = vmatprep.mubr.bf16.mxu1 %v7858_v31  ;;  %v8228_v31 = vld [vmem:[#allocation2 + $0x121] sm:$0xff] }
 0x8c1   : > { %v8261_v43 = vpack.c.bf16 %v8229_v0, %v8228_v31  ;;  %v8632_v0 = vld [vmem:[#allocation2 + $0xf2] sm:$0xff]  ;;  %v8635_v31 = vld [vmem:[#allocation2 + $0x10a] sm:$0xff] }
 0x8c7   : > { %11725 = vmatmul.mubr.bf16.gmra.mrb[36].mxu1 %v7859_v60  ;;  %v8233_v60 = vld [vmem:[#allocation2 + $0x149] sm:$0xff] }
 0x8c8   : > { %11744 = vmatprep.mubr.bf16.mxu1 %v8246_v48  ;;  %v8232_v48 = vld [vmem:[#allocation2 + $0x141] sm:$0xff] }
 0x8c9   : > { %v8263_v11 = vpack.c.bf16 %v8233_v60, %v8232_v48  ;;  %v8636_v60 = vld [vmem:[#allocation2 + $0x112] sm:$0xff]  ;;  %v8639_v48 = vld [vmem:[#allocation2 + $0x12a] sm:$0xff] }
 0x8cf   : > { %11745 = vmatmul.mubr.bf16.vlgmr.msra.gmra.mrb[248].mxu1 %v8247_v54  ;;  %v8237_v54 = vld [vmem:[#allocation2 + $0x169] sm:$0xff] }
 0x8d0   : > { %11793 = vmatpush3.bf16.msra.mxu1 %v12452_v18  ;;  %11748 = vmatprep.mubr.bf16.mxu1 %v8248_v24  ;;  %v12456_v18 = vld [vmem:[%s16847_s4 + $0x220] sm:$0xff]  }
 0x8d1   : > { %11794 = vmatprep.subr.bf16.mxu1 %v12453_v61 }
 0x8d4   : > { %11795 = vmatpush3.bf16.msra.mxu1 %v12453_v61  ;;  %v8236_v61 = vld [vmem:[#allocation2 + $0x161] sm:$0xff] }
 0x8d5   : > { %11796 = vmatprep.subr.bf16.mxu1 %v12454_v33  ;;  %v8265_v24 = vpack.c.bf16 %v8237_v54, %v8236_v61  ;;  %v8640_v54 = vld [vmem:[#allocation2 + $0x132] sm:$0xff]  ;;  %v8643_v61 = vld [vmem:[#allocation2 + $0x14a] sm:$0xff] }
 0x8d7   : > { %11749 = vmatmul.mubr.bf16.gmra.mrb[252].mxu1 %v8249_v28  ;;  %v17574_v28 = vpack.c.bf16 %v16221_v22, %v16219_v40  ;;  %v8617_v40 = vld [vmem:[#allocation2 + $0x7a] sm:$0xff]  ;;  %v8614_v22 = vld [vmem:[#allocation2 + $0x62] sm:$0xff] }
 0x8d8   : > { %11752 = vmatprep.mubr.bf16.mxu1 %v8250_v7  ;;  %11797 = vmatpush3.bf16.msra.mxu1 %v12454_v33  ;;  %v8238_v33 = vld [vmem:[#allocation2 + $0x171] sm:$0xff]  ;;  %v8609_v7 = vld [vmem:[#allocation2 + $0x3a] sm:$0xff]  ;;  %v8659_v14 = vpack.c.bf16 %v8615_v50, %v8614_v22  ;;  %v8660_v23 = vpack.c.bf16 %v8617_v40, %v8616_v46 }
 0x8d9   : > { %11798 = vmatprep.subr.bf16.mxu1 %v12455_v55  ;;  %v8266_v15 = vpack.c.bf16 %v8239_v21, %v8238_v33  ;;  %v8656_v12 = vpack.c.bf16 %v8609_v7, %v8608_v9  ;;  %v8642_v33 = vld [vmem:[#allocation2 + $0x142] sm:$0xff] }
 0x8dc   : > { %11799 = vmatpush3.bf16.msra.mxu1 %v12455_v55  ;;  %v8245_v55 = vld [vmem:[#allocation2 + $0x1a9] sm:$0xff] }
 0x8dd   : > { %11800 = vmatprep.subr.bf16.mxu1 %v12456_v18 }
 0x8df   : > { %11753 = vmatmul.mubr.bf16.gmra.mrb[0].mxu1 %v8251_v1  ;;  %v8613_v1 = vld [vmem:[#allocation2 + $0x5a] sm:$0xff] }
 0x8e0   : > { %11756 = vmatprep.mubr.bf16.mxu1 %v8252_v45  ;;  %11801 = vmatpush3.bf16.msra.mxu1 %v12456_v18  ;;  %v8269_v18 = vpack.c.bf16 %v8245_v55, %v8244_v16  ;;  %v8612_v45 = vld [vmem:[#allocation2 + $0x52] sm:$0xff]  ;;  %v8649_v16 = vld [vmem:[#allocation2 + $0x17a] sm:$0xff]  ;;  %v8646_v55 = vld [vmem:[#allocation2 + $0x162] sm:$0xff] }
 0x8e1   : > { %11802 = vmatprep.subr.bf16.mxu1 %v12457_v10 }
 0x8e4   : > { %11803 = vmatpush3.bf16.msra.mxu1 %v12457_v10  ;;  %v8657_v10 = vpack.c.bf16 %v8611_v13, %v8610_v59  ;;  %v8654_v59 = vld [vmem:[#allocation2 + $0x1a2] sm:$0xff] }
 0x8e5   : > { %11804 = vmatprep.subr.bf16.mxu1 %v12458_v58 }
 0x8e7   : > { %11757 = vmatmul.mubr.bf16.gmra.mrb[4].mxu1 %v8253_v36  ;;  %v8619_v36 = vld [vmem:[#allocation2 + $0x8a] sm:$0xff] }
 0x8e8   : > { %11760 = vmatprep.mubr.bf16.mxu1 %v8254_v4  ;;  %11805 = vmatpush3.bf16.msra.mxu1 %v12458_v58  ;;  %v8658_v58 = vpack.c.bf16 %v8613_v1, %v8612_v45  ;;  %v17575_v1 = vpack.c.bf16 %v17525_v6, %v17521_v49 }
 0x8e9   : > { %11806 = vmatprep.subr.bf16.mxu1 %v12459_v52 }
 0x8ec   : > { %11807 = vmatpush3.bf16.msra.mxu1 %v12459_v52  ;;  %v8618_v52 = vld [vmem:[#allocation2 + $0x82] sm:$0xff] }
 0x8ed   : > { %v8661_v4 = vpack.c.bf16 %v8619_v36, %v8618_v52 }
 0x8ef   : > { %11761 = vmatmul.mubr.bf16.gmra.mrb[8].mxu1 %v8255_v35  ;;  %v8625_v35 = vld [vmem:[#allocation2 + $0xba] sm:$0xff] }
 0x8f0   : > { %11764 = vmatprep.mubr.bf16.mxu1 %v8256_v57  ;;  %v8663_v57 = vpack.c.bf16 %v8623_v63, %v8622_v56  ;;  %v8664_v44 = vpack.c.bf16 %v8625_v35, %v8624_v39 }
 0x8f7   : > { %11765 = vmatmul.mubr.bf16.gmra.mrb[12].mxu1 %v8257_v2  ;;  %v8629_v2 = vld [vmem:[#allocation2 + $0xda] sm:$0xff] }
 0x8f8   : > { %11768 = vmatprep.mubr.bf16.mxu1 %v8258_v26  ;;  %v8665_v26 = vpack.c.bf16 %v8627_v20, %v8626_v47  ;;  %v8666_v42 = vpack.c.bf16 %v8629_v2, %v8628_v62 }
 0x8ff   : > { %11769 = vmatmul.mubr.bf16.gmra.mrb[16].mxu1 %v8259_v32  ;;  %v8633_v32 = vld [vmem:[#allocation2 + $0xfa] sm:$0xff] }
 0x900   : > { %11772 = vmatprep.mubr.bf16.mxu1 %v8260_v51  ;;  %v8667_v51 = vpack.c.bf16 %v8631_v27, %v8630_v8  ;;  %v8668_v37 = vpack.c.bf16 %v8633_v32, %v8632_v0 }
 0x907   : > { %11773 = vmatmul.mubr.bf16.gmra.mrb[20].mxu1 %v8261_v43  ;;  %v8637_v43 = vld [vmem:[#allocation2 + $0x11a] sm:$0xff] }
 0x908   : > { %11776 = vmatprep.mubr.bf16.mxu1 %v8262_v19  ;;  %v8669_v19 = vpack.c.bf16 %v8635_v31, %v8634_v53  ;;  %v8670_v38 = vpack.c.bf16 %v8637_v43, %v8636_v60 }
 0x90f   : > { %11777 = vmatmul.mubr.bf16.gmra.mrb[24].mxu1 %v8263_v11  ;;  %v8641_v11 = vld [vmem:[#allocation2 + $0x13a] sm:$0xff] }
 0x910   : > { %11780 = vmatprep.mubr.bf16.mxu1 %v8264_v30  ;;  %v8671_v30 = vpack.c.bf16 %v8639_v48, %v8638_v25  ;;  %v8672_v21 = vpack.c.bf16 %v8641_v11, %v8640_v54 }
 0x917   : > { %11781 = vmatmul.mubr.bf16.gmra.mrb[28].mxu1 %v8265_v24  ;;  %v8645_v24 = vld [vmem:[#allocation2 + $0x15a] sm:$0xff] }
 0x918   : > { %11784 = vmatprep.mubr.bf16.mxu1 %v8266_v15  ;;  %v8673_v15 = vpack.c.bf16 %v8643_v61, %v8642_v33 }
 0x91f   : > { %11785 = vmatmul.mubr.bf16.gmra.mrb[32].mxu1 %v17574_v28  ;;  %v8647_v28 = vld [vmem:[#allocation2 + $0x16a] sm:$0xff] }
 0x920   : > { %11788 = vmatprep.mubr.bf16.mxu1 %v8268_v34  ;;  %v8674_v34 = vpack.c.bf16 %v8645_v24, %v8644_v41  ;;  %v8675_v7 = vpack.c.bf16 %v8647_v28, %v8646_v55 }
 0x927   : > { %11789 = vmatmul.mubr.bf16.gmra.mrb[36].mxu1 %v8269_v18  ;;  %v8648_v18 = vld [vmem:[#allocation2 + $0x172] sm:$0xff] }
 0x928   : > { %11808 = vmatprep.mubr.bf16.mxu1 %v8656_v12  ;;  %v8676_v9 = vpack.c.bf16 %v8649_v16, %v8648_v18  ;;  %v8653_v12 = vld [vmem:[#allocation2 + $0x19a] sm:$0xff] }
 0x929   : > { %v8678_v13 = vpack.c.bf16 %v8653_v12, %v16577_v5 }
 0x92f   : > { %11809 = vmatmul.mubr.bf16.vlgmr.msra.gmra.mrb[248].mxu1 %v8657_v10  ;;  %v8655_v10 = vld [vmem:[#allocation2 + $0x1aa] sm:$0xff] }
 0x930   : > { %11812 = vmatprep.mubr.bf16.mxu1 %v8658_v58  ;;  %v8679_v45 = vpack.c.bf16 %v8655_v10, %v8654_v59  ;;  %v16691_v58 = vld [vmem:[%s16849_s6] ss:$0 sm:$0xff] }
 0x937   : > { %11813 = vmatmul.mubr.bf16.gmra.mrb[252].mxu1 %v8659_v14 }
 0x938   : > { %11816 = vmatprep.mubr.bf16.mxu1 %v8660_v23 }
 0x93f   : > { %11817 = vmatmul.mubr.bf16.gmra.mrb[0].mxu1 %v8661_v4 }
 0x940   : > { %11820 = vmatprep.mubr.bf16.mxu1 %v8662_v17 }
 0x947   : > { %11821 = vmatmul.mubr.bf16.gmra.mrb[4].mxu1 %v8663_v57 }
 0x948   : > { %11824 = vmatprep.mubr.bf16.mxu1 %v8664_v44 }
 0x94f   : > { %11825 = vmatmul.mubr.bf16.gmra.mrb[8].mxu1 %v8665_v26 }
 0x950   : > { %11828 = vmatprep.mubr.bf16.mxu1 %v8666_v42 }
 0x957   : > { %11829 = vmatmul.mubr.bf16.gmra.mrb[12].mxu1 %v8667_v51 }
 0x958   : > { %11832 = vmatprep.mubr.bf16.mxu1 %v8668_v37 }
 0x95f   : > { %11833 = vmatmul.mubr.bf16.gmra.mrb[16].mxu1 %v8669_v19 }
 0x960   : > { %11836 = vmatprep.mubr.bf16.mxu1 %v8670_v38 }
 0x967   : > { %11837 = vmatmul.mubr.bf16.gmra.mrb[20].mxu1 %v8671_v30 }
 0x968   : > { %11840 = vmatprep.mubr.bf16.mxu1 %v8672_v21 }
 0x96f   : > { %11841 = vmatmul.mubr.bf16.gmra.mrb[24].mxu1 %v8673_v15 }
 0x970   : > { %11844 = vmatprep.mubr.bf16.mxu1 %v8674_v34 }
 0x977   : > { %11845 = vmatmul.mubr.bf16.gmra.mrb[28].mxu1 %v8675_v7 }
 0x978   : > { %11848 = vmatprep.mubr.bf16.mxu1 %v8676_v9 }
 0x97f   : > { %11849 = vmatmul.mubr.bf16.gmra.mrb[32].mxu1 %v17575_v1 }
 0x980   : > { %11852 = vmatprep.mubr.bf16.mxu1 %v8678_v13 }
 0x987   : > { %11853 = vmatmul.mubr.bf16.gmra.mrb[36].mxu1 %v8679_v45 }
 0xa02   : > { %v11810_v50 = vpop.f32.mrb[248].mxu1 }
 0xa03   : > { %v11858_v5 = vadd.f32 %v11810_v50, %v16691_v58  ;;  %v8779_v40 = vpop.f32.mrb[249].mxu1 }
 0xa04   : > { %v11859_v49 = vadd.f32 %v16691_v58, %v8779_v40  ;;  %v11811_v6 = vpop.f32.mrb[250].mxu1 }
 0xa05   : > { %v9020_v22 = vmax.f32 %v11858_v5, 0.0  ;;  %v11860_v14 = vadd.f32 %v11811_v6, %v16691_v58  ;;  %v8782_v46 = vpop.f32.mrb[251].mxu1 }
 0xa06   : > { %v9018_v23 = vmax.f32 %v11859_v49, 0.0  ;;  %v11861_v36 = vadd.f32 %v16691_v58, %v8782_v46 }
 0xa07   : > { %9068 = vst [vmem:[%s16697_s14 + $0x10] sm:$0xff] %v9020_v22  ;;  %v9021_v29 = vmax.f32 %v11860_v14, 0.0 }
 0xa08   : > { %9066 = vst [vmem:[%s16697_s14] sm:$0xff] %v9018_v23  ;;  %v9019_v52 = vmax.f32 %v11861_v36, 0.0 }
 0xa09   : > { %9069 = vst [vmem:[%s16697_s14 + $0x18] sm:$0xff] %v9021_v29 }
 0xa0a   : > { %9067 = vst [vmem:[%s16697_s14 + $0x8] sm:$0xff] %v9019_v52  ;;  %v11814_v4 = vpop.f32.mrb[252].mxu1 }
 0xa0b   : > { %v11862_v3 = vadd.f32 %v11814_v4, %v16691_v58  ;;  %v8795_v17 = vpop.f32.mrb[253].mxu1 }
 0xa0c   : > { %v11863_v63 = vadd.f32 %v16691_v58, %v8795_v17  ;;  %v11815_v35 = vpop.f32.mrb[254].mxu1 }
 0xa0d   : > { %v9024_v56 = vmax.f32 %v11862_v3, 0.0  ;;  %v11864_v57 = vadd.f32 %v11815_v35, %v16691_v58  ;;  %v8798_v39 = vpop.f32.mrb[255].mxu1 }
 0xa0e   : > { %v9022_v44 = vmax.f32 %v11863_v63, 0.0  ;;  %v11865_v20 = vadd.f32 %v16691_v58, %v8798_v39 }
 0xa0f   : > { %9072 = vst [vmem:[%s16697_s14 + $0x30] sm:$0xff] %v9024_v56  ;;  %v9025_v2 = vmax.f32 %v11864_v57, 0.0 }
 0xa10   : > { %9070 = vst [vmem:[%s16697_s14 + $0x20] sm:$0xff] %v9022_v44  ;;  %v9023_v47 = vmax.f32 %v11865_v20, 0.0 }
 0xa11   : > { %9073 = vst [vmem:[%s16697_s14 + $0x38] sm:$0xff] %v9025_v2 }
 0xa12   : > { %9071 = vst [vmem:[%s16697_s14 + $0x28] sm:$0xff] %v9023_v47  ;;  %v11818_v26 = vpop.f32.mrb[0].mxu1 }
 0xa13   : > { %v11866_v62 = vadd.f32 %v11818_v26, %v16691_v58  ;;  %v8811_v42 = vpop.f32.mrb[1].mxu1 }
 0xa14   : > { %v11867_v27 = vadd.f32 %v16691_v58, %v8811_v42  ;;  %v11819_v32 = vpop.f32.mrb[2].mxu1 }
 0xa15   : > { %v9028_v8 = vmax.f32 %v11866_v62, 0.0  ;;  %v11868_v51 = vadd.f32 %v11819_v32, %v16691_v58  ;;  %v8814_v0 = vpop.f32.mrb[3].mxu1 }
 0xa16   : > { %v9026_v37 = vmax.f32 %v11867_v27, 0.0  ;;  %v11869_v31 = vadd.f32 %v16691_v58, %v8814_v0 }
 0xa17   : > { %9076 = vst [vmem:[%s16697_s14 + $0x50] sm:$0xff] %v9028_v8  ;;  %v9029_v43 = vmax.f32 %v11868_v51, 0.0 }
 0xa18   : > { %9074 = vst [vmem:[%s16697_s14 + $0x40] sm:$0xff] %v9026_v37  ;;  %v9027_v53 = vmax.f32 %v11869_v31, 0.0 }
 0xa19   : > { %9077 = vst [vmem:[%s16697_s14 + $0x58] sm:$0xff] %v9029_v43 }
 0xa1a   : > { %9075 = vst [vmem:[%s16697_s14 + $0x48] sm:$0xff] %v9027_v53  ;;  %v11822_v19 = vpop.f32.mrb[4].mxu1 }
 0xa1b   : > { %v11870_v60 = vadd.f32 %v11822_v19, %v16691_v58  ;;  %v8827_v38 = vpop.f32.mrb[5].mxu1 }
 0xa1c   : > { %v11871_v48 = vadd.f32 %v16691_v58, %v8827_v38  ;;  %v11823_v11 = vpop.f32.mrb[6].mxu1 }
 0xa1d   : > { %v9032_v25 = vmax.f32 %v11870_v60, 0.0  ;;  %v11872_v30 = vadd.f32 %v11823_v11, %v16691_v58  ;;  %v8830_v54 = vpop.f32.mrb[7].mxu1 }
 0xa1e   : > { %v9030_v21 = vmax.f32 %v11871_v48, 0.0  ;;  %v11873_v61 = vadd.f32 %v16691_v58, %v8830_v54 }
 0xa1f   : > { %9080 = vst [vmem:[%s16697_s14 + $0x70] sm:$0xff] %v9032_v25  ;;  %v9033_v24 = vmax.f32 %v11872_v30, 0.0 }
 0xa20   : > { %9078 = vst [vmem:[%s16697_s14 + $0x60] sm:$0xff] %v9030_v21  ;;  %v9031_v33 = vmax.f32 %v11873_v61, 0.0 }
 0xa21   : > { %9081 = vst [vmem:[%s16697_s14 + $0x78] sm:$0xff] %v9033_v24 }
 0xa22   : > { %9079 = vst [vmem:[%s16697_s14 + $0x68] sm:$0xff] %v9031_v33  ;;  %v11826_v15 = vpop.f32.mrb[8].mxu1 }
 0xa23   : > { %v11874_v41 = vadd.f32 %v11826_v15, %v16691_v58  ;;  %v8843_v34 = vpop.f32.mrb[9].mxu1 }
 0xa24   : > { %v11875_v28 = vadd.f32 %v16691_v58, %v8843_v34  ;;  %v11827_v16 = vpop.f32.mrb[10].mxu1 }
 0xa25   : > { %v9036_v55 = vmax.f32 %v11874_v41, 0.0  ;;  %v11876_v7 = vadd.f32 %v11827_v16, %v16691_v58  ;;  %v8846_v18 = vpop.f32.mrb[11].mxu1 }
 0xa26   : > { %v9034_v9 = vmax.f32 %v11875_v28, 0.0  ;;  %v11877_v12 = vadd.f32 %v16691_v58, %v8846_v18 }
 0xa27   : > { %9084 = vst [vmem:[%s16697_s14 + $0x90] sm:$0xff] %v9036_v55  ;;  %v9037_v13 = vmax.f32 %v11876_v7, 0.0 }
 0xa28   : > { %9082 = vst [vmem:[%s16697_s14 + $0x80] sm:$0xff] %v9034_v9  ;;  %v9035_v1 = vmax.f32 %v11877_v12, 0.0 }
 0xa29   : > { %9085 = vst [vmem:[%s16697_s14 + $0x98] sm:$0xff] %v9037_v13 }
 0xa2a   : > { %9083 = vst [vmem:[%s16697_s14 + $0x88] sm:$0xff] %v9035_v1  ;;  %v11830_v59 = vpop.f32.mrb[12].mxu1 }
 0xa2b   : > { %v11878_v10 = vadd.f32 %v11830_v59, %v16691_v58  ;;  %v8859_v45 = vpop.f32.mrb[13].mxu1 }
 0xa2c   : > { %v11879_v50 = vadd.f32 %v16691_v58, %v8859_v45  ;;  %v11831_v5 = vpop.f32.mrb[14].mxu1 }
 0xa2d   : > { %v9040_v40 = vmax.f32 %v11878_v10, 0.0  ;;  %v11880_v49 = vadd.f32 %v11831_v5, %v16691_v58  ;;  %v8862_v6 = vpop.f32.mrb[15].mxu1 }
 0xa2e   : > { %v9038_v22 = vmax.f32 %v11879_v50, 0.0  ;;  %v11881_v14 = vadd.f32 %v16691_v58, %v8862_v6 }
 0xa2f   : > { %9088 = vst [vmem:[%s16697_s14 + $0xb0] sm:$0xff] %v9040_v40  ;;  %v9041_v46 = vmax.f32 %v11880_v49, 0.0 }
 0xa30   : > { %9086 = vst [vmem:[%s16697_s14 + $0xa0] sm:$0xff] %v9038_v22  ;;  %v9039_v23 = vmax.f32 %v11881_v14, 0.0 }
 0xa31   : > { %9089 = vst [vmem:[%s16697_s14 + $0xb8] sm:$0xff] %v9041_v46 }
 0xa32   : > { %9087 = vst [vmem:[%s16697_s14 + $0xa8] sm:$0xff] %v9039_v23  ;;  %v11834_v36 = vpop.f32.mrb[16].mxu1 }
 0xa33   : > { %v11882_v29 = vadd.f32 %v11834_v36, %v16691_v58  ;;  %v8875_v52 = vpop.f32.mrb[17].mxu1 }
 0xa34   : > { %v11883_v4 = vadd.f32 %v16691_v58, %v8875_v52  ;;  %v11835_v3 = vpop.f32.mrb[18].mxu1 }
 0xa35   : > { %v9044_v17 = vmax.f32 %v11882_v29, 0.0  ;;  %v11884_v63 = vadd.f32 %v11835_v3, %v16691_v58  ;;  %v8878_v35 = vpop.f32.mrb[19].mxu1 }
 0xa36   : > { %v9042_v56 = vmax.f32 %v11883_v4, 0.0  ;;  %v11885_v57 = vadd.f32 %v16691_v58, %v8878_v35 }
 0xa37   : > { %9092 = vst [vmem:[%s16697_s14 + $0xd0] sm:$0xff] %v9044_v17  ;;  %v9045_v39 = vmax.f32 %v11884_v63, 0.0 }
 0xa38   : > { %9090 = vst [vmem:[%s16697_s14 + $0xc0] sm:$0xff] %v9042_v56  ;;  %v9043_v44 = vmax.f32 %v11885_v57, 0.0 }
 0xa39   : > { %9093 = vst [vmem:[%s16697_s14 + $0xd8] sm:$0xff] %v9045_v39 }
 0xa3a   : > { %9091 = vst [vmem:[%s16697_s14 + $0xc8] sm:$0xff] %v9043_v44  ;;  %v11838_v20 = vpop.f32.mrb[20].mxu1 }
 0xa3b   : > { %v11886_v2 = vadd.f32 %v11838_v20, %v16691_v58  ;;  %v8891_v47 = vpop.f32.mrb[21].mxu1 }
 0xa3c   : > { %v11887_v26 = vadd.f32 %v16691_v58, %v8891_v47  ;;  %v11839_v62 = vpop.f32.mrb[22].mxu1 }
 0xa3d   : > { %v9048_v42 = vmax.f32 %v11886_v2, 0.0  ;;  %v11888_v27 = vadd.f32 %v11839_v62, %v16691_v58  ;;  %v8894_v32 = vpop.f32.mrb[23].mxu1 }
 0xa3e   : > { %v9046_v8 = vmax.f32 %v11887_v26, 0.0  ;;  %v11889_v51 = vadd.f32 %v16691_v58, %v8894_v32 }
 0xa3f   : > { %9096 = vst [vmem:[%s16697_s14 + $0xf0] sm:$0xff] %v9048_v42  ;;  %v9049_v0 = vmax.f32 %v11888_v27, 0.0 }
 0xa40   : > { %9094 = vst [vmem:[%s16697_s14 + $0xe0] sm:$0xff] %v9046_v8  ;;  %v9047_v37 = vmax.f32 %v11889_v51, 0.0 }
 0xa41   : > { %9097 = vst [vmem:[%s16697_s14 + $0xf8] sm:$0xff] %v9049_v0 }
 0xa42   : > { %9095 = vst [vmem:[%s16697_s14 + $0xe8] sm:$0xff] %v9047_v37  ;;  %v11842_v31 = vpop.f32.mrb[24].mxu1 }
 0xa43   : > { %v11890_v43 = vadd.f32 %v11842_v31, %v16691_v58  ;;  %v8907_v53 = vpop.f32.mrb[25].mxu1 }
 0xa44   : > { %v11891_v19 = vadd.f32 %v16691_v58, %v8907_v53  ;;  %v11843_v60 = vpop.f32.mrb[26].mxu1 }
 0xa45   : > { %v9052_v38 = vmax.f32 %v11890_v43, 0.0  ;;  %v11892_v48 = vadd.f32 %v11843_v60, %v16691_v58  ;;  %v8910_v11 = vpop.f32.mrb[27].mxu1 }
 0xa46   : > { %v9050_v25 = vmax.f32 %v11891_v19, 0.0  ;;  %v11893_v30 = vadd.f32 %v16691_v58, %v8910_v11 }
 0xa47   : > { %9100 = vst [vmem:[%s16697_s14 + $0x110] sm:$0xff] %v9052_v38  ;;  %v9053_v54 = vmax.f32 %v11892_v48, 0.0 }
 0xa48   : > { %9098 = vst [vmem:[%s16697_s14 + $0x100] sm:$0xff] %v9050_v25  ;;  %v9051_v21 = vmax.f32 %v11893_v30, 0.0 }
 0xa49   : > { %9101 = vst [vmem:[%s16697_s14 + $0x118] sm:$0xff] %v9053_v54 }
 0xa4a   : > { %9099 = vst [vmem:[%s16697_s14 + $0x108] sm:$0xff] %v9051_v21  ;;  %v11846_v61 = vpop.f32.mrb[28].mxu1 }
 0xa4b   : > { %v11894_v24 = vadd.f32 %v11846_v61, %v16691_v58  ;;  %v8923_v33 = vpop.f32.mrb[29].mxu1 }
 0xa4c   : > { %v11895_v15 = vadd.f32 %v16691_v58, %v8923_v33  ;;  %v11847_v41 = vpop.f32.mrb[30].mxu1 }
 0xa4d   : > { %v9056_v34 = vmax.f32 %v11894_v24, 0.0  ;;  %v11896_v28 = vadd.f32 %v11847_v41, %v16691_v58  ;;  %v8926_v16 = vpop.f32.mrb[31].mxu1 }
 0xa4e   : > { %v9054_v55 = vmax.f32 %v11895_v15, 0.0  ;;  %v11897_v7 = vadd.f32 %v16691_v58, %v8926_v16 }
 0xa4f   : > { %9104 = vst [vmem:[%s16697_s14 + $0x130] sm:$0xff] %v9056_v34  ;;  %v9057_v18 = vmax.f32 %v11896_v28, 0.0 }
 0xa50   : > { %9102 = vst [vmem:[%s16697_s14 + $0x120] sm:$0xff] %v9054_v55  ;;  %v9055_v9 = vmax.f32 %v11897_v7, 0.0 }
 0xa51   : > { %9105 = vst [vmem:[%s16697_s14 + $0x138] sm:$0xff] %v9057_v18 }
 0xa52   : > { %9103 = vst [vmem:[%s16697_s14 + $0x128] sm:$0xff] %v9055_v9  ;;  %v11850_v12 = vpop.f32.mrb[32].mxu1 }
 0xa53   : > { %v11898_v13 = vadd.f32 %v11850_v12, %v16691_v58  ;;  %v8939_v1 = vpop.f32.mrb[33].mxu1 }
 0xa54   : > { %v11899_v59 = vadd.f32 %v16691_v58, %v8939_v1  ;;  %v11851_v10 = vpop.f32.mrb[34].mxu1 }
 0xa55   : > { %v9060_v45 = vmax.f32 %v11898_v13, 0.0  ;;  %v11900_v50 = vadd.f32 %v11851_v10, %v16691_v58  ;;  %v8942_v5 = vpop.f32.mrb[35].mxu1 }
 0xa56   : > { %v9058_v40 = vmax.f32 %v11899_v59, 0.0  ;;  %v11901_v49 = vadd.f32 %v16691_v58, %v8942_v5 }
 0xa57   : > { %9108 = vst [vmem:[%s16697_s14 + $0x150] sm:$0xff] %v9060_v45  ;;  %v9061_v6 = vmax.f32 %v11900_v50, 0.0 }
 0xa58   : > { %9106 = vst [vmem:[%s16697_s14 + $0x140] sm:$0xff] %v9058_v40  ;;  %v9059_v22 = vmax.f32 %v11901_v49, 0.0 }
 0xa59   : > { %9109 = vst [vmem:[%s16697_s14 + $0x158] sm:$0xff] %v9061_v6 }
 0xa5a   : > { %9107 = vst [vmem:[%s16697_s14 + $0x148] sm:$0xff] %v9059_v22  ;;  %v11854_v14 = vpop.f32.mrb[36].mxu1 }
 0xa5b   : > { %v11902_v46 = vadd.f32 %v11854_v14, %v16691_v58  ;;  %v8955_v23 = vpop.f32.mrb[37].mxu1 }
 0xa5c   : > { %v11903_v36 = vadd.f32 %v16691_v58, %v8955_v23  ;;  %v11855_v29 = vpop.f32.mrb[38].mxu1 }
 0xa5d   : > { %v9064_v52 = vmax.f32 %v11902_v46, 0.0  ;;  %v11904_v4 = vadd.f32 %v11855_v29, %v16691_v58  ;;  %v8958_v3 = vpop.f32.mrb[39].mxu1 }
 0xa5e   : > { %v9062_v17 = vmax.f32 %v11903_v36, 0.0  ;;  %v11905_v63 = vadd.f32 %v16691_v58, %v8958_v3 }
 0xa5f   : > { %9112 = vst [vmem:[%s16697_s14 + $0x170] sm:$0xff] %v9064_v52  ;;  %v9065_v35 = vmax.f32 %v11904_v4, 0.0 }
 0xa60   : > { %9110 = vst [vmem:[%s16697_s14 + $0x160] sm:$0xff] %v9062_v17  ;;  %v9063_v56 = vmax.f32 %v11905_v63, 0.0 }
 0xa61   : > { %9113 = vst [vmem:[%s16697_s14 + $0x178] sm:$0xff] %v9065_v35 }
 0xa62   : > { %9111 = vst [vmem:[%s16697_s14 + $0x168] sm:$0xff] %v9063_v56 }
 0xa63   : > { %12525 = shalt.err (!%p12522_p3)
}
 0xa64   : > { %s12526_s29 = scalar_lea.hbm %s16793_s28, 6144  ;;  %s12530_s13 = scalar_lea.hbm %s16850_s7, 12288 }
 0xa65   : > { %p12527_p4 = scmp.ne.s32.totalorder %s16793_s28, %s12526_s29  ;;  %p12531_p9 = scmp.lt.u32.totalorder %s16793_s28, %s16850_s7 }
 0xa66   : > { %p12532_p10 = scmp.lt.u32.totalorder %s12530_s13, %s12526_s29  ;;  %p12534_p12 = scmp.lt.u32.totalorder %s12526_s29, %s16793_s28 }
 0xa67   : > { %p12528_p7 = pnand %p12527_p4, %p12660_p5 }
 0xa68   : > { %p12533_p11 = por %p12532_p10, %p12531_p9 }
 0xa69   : > { %p12529_p8 = pneg %p12528_p7 }
 0xa6a   : > { %p12535_p13 = por %p12534_p12, %p12533_p11 }
 0xa6c   : > { %p12536_p0 = pnand %p12535_p13, %p12529_p8 }
 0xa6e   : > { %12539 = shalt.err (!%p12536_p0)
}
 0xa6f   : > { %s12580_s17 = smov 128   ;;  %s12581_s18 = smov 8  }
 0xa70   : > { %12342 = dma.vmem_to_hbm [thread:$0]  (%p12660_p5), %s16796_s16, 6144, %s16793_s28, %s16802_s19, %s12580_s17, %s12580_s17, %s12581_s18  }
 0xa71 PF: > { %p12348_p1 = scmp.ge.s32.totalorder %s12574_s27, 2  ;;  %s9143_s21 = sand.u32 1, %s12562_s24  }
 0xa72   : > { %s9144_s20 = scalar_lea.sflag [#allocation4], %s9143_s21 }
 0xa73   : > { %p12345_p2 = pnand %p12348_p1, %p12664_p6 }
 0xa75   : > { %12557 = dma.done.wait (!%p12345_p2), %s9144_s20, 6144  }
 0xa76   : > { %12559 = vsyncadd (!%p12345_p2), %s9144_s20, 4294961152  ;;  %p17_p3 = scmp.ge.s32.totalorder %s12647_s30, 4   ;;  %s17576_s24 = smov %s12566_s25 }
 0xa77   : > { %s17577_s25 = smov %s12570_s26  ;;  %s17578_s26 = smov %s12658_s10 }
 0xa78   : > { %s17579_s27 = smov %s12647_s30  ;;  %19 = sbr.rel (!%p17_p3) target bundleno = 3 (0x3), region = 99 }
 0xa7f   :  { %9149 = vsyncpa [#allocation4], 1 }
 0xa80   :  { %9151 = vsyncpa [#allocation4 + $0x1], 1 }

</bundles_post_ra>
